<compile_context>
chip_gen: v7x
topology: tpu7x:2x2x1
jax: 0.10.0
libtpu: 0.0.40
codegen_flags: <defaults>
</compile_context>

<pallas_src>
import functools
import math

import jax
import jax.numpy as jnp
from jax.experimental import pallas as pl

QUANT_NAMES = ("q10", "q25", "q75", "q90")
_EPS = 1e-5
_NEG_BIG = -1e30


# ----------------------------------------------------------------------------
# The single fused forward kernel
# ----------------------------------------------------------------------------

def _fused_forward_kernel(
    x_ref,
    w_in_ref, b_in_ref,
    msa_wqkv_ref, msa_bqkv_ref, msa_wo_ref, msa_bo_ref,
    msa_wf_ref, msa_bf_ref, msa_g_ref, msa_b_ref,
    enc_wqkv_ref, enc_bqkv_ref, enc_wo_ref, enc_bo_ref,
    enc_g1_ref, enc_b1_ref, enc_g2_ref, enc_b2_ref,
    enc_w1_ref, enc_bf1_ref, enc_w2_ref, enc_bf2_ref,
    lstm_wih0_ref, lstm_b0_ref, lstm_whh0_ref,
    lstm_wih1_ref, lstm_b1_ref, lstm_whh1f_ref,
    hw1_ref, hb1_ref, hw2_ref, hb2_ref, hw3_ref, hb3_ref,
    qw_ref, qb_ref,
    out_ref,
    *, batch, seq, d_model, num_heads, num_layers, starts, scale, eps, horizon):
  B, S, D, nH = batch, seq, d_model, num_heads
  Dh = D // nH
  H = D                       # LSTM hidden_size == d_model
  H4 = 4 * H

  def mm(a, b):
    return jnp.dot(a, b, preferred_element_type=jnp.float32)

  def qkt(q, k):              # q @ k^T without materializing a transpose
    return jax.lax.dot_general(q, k, (((1,), (1,)), ((), ())),
                               preferred_element_type=jnp.float32)

  def layer_norm(y, g, b):
    mu = jnp.mean(y, axis=-1, keepdims=True)
    var = jnp.mean((y - mu) ** 2, axis=-1, keepdims=True)
    return (y - mu) * jax.lax.rsqrt(var + eps) * g + b

  def softmax_rows(s):
    m = jnp.max(s, axis=-1, keepdims=True)
    p = jnp.exp(s - m)
    return p / jnp.sum(p, axis=-1, keepdims=True)

  def sigmoid(z):             # exact (review: approx reciprocal drifts in LSTM)
    return 1.0 / (1.0 + jnp.exp(-z))

  def lstm_cell(gates, c_prev):   # PyTorch gate order i, f, g, o
    i = sigmoid(gates[:, 0 * H:1 * H])
    f = sigmoid(gates[:, 1 * H:2 * H])
    g = jnp.tanh(gates[:, 2 * H:3 * H])
    o = sigmoid(gates[:, 3 * H:4 * H])
    c_new = f * c_prev + i * g
    return o * jnp.tanh(c_new), c_new

  key_pos = jax.lax.broadcasted_iota(jnp.int32, (S, S), 1)
  row_pos = jax.lax.broadcasted_iota(jnp.int32, (S, 1), 0)

  def mha_heads(qkv_b, mask_start):
    # qkv_b: (S, 3D) lanes laid out [Q | K | V]; returns (S, D) head concat.
    heads = []
    for hh in range(nH):
      q = qkv_b[:, hh * Dh:(hh + 1) * Dh]
      k = qkv_b[:, D + hh * Dh:D + (hh + 1) * Dh]
      v = qkv_b[:, 2 * D + hh * Dh:2 * D + (hh + 1) * Dh]
      s = qkt(q, k) * scale
      if mask_start > 0:                    # branch window: keys >= start
        s = jnp.where(key_pos >= mask_start, s, _NEG_BIG)
      heads.append(mm(softmax_rows(s), v))
    return jnp.concatenate(heads, axis=1)

  # ---- 1) input projection (batch flattened, batch-major rows) -------------
  h = mm(x_ref[...], w_in_ref[...]) + b_in_ref[...]               # (B*S, D)

  # ---- 2) multi-scale attention: one packed QKV for all branches & heads ---
  qkv_all = mm(h, msa_wqkv_ref[...]) + msa_bqkv_ref[...]          # (B*S, 9D)
  per_batch = []
  for b in range(B):
    r0 = b * S
    branch_outs = []
    for c, start in enumerate(starts):      # short, medium, long
      qkv_b = qkv_all[r0:r0 + S, c * 3 * D:(c + 1) * 3 * D]
      attn = mm(mha_heads(qkv_b, start), msa_wo_ref[c]) + msa_bo_ref[c]
      if start > 0:                         # reference zero-pads rows < start
        attn = jnp.where(row_pos >= start, attn, 0.0)
      branch_outs.append(attn)
    per_batch.append(jnp.concatenate(branch_outs, axis=1))        # (S, 3D)
  branch_cat = jnp.concatenate(per_batch, axis=0)                 # (B*S, 3D)
  h = layer_norm(mm(branch_cat, msa_wf_ref[...]) + msa_bf_ref[...] + h,
                 msa_g_ref[...], msa_b_ref[...])

  # ---- 3) transformer encoder layers (norm_first=True, relu FFN) -----------
  for l in range(num_layers):
    xn = layer_norm(h, enc_g1_ref[l], enc_b1_ref[l])
    qkv = mm(xn, enc_wqkv_ref[l]) + enc_bqkv_ref[l]               # (B*S, 3D)
    attn_cat = jnp.concatenate(
        [mha_heads(qkv[b * S:(b + 1) * S, :], 0) for b in range(B)], axis=0)
    h = h + mm(attn_cat, enc_wo_ref[l]) + enc_bo_ref[l]
    xn2 = layer_norm(h, enc_g2_ref[l], enc_b2_ref[l])
    mid = jnp.maximum(mm(xn2, enc_w1_ref[l]) + enc_bf1_ref[l], 0.0)
    h = h + mm(mid, enc_w2_ref[l]) + enc_bf2_ref[l]

  # ---- 4) 2-layer bidirectional LSTM ---------------------------------------
  # Reorder batch-major rows (b*S+s) to time-major rows (s*B+b) once.
  x_tm = jnp.concatenate(
      [h[b * S + s:b * S + s + 1, :] for s in range(S) for b in range(B)],
      axis=0)                                                     # (S*B, D)
  # Layer-0 input->gate contributions for ALL steps / both dirs in one push.
  xg0 = mm(x_tm, lstm_wih0_ref[...]) + lstm_b0_ref[...]           # (S*B, 8H)
  whh0 = lstm_whh0_ref[...]                                       # (H, 8H)
  zero = jnp.zeros((B, H), jnp.float32)
  h0f = h0b = c0f = c0b = zero
  l0f = [None] * S
  l0b = [None] * S
  for s in range(S):
    # one fused recurrent push for both directions
    g_cat = mm(jnp.concatenate([h0f, h0b], axis=0), whh0)         # (2B, 8H)
    sb = S - 1 - s
    gf = xg0[s * B:(s + 1) * B, 0:H4] + g_cat[0:B, 0:H4]
    gb = xg0[sb * B:(sb + 1) * B, H4:2 * H4] + g_cat[B:2 * B, H4:2 * H4]
    h0f, c0f = lstm_cell(gf, c0f)
    h0b, c0b = lstm_cell(gb, c0b)
    l0f[s] = h0f
    l0b[sb] = h0b

  l0_tm = jnp.concatenate(
      [jnp.concatenate([l0f[s], l0b[s]], axis=1) for s in range(S)],
      axis=0)                                                     # (S*B, 2H)
  xg1 = mm(l0_tm, lstm_wih1_ref[...]) + lstm_b1_ref[...]          # (S*B, 8H)
  whh1f = lstm_whh1f_ref[...]                                     # (H, 4H)
  h1f, c1f = zero, zero
  for s in range(S):
    h1f, c1f = lstm_cell(xg1[s * B:(s + 1) * B, 0:H4] + mm(h1f, whh1f), c1f)
  # Layer-1 backward at the last position is its FIRST step (h_prev = c_prev
  # = 0), so the recurrent matmul vanishes.
  h1b, _ = lstm_cell(xg1[(S - 1) * B:S * B, H4:2 * H4], zero)
  fh = jnp.concatenate([h1f, h1b], axis=1)                        # (B, 2H)

  # ---- 5) prediction heads (mean+var MLPs merged, quantiles as one matmul) -
  z1 = jnp.maximum(mm(fh, hw1_ref[...]) + hb1_ref[...], 0.0)      # (B, 2D)
  z2 = jnp.maximum(mm(z1, hw2_ref[...]) + hb2_ref[...], 0.0)      # (B, D)
  mv = mm(z2, hw3_ref[...]) + hb3_ref[...]                        # (B, 2*Hor)
  mean = mv[:, 0:horizon]
  vraw = mv[:, horizon:2 * horizon]
  # PyTorch Softplus(beta=1, threshold=20), numerically stable form.
  var = jnp.where(vraw > 20.0, vraw,
                  jnp.maximum(vraw, 0.0) + jnp.log(1.0 + jnp.exp(-jnp.abs(vraw))))
  quant = mm(fh, qw_ref[...]) + qb_ref[...]                       # (B, 4*Hor)

  # One lane-dense output slab: [mean | var | quantiles | features].
  out_ref[...] = jnp.concatenate([mean, var, quant, fh], axis=1)


# ----------------------------------------------------------------------------
# Wrapper: a single pallas_call for the whole forward pass
# ----------------------------------------------------------------------------

def advanced_stock_predictor_forward(prep, x, cfg):
  B, S, F = x.shape
  D = cfg["d_model"]
  nH = cfg["num_heads"]
  Hor = cfg["prediction_horizon"]
  starts = (max(0, S - S // 4), max(0, S - S // 2), 0)
  kernel = functools.partial(
      _fused_forward_kernel, batch=B, seq=S, d_model=D, num_heads=nH,
      num_layers=cfg["num_layers"], starts=starts,
      scale=1.0 / math.sqrt(D // nH), eps=_EPS, horizon=Hor)

  out = pl.pallas_call(
      kernel,
      out_shape=jax.ShapeDtypeStruct((B, 6 * Hor + 2 * D), jnp.float32),
  )(x.reshape(B * S, F), *prep)

  mean = out[:, 0:Hor]
  variance = out[:, Hor:2 * Hor]
  quantiles = {name: out[:, (2 + i) * Hor:(3 + i) * Hor]
               for i, name in enumerate(QUANT_NAMES)}
  features = out[:, 6 * Hor:]
  return {"mean": mean, "variance": variance, "quantiles": quantiles,
          "features": features}


# ----------------------------------------------------------------------------
# One-time weight preparation: PyTorch layout -> kernel-ready packed layout
# ----------------------------------------------------------------------------

def prepare_params(params, cfg):
  D = cfg["d_model"]
  Hor = cfg["prediction_horizon"]
  D2 = D // 2

  def vrow(v):
    return v.reshape(1, -1)

  w_in = params["inp_w"].T                                        # (F, D)
  b_in = vrow(params["inp_b"])

  # --- multi-scale attention (branch order short, medium, long) -------------
  msa = params["msa"]
  branches = (msa["short"], msa["medium"], msa["long"])
  msa_wqkv = jnp.concatenate([bp["in_w"].T for bp in branches], axis=1)   # (D, 9D)
  msa_bqkv = jnp.concatenate([vrow(bp["in_b"]) for bp in branches], axis=1)
  msa_wo = jnp.stack([bp["out_w"].T for bp in branches])                  # (3, D, D)
  msa_bo = jnp.stack([vrow(bp["out_b"]) for bp in branches])              # (3, 1, D)
  msa_wf = msa["fusion_w"].T                                              # (3D, D)
  msa_bf = vrow(msa["fusion_b"])
  msa_g = vrow(msa["ln_w"])
  msa_b = vrow(msa["ln_b"])

  # --- transformer encoder layers (stacked along a leading layer axis) ------
  enc = params["transformer"]
  enc_wqkv = jnp.stack([lp["attn"]["in_w"].T for lp in enc])              # (L, D, 3D)
  enc_bqkv = jnp.stack([vrow(lp["attn"]["in_b"]) for lp in enc])
  enc_wo = jnp.stack([lp["attn"]["out_w"].T for lp in enc])               # (L, D, D)
  enc_bo = jnp.stack([vrow(lp["attn"]["out_b"]) for lp in enc])
  enc_g1 = jnp.stack([vrow(lp["norm1_w"]) for lp in enc])
  enc_b1 = jnp.stack([vrow(lp["norm1_b"]) for lp in enc])
  enc_g2 = jnp.stack([vrow(lp["norm2_w"]) for lp in enc])
  enc_b2 = jnp.stack([vrow(lp["norm2_b"]) for lp in enc])
  enc_w1 = jnp.stack([lp["lin1_w"].T for lp in enc])                      # (L, D, 4D)
  enc_bf1 = jnp.stack([vrow(lp["lin1_b"]) for lp in enc])
  enc_w2 = jnp.stack([lp["lin2_w"].T for lp in enc])                      # (L, 4D, D)
  enc_bf2 = jnp.stack([vrow(lp["lin2_b"]) for lp in enc])

  # --- LSTM (biases folded, forward/backward packed along lanes) ------------
  L = params["lstm"]
  lstm_wih0 = jnp.concatenate([L["l0f"]["w_ih"].T, L["l0b"]["w_ih"].T], axis=1)   # (D, 8H)
  lstm_b0 = jnp.concatenate([vrow(L["l0f"]["b_ih"] + L["l0f"]["b_hh"]),
                             vrow(L["l0b"]["b_ih"] + L["l0b"]["b_hh"])], axis=1)  # (1, 8H)
  lstm_whh0 = jnp.concatenate([L["l0f"]["w_hh"].T, L["l0b"]["w_hh"].T], axis=1)   # (H, 8H)
  lstm_wih1 = jnp.concatenate([L["l1f"]["w_ih"].T, L["l1b"]["w_ih"].T], axis=1)   # (2H, 8H)
  lstm_b1 = jnp.concatenate([vrow(L["l1f"]["b_ih"] + L["l1f"]["b_hh"]),
                             vrow(L["l1b"]["b_ih"] + L["l1b"]["b_hh"])], axis=1)
  lstm_whh1f = L["l1f"]["w_hh"].T                                                 # (H, 4H)

  # --- heads (mean+var merged: lane-concat layer 1, block-diag layers 2/3) --
  m, v = params["mean_head"], params["var_head"]
  hw1 = jnp.concatenate([m["w1"].T, v["w1"].T], axis=1)                   # (2D, 2D)
  hb1 = jnp.concatenate([vrow(m["b1"]), vrow(v["b1"])], axis=1)
  z2 = jnp.zeros((D, D2), jnp.float32)
  hw2 = jnp.concatenate([jnp.concatenate([m["w2"].T, z2], axis=1),
                         jnp.concatenate([z2, v["w2"].T], axis=1)], axis=0)  # (2D, D)
  hb2 = jnp.concatenate([vrow(m["b2"]), vrow(v["b2"])], axis=1)
  z3 = jnp.zeros((D2, Hor), jnp.float32)
  hw3 = jnp.concatenate([jnp.concatenate([m["w3"].T, z3], axis=1),
                         jnp.concatenate([z3, v["w3"].T], axis=1)], axis=0)  # (D, 2*Hor)
  hb3 = jnp.concatenate([vrow(m["b3"]), vrow(v["b3"])], axis=1)
  qw = jnp.concatenate([params["quant"][n][0].T for n in QUANT_NAMES], axis=1)   # (2D, 4*Hor)
  qb = jnp.concatenate([vrow(params["quant"][n][1]) for n in QUANT_NAMES], axis=1)

  return (w_in, b_in,
          msa_wqkv, msa_bqkv, msa_wo, msa_bo, msa_wf, msa_bf, msa_g, msa_b,
          enc_wqkv, enc_bqkv, enc_wo, enc_bo,
          enc_g1, enc_b1, enc_g2, enc_b2,
          enc_w1, enc_bf1, enc_w2, enc_bf2,
          lstm_wih0, lstm_b0, lstm_whh0, lstm_wih1, lstm_b1, lstm_whh1f,
          hw1, hb1, hw2, hb2, hw3, hb3, qw, qb)


# ----------------------------------------------------------------------------
# Deterministic synthetic parameters (PyTorch layouts)
# ----------------------------------------------------------------------------

class _PInit:
  def __init__(self, key, scale=0.05):
    self.key = key
    self.i = 0
    self.scale = scale

  def w(self, *shape):
    self.i += 1
    return self.scale * jax.random.normal(
        jax.random.fold_in(self.key, self.i), shape, jnp.float32)

  def b(self, n):
    self.i += 1
    return 0.01 * jax.random.normal(
        jax.random.fold_in(self.key, self.i), (n,), jnp.float32)


def _init_mha(pi, D):
  return dict(in_w=pi.w(3 * D, D), in_b=pi.b(3 * D),
              out_w=pi.w(D, D), out_b=pi.b(D))


def init_params(key, cfg):
  pi = _PInit(key)
  D = cfg["d_model"]
  F = cfg["input_dim"]
  Hor = cfg["prediction_horizon"]
  nL = cfg["num_layers"]

  params = {}
  params["inp_w"] = pi.w(D, F)
  params["inp_b"] = pi.b(D)

  params["msa"] = dict(
      short=_init_mha(pi, D), medium=_init_mha(pi, D), long=_init_mha(pi, D),
      fusion_w=pi.w(D, 3 * D), fusion_b=pi.b(D),
      ln_w=jnp.ones((D,), jnp.float32), ln_b=jnp.zeros((D,), jnp.float32))

  params["transformer"] = []
  for _ in range(nL):
    params["transformer"].append(dict(
        attn=_init_mha(pi, D),
        lin1_w=pi.w(4 * D, D), lin1_b=pi.b(4 * D),
        lin2_w=pi.w(D, 4 * D), lin2_b=pi.b(D),
        norm1_w=jnp.ones((D,), jnp.float32), norm1_b=jnp.zeros((D,), jnp.float32),
        norm2_w=jnp.ones((D,), jnp.float32), norm2_b=jnp.zeros((D,), jnp.float32)))

  H = D  # LSTM hidden_size == d_model

  def lstm_dir(din):
    return dict(w_ih=pi.w(4 * H, din), w_hh=pi.w(4 * H, H),
                b_ih=pi.b(4 * H), b_hh=pi.b(4 * H))

  params["lstm"] = dict(l0f=lstm_dir(D), l0b=lstm_dir(D),
                        l1f=lstm_dir(2 * H), l1b=lstm_dir(2 * H))

  def head(out_dim):
    return dict(w1=pi.w(D, 2 * D), b1=pi.b(D),
                w2=pi.w(D // 2, D), b2=pi.b(D // 2),
                w3=pi.w(out_dim, D // 2), b3=pi.b(out_dim))

  params["mean_head"] = head(Hor)
  params["var_head"] = head(Hor)
  params["quant"] = {name: (pi.w(Hor, 2 * D), pi.b(Hor)) for name in QUANT_NAMES}
  return params


# ----------------------------------------------------------------------------

if __name__ == "__main__":
  cfg = dict(input_dim=8, sequence_length=8, prediction_horizon=4,
             d_model=32, num_heads=4, num_layers=2)
  assert cfg["d_model"] % cfg["num_heads"] == 0

  key = jax.random.PRNGKey(0)
  x = jax.random.normal(jax.random.fold_in(key, 12345),
                        (2, cfg["sequence_length"], cfg["input_dim"]), jnp.float32)

  params = init_params(key, cfg)
  prep = prepare_params(params, cfg)   # one-time: transpose / pack / stack

  fwd = jax.jit(functools.partial(advanced_stock_predictor_forward, cfg=cfg))
  out = fwd(prep, x)
  out = jax.tree_util.tree_map(jax.block_until_ready, out)

  B = x.shape[0]
  Hor = cfg["prediction_horizon"]
  assert out["mean"].shape == (B, Hor)
  assert out["variance"].shape == (B, Hor)
  assert out["features"].shape == (B, 2 * cfg["d_model"])
  for name in QUANT_NAMES:
    assert out["quantiles"][name].shape == (B, Hor)
  assert bool(jnp.all(out["variance"] >= 0.0))           # Softplus output
  assert bool(jnp.all(jnp.isfinite(out["mean"])))
  assert bool(jnp.all(jnp.isfinite(out["features"])))

  print("KERNEL_OK")
</pallas_src>

<mosaic_0001>
module attributes {stable_mosaic.version = 11 : i64} {
  func.func @_fused_forward_kernel(%arg0: memref<16x8xf32, #tpu.memory_space<vmem>>, %arg1: memref<8x32xf32, #tpu.memory_space<vmem>>, %arg2: memref<1x32xf32, #tpu.memory_space<vmem>>, %arg3: memref<32x288xf32, #tpu.memory_space<vmem>>, %arg4: memref<1x288xf32, #tpu.memory_space<vmem>>, %arg5: memref<3x32x32xf32, #tpu.memory_space<vmem>>, %arg6: memref<3x1x32xf32, #tpu.memory_space<vmem>>, %arg7: memref<96x32xf32, #tpu.memory_space<vmem>>, %arg8: memref<1x32xf32, #tpu.memory_space<vmem>>, %arg9: memref<1x32xf32, #tpu.memory_space<vmem>>, %arg10: memref<1x32xf32, #tpu.memory_space<vmem>>, %arg11: memref<2x32x96xf32, #tpu.memory_space<vmem>>, %arg12: memref<2x1x96xf32, #tpu.memory_space<vmem>>, %arg13: memref<2x32x32xf32, #tpu.memory_space<vmem>>, %arg14: memref<2x1x32xf32, #tpu.memory_space<vmem>>, %arg15: memref<2x1x32xf32, #tpu.memory_space<vmem>>, %arg16: memref<2x1x32xf32, #tpu.memory_space<vmem>>, %arg17: memref<2x1x32xf32, #tpu.memory_space<vmem>>, %arg18: memref<2x1x32xf32, #tpu.memory_space<vmem>>, %arg19: memref<2x32x128xf32, #tpu.memory_space<vmem>>, %arg20: memref<2x1x128xf32, #tpu.memory_space<vmem>>, %arg21: memref<2x128x32xf32, #tpu.memory_space<vmem>>, %arg22: memref<2x1x32xf32, #tpu.memory_space<vmem>>, %arg23: memref<32x256xf32, #tpu.memory_space<vmem>>, %arg24: memref<1x256xf32, #tpu.memory_space<vmem>>, %arg25: memref<32x256xf32, #tpu.memory_space<vmem>>, %arg26: memref<64x256xf32, #tpu.memory_space<vmem>>, %arg27: memref<1x256xf32, #tpu.memory_space<vmem>>, %arg28: memref<32x128xf32, #tpu.memory_space<vmem>>, %arg29: memref<64x64xf32, #tpu.memory_space<vmem>>, %arg30: memref<1x64xf32, #tpu.memory_space<vmem>>, %arg31: memref<64x32xf32, #tpu.memory_space<vmem>>, %arg32: memref<1x32xf32, #tpu.memory_space<vmem>>, %arg33: memref<32x8xf32, #tpu.memory_space<vmem>>, %arg34: memref<1x8xf32, #tpu.memory_space<vmem>>, %arg35: memref<64x16xf32, #tpu.memory_space<vmem>>, %arg36: memref<1x16xf32, #tpu.memory_space<vmem>>, %arg37: memref<2x88xf32, #tpu.memory_space<vmem>>) attributes {dimension_semantics = [], scalar_prefetch = 0 : i64, scratch_operands = 0 : i64, tpu.core_type = #tpu.core_type<tc>} {
    %0 = tpu.iota {dimensions = array<i32: 1>} : vector<8x8xi32>
    %1 = tpu.iota {dimensions = array<i32: 0>} : vector<8x1xi32>
    %c0 = arith.constant 0 : index
    %c0_0 = arith.constant 0 : index
    %2 = vector.load %arg0[%c0, %c0_0] : memref<16x8xf32, #tpu.memory_space<vmem>>, vector<16x8xf32>
    %c0_1 = arith.constant 0 : index
    %c0_2 = arith.constant 0 : index
    %3 = vector.load %arg1[%c0_1, %c0_2] : memref<8x32xf32, #tpu.memory_space<vmem>>, vector<8x32xf32>
    %cst = arith.constant dense<0.000000e+00> : vector<16x32xf32>
    %4 = tpu.matmul %2, %3, %cst {dimension_numbers = #tpu.dot_dimension_numbers<[1], [0], [0], [1], [0, 0, 1, 1], [], []>} : vector<16x8xf32>, vector<8x32xf32>, vector<16x32xf32> -> vector<16x32xf32>
    %c0_3 = arith.constant 0 : index
    %c0_4 = arith.constant 0 : index
    %5 = vector.load %arg2[%c0_3, %c0_4] : memref<1x32xf32, #tpu.memory_space<vmem>>, vector<1x32xf32>
    %6 = vector.broadcast %5 : vector<1x32xf32> to vector<16x32xf32>
    %7 = arith.addf %4, %6 : vector<16x32xf32>
    %c0_5 = arith.constant 0 : index
    %c0_6 = arith.constant 0 : index
    %8 = vector.load %arg3[%c0_5, %c0_6] : memref<32x288xf32, #tpu.memory_space<vmem>>, vector<32x288xf32>
    %cst_7 = arith.constant dense<0.000000e+00> : vector<16x288xf32>
    %9 = tpu.matmul %7, %8, %cst_7 {dimension_numbers = #tpu.dot_dimension_numbers<[1], [0], [0], [1], [0, 0, 1, 1], [], []>} : vector<16x32xf32>, vector<32x288xf32>, vector<16x288xf32> -> vector<16x288xf32>
    %c0_8 = arith.constant 0 : index
    %c0_9 = arith.constant 0 : index
    %10 = vector.load %arg4[%c0_8, %c0_9] : memref<1x288xf32, #tpu.memory_space<vmem>>, vector<1x288xf32>
    %11 = vector.broadcast %10 : vector<1x288xf32> to vector<16x288xf32>
    %12 = arith.addf %9, %11 : vector<16x288xf32>
    %13 = vector.extract_strided_slice %12 {offsets = [0, 0], sizes = [8, 96], strides = [1, 1]} : vector<16x288xf32> to vector<8x96xf32>
    %14 = vector.extract_strided_slice %13 {offsets = [0, 0], sizes = [8, 8], strides = [1, 1]} : vector<8x96xf32> to vector<8x8xf32>
    %15 = vector.extract_strided_slice %13 {offsets = [0, 32], sizes = [8, 8], strides = [1, 1]} : vector<8x96xf32> to vector<8x8xf32>
    %16 = vector.extract_strided_slice %13 {offsets = [0, 64], sizes = [8, 8], strides = [1, 1]} : vector<8x96xf32> to vector<8x8xf32>
    %cst_10 = arith.constant dense<0.000000e+00> : vector<8x8xf32>
    %17 = tpu.matmul %14, %15, %cst_10 {dimension_numbers = #tpu.dot_dimension_numbers<[1], [1], [0], [0], [0, 0, 1, 0], [], []>} : vector<8x8xf32>, vector<8x8xf32>, vector<8x8xf32> -> vector<8x8xf32>
    %cst_11 = arith.constant 0.353553385 : f32
    %18 = vector.broadcast %cst_11 : f32 to vector<8x8xf32>
    %19 = arith.mulf %17, %18 : vector<8x8xf32>
    %c6_i32 = arith.constant 6 : i32
    %20 = vector.broadcast %c6_i32 : i32 to vector<8x8xi32>
    %21 = arith.cmpi sge, %0, %20 : vector<8x8xi32>
    %cst_12 = arith.constant -1.000000e+30 : f32
    %22 = vector.broadcast %cst_12 : f32 to vector<8x8xf32>
    %23 = arith.select %21, %19, %22 : vector<8x8xi1>, vector<8x8xf32>
    %cst_13 = arith.constant dense<0xFF800000> : vector<8xf32>
    %24 = vector.multi_reduction <maximumf>, %23, %cst_13 [1] : vector<8x8xf32> to vector<8xf32>
    %25 = vector.shape_cast %24 : vector<8xf32> to vector<8x1xf32>
    %26 = vector.broadcast %25 : vector<8x1xf32> to vector<8x8xf32>
    %27 = arith.subf %23, %26 : vector<8x8xf32>
    %28 = math.exp %27 : vector<8x8xf32>
    %cst_14 = arith.constant dense<0.000000e+00> : vector<8xf32>
    %29 = vector.multi_reduction <add>, %28, %cst_14 [1] : vector<8x8xf32> to vector<8xf32>
    %30 = vector.shape_cast %29 : vector<8xf32> to vector<8x1xf32>
    %31 = vector.broadcast %30 : vector<8x1xf32> to vector<8x8xf32>
    %32 = arith.divf %28, %31 : vector<8x8xf32>
    %cst_15 = arith.constant dense<0.000000e+00> : vector<8x8xf32>
    %33 = tpu.matmul %32, %16, %cst_15 {dimension_numbers = #tpu.dot_dimension_numbers<[1], [0], [0], [1], [0, 0, 1, 1], [], []>} : vector<8x8xf32>, vector<8x8xf32>, vector<8x8xf32> -> vector<8x8xf32>
    %34 = vector.extract_strided_slice %13 {offsets = [0, 8], sizes = [8, 8], strides = [1, 1]} : vector<8x96xf32> to vector<8x8xf32>
    %35 = vector.extract_strided_slice %13 {offsets = [0, 40], sizes = [8, 8], strides = [1, 1]} : vector<8x96xf32> to vector<8x8xf32>
    %36 = vector.extract_strided_slice %13 {offsets = [0, 72], sizes = [8, 8], strides = [1, 1]} : vector<8x96xf32> to vector<8x8xf32>
    %cst_16 = arith.constant dense<0.000000e+00> : vector<8x8xf32>
    %37 = tpu.matmul %34, %35, %cst_16 {dimension_numbers = #tpu.dot_dimension_numbers<[1], [1], [0], [0], [0, 0, 1, 0], [], []>} : vector<8x8xf32>, vector<8x8xf32>, vector<8x8xf32> -> vector<8x8xf32>
    %cst_17 = arith.constant 0.353553385 : f32
    %38 = vector.broadcast %cst_17 : f32 to vector<8x8xf32>
    %39 = arith.mulf %37, %38 : vector<8x8xf32>
    %c6_i32_18 = arith.constant 6 : i32
    %40 = vector.broadcast %c6_i32_18 : i32 to vector<8x8xi32>
    %41 = arith.cmpi sge, %0, %40 : vector<8x8xi32>
    %cst_19 = arith.constant -1.000000e+30 : f32
    %42 = vector.broadcast %cst_19 : f32 to vector<8x8xf32>
    %43 = arith.select %41, %39, %42 : vector<8x8xi1>, vector<8x8xf32>
    %cst_20 = arith.constant dense<0xFF800000> : vector<8xf32>
    %44 = vector.multi_reduction <maximumf>, %43, %cst_20 [1] : vector<8x8xf32> to vector<8xf32>
    %45 = vector.shape_cast %44 : vector<8xf32> to vector<8x1xf32>
    %46 = vector.broadcast %45 : vector<8x1xf32> to vector<8x8xf32>
    %47 = arith.subf %43, %46 : vector<8x8xf32>
    %48 = math.exp %47 : vector<8x8xf32>
    %cst_21 = arith.constant dense<0.000000e+00> : vector<8xf32>
    %49 = vector.multi_reduction <add>, %48, %cst_21 [1] : vector<8x8xf32> to vector<8xf32>
    %50 = vector.shape_cast %49 : vector<8xf32> to vector<8x1xf32>
    %51 = vector.broadcast %50 : vector<8x1xf32> to vector<8x8xf32>
    %52 = arith.divf %48, %51 : vector<8x8xf32>
    %cst_22 = arith.constant dense<0.000000e+00> : vector<8x8xf32>
    %53 = tpu.matmul %52, %36, %cst_22 {dimension_numbers = #tpu.dot_dimension_numbers<[1], [0], [0], [1], [0, 0, 1, 1], [], []>} : vector<8x8xf32>, vector<8x8xf32>, vector<8x8xf32> -> vector<8x8xf32>
    %54 = vector.extract_strided_slice %13 {offsets = [0, 16], sizes = [8, 8], strides = [1, 1]} : vector<8x96xf32> to vector<8x8xf32>
    %55 = vector.extract_strided_slice %13 {offsets = [0, 48], sizes = [8, 8], strides = [1, 1]} : vector<8x96xf32> to vector<8x8xf32>
    %56 = vector.extract_strided_slice %13 {offsets = [0, 80], sizes = [8, 8], strides = [1, 1]} : vector<8x96xf32> to vector<8x8xf32>
    %cst_23 = arith.constant dense<0.000000e+00> : vector<8x8xf32>
    %57 = tpu.matmul %54, %55, %cst_23 {dimension_numbers = #tpu.dot_dimension_numbers<[1], [1], [0], [0], [0, 0, 1, 0], [], []>} : vector<8x8xf32>, vector<8x8xf32>, vector<8x8xf32> -> vector<8x8xf32>
    %cst_24 = arith.constant 0.353553385 : f32
    %58 = vector.broadcast %cst_24 : f32 to vector<8x8xf32>
    %59 = arith.mulf %57, %58 : vector<8x8xf32>
    %c6_i32_25 = arith.constant 6 : i32
    %60 = vector.broadcast %c6_i32_25 : i32 to vector<8x8xi32>
    %61 = arith.cmpi sge, %0, %60 : vector<8x8xi32>
    %cst_26 = arith.constant -1.000000e+30 : f32
    %62 = vector.broadcast %cst_26 : f32 to vector<8x8xf32>
    %63 = arith.select %61, %59, %62 : vector<8x8xi1>, vector<8x8xf32>
    %cst_27 = arith.constant dense<0xFF800000> : vector<8xf32>
    %64 = vector.multi_reduction <maximumf>, %63, %cst_27 [1] : vector<8x8xf32> to vector<8xf32>
    %65 = vector.shape_cast %64 : vector<8xf32> to vector<8x1xf32>
    %66 = vector.broadcast %65 : vector<8x1xf32> to vector<8x8xf32>
    %67 = arith.subf %63, %66 : vector<8x8xf32>
    %68 = math.exp %67 : vector<8x8xf32>
    %cst_28 = arith.constant dense<0.000000e+00> : vector<8xf32>
    %69 = vector.multi_reduction <add>, %68, %cst_28 [1] : vector<8x8xf32> to vector<8xf32>
    %70 = vector.shape_cast %69 : vector<8xf32> to vector<8x1xf32>
    %71 = vector.broadcast %70 : vector<8x1xf32> to vector<8x8xf32>
    %72 = arith.divf %68, %71 : vector<8x8xf32>
    %cst_29 = arith.constant dense<0.000000e+00> : vector<8x8xf32>
    %73 = tpu.matmul %72, %56, %cst_29 {dimension_numbers = #tpu.dot_dimension_numbers<[1], [0], [0], [1], [0, 0, 1, 1], [], []>} : vector<8x8xf32>, vector<8x8xf32>, vector<8x8xf32> -> vector<8x8xf32>
    %74 = vector.extract_strided_slice %13 {offsets = [0, 24], sizes = [8, 8], strides = [1, 1]} : vector<8x96xf32> to vector<8x8xf32>
    %75 = vector.extract_strided_slice %13 {offsets = [0, 56], sizes = [8, 8], strides = [1, 1]} : vector<8x96xf32> to vector<8x8xf32>
    %76 = vector.extract_strided_slice %13 {offsets = [0, 88], sizes = [8, 8], strides = [1, 1]} : vector<8x96xf32> to vector<8x8xf32>
    %cst_30 = arith.constant dense<0.000000e+00> : vector<8x8xf32>
    %77 = tpu.matmul %74, %75, %cst_30 {dimension_numbers = #tpu.dot_dimension_numbers<[1], [1], [0], [0], [0, 0, 1, 0], [], []>} : vector<8x8xf32>, vector<8x8xf32>, vector<8x8xf32> -> vector<8x8xf32>
    %cst_31 = arith.constant 0.353553385 : f32
    %78 = vector.broadcast %cst_31 : f32 to vector<8x8xf32>
    %79 = arith.mulf %77, %78 : vector<8x8xf32>
    %c6_i32_32 = arith.constant 6 : i32
    %80 = vector.broadcast %c6_i32_32 : i32 to vector<8x8xi32>
    %81 = arith.cmpi sge, %0, %80 : vector<8x8xi32>
    %cst_33 = arith.constant -1.000000e+30 : f32
    %82 = vector.broadcast %cst_33 : f32 to vector<8x8xf32>
    %83 = arith.select %81, %79, %82 : vector<8x8xi1>, vector<8x8xf32>
    %cst_34 = arith.constant dense<0xFF800000> : vector<8xf32>
    %84 = vector.multi_reduction <maximumf>, %83, %cst_34 [1] : vector<8x8xf32> to vector<8xf32>
    %85 = vector.shape_cast %84 : vector<8xf32> to vector<8x1xf32>
    %86 = vector.broadcast %85 : vector<8x1xf32> to vector<8x8xf32>
    %87 = arith.subf %83, %86 : vector<8x8xf32>
    %88 = math.exp %87 : vector<8x8xf32>
    %cst_35 = arith.constant dense<0.000000e+00> : vector<8xf32>
    %89 = vector.multi_reduction <add>, %88, %cst_35 [1] : vector<8x8xf32> to vector<8xf32>
    %90 = vector.shape_cast %89 : vector<8xf32> to vector<8x1xf32>
    %91 = vector.broadcast %90 : vector<8x1xf32> to vector<8x8xf32>
    %92 = arith.divf %88, %91 : vector<8x8xf32>
    %cst_36 = arith.constant dense<0.000000e+00> : vector<8x8xf32>
    %93 = tpu.matmul %92, %76, %cst_36 {dimension_numbers = #tpu.dot_dimension_numbers<[1], [0], [0], [1], [0, 0, 1, 1], [], []>} : vector<8x8xf32>, vector<8x8xf32>, vector<8x8xf32> -> vector<8x8xf32>
    %94 = tpu.concatenate %33, %53, %73, %93 in 1 : vector<8x8xf32>, vector<8x8xf32>, vector<8x8xf32>, vector<8x8xf32> -> vector<8x32xf32>
    %c0_37 = arith.constant 0 : index
    %c0_38 = arith.constant 0 : index
    %c0_39 = arith.constant 0 : index
    %95 = vector.load %arg5[%c0_37, %c0_38, %c0_39] : memref<3x32x32xf32, #tpu.memory_space<vmem>>, vector<1x32x32xf32>
    %96 = vector.shape_cast %95 : vector<1x32x32xf32> to vector<32x32xf32>
    %cst_40 = arith.constant dense<0.000000e+00> : vector<8x32xf32>
    %97 = tpu.matmul %94, %96, %cst_40 {dimension_numbers = #tpu.dot_dimension_numbers<[1], [0], [0], [1], [0, 0, 1, 1], [], []>} : vector<8x32xf32>, vector<32x32xf32>, vector<8x32xf32> -> vector<8x32xf32>
    %c0_41 = arith.constant 0 : index
    %c0_42 = arith.constant 0 : index
    %c0_43 = arith.constant 0 : index
    %98 = vector.load %arg6[%c0_41, %c0_42, %c0_43] : memref<3x1x32xf32, #tpu.memory_space<vmem>>, vector<1x1x32xf32>
    %99 = vector.shape_cast %98 : vector<1x1x32xf32> to vector<1x32xf32>
    %100 = vector.broadcast %99 : vector<1x32xf32> to vector<8x32xf32>
    %101 = arith.addf %97, %100 : vector<8x32xf32>
    %c6_i32_44 = arith.constant 6 : i32
    %102 = vector.broadcast %c6_i32_44 : i32 to vector<8x1xi32>
    %103 = arith.cmpi sge, %1, %102 : vector<8x1xi32>
    %cst_45 = arith.constant 0.000000e+00 : f32
    %104 = vector.shape_cast %103 : vector<8x1xi1> to vector<8x1xi1>
    %105 = vector.broadcast %104 : vector<8x1xi1> to vector<8x32xi1>
    %106 = vector.broadcast %cst_45 : f32 to vector<8x32xf32>
    %107 = arith.select %105, %101, %106 : vector<8x32xi1>, vector<8x32xf32>
    %108 = vector.extract_strided_slice %12 {offsets = [0, 96], sizes = [8, 96], strides = [1, 1]} : vector<16x288xf32> to vector<8x96xf32>
    %109 = vector.extract_strided_slice %108 {offsets = [0, 0], sizes = [8, 8], strides = [1, 1]} : vector<8x96xf32> to vector<8x8xf32>
    %110 = vector.extract_strided_slice %108 {offsets = [0, 32], sizes = [8, 8], strides = [1, 1]} : vector<8x96xf32> to vector<8x8xf32>
    %111 = vector.extract_strided_slice %108 {offsets = [0, 64], sizes = [8, 8], strides = [1, 1]} : vector<8x96xf32> to vector<8x8xf32>
    %cst_46 = arith.constant dense<0.000000e+00> : vector<8x8xf32>
    %112 = tpu.matmul %109, %110, %cst_46 {dimension_numbers = #tpu.dot_dimension_numbers<[1], [1], [0], [0], [0, 0, 1, 0], [], []>} : vector<8x8xf32>, vector<8x8xf32>, vector<8x8xf32> -> vector<8x8xf32>
    %cst_47 = arith.constant 0.353553385 : f32
    %113 = vector.broadcast %cst_47 : f32 to vector<8x8xf32>
    %114 = arith.mulf %112, %113 : vector<8x8xf32>
    %c4_i32 = arith.constant 4 : i32
    %115 = vector.broadcast %c4_i32 : i32 to vector<8x8xi32>
    %116 = arith.cmpi sge, %0, %115 : vector<8x8xi32>
    %cst_48 = arith.constant -1.000000e+30 : f32
    %117 = vector.broadcast %cst_48 : f32 to vector<8x8xf32>
    %118 = arith.select %116, %114, %117 : vector<8x8xi1>, vector<8x8xf32>
    %cst_49 = arith.constant dense<0xFF800000> : vector<8xf32>
    %119 = vector.multi_reduction <maximumf>, %118, %cst_49 [1] : vector<8x8xf32> to vector<8xf32>
    %120 = vector.shape_cast %119 : vector<8xf32> to vector<8x1xf32>
    %121 = vector.broadcast %120 : vector<8x1xf32> to vector<8x8xf32>
    %122 = arith.subf %118, %121 : vector<8x8xf32>
    %123 = math.exp %122 : vector<8x8xf32>
    %cst_50 = arith.constant dense<0.000000e+00> : vector<8xf32>
    %124 = vector.multi_reduction <add>, %123, %cst_50 [1] : vector<8x8xf32> to vector<8xf32>
    %125 = vector.shape_cast %124 : vector<8xf32> to vector<8x1xf32>
    %126 = vector.broadcast %125 : vector<8x1xf32> to vector<8x8xf32>
    %127 = arith.divf %123, %126 : vector<8x8xf32>
    %cst_51 = arith.constant dense<0.000000e+00> : vector<8x8xf32>
    %128 = tpu.matmul %127, %111, %cst_51 {dimension_numbers = #tpu.dot_dimension_numbers<[1], [0], [0], [1], [0, 0, 1, 1], [], []>} : vector<8x8xf32>, vector<8x8xf32>, vector<8x8xf32> -> vector<8x8xf32>
    %129 = vector.extract_strided_slice %108 {offsets = [0, 8], sizes = [8, 8], strides = [1, 1]} : vector<8x96xf32> to vector<8x8xf32>
    %130 = vector.extract_strided_slice %108 {offsets = [0, 40], sizes = [8, 8], strides = [1, 1]} : vector<8x96xf32> to vector<8x8xf32>
    %131 = vector.extract_strided_slice %108 {offsets = [0, 72], sizes = [8, 8], strides = [1, 1]} : vector<8x96xf32> to vector<8x8xf32>
    %cst_52 = arith.constant dense<0.000000e+00> : vector<8x8xf32>
    %132 = tpu.matmul %129, %130, %cst_52 {dimension_numbers = #tpu.dot_dimension_numbers<[1], [1], [0], [0], [0, 0, 1, 0], [], []>} : vector<8x8xf32>, vector<8x8xf32>, vector<8x8xf32> -> vector<8x8xf32>
    %cst_53 = arith.constant 0.353553385 : f32
    %133 = vector.broadcast %cst_53 : f32 to vector<8x8xf32>
    %134 = arith.mulf %132, %133 : vector<8x8xf32>
    %c4_i32_54 = arith.constant 4 : i32
    %135 = vector.broadcast %c4_i32_54 : i32 to vector<8x8xi32>
    %136 = arith.cmpi sge, %0, %135 : vector<8x8xi32>
    %cst_55 = arith.constant -1.000000e+30 : f32
    %137 = vector.broadcast %cst_55 : f32 to vector<8x8xf32>
    %138 = arith.select %136, %134, %137 : vector<8x8xi1>, vector<8x8xf32>
    %cst_56 = arith.constant dense<0xFF800000> : vector<8xf32>
    %139 = vector.multi_reduction <maximumf>, %138, %cst_56 [1] : vector<8x8xf32> to vector<8xf32>
    %140 = vector.shape_cast %139 : vector<8xf32> to vector<8x1xf32>
    %141 = vector.broadcast %140 : vector<8x1xf32> to vector<8x8xf32>
    %142 = arith.subf %138, %141 : vector<8x8xf32>
    %143 = math.exp %142 : vector<8x8xf32>
    %cst_57 = arith.constant dense<0.000000e+00> : vector<8xf32>
    %144 = vector.multi_reduction <add>, %143, %cst_57 [1] : vector<8x8xf32> to vector<8xf32>
    %145 = vector.shape_cast %144 : vector<8xf32> to vector<8x1xf32>
    %146 = vector.broadcast %145 : vector<8x1xf32> to vector<8x8xf32>
    %147 = arith.divf %143, %146 : vector<8x8xf32>
    %cst_58 = arith.constant dense<0.000000e+00> : vector<8x8xf32>
    %148 = tpu.matmul %147, %131, %cst_58 {dimension_numbers = #tpu.dot_dimension_numbers<[1], [0], [0], [1], [0, 0, 1, 1], [], []>} : vector<8x8xf32>, vector<8x8xf32>, vector<8x8xf32> -> vector<8x8xf32>
    %149 = vector.extract_strided_slice %108 {offsets = [0, 16], sizes = [8, 8], strides = [1, 1]} : vector<8x96xf32> to vector<8x8xf32>
    %150 = vector.extract_strided_slice %108 {offsets = [0, 48], sizes = [8, 8], strides = [1, 1]} : vector<8x96xf32> to vector<8x8xf32>
    %151 = vector.extract_strided_slice %108 {offsets = [0, 80], sizes = [8, 8], strides = [1, 1]} : vector<8x96xf32> to vector<8x8xf32>
    %cst_59 = arith.constant dense<0.000000e+00> : vector<8x8xf32>
    %152 = tpu.matmul %149, %150, %cst_59 {dimension_numbers = #tpu.dot_dimension_numbers<[1], [1], [0], [0], [0, 0, 1, 0], [], []>} : vector<8x8xf32>, vector<8x8xf32>, vector<8x8xf32> -> vector<8x8xf32>
    %cst_60 = arith.constant 0.353553385 : f32
    %153 = vector.broadcast %cst_60 : f32 to vector<8x8xf32>
    %154 = arith.mulf %152, %153 : vector<8x8xf32>
    %c4_i32_61 = arith.constant 4 : i32
    %155 = vector.broadcast %c4_i32_61 : i32 to vector<8x8xi32>
    %156 = arith.cmpi sge, %0, %155 : vector<8x8xi32>
    %cst_62 = arith.constant -1.000000e+30 : f32
    %157 = vector.broadcast %cst_62 : f32 to vector<8x8xf32>
    %158 = arith.select %156, %154, %157 : vector<8x8xi1>, vector<8x8xf32>
    %cst_63 = arith.constant dense<0xFF800000> : vector<8xf32>
    %159 = vector.multi_reduction <maximumf>, %158, %cst_63 [1] : vector<8x8xf32> to vector<8xf32>
    %160 = vector.shape_cast %159 : vector<8xf32> to vector<8x1xf32>
    %161 = vector.broadcast %160 : vector<8x1xf32> to vector<8x8xf32>
    %162 = arith.subf %158, %161 : vector<8x8xf32>
    %163 = math.exp %162 : vector<8x8xf32>
    %cst_64 = arith.constant dense<0.000000e+00> : vector<8xf32>
    %164 = vector.multi_reduction <add>, %163, %cst_64 [1] : vector<8x8xf32> to vector<8xf32>
    %165 = vector.shape_cast %164 : vector<8xf32> to vector<8x1xf32>
    %166 = vector.broadcast %165 : vector<8x1xf32> to vector<8x8xf32>
    %167 = arith.divf %163, %166 : vector<8x8xf32>
    %cst_65 = arith.constant dense<0.000000e+00> : vector<8x8xf32>
    %168 = tpu.matmul %167, %151, %cst_65 {dimension_numbers = #tpu.dot_dimension_numbers<[1], [0], [0], [1], [0, 0, 1, 1], [], []>} : vector<8x8xf32>, vector<8x8xf32>, vector<8x8xf32> -> vector<8x8xf32>
    %169 = vector.extract_strided_slice %108 {offsets = [0, 24], sizes = [8, 8], strides = [1, 1]} : vector<8x96xf32> to vector<8x8xf32>
    %170 = vector.extract_strided_slice %108 {offsets = [0, 56], sizes = [8, 8], strides = [1, 1]} : vector<8x96xf32> to vector<8x8xf32>
    %171 = vector.extract_strided_slice %108 {offsets = [0, 88], sizes = [8, 8], strides = [1, 1]} : vector<8x96xf32> to vector<8x8xf32>
    %cst_66 = arith.constant dense<0.000000e+00> : vector<8x8xf32>
    %172 = tpu.matmul %169, %170, %cst_66 {dimension_numbers = #tpu.dot_dimension_numbers<[1], [1], [0], [0], [0, 0, 1, 0], [], []>} : vector<8x8xf32>, vector<8x8xf32>, vector<8x8xf32> -> vector<8x8xf32>
    %cst_67 = arith.constant 0.353553385 : f32
    %173 = vector.broadcast %cst_67 : f32 to vector<8x8xf32>
    %174 = arith.mulf %172, %173 : vector<8x8xf32>
    %c4_i32_68 = arith.constant 4 : i32
    %175 = vector.broadcast %c4_i32_68 : i32 to vector<8x8xi32>
    %176 = arith.cmpi sge, %0, %175 : vector<8x8xi32>
    %cst_69 = arith.constant -1.000000e+30 : f32
    %177 = vector.broadcast %cst_69 : f32 to vector<8x8xf32>
    %178 = arith.select %176, %174, %177 : vector<8x8xi1>, vector<8x8xf32>
    %cst_70 = arith.constant dense<0xFF800000> : vector<8xf32>
    %179 = vector.multi_reduction <maximumf>, %178, %cst_70 [1] : vector<8x8xf32> to vector<8xf32>
    %180 = vector.shape_cast %179 : vector<8xf32> to vector<8x1xf32>
    %181 = vector.broadcast %180 : vector<8x1xf32> to vector<8x8xf32>
    %182 = arith.subf %178, %181 : vector<8x8xf32>
    %183 = math.exp %182 : vector<8x8xf32>
    %cst_71 = arith.constant dense<0.000000e+00> : vector<8xf32>
    %184 = vector.multi_reduction <add>, %183, %cst_71 [1] : vector<8x8xf32> to vector<8xf32>
    %185 = vector.shape_cast %184 : vector<8xf32> to vector<8x1xf32>
    %186 = vector.broadcast %185 : vector<8x1xf32> to vector<8x8xf32>
    %187 = arith.divf %183, %186 : vector<8x8xf32>
    %cst_72 = arith.constant dense<0.000000e+00> : vector<8x8xf32>
    %188 = tpu.matmul %187, %171, %cst_72 {dimension_numbers = #tpu.dot_dimension_numbers<[1], [0], [0], [1], [0, 0, 1, 1], [], []>} : vector<8x8xf32>, vector<8x8xf32>, vector<8x8xf32> -> vector<8x8xf32>
    %189 = tpu.concatenate %128, %148, %168, %188 in 1 : vector<8x8xf32>, vector<8x8xf32>, vector<8x8xf32>, vector<8x8xf32> -> vector<8x32xf32>
    %c1 = arith.constant 1 : index
    %c0_73 = arith.constant 0 : index
    %c0_74 = arith.constant 0 : index
    %190 = vector.load %arg5[%c1, %c0_73, %c0_74] : memref<3x32x32xf32, #tpu.memory_space<vmem>>, vector<1x32x32xf32>
    %191 = vector.shape_cast %190 : vector<1x32x32xf32> to vector<32x32xf32>
    %cst_75 = arith.constant dense<0.000000e+00> : vector<8x32xf32>
    %192 = tpu.matmul %189, %191, %cst_75 {dimension_numbers = #tpu.dot_dimension_numbers<[1], [0], [0], [1], [0, 0, 1, 1], [], []>} : vector<8x32xf32>, vector<32x32xf32>, vector<8x32xf32> -> vector<8x32xf32>
    %c1_76 = arith.constant 1 : index
    %c0_77 = arith.constant 0 : index
    %c0_78 = arith.constant 0 : index
    %193 = vector.load %arg6[%c1_76, %c0_77, %c0_78] : memref<3x1x32xf32, #tpu.memory_space<vmem>>, vector<1x1x32xf32>
    %194 = vector.shape_cast %193 : vector<1x1x32xf32> to vector<1x32xf32>
    %195 = vector.broadcast %194 : vector<1x32xf32> to vector<8x32xf32>
    %196 = arith.addf %192, %195 : vector<8x32xf32>
    %c4_i32_79 = arith.constant 4 : i32
    %197 = vector.broadcast %c4_i32_79 : i32 to vector<8x1xi32>
    %198 = arith.cmpi sge, %1, %197 : vector<8x1xi32>
    %cst_80 = arith.constant 0.000000e+00 : f32
    %199 = vector.shape_cast %198 : vector<8x1xi1> to vector<8x1xi1>
    %200 = vector.broadcast %199 : vector<8x1xi1> to vector<8x32xi1>
    %201 = vector.broadcast %cst_80 : f32 to vector<8x32xf32>
    %202 = arith.select %200, %196, %201 : vector<8x32xi1>, vector<8x32xf32>
    %203 = vector.extract_strided_slice %12 {offsets = [0, 192], sizes = [8, 96], strides = [1, 1]} : vector<16x288xf32> to vector<8x96xf32>
    %204 = vector.extract_strided_slice %203 {offsets = [0, 0], sizes = [8, 8], strides = [1, 1]} : vector<8x96xf32> to vector<8x8xf32>
    %205 = vector.extract_strided_slice %203 {offsets = [0, 32], sizes = [8, 8], strides = [1, 1]} : vector<8x96xf32> to vector<8x8xf32>
    %206 = vector.extract_strided_slice %203 {offsets = [0, 64], sizes = [8, 8], strides = [1, 1]} : vector<8x96xf32> to vector<8x8xf32>
    %cst_81 = arith.constant dense<0.000000e+00> : vector<8x8xf32>
    %207 = tpu.matmul %204, %205, %cst_81 {dimension_numbers = #tpu.dot_dimension_numbers<[1], [1], [0], [0], [0, 0, 1, 0], [], []>} : vector<8x8xf32>, vector<8x8xf32>, vector<8x8xf32> -> vector<8x8xf32>
    %cst_82 = arith.constant 0.353553385 : f32
    %208 = vector.broadcast %cst_82 : f32 to vector<8x8xf32>
    %209 = arith.mulf %207, %208 : vector<8x8xf32>
    %cst_83 = arith.constant dense<0xFF800000> : vector<8xf32>
    %210 = vector.multi_reduction <maximumf>, %209, %cst_83 [1] : vector<8x8xf32> to vector<8xf32>
    %211 = vector.shape_cast %210 : vector<8xf32> to vector<8x1xf32>
    %212 = vector.broadcast %211 : vector<8x1xf32> to vector<8x8xf32>
    %213 = arith.subf %209, %212 : vector<8x8xf32>
    %214 = math.exp %213 : vector<8x8xf32>
    %cst_84 = arith.constant dense<0.000000e+00> : vector<8xf32>
    %215 = vector.multi_reduction <add>, %214, %cst_84 [1] : vector<8x8xf32> to vector<8xf32>
    %216 = vector.shape_cast %215 : vector<8xf32> to vector<8x1xf32>
    %217 = vector.broadcast %216 : vector<8x1xf32> to vector<8x8xf32>
    %218 = arith.divf %214, %217 : vector<8x8xf32>
    %cst_85 = arith.constant dense<0.000000e+00> : vector<8x8xf32>
    %219 = tpu.matmul %218, %206, %cst_85 {dimension_numbers = #tpu.dot_dimension_numbers<[1], [0], [0], [1], [0, 0, 1, 1], [], []>} : vector<8x8xf32>, vector<8x8xf32>, vector<8x8xf32> -> vector<8x8xf32>
    %220 = vector.extract_strided_slice %203 {offsets = [0, 8], sizes = [8, 8], strides = [1, 1]} : vector<8x96xf32> to vector<8x8xf32>
    %221 = vector.extract_strided_slice %203 {offsets = [0, 40], sizes = [8, 8], strides = [1, 1]} : vector<8x96xf32> to vector<8x8xf32>
    %222 = vector.extract_strided_slice %203 {offsets = [0, 72], sizes = [8, 8], strides = [1, 1]} : vector<8x96xf32> to vector<8x8xf32>
    %cst_86 = arith.constant dense<0.000000e+00> : vector<8x8xf32>
    %223 = tpu.matmul %220, %221, %cst_86 {dimension_numbers = #tpu.dot_dimension_numbers<[1], [1], [0], [0], [0, 0, 1, 0], [], []>} : vector<8x8xf32>, vector<8x8xf32>, vector<8x8xf32> -> vector<8x8xf32>
    %cst_87 = arith.constant 0.353553385 : f32
    %224 = vector.broadcast %cst_87 : f32 to vector<8x8xf32>
    %225 = arith.mulf %223, %224 : vector<8x8xf32>
    %cst_88 = arith.constant dense<0xFF800000> : vector<8xf32>
    %226 = vector.multi_reduction <maximumf>, %225, %cst_88 [1] : vector<8x8xf32> to vector<8xf32>
    %227 = vector.shape_cast %226 : vector<8xf32> to vector<8x1xf32>
    %228 = vector.broadcast %227 : vector<8x1xf32> to vector<8x8xf32>
    %229 = arith.subf %225, %228 : vector<8x8xf32>
    %230 = math.exp %229 : vector<8x8xf32>
    %cst_89 = arith.constant dense<0.000000e+00> : vector<8xf32>
    %231 = vector.multi_reduction <add>, %230, %cst_89 [1] : vector<8x8xf32> to vector<8xf32>
    %232 = vector.shape_cast %231 : vector<8xf32> to vector<8x1xf32>
    %233 = vector.broadcast %232 : vector<8x1xf32> to vector<8x8xf32>
    %234 = arith.divf %230, %233 : vector<8x8xf32>
    %cst_90 = arith.constant dense<0.000000e+00> : vector<8x8xf32>
    %235 = tpu.matmul %234, %222, %cst_90 {dimension_numbers = #tpu.dot_dimension_numbers<[1], [0], [0], [1], [0, 0, 1, 1], [], []>} : vector<8x8xf32>, vector<8x8xf32>, vector<8x8xf32> -> vector<8x8xf32>
    %236 = vector.extract_strided_slice %203 {offsets = [0, 16], sizes = [8, 8], strides = [1, 1]} : vector<8x96xf32> to vector<8x8xf32>
    %237 = vector.extract_strided_slice %203 {offsets = [0, 48], sizes = [8, 8], strides = [1, 1]} : vector<8x96xf32> to vector<8x8xf32>
    %238 = vector.extract_strided_slice %203 {offsets = [0, 80], sizes = [8, 8], strides = [1, 1]} : vector<8x96xf32> to vector<8x8xf32>
    %cst_91 = arith.constant dense<0.000000e+00> : vector<8x8xf32>
    %239 = tpu.matmul %236, %237, %cst_91 {dimension_numbers = #tpu.dot_dimension_numbers<[1], [1], [0], [0], [0, 0, 1, 0], [], []>} : vector<8x8xf32>, vector<8x8xf32>, vector<8x8xf32> -> vector<8x8xf32>
    %cst_92 = arith.constant 0.353553385 : f32
    %240 = vector.broadcast %cst_92 : f32 to vector<8x8xf32>
    %241 = arith.mulf %239, %240 : vector<8x8xf32>
    %cst_93 = arith.constant dense<0xFF800000> : vector<8xf32>
    %242 = vector.multi_reduction <maximumf>, %241, %cst_93 [1] : vector<8x8xf32> to vector<8xf32>
    %243 = vector.shape_cast %242 : vector<8xf32> to vector<8x1xf32>
    %244 = vector.broadcast %243 : vector<8x1xf32> to vector<8x8xf32>
    %245 = arith.subf %241, %244 : vector<8x8xf32>
    %246 = math.exp %245 : vector<8x8xf32>
    %cst_94 = arith.constant dense<0.000000e+00> : vector<8xf32>
    %247 = vector.multi_reduction <add>, %246, %cst_94 [1] : vector<8x8xf32> to vector<8xf32>
    %248 = vector.shape_cast %247 : vector<8xf32> to vector<8x1xf32>
    %249 = vector.broadcast %248 : vector<8x1xf32> to vector<8x8xf32>
    %250 = arith.divf %246, %249 : vector<8x8xf32>
    %cst_95 = arith.constant dense<0.000000e+00> : vector<8x8xf32>
    %251 = tpu.matmul %250, %238, %cst_95 {dimension_numbers = #tpu.dot_dimension_numbers<[1], [0], [0], [1], [0, 0, 1, 1], [], []>} : vector<8x8xf32>, vector<8x8xf32>, vector<8x8xf32> -> vector<8x8xf32>
    %252 = vector.extract_strided_slice %203 {offsets = [0, 24], sizes = [8, 8], strides = [1, 1]} : vector<8x96xf32> to vector<8x8xf32>
    %253 = vector.extract_strided_slice %203 {offsets = [0, 56], sizes = [8, 8], strides = [1, 1]} : vector<8x96xf32> to vector<8x8xf32>
    %254 = vector.extract_strided_slice %203 {offsets = [0, 88], sizes = [8, 8], strides = [1, 1]} : vector<8x96xf32> to vector<8x8xf32>
    %cst_96 = arith.constant dense<0.000000e+00> : vector<8x8xf32>
    %255 = tpu.matmul %252, %253, %cst_96 {dimension_numbers = #tpu.dot_dimension_numbers<[1], [1], [0], [0], [0, 0, 1, 0], [], []>} : vector<8x8xf32>, vector<8x8xf32>, vector<8x8xf32> -> vector<8x8xf32>
    %cst_97 = arith.constant 0.353553385 : f32
    %256 = vector.broadcast %cst_97 : f32 to vector<8x8xf32>
    %257 = arith.mulf %255, %256 : vector<8x8xf32>
    %cst_98 = arith.constant dense<0xFF800000> : vector<8xf32>
    %258 = vector.multi_reduction <maximumf>, %257, %cst_98 [1] : vector<8x8xf32> to vector<8xf32>
    %259 = vector.shape_cast %258 : vector<8xf32> to vector<8x1xf32>
    %260 = vector.broadcast %259 : vector<8x1xf32> to vector<8x8xf32>
    %261 = arith.subf %257, %260 : vector<8x8xf32>
    %262 = math.exp %261 : vector<8x8xf32>
    %cst_99 = arith.constant dense<0.000000e+00> : vector<8xf32>
    %263 = vector.multi_reduction <add>, %262, %cst_99 [1] : vector<8x8xf32> to vector<8xf32>
    %264 = vector.shape_cast %263 : vector<8xf32> to vector<8x1xf32>
    %265 = vector.broadcast %264 : vector<8x1xf32> to vector<8x8xf32>
    %266 = arith.divf %262, %265 : vector<8x8xf32>
    %cst_100 = arith.constant dense<0.000000e+00> : vector<8x8xf32>
    %267 = tpu.matmul %266, %254, %cst_100 {dimension_numbers = #tpu.dot_dimension_numbers<[1], [0], [0], [1], [0, 0, 1, 1], [], []>} : vector<8x8xf32>, vector<8x8xf32>, vector<8x8xf32> -> vector<8x8xf32>
    %268 = tpu.concatenate %219, %235, %251, %267 in 1 : vector<8x8xf32>, vector<8x8xf32>, vector<8x8xf32>, vector<8x8xf32> -> vector<8x32xf32>
    %c2 = arith.constant 2 : index
    %c0_101 = arith.constant 0 : index
    %c0_102 = arith.constant 0 : index
    %269 = vector.load %arg5[%c2, %c0_101, %c0_102] : memref<3x32x32xf32, #tpu.memory_space<vmem>>, vector<1x32x32xf32>
    %270 = vector.shape_cast %269 : vector<1x32x32xf32> to vector<32x32xf32>
    %cst_103 = arith.constant dense<0.000000e+00> : vector<8x32xf32>
    %271 = tpu.matmul %268, %270, %cst_103 {dimension_numbers = #tpu.dot_dimension_numbers<[1], [0], [0], [1], [0, 0, 1, 1], [], []>} : vector<8x32xf32>, vector<32x32xf32>, vector<8x32xf32> -> vector<8x32xf32>
    %c2_104 = arith.constant 2 : index
    %c0_105 = arith.constant 0 : index
    %c0_106 = arith.constant 0 : index
    %272 = vector.load %arg6[%c2_104, %c0_105, %c0_106] : memref<3x1x32xf32, #tpu.memory_space<vmem>>, vector<1x1x32xf32>
    %273 = vector.shape_cast %272 : vector<1x1x32xf32> to vector<1x32xf32>
    %274 = vector.broadcast %273 : vector<1x32xf32> to vector<8x32xf32>
    %275 = arith.addf %271, %274 : vector<8x32xf32>
    %276 = tpu.concatenate %107, %202, %275 in 1 : vector<8x32xf32>, vector<8x32xf32>, vector<8x32xf32> -> vector<8x96xf32>
    %277 = vector.extract_strided_slice %12 {offsets = [8, 0], sizes = [8, 96], strides = [1, 1]} : vector<16x288xf32> to vector<8x96xf32>
    %278 = vector.extract_strided_slice %277 {offsets = [0, 0], sizes = [8, 8], strides = [1, 1]} : vector<8x96xf32> to vector<8x8xf32>
    %279 = vector.extract_strided_slice %277 {offsets = [0, 32], sizes = [8, 8], strides = [1, 1]} : vector<8x96xf32> to vector<8x8xf32>
    %280 = vector.extract_strided_slice %277 {offsets = [0, 64], sizes = [8, 8], strides = [1, 1]} : vector<8x96xf32> to vector<8x8xf32>
    %cst_107 = arith.constant dense<0.000000e+00> : vector<8x8xf32>
    %281 = tpu.matmul %278, %279, %cst_107 {dimension_numbers = #tpu.dot_dimension_numbers<[1], [1], [0], [0], [0, 0, 1, 0], [], []>} : vector<8x8xf32>, vector<8x8xf32>, vector<8x8xf32> -> vector<8x8xf32>
    %cst_108 = arith.constant 0.353553385 : f32
    %282 = vector.broadcast %cst_108 : f32 to vector<8x8xf32>
    %283 = arith.mulf %281, %282 : vector<8x8xf32>
    %c6_i32_109 = arith.constant 6 : i32
    %284 = vector.broadcast %c6_i32_109 : i32 to vector<8x8xi32>
    %285 = arith.cmpi sge, %0, %284 : vector<8x8xi32>
    %cst_110 = arith.constant -1.000000e+30 : f32
    %286 = vector.broadcast %cst_110 : f32 to vector<8x8xf32>
    %287 = arith.select %285, %283, %286 : vector<8x8xi1>, vector<8x8xf32>
    %cst_111 = arith.constant dense<0xFF800000> : vector<8xf32>
    %288 = vector.multi_reduction <maximumf>, %287, %cst_111 [1] : vector<8x8xf32> to vector<8xf32>
    %289 = vector.shape_cast %288 : vector<8xf32> to vector<8x1xf32>
    %290 = vector.broadcast %289 : vector<8x1xf32> to vector<8x8xf32>
    %291 = arith.subf %287, %290 : vector<8x8xf32>
    %292 = math.exp %291 : vector<8x8xf32>
    %cst_112 = arith.constant dense<0.000000e+00> : vector<8xf32>
    %293 = vector.multi_reduction <add>, %292, %cst_112 [1] : vector<8x8xf32> to vector<8xf32>
    %294 = vector.shape_cast %293 : vector<8xf32> to vector<8x1xf32>
    %295 = vector.broadcast %294 : vector<8x1xf32> to vector<8x8xf32>
    %296 = arith.divf %292, %295 : vector<8x8xf32>
    %cst_113 = arith.constant dense<0.000000e+00> : vector<8x8xf32>
    %297 = tpu.matmul %296, %280, %cst_113 {dimension_numbers = #tpu.dot_dimension_numbers<[1], [0], [0], [1], [0, 0, 1, 1], [], []>} : vector<8x8xf32>, vector<8x8xf32>, vector<8x8xf32> -> vector<8x8xf32>
    %298 = vector.extract_strided_slice %277 {offsets = [0, 8], sizes = [8, 8], strides = [1, 1]} : vector<8x96xf32> to vector<8x8xf32>
    %299 = vector.extract_strided_slice %277 {offsets = [0, 40], sizes = [8, 8], strides = [1, 1]} : vector<8x96xf32> to vector<8x8xf32>
    %300 = vector.extract_strided_slice %277 {offsets = [0, 72], sizes = [8, 8], strides = [1, 1]} : vector<8x96xf32> to vector<8x8xf32>
    %cst_114 = arith.constant dense<0.000000e+00> : vector<8x8xf32>
    %301 = tpu.matmul %298, %299, %cst_114 {dimension_numbers = #tpu.dot_dimension_numbers<[1], [1], [0], [0], [0, 0, 1, 0], [], []>} : vector<8x8xf32>, vector<8x8xf32>, vector<8x8xf32> -> vector<8x8xf32>
    %cst_115 = arith.constant 0.353553385 : f32
    %302 = vector.broadcast %cst_115 : f32 to vector<8x8xf32>
    %303 = arith.mulf %301, %302 : vector<8x8xf32>
    %c6_i32_116 = arith.constant 6 : i32
    %304 = vector.broadcast %c6_i32_116 : i32 to vector<8x8xi32>
    %305 = arith.cmpi sge, %0, %304 : vector<8x8xi32>
    %cst_117 = arith.constant -1.000000e+30 : f32
    %306 = vector.broadcast %cst_117 : f32 to vector<8x8xf32>
    %307 = arith.select %305, %303, %306 : vector<8x8xi1>, vector<8x8xf32>
    %cst_118 = arith.constant dense<0xFF800000> : vector<8xf32>
    %308 = vector.multi_reduction <maximumf>, %307, %cst_118 [1] : vector<8x8xf32> to vector<8xf32>
    %309 = vector.shape_cast %308 : vector<8xf32> to vector<8x1xf32>
    %310 = vector.broadcast %309 : vector<8x1xf32> to vector<8x8xf32>
    %311 = arith.subf %307, %310 : vector<8x8xf32>
    %312 = math.exp %311 : vector<8x8xf32>
    %cst_119 = arith.constant dense<0.000000e+00> : vector<8xf32>
    %313 = vector.multi_reduction <add>, %312, %cst_119 [1] : vector<8x8xf32> to vector<8xf32>
    %314 = vector.shape_cast %313 : vector<8xf32> to vector<8x1xf32>
    %315 = vector.broadcast %314 : vector<8x1xf32> to vector<8x8xf32>
    %316 = arith.divf %312, %315 : vector<8x8xf32>
    %cst_120 = arith.constant dense<0.000000e+00> : vector<8x8xf32>
    %317 = tpu.matmul %316, %300, %cst_120 {dimension_numbers = #tpu.dot_dimension_numbers<[1], [0], [0], [1], [0, 0, 1, 1], [], []>} : vector<8x8xf32>, vector<8x8xf32>, vector<8x8xf32> -> vector<8x8xf32>
    %318 = vector.extract_strided_slice %277 {offsets = [0, 16], sizes = [8, 8], strides = [1, 1]} : vector<8x96xf32> to vector<8x8xf32>
    %319 = vector.extract_strided_slice %277 {offsets = [0, 48], sizes = [8, 8], strides = [1, 1]} : vector<8x96xf32> to vector<8x8xf32>
    %320 = vector.extract_strided_slice %277 {offsets = [0, 80], sizes = [8, 8], strides = [1, 1]} : vector<8x96xf32> to vector<8x8xf32>
    %cst_121 = arith.constant dense<0.000000e+00> : vector<8x8xf32>
    %321 = tpu.matmul %318, %319, %cst_121 {dimension_numbers = #tpu.dot_dimension_numbers<[1], [1], [0], [0], [0, 0, 1, 0], [], []>} : vector<8x8xf32>, vector<8x8xf32>, vector<8x8xf32> -> vector<8x8xf32>
    %cst_122 = arith.constant 0.353553385 : f32
    %322 = vector.broadcast %cst_122 : f32 to vector<8x8xf32>
    %323 = arith.mulf %321, %322 : vector<8x8xf32>
    %c6_i32_123 = arith.constant 6 : i32
    %324 = vector.broadcast %c6_i32_123 : i32 to vector<8x8xi32>
    %325 = arith.cmpi sge, %0, %324 : vector<8x8xi32>
    %cst_124 = arith.constant -1.000000e+30 : f32
    %326 = vector.broadcast %cst_124 : f32 to vector<8x8xf32>
    %327 = arith.select %325, %323, %326 : vector<8x8xi1>, vector<8x8xf32>
    %cst_125 = arith.constant dense<0xFF800000> : vector<8xf32>
    %328 = vector.multi_reduction <maximumf>, %327, %cst_125 [1] : vector<8x8xf32> to vector<8xf32>
    %329 = vector.shape_cast %328 : vector<8xf32> to vector<8x1xf32>
    %330 = vector.broadcast %329 : vector<8x1xf32> to vector<8x8xf32>
    %331 = arith.subf %327, %330 : vector<8x8xf32>
    %332 = math.exp %331 : vector<8x8xf32>
    %cst_126 = arith.constant dense<0.000000e+00> : vector<8xf32>
    %333 = vector.multi_reduction <add>, %332, %cst_126 [1] : vector<8x8xf32> to vector<8xf32>
    %334 = vector.shape_cast %333 : vector<8xf32> to vector<8x1xf32>
    %335 = vector.broadcast %334 : vector<8x1xf32> to vector<8x8xf32>
    %336 = arith.divf %332, %335 : vector<8x8xf32>
    %cst_127 = arith.constant dense<0.000000e+00> : vector<8x8xf32>
    %337 = tpu.matmul %336, %320, %cst_127 {dimension_numbers = #tpu.dot_dimension_numbers<[1], [0], [0], [1], [0, 0, 1, 1], [], []>} : vector<8x8xf32>, vector<8x8xf32>, vector<8x8xf32> -> vector<8x8xf32>
    %338 = vector.extract_strided_slice %277 {offsets = [0, 24], sizes = [8, 8], strides = [1, 1]} : vector<8x96xf32> to vector<8x8xf32>
    %339 = vector.extract_strided_slice %277 {offsets = [0, 56], sizes = [8, 8], strides = [1, 1]} : vector<8x96xf32> to vector<8x8xf32>
    %340 = vector.extract_strided_slice %277 {offsets = [0, 88], sizes = [8, 8], strides = [1, 1]} : vector<8x96xf32> to vector<8x8xf32>
    %cst_128 = arith.constant dense<0.000000e+00> : vector<8x8xf32>
    %341 = tpu.matmul %338, %339, %cst_128 {dimension_numbers = #tpu.dot_dimension_numbers<[1], [1], [0], [0], [0, 0, 1, 0], [], []>} : vector<8x8xf32>, vector<8x8xf32>, vector<8x8xf32> -> vector<8x8xf32>
    %cst_129 = arith.constant 0.353553385 : f32
    %342 = vector.broadcast %cst_129 : f32 to vector<8x8xf32>
    %343 = arith.mulf %341, %342 : vector<8x8xf32>
    %c6_i32_130 = arith.constant 6 : i32
    %344 = vector.broadcast %c6_i32_130 : i32 to vector<8x8xi32>
    %345 = arith.cmpi sge, %0, %344 : vector<8x8xi32>
    %cst_131 = arith.constant -1.000000e+30 : f32
    %346 = vector.broadcast %cst_131 : f32 to vector<8x8xf32>
    %347 = arith.select %345, %343, %346 : vector<8x8xi1>, vector<8x8xf32>
    %cst_132 = arith.constant dense<0xFF800000> : vector<8xf32>
    %348 = vector.multi_reduction <maximumf>, %347, %cst_132 [1] : vector<8x8xf32> to vector<8xf32>
    %349 = vector.shape_cast %348 : vector<8xf32> to vector<8x1xf32>
    %350 = vector.broadcast %349 : vector<8x1xf32> to vector<8x8xf32>
    %351 = arith.subf %347, %350 : vector<8x8xf32>
    %352 = math.exp %351 : vector<8x8xf32>
    %cst_133 = arith.constant dense<0.000000e+00> : vector<8xf32>
    %353 = vector.multi_reduction <add>, %352, %cst_133 [1] : vector<8x8xf32> to vector<8xf32>
    %354 = vector.shape_cast %353 : vector<8xf32> to vector<8x1xf32>
    %355 = vector.broadcast %354 : vector<8x1xf32> to vector<8x8xf32>
    %356 = arith.divf %352, %355 : vector<8x8xf32>
    %cst_134 = arith.constant dense<0.000000e+00> : vector<8x8xf32>
    %357 = tpu.matmul %356, %340, %cst_134 {dimension_numbers = #tpu.dot_dimension_numbers<[1], [0], [0], [1], [0, 0, 1, 1], [], []>} : vector<8x8xf32>, vector<8x8xf32>, vector<8x8xf32> -> vector<8x8xf32>
    %358 = tpu.concatenate %297, %317, %337, %357 in 1 : vector<8x8xf32>, vector<8x8xf32>, vector<8x8xf32>, vector<8x8xf32> -> vector<8x32xf32>
    %c0_135 = arith.constant 0 : index
    %c0_136 = arith.constant 0 : index
    %c0_137 = arith.constant 0 : index
    %359 = vector.load %arg5[%c0_135, %c0_136, %c0_137] : memref<3x32x32xf32, #tpu.memory_space<vmem>>, vector<1x32x32xf32>
    %360 = vector.shape_cast %359 : vector<1x32x32xf32> to vector<32x32xf32>
    %cst_138 = arith.constant dense<0.000000e+00> : vector<8x32xf32>
    %361 = tpu.matmul %358, %360, %cst_138 {dimension_numbers = #tpu.dot_dimension_numbers<[1], [0], [0], [1], [0, 0, 1, 1], [], []>} : vector<8x32xf32>, vector<32x32xf32>, vector<8x32xf32> -> vector<8x32xf32>
    %c0_139 = arith.constant 0 : index
    %c0_140 = arith.constant 0 : index
    %c0_141 = arith.constant 0 : index
    %362 = vector.load %arg6[%c0_139, %c0_140, %c0_141] : memref<3x1x32xf32, #tpu.memory_space<vmem>>, vector<1x1x32xf32>
    %363 = vector.shape_cast %362 : vector<1x1x32xf32> to vector<1x32xf32>
    %364 = vector.broadcast %363 : vector<1x32xf32> to vector<8x32xf32>
    %365 = arith.addf %361, %364 : vector<8x32xf32>
    %c6_i32_142 = arith.constant 6 : i32
    %366 = vector.broadcast %c6_i32_142 : i32 to vector<8x1xi32>
    %367 = arith.cmpi sge, %1, %366 : vector<8x1xi32>
    %cst_143 = arith.constant 0.000000e+00 : f32
    %368 = vector.shape_cast %367 : vector<8x1xi1> to vector<8x1xi1>
    %369 = vector.broadcast %368 : vector<8x1xi1> to vector<8x32xi1>
    %370 = vector.broadcast %cst_143 : f32 to vector<8x32xf32>
    %371 = arith.select %369, %365, %370 : vector<8x32xi1>, vector<8x32xf32>
    %372 = vector.extract_strided_slice %12 {offsets = [8, 96], sizes = [8, 96], strides = [1, 1]} : vector<16x288xf32> to vector<8x96xf32>
    %373 = vector.extract_strided_slice %372 {offsets = [0, 0], sizes = [8, 8], strides = [1, 1]} : vector<8x96xf32> to vector<8x8xf32>
    %374 = vector.extract_strided_slice %372 {offsets = [0, 32], sizes = [8, 8], strides = [1, 1]} : vector<8x96xf32> to vector<8x8xf32>
    %375 = vector.extract_strided_slice %372 {offsets = [0, 64], sizes = [8, 8], strides = [1, 1]} : vector<8x96xf32> to vector<8x8xf32>
    %cst_144 = arith.constant dense<0.000000e+00> : vector<8x8xf32>
    %376 = tpu.matmul %373, %374, %cst_144 {dimension_numbers = #tpu.dot_dimension_numbers<[1], [1], [0], [0], [0, 0, 1, 0], [], []>} : vector<8x8xf32>, vector<8x8xf32>, vector<8x8xf32> -> vector<8x8xf32>
    %cst_145 = arith.constant 0.353553385 : f32
    %377 = vector.broadcast %cst_145 : f32 to vector<8x8xf32>
    %378 = arith.mulf %376, %377 : vector<8x8xf32>
    %c4_i32_146 = arith.constant 4 : i32
    %379 = vector.broadcast %c4_i32_146 : i32 to vector<8x8xi32>
    %380 = arith.cmpi sge, %0, %379 : vector<8x8xi32>
    %cst_147 = arith.constant -1.000000e+30 : f32
    %381 = vector.broadcast %cst_147 : f32 to vector<8x8xf32>
    %382 = arith.select %380, %378, %381 : vector<8x8xi1>, vector<8x8xf32>
    %cst_148 = arith.constant dense<0xFF800000> : vector<8xf32>
    %383 = vector.multi_reduction <maximumf>, %382, %cst_148 [1] : vector<8x8xf32> to vector<8xf32>
    %384 = vector.shape_cast %383 : vector<8xf32> to vector<8x1xf32>
    %385 = vector.broadcast %384 : vector<8x1xf32> to vector<8x8xf32>
    %386 = arith.subf %382, %385 : vector<8x8xf32>
    %387 = math.exp %386 : vector<8x8xf32>
    %cst_149 = arith.constant dense<0.000000e+00> : vector<8xf32>
    %388 = vector.multi_reduction <add>, %387, %cst_149 [1] : vector<8x8xf32> to vector<8xf32>
    %389 = vector.shape_cast %388 : vector<8xf32> to vector<8x1xf32>
    %390 = vector.broadcast %389 : vector<8x1xf32> to vector<8x8xf32>
    %391 = arith.divf %387, %390 : vector<8x8xf32>
    %cst_150 = arith.constant dense<0.000000e+00> : vector<8x8xf32>
    %392 = tpu.matmul %391, %375, %cst_150 {dimension_numbers = #tpu.dot_dimension_numbers<[1], [0], [0], [1], [0, 0, 1, 1], [], []>} : vector<8x8xf32>, vector<8x8xf32>, vector<8x8xf32> -> vector<8x8xf32>
    %393 = vector.extract_strided_slice %372 {offsets = [0, 8], sizes = [8, 8], strides = [1, 1]} : vector<8x96xf32> to vector<8x8xf32>
    %394 = vector.extract_strided_slice %372 {offsets = [0, 40], sizes = [8, 8], strides = [1, 1]} : vector<8x96xf32> to vector<8x8xf32>
    %395 = vector.extract_strided_slice %372 {offsets = [0, 72], sizes = [8, 8], strides = [1, 1]} : vector<8x96xf32> to vector<8x8xf32>
    %cst_151 = arith.constant dense<0.000000e+00> : vector<8x8xf32>
    %396 = tpu.matmul %393, %394, %cst_151 {dimension_numbers = #tpu.dot_dimension_numbers<[1], [1], [0], [0], [0, 0, 1, 0], [], []>} : vector<8x8xf32>, vector<8x8xf32>, vector<8x8xf32> -> vector<8x8xf32>
    %cst_152 = arith.constant 0.353553385 : f32
    %397 = vector.broadcast %cst_152 : f32 to vector<8x8xf32>
    %398 = arith.mulf %396, %397 : vector<8x8xf32>
    %c4_i32_153 = arith.constant 4 : i32
    %399 = vector.broadcast %c4_i32_153 : i32 to vector<8x8xi32>
    %400 = arith.cmpi sge, %0, %399 : vector<8x8xi32>
    %cst_154 = arith.constant -1.000000e+30 : f32
    %401 = vector.broadcast %cst_154 : f32 to vector<8x8xf32>
    %402 = arith.select %400, %398, %401 : vector<8x8xi1>, vector<8x8xf32>
    %cst_155 = arith.constant dense<0xFF800000> : vector<8xf32>
    %403 = vector.multi_reduction <maximumf>, %402, %cst_155 [1] : vector<8x8xf32> to vector<8xf32>
    %404 = vector.shape_cast %403 : vector<8xf32> to vector<8x1xf32>
    %405 = vector.broadcast %404 : vector<8x1xf32> to vector<8x8xf32>
    %406 = arith.subf %402, %405 : vector<8x8xf32>
    %407 = math.exp %406 : vector<8x8xf32>
    %cst_156 = arith.constant dense<0.000000e+00> : vector<8xf32>
    %408 = vector.multi_reduction <add>, %407, %cst_156 [1] : vector<8x8xf32> to vector<8xf32>
    %409 = vector.shape_cast %408 : vector<8xf32> to vector<8x1xf32>
    %410 = vector.broadcast %409 : vector<8x1xf32> to vector<8x8xf32>
    %411 = arith.divf %407, %410 : vector<8x8xf32>
    %cst_157 = arith.constant dense<0.000000e+00> : vector<8x8xf32>
    %412 = tpu.matmul %411, %395, %cst_157 {dimension_numbers = #tpu.dot_dimension_numbers<[1], [0], [0], [1], [0, 0, 1, 1], [], []>} : vector<8x8xf32>, vector<8x8xf32>, vector<8x8xf32> -> vector<8x8xf32>
    %413 = vector.extract_strided_slice %372 {offsets = [0, 16], sizes = [8, 8], strides = [1, 1]} : vector<8x96xf32> to vector<8x8xf32>
    %414 = vector.extract_strided_slice %372 {offsets = [0, 48], sizes = [8, 8], strides = [1, 1]} : vector<8x96xf32> to vector<8x8xf32>
    %415 = vector.extract_strided_slice %372 {offsets = [0, 80], sizes = [8, 8], strides = [1, 1]} : vector<8x96xf32> to vector<8x8xf32>
    %cst_158 = arith.constant dense<0.000000e+00> : vector<8x8xf32>
    %416 = tpu.matmul %413, %414, %cst_158 {dimension_numbers = #tpu.dot_dimension_numbers<[1], [1], [0], [0], [0, 0, 1, 0], [], []>} : vector<8x8xf32>, vector<8x8xf32>, vector<8x8xf32> -> vector<8x8xf32>
    %cst_159 = arith.constant 0.353553385 : f32
    %417 = vector.broadcast %cst_159 : f32 to vector<8x8xf32>
    %418 = arith.mulf %416, %417 : vector<8x8xf32>
    %c4_i32_160 = arith.constant 4 : i32
    %419 = vector.broadcast %c4_i32_160 : i32 to vector<8x8xi32>
    %420 = arith.cmpi sge, %0, %419 : vector<8x8xi32>
    %cst_161 = arith.constant -1.000000e+30 : f32
    %421 = vector.broadcast %cst_161 : f32 to vector<8x8xf32>
    %422 = arith.select %420, %418, %421 : vector<8x8xi1>, vector<8x8xf32>
    %cst_162 = arith.constant dense<0xFF800000> : vector<8xf32>
    %423 = vector.multi_reduction <maximumf>, %422, %cst_162 [1] : vector<8x8xf32> to vector<8xf32>
    %424 = vector.shape_cast %423 : vector<8xf32> to vector<8x1xf32>
    %425 = vector.broadcast %424 : vector<8x1xf32> to vector<8x8xf32>
    %426 = arith.subf %422, %425 : vector<8x8xf32>
    %427 = math.exp %426 : vector<8x8xf32>
    %cst_163 = arith.constant dense<0.000000e+00> : vector<8xf32>
    %428 = vector.multi_reduction <add>, %427, %cst_163 [1] : vector<8x8xf32> to vector<8xf32>
    %429 = vector.shape_cast %428 : vector<8xf32> to vector<8x1xf32>
    %430 = vector.broadcast %429 : vector<8x1xf32> to vector<8x8xf32>
    %431 = arith.divf %427, %430 : vector<8x8xf32>
    %cst_164 = arith.constant dense<0.000000e+00> : vector<8x8xf32>
    %432 = tpu.matmul %431, %415, %cst_164 {dimension_numbers = #tpu.dot_dimension_numbers<[1], [0], [0], [1], [0, 0, 1, 1], [], []>} : vector<8x8xf32>, vector<8x8xf32>, vector<8x8xf32> -> vector<8x8xf32>
    %433 = vector.extract_strided_slice %372 {offsets = [0, 24], sizes = [8, 8], strides = [1, 1]} : vector<8x96xf32> to vector<8x8xf32>
    %434 = vector.extract_strided_slice %372 {offsets = [0, 56], sizes = [8, 8], strides = [1, 1]} : vector<8x96xf32> to vector<8x8xf32>
    %435 = vector.extract_strided_slice %372 {offsets = [0, 88], sizes = [8, 8], strides = [1, 1]} : vector<8x96xf32> to vector<8x8xf32>
    %cst_165 = arith.constant dense<0.000000e+00> : vector<8x8xf32>
    %436 = tpu.matmul %433, %434, %cst_165 {dimension_numbers = #tpu.dot_dimension_numbers<[1], [1], [0], [0], [0, 0, 1, 0], [], []>} : vector<8x8xf32>, vector<8x8xf32>, vector<8x8xf32> -> vector<8x8xf32>
    %cst_166 = arith.constant 0.353553385 : f32
    %437 = vector.broadcast %cst_166 : f32 to vector<8x8xf32>
    %438 = arith.mulf %436, %437 : vector<8x8xf32>
    %c4_i32_167 = arith.constant 4 : i32
    %439 = vector.broadcast %c4_i32_167 : i32 to vector<8x8xi32>
    %440 = arith.cmpi sge, %0, %439 : vector<8x8xi32>
    %cst_168 = arith.constant -1.000000e+30 : f32
    %441 = vector.broadcast %cst_168 : f32 to vector<8x8xf32>
    %442 = arith.select %440, %438, %441 : vector<8x8xi1>, vector<8x8xf32>
    %cst_169 = arith.constant dense<0xFF800000> : vector<8xf32>
    %443 = vector.multi_reduction <maximumf>, %442, %cst_169 [1] : vector<8x8xf32> to vector<8xf32>
    %444 = vector.shape_cast %443 : vector<8xf32> to vector<8x1xf32>
    %445 = vector.broadcast %444 : vector<8x1xf32> to vector<8x8xf32>
    %446 = arith.subf %442, %445 : vector<8x8xf32>
    %447 = math.exp %446 : vector<8x8xf32>
    %cst_170 = arith.constant dense<0.000000e+00> : vector<8xf32>
    %448 = vector.multi_reduction <add>, %447, %cst_170 [1] : vector<8x8xf32> to vector<8xf32>
    %449 = vector.shape_cast %448 : vector<8xf32> to vector<8x1xf32>
    %450 = vector.broadcast %449 : vector<8x1xf32> to vector<8x8xf32>
    %451 = arith.divf %447, %450 : vector<8x8xf32>
    %cst_171 = arith.constant dense<0.000000e+00> : vector<8x8xf32>
    %452 = tpu.matmul %451, %435, %cst_171 {dimension_numbers = #tpu.dot_dimension_numbers<[1], [0], [0], [1], [0, 0, 1, 1], [], []>} : vector<8x8xf32>, vector<8x8xf32>, vector<8x8xf32> -> vector<8x8xf32>
    %453 = tpu.concatenate %392, %412, %432, %452 in 1 : vector<8x8xf32>, vector<8x8xf32>, vector<8x8xf32>, vector<8x8xf32> -> vector<8x32xf32>
    %c1_172 = arith.constant 1 : index
    %c0_173 = arith.constant 0 : index
    %c0_174 = arith.constant 0 : index
    %454 = vector.load %arg5[%c1_172, %c0_173, %c0_174] : memref<3x32x32xf32, #tpu.memory_space<vmem>>, vector<1x32x32xf32>
    %455 = vector.shape_cast %454 : vector<1x32x32xf32> to vector<32x32xf32>
    %cst_175 = arith.constant dense<0.000000e+00> : vector<8x32xf32>
    %456 = tpu.matmul %453, %455, %cst_175 {dimension_numbers = #tpu.dot_dimension_numbers<[1], [0], [0], [1], [0, 0, 1, 1], [], []>} : vector<8x32xf32>, vector<32x32xf32>, vector<8x32xf32> -> vector<8x32xf32>
    %c1_176 = arith.constant 1 : index
    %c0_177 = arith.constant 0 : index
    %c0_178 = arith.constant 0 : index
    %457 = vector.load %arg6[%c1_176, %c0_177, %c0_178] : memref<3x1x32xf32, #tpu.memory_space<vmem>>, vector<1x1x32xf32>
    %458 = vector.shape_cast %457 : vector<1x1x32xf32> to vector<1x32xf32>
    %459 = vector.broadcast %458 : vector<1x32xf32> to vector<8x32xf32>
    %460 = arith.addf %456, %459 : vector<8x32xf32>
    %c4_i32_179 = arith.constant 4 : i32
    %461 = vector.broadcast %c4_i32_179 : i32 to vector<8x1xi32>
    %462 = arith.cmpi sge, %1, %461 : vector<8x1xi32>
    %cst_180 = arith.constant 0.000000e+00 : f32
    %463 = vector.shape_cast %462 : vector<8x1xi1> to vector<8x1xi1>
    %464 = vector.broadcast %463 : vector<8x1xi1> to vector<8x32xi1>
    %465 = vector.broadcast %cst_180 : f32 to vector<8x32xf32>
    %466 = arith.select %464, %460, %465 : vector<8x32xi1>, vector<8x32xf32>
    %467 = vector.extract_strided_slice %12 {offsets = [8, 192], sizes = [8, 96], strides = [1, 1]} : vector<16x288xf32> to vector<8x96xf32>
    %468 = vector.extract_strided_slice %467 {offsets = [0, 0], sizes = [8, 8], strides = [1, 1]} : vector<8x96xf32> to vector<8x8xf32>
    %469 = vector.extract_strided_slice %467 {offsets = [0, 32], sizes = [8, 8], strides = [1, 1]} : vector<8x96xf32> to vector<8x8xf32>
    %470 = vector.extract_strided_slice %467 {offsets = [0, 64], sizes = [8, 8], strides = [1, 1]} : vector<8x96xf32> to vector<8x8xf32>
    %cst_181 = arith.constant dense<0.000000e+00> : vector<8x8xf32>
    %471 = tpu.matmul %468, %469, %cst_181 {dimension_numbers = #tpu.dot_dimension_numbers<[1], [1], [0], [0], [0, 0, 1, 0], [], []>} : vector<8x8xf32>, vector<8x8xf32>, vector<8x8xf32> -> vector<8x8xf32>
    %cst_182 = arith.constant 0.353553385 : f32
    %472 = vector.broadcast %cst_182 : f32 to vector<8x8xf32>
    %473 = arith.mulf %471, %472 : vector<8x8xf32>
    %cst_183 = arith.constant dense<0xFF800000> : vector<8xf32>
    %474 = vector.multi_reduction <maximumf>, %473, %cst_183 [1] : vector<8x8xf32> to vector<8xf32>
    %475 = vector.shape_cast %474 : vector<8xf32> to vector<8x1xf32>
    %476 = vector.broadcast %475 : vector<8x1xf32> to vector<8x8xf32>
    %477 = arith.subf %473, %476 : vector<8x8xf32>
    %478 = math.exp %477 : vector<8x8xf32>
    %cst_184 = arith.constant dense<0.000000e+00> : vector<8xf32>
    %479 = vector.multi_reduction <add>, %478, %cst_184 [1] : vector<8x8xf32> to vector<8xf32>
    %480 = vector.shape_cast %479 : vector<8xf32> to vector<8x1xf32>
    %481 = vector.broadcast %480 : vector<8x1xf32> to vector<8x8xf32>
    %482 = arith.divf %478, %481 : vector<8x8xf32>
    %cst_185 = arith.constant dense<0.000000e+00> : vector<8x8xf32>
    %483 = tpu.matmul %482, %470, %cst_185 {dimension_numbers = #tpu.dot_dimension_numbers<[1], [0], [0], [1], [0, 0, 1, 1], [], []>} : vector<8x8xf32>, vector<8x8xf32>, vector<8x8xf32> -> vector<8x8xf32>
    %484 = vector.extract_strided_slice %467 {offsets = [0, 8], sizes = [8, 8], strides = [1, 1]} : vector<8x96xf32> to vector<8x8xf32>
    %485 = vector.extract_strided_slice %467 {offsets = [0, 40], sizes = [8, 8], strides = [1, 1]} : vector<8x96xf32> to vector<8x8xf32>
    %486 = vector.extract_strided_slice %467 {offsets = [0, 72], sizes = [8, 8], strides = [1, 1]} : vector<8x96xf32> to vector<8x8xf32>
    %cst_186 = arith.constant dense<0.000000e+00> : vector<8x8xf32>
    %487 = tpu.matmul %484, %485, %cst_186 {dimension_numbers = #tpu.dot_dimension_numbers<[1], [1], [0], [0], [0, 0, 1, 0], [], []>} : vector<8x8xf32>, vector<8x8xf32>, vector<8x8xf32> -> vector<8x8xf32>
    %cst_187 = arith.constant 0.353553385 : f32
    %488 = vector.broadcast %cst_187 : f32 to vector<8x8xf32>
    %489 = arith.mulf %487, %488 : vector<8x8xf32>
    %cst_188 = arith.constant dense<0xFF800000> : vector<8xf32>
    %490 = vector.multi_reduction <maximumf>, %489, %cst_188 [1] : vector<8x8xf32> to vector<8xf32>
    %491 = vector.shape_cast %490 : vector<8xf32> to vector<8x1xf32>
    %492 = vector.broadcast %491 : vector<8x1xf32> to vector<8x8xf32>
    %493 = arith.subf %489, %492 : vector<8x8xf32>
    %494 = math.exp %493 : vector<8x8xf32>
    %cst_189 = arith.constant dense<0.000000e+00> : vector<8xf32>
    %495 = vector.multi_reduction <add>, %494, %cst_189 [1] : vector<8x8xf32> to vector<8xf32>
    %496 = vector.shape_cast %495 : vector<8xf32> to vector<8x1xf32>
    %497 = vector.broadcast %496 : vector<8x1xf32> to vector<8x8xf32>
    %498 = arith.divf %494, %497 : vector<8x8xf32>
    %cst_190 = arith.constant dense<0.000000e+00> : vector<8x8xf32>
    %499 = tpu.matmul %498, %486, %cst_190 {dimension_numbers = #tpu.dot_dimension_numbers<[1], [0], [0], [1], [0, 0, 1, 1], [], []>} : vector<8x8xf32>, vector<8x8xf32>, vector<8x8xf32> -> vector<8x8xf32>
    %500 = vector.extract_strided_slice %467 {offsets = [0, 16], sizes = [8, 8], strides = [1, 1]} : vector<8x96xf32> to vector<8x8xf32>
    %501 = vector.extract_strided_slice %467 {offsets = [0, 48], sizes = [8, 8], strides = [1, 1]} : vector<8x96xf32> to vector<8x8xf32>
    %502 = vector.extract_strided_slice %467 {offsets = [0, 80], sizes = [8, 8], strides = [1, 1]} : vector<8x96xf32> to vector<8x8xf32>
    %cst_191 = arith.constant dense<0.000000e+00> : vector<8x8xf32>
    %503 = tpu.matmul %500, %501, %cst_191 {dimension_numbers = #tpu.dot_dimension_numbers<[1], [1], [0], [0], [0, 0, 1, 0], [], []>} : vector<8x8xf32>, vector<8x8xf32>, vector<8x8xf32> -> vector<8x8xf32>
    %cst_192 = arith.constant 0.353553385 : f32
    %504 = vector.broadcast %cst_192 : f32 to vector<8x8xf32>
    %505 = arith.mulf %503, %504 : vector<8x8xf32>
    %cst_193 = arith.constant dense<0xFF800000> : vector<8xf32>
    %506 = vector.multi_reduction <maximumf>, %505, %cst_193 [1] : vector<8x8xf32> to vector<8xf32>
    %507 = vector.shape_cast %506 : vector<8xf32> to vector<8x1xf32>
    %508 = vector.broadcast %507 : vector<8x1xf32> to vector<8x8xf32>
    %509 = arith.subf %505, %508 : vector<8x8xf32>
    %510 = math.exp %509 : vector<8x8xf32>
    %cst_194 = arith.constant dense<0.000000e+00> : vector<8xf32>
    %511 = vector.multi_reduction <add>, %510, %cst_194 [1] : vector<8x8xf32> to vector<8xf32>
    %512 = vector.shape_cast %511 : vector<8xf32> to vector<8x1xf32>
    %513 = vector.broadcast %512 : vector<8x1xf32> to vector<8x8xf32>
    %514 = arith.divf %510, %513 : vector<8x8xf32>
    %cst_195 = arith.constant dense<0.000000e+00> : vector<8x8xf32>
    %515 = tpu.matmul %514, %502, %cst_195 {dimension_numbers = #tpu.dot_dimension_numbers<[1], [0], [0], [1], [0, 0, 1, 1], [], []>} : vector<8x8xf32>, vector<8x8xf32>, vector<8x8xf32> -> vector<8x8xf32>
    %516 = vector.extract_strided_slice %467 {offsets = [0, 24], sizes = [8, 8], strides = [1, 1]} : vector<8x96xf32> to vector<8x8xf32>
    %517 = vector.extract_strided_slice %467 {offsets = [0, 56], sizes = [8, 8], strides = [1, 1]} : vector<8x96xf32> to vector<8x8xf32>
    %518 = vector.extract_strided_slice %467 {offsets = [0, 88], sizes = [8, 8], strides = [1, 1]} : vector<8x96xf32> to vector<8x8xf32>
    %cst_196 = arith.constant dense<0.000000e+00> : vector<8x8xf32>
    %519 = tpu.matmul %516, %517, %cst_196 {dimension_numbers = #tpu.dot_dimension_numbers<[1], [1], [0], [0], [0, 0, 1, 0], [], []>} : vector<8x8xf32>, vector<8x8xf32>, vector<8x8xf32> -> vector<8x8xf32>
    %cst_197 = arith.constant 0.353553385 : f32
    %520 = vector.broadcast %cst_197 : f32 to vector<8x8xf32>
    %521 = arith.mulf %519, %520 : vector<8x8xf32>
    %cst_198 = arith.constant dense<0xFF800000> : vector<8xf32>
    %522 = vector.multi_reduction <maximumf>, %521, %cst_198 [1] : vector<8x8xf32> to vector<8xf32>
    %523 = vector.shape_cast %522 : vector<8xf32> to vector<8x1xf32>
    %524 = vector.broadcast %523 : vector<8x1xf32> to vector<8x8xf32>
    %525 = arith.subf %521, %524 : vector<8x8xf32>
    %526 = math.exp %525 : vector<8x8xf32>
    %cst_199 = arith.constant dense<0.000000e+00> : vector<8xf32>
    %527 = vector.multi_reduction <add>, %526, %cst_199 [1] : vector<8x8xf32> to vector<8xf32>
    %528 = vector.shape_cast %527 : vector<8xf32> to vector<8x1xf32>
    %529 = vector.broadcast %528 : vector<8x1xf32> to vector<8x8xf32>
    %530 = arith.divf %526, %529 : vector<8x8xf32>
    %cst_200 = arith.constant dense<0.000000e+00> : vector<8x8xf32>
    %531 = tpu.matmul %530, %518, %cst_200 {dimension_numbers = #tpu.dot_dimension_numbers<[1], [0], [0], [1], [0, 0, 1, 1], [], []>} : vector<8x8xf32>, vector<8x8xf32>, vector<8x8xf32> -> vector<8x8xf32>
    %532 = tpu.concatenate %483, %499, %515, %531 in 1 : vector<8x8xf32>, vector<8x8xf32>, vector<8x8xf32>, vector<8x8xf32> -> vector<8x32xf32>
    %c2_201 = arith.constant 2 : index
    %c0_202 = arith.constant 0 : index
    %c0_203 = arith.constant 0 : index
    %533 = vector.load %arg5[%c2_201, %c0_202, %c0_203] : memref<3x32x32xf32, #tpu.memory_space<vmem>>, vector<1x32x32xf32>
    %534 = vector.shape_cast %533 : vector<1x32x32xf32> to vector<32x32xf32>
    %cst_204 = arith.constant dense<0.000000e+00> : vector<8x32xf32>
    %535 = tpu.matmul %532, %534, %cst_204 {dimension_numbers = #tpu.dot_dimension_numbers<[1], [0], [0], [1], [0, 0, 1, 1], [], []>} : vector<8x32xf32>, vector<32x32xf32>, vector<8x32xf32> -> vector<8x32xf32>
    %c2_205 = arith.constant 2 : index
    %c0_206 = arith.constant 0 : index
    %c0_207 = arith.constant 0 : index
    %536 = vector.load %arg6[%c2_205, %c0_206, %c0_207] : memref<3x1x32xf32, #tpu.memory_space<vmem>>, vector<1x1x32xf32>
    %537 = vector.shape_cast %536 : vector<1x1x32xf32> to vector<1x32xf32>
    %538 = vector.broadcast %537 : vector<1x32xf32> to vector<8x32xf32>
    %539 = arith.addf %535, %538 : vector<8x32xf32>
    %540 = tpu.concatenate %371, %466, %539 in 1 : vector<8x32xf32>, vector<8x32xf32>, vector<8x32xf32> -> vector<8x96xf32>
    %541 = tpu.concatenate %276, %540 in 0 : vector<8x96xf32>, vector<8x96xf32> -> vector<16x96xf32>
    %c0_208 = arith.constant 0 : index
    %c0_209 = arith.constant 0 : index
    %542 = vector.load %arg7[%c0_208, %c0_209] : memref<96x32xf32, #tpu.memory_space<vmem>>, vector<96x32xf32>
    %cst_210 = arith.constant dense<0.000000e+00> : vector<16x32xf32>
    %543 = tpu.matmul %541, %542, %cst_210 {dimension_numbers = #tpu.dot_dimension_numbers<[1], [0], [0], [1], [0, 0, 1, 1], [], []>} : vector<16x96xf32>, vector<96x32xf32>, vector<16x32xf32> -> vector<16x32xf32>
    %c0_211 = arith.constant 0 : index
    %c0_212 = arith.constant 0 : index
    %544 = vector.load %arg8[%c0_211, %c0_212] : memref<1x32xf32, #tpu.memory_space<vmem>>, vector<1x32xf32>
    %545 = vector.broadcast %544 : vector<1x32xf32> to vector<16x32xf32>
    %546 = arith.addf %543, %545 : vector<16x32xf32>
    %547 = arith.addf %546, %7 : vector<16x32xf32>
    %c0_213 = arith.constant 0 : index
    %c0_214 = arith.constant 0 : index
    %548 = vector.load %arg9[%c0_213, %c0_214] : memref<1x32xf32, #tpu.memory_space<vmem>>, vector<1x32xf32>
    %c0_215 = arith.constant 0 : index
    %c0_216 = arith.constant 0 : index
    %549 = vector.load %arg10[%c0_215, %c0_216] : memref<1x32xf32, #tpu.memory_space<vmem>>, vector<1x32xf32>
    %cst_217 = arith.constant dense<0.000000e+00> : vector<16xf32>
    %550 = vector.multi_reduction <add>, %547, %cst_217 [1] : vector<16x32xf32> to vector<16xf32>
    %551 = vector.shape_cast %550 : vector<16xf32> to vector<16x1xf32>
    %cst_218 = arith.constant 3.200000e+01 : f32
    %552 = vector.broadcast %cst_218 : f32 to vector<16x1xf32>
    %553 = arith.divf %551, %552 : vector<16x1xf32>
    %554 = vector.broadcast %553 : vector<16x1xf32> to vector<16x32xf32>
    %555 = arith.subf %547, %554 : vector<16x32xf32>
    %556 = arith.mulf %555, %555 : vector<16x32xf32>
    %cst_219 = arith.constant dense<0.000000e+00> : vector<16xf32>
    %557 = vector.multi_reduction <add>, %556, %cst_219 [1] : vector<16x32xf32> to vector<16xf32>
    %558 = vector.shape_cast %557 : vector<16xf32> to vector<16x1xf32>
    %cst_220 = arith.constant 3.200000e+01 : f32
    %559 = vector.broadcast %cst_220 : f32 to vector<16x1xf32>
    %560 = arith.divf %558, %559 : vector<16x1xf32>
    %561 = vector.broadcast %553 : vector<16x1xf32> to vector<16x32xf32>
    %562 = arith.subf %547, %561 : vector<16x32xf32>
    %cst_221 = arith.constant 9.99999974E-6 : f32
    %563 = vector.broadcast %cst_221 : f32 to vector<16x1xf32>
    %564 = arith.addf %560, %563 : vector<16x1xf32>
    %565 = math.rsqrt %564 : vector<16x1xf32>
    %566 = vector.broadcast %565 : vector<16x1xf32> to vector<16x32xf32>
    %567 = arith.mulf %562, %566 : vector<16x32xf32>
    %568 = vector.broadcast %548 : vector<1x32xf32> to vector<16x32xf32>
    %569 = arith.mulf %567, %568 : vector<16x32xf32>
    %570 = vector.broadcast %549 : vector<1x32xf32> to vector<16x32xf32>
    %571 = arith.addf %569, %570 : vector<16x32xf32>
    %c0_222 = arith.constant 0 : index
    %c0_223 = arith.constant 0 : index
    %c0_224 = arith.constant 0 : index
    %572 = vector.load %arg15[%c0_222, %c0_223, %c0_224] : memref<2x1x32xf32, #tpu.memory_space<vmem>>, vector<1x1x32xf32>
    %573 = vector.shape_cast %572 : vector<1x1x32xf32> to vector<1x32xf32>
    %c0_225 = arith.constant 0 : index
    %c0_226 = arith.constant 0 : index
    %c0_227 = arith.constant 0 : index
    %574 = vector.load %arg16[%c0_225, %c0_226, %c0_227] : memref<2x1x32xf32, #tpu.memory_space<vmem>>, vector<1x1x32xf32>
    %575 = vector.shape_cast %574 : vector<1x1x32xf32> to vector<1x32xf32>
    %cst_228 = arith.constant dense<0.000000e+00> : vector<16xf32>
    %576 = vector.multi_reduction <add>, %571, %cst_228 [1] : vector<16x32xf32> to vector<16xf32>
    %577 = vector.shape_cast %576 : vector<16xf32> to vector<16x1xf32>
    %cst_229 = arith.constant 3.200000e+01 : f32
    %578 = vector.broadcast %cst_229 : f32 to vector<16x1xf32>
    %579 = arith.divf %577, %578 : vector<16x1xf32>
    %580 = vector.broadcast %579 : vector<16x1xf32> to vector<16x32xf32>
    %581 = arith.subf %571, %580 : vector<16x32xf32>
    %582 = arith.mulf %581, %581 : vector<16x32xf32>
    %cst_230 = arith.constant dense<0.000000e+00> : vector<16xf32>
    %583 = vector.multi_reduction <add>, %582, %cst_230 [1] : vector<16x32xf32> to vector<16xf32>
    %584 = vector.shape_cast %583 : vector<16xf32> to vector<16x1xf32>
    %cst_231 = arith.constant 3.200000e+01 : f32
    %585 = vector.broadcast %cst_231 : f32 to vector<16x1xf32>
    %586 = arith.divf %584, %585 : vector<16x1xf32>
    %587 = vector.broadcast %579 : vector<16x1xf32> to vector<16x32xf32>
    %588 = arith.subf %571, %587 : vector<16x32xf32>
    %cst_232 = arith.constant 9.99999974E-6 : f32
    %589 = vector.broadcast %cst_232 : f32 to vector<16x1xf32>
    %590 = arith.addf %586, %589 : vector<16x1xf32>
    %591 = math.rsqrt %590 : vector<16x1xf32>
    %592 = vector.broadcast %591 : vector<16x1xf32> to vector<16x32xf32>
    %593 = arith.mulf %588, %592 : vector<16x32xf32>
    %594 = vector.broadcast %573 : vector<1x32xf32> to vector<16x32xf32>
    %595 = arith.mulf %593, %594 : vector<16x32xf32>
    %596 = vector.broadcast %575 : vector<1x32xf32> to vector<16x32xf32>
    %597 = arith.addf %595, %596 : vector<16x32xf32>
    %c0_233 = arith.constant 0 : index
    %c0_234 = arith.constant 0 : index
    %c0_235 = arith.constant 0 : index
    %598 = vector.load %arg11[%c0_233, %c0_234, %c0_235] : memref<2x32x96xf32, #tpu.memory_space<vmem>>, vector<1x32x96xf32>
    %599 = vector.shape_cast %598 : vector<1x32x96xf32> to vector<32x96xf32>
    %cst_236 = arith.constant dense<0.000000e+00> : vector<16x96xf32>
    %600 = tpu.matmul %597, %599, %cst_236 {dimension_numbers = #tpu.dot_dimension_numbers<[1], [0], [0], [1], [0, 0, 1, 1], [], []>} : vector<16x32xf32>, vector<32x96xf32>, vector<16x96xf32> -> vector<16x96xf32>
    %c0_237 = arith.constant 0 : index
    %c0_238 = arith.constant 0 : index
    %c0_239 = arith.constant 0 : index
    %601 = vector.load %arg12[%c0_237, %c0_238, %c0_239] : memref<2x1x96xf32, #tpu.memory_space<vmem>>, vector<1x1x96xf32>
    %602 = vector.shape_cast %601 : vector<1x1x96xf32> to vector<1x96xf32>
    %603 = vector.broadcast %602 : vector<1x96xf32> to vector<16x96xf32>
    %604 = arith.addf %600, %603 : vector<16x96xf32>
    %605 = vector.extract_strided_slice %604 {offsets = [0, 0], sizes = [8, 96], strides = [1, 1]} : vector<16x96xf32> to vector<8x96xf32>
    %606 = vector.extract_strided_slice %605 {offsets = [0, 0], sizes = [8, 8], strides = [1, 1]} : vector<8x96xf32> to vector<8x8xf32>
    %607 = vector.extract_strided_slice %605 {offsets = [0, 32], sizes = [8, 8], strides = [1, 1]} : vector<8x96xf32> to vector<8x8xf32>
    %608 = vector.extract_strided_slice %605 {offsets = [0, 64], sizes = [8, 8], strides = [1, 1]} : vector<8x96xf32> to vector<8x8xf32>
    %cst_240 = arith.constant dense<0.000000e+00> : vector<8x8xf32>
    %609 = tpu.matmul %606, %607, %cst_240 {dimension_numbers = #tpu.dot_dimension_numbers<[1], [1], [0], [0], [0, 0, 1, 0], [], []>} : vector<8x8xf32>, vector<8x8xf32>, vector<8x8xf32> -> vector<8x8xf32>
    %cst_241 = arith.constant 0.353553385 : f32
    %610 = vector.broadcast %cst_241 : f32 to vector<8x8xf32>
    %611 = arith.mulf %609, %610 : vector<8x8xf32>
    %cst_242 = arith.constant dense<0xFF800000> : vector<8xf32>
    %612 = vector.multi_reduction <maximumf>, %611, %cst_242 [1] : vector<8x8xf32> to vector<8xf32>
    %613 = vector.shape_cast %612 : vector<8xf32> to vector<8x1xf32>
    %614 = vector.broadcast %613 : vector<8x1xf32> to vector<8x8xf32>
    %615 = arith.subf %611, %614 : vector<8x8xf32>
    %616 = math.exp %615 : vector<8x8xf32>
    %cst_243 = arith.constant dense<0.000000e+00> : vector<8xf32>
    %617 = vector.multi_reduction <add>, %616, %cst_243 [1] : vector<8x8xf32> to vector<8xf32>
    %618 = vector.shape_cast %617 : vector<8xf32> to vector<8x1xf32>
    %619 = vector.broadcast %618 : vector<8x1xf32> to vector<8x8xf32>
    %620 = arith.divf %616, %619 : vector<8x8xf32>
    %cst_244 = arith.constant dense<0.000000e+00> : vector<8x8xf32>
    %621 = tpu.matmul %620, %608, %cst_244 {dimension_numbers = #tpu.dot_dimension_numbers<[1], [0], [0], [1], [0, 0, 1, 1], [], []>} : vector<8x8xf32>, vector<8x8xf32>, vector<8x8xf32> -> vector<8x8xf32>
    %622 = vector.extract_strided_slice %605 {offsets = [0, 8], sizes = [8, 8], strides = [1, 1]} : vector<8x96xf32> to vector<8x8xf32>
    %623 = vector.extract_strided_slice %605 {offsets = [0, 40], sizes = [8, 8], strides = [1, 1]} : vector<8x96xf32> to vector<8x8xf32>
    %624 = vector.extract_strided_slice %605 {offsets = [0, 72], sizes = [8, 8], strides = [1, 1]} : vector<8x96xf32> to vector<8x8xf32>
    %cst_245 = arith.constant dense<0.000000e+00> : vector<8x8xf32>
    %625 = tpu.matmul %622, %623, %cst_245 {dimension_numbers = #tpu.dot_dimension_numbers<[1], [1], [0], [0], [0, 0, 1, 0], [], []>} : vector<8x8xf32>, vector<8x8xf32>, vector<8x8xf32> -> vector<8x8xf32>
    %cst_246 = arith.constant 0.353553385 : f32
    %626 = vector.broadcast %cst_246 : f32 to vector<8x8xf32>
    %627 = arith.mulf %625, %626 : vector<8x8xf32>
    %cst_247 = arith.constant dense<0xFF800000> : vector<8xf32>
    %628 = vector.multi_reduction <maximumf>, %627, %cst_247 [1] : vector<8x8xf32> to vector<8xf32>
    %629 = vector.shape_cast %628 : vector<8xf32> to vector<8x1xf32>
    %630 = vector.broadcast %629 : vector<8x1xf32> to vector<8x8xf32>
    %631 = arith.subf %627, %630 : vector<8x8xf32>
    %632 = math.exp %631 : vector<8x8xf32>
    %cst_248 = arith.constant dense<0.000000e+00> : vector<8xf32>
    %633 = vector.multi_reduction <add>, %632, %cst_248 [1] : vector<8x8xf32> to vector<8xf32>
    %634 = vector.shape_cast %633 : vector<8xf32> to vector<8x1xf32>
    %635 = vector.broadcast %634 : vector<8x1xf32> to vector<8x8xf32>
    %636 = arith.divf %632, %635 : vector<8x8xf32>
    %cst_249 = arith.constant dense<0.000000e+00> : vector<8x8xf32>
    %637 = tpu.matmul %636, %624, %cst_249 {dimension_numbers = #tpu.dot_dimension_numbers<[1], [0], [0], [1], [0, 0, 1, 1], [], []>} : vector<8x8xf32>, vector<8x8xf32>, vector<8x8xf32> -> vector<8x8xf32>
    %638 = vector.extract_strided_slice %605 {offsets = [0, 16], sizes = [8, 8], strides = [1, 1]} : vector<8x96xf32> to vector<8x8xf32>
    %639 = vector.extract_strided_slice %605 {offsets = [0, 48], sizes = [8, 8], strides = [1, 1]} : vector<8x96xf32> to vector<8x8xf32>
    %640 = vector.extract_strided_slice %605 {offsets = [0, 80], sizes = [8, 8], strides = [1, 1]} : vector<8x96xf32> to vector<8x8xf32>
    %cst_250 = arith.constant dense<0.000000e+00> : vector<8x8xf32>
    %641 = tpu.matmul %638, %639, %cst_250 {dimension_numbers = #tpu.dot_dimension_numbers<[1], [1], [0], [0], [0, 0, 1, 0], [], []>} : vector<8x8xf32>, vector<8x8xf32>, vector<8x8xf32> -> vector<8x8xf32>
    %cst_251 = arith.constant 0.353553385 : f32
    %642 = vector.broadcast %cst_251 : f32 to vector<8x8xf32>
    %643 = arith.mulf %641, %642 : vector<8x8xf32>
    %cst_252 = arith.constant dense<0xFF800000> : vector<8xf32>
    %644 = vector.multi_reduction <maximumf>, %643, %cst_252 [1] : vector<8x8xf32> to vector<8xf32>
    %645 = vector.shape_cast %644 : vector<8xf32> to vector<8x1xf32>
    %646 = vector.broadcast %645 : vector<8x1xf32> to vector<8x8xf32>
    %647 = arith.subf %643, %646 : vector<8x8xf32>
    %648 = math.exp %647 : vector<8x8xf32>
    %cst_253 = arith.constant dense<0.000000e+00> : vector<8xf32>
    %649 = vector.multi_reduction <add>, %648, %cst_253 [1] : vector<8x8xf32> to vector<8xf32>
    %650 = vector.shape_cast %649 : vector<8xf32> to vector<8x1xf32>
    %651 = vector.broadcast %650 : vector<8x1xf32> to vector<8x8xf32>
    %652 = arith.divf %648, %651 : vector<8x8xf32>
    %cst_254 = arith.constant dense<0.000000e+00> : vector<8x8xf32>
    %653 = tpu.matmul %652, %640, %cst_254 {dimension_numbers = #tpu.dot_dimension_numbers<[1], [0], [0], [1], [0, 0, 1, 1], [], []>} : vector<8x8xf32>, vector<8x8xf32>, vector<8x8xf32> -> vector<8x8xf32>
    %654 = vector.extract_strided_slice %605 {offsets = [0, 24], sizes = [8, 8], strides = [1, 1]} : vector<8x96xf32> to vector<8x8xf32>
    %655 = vector.extract_strided_slice %605 {offsets = [0, 56], sizes = [8, 8], strides = [1, 1]} : vector<8x96xf32> to vector<8x8xf32>
    %656 = vector.extract_strided_slice %605 {offsets = [0, 88], sizes = [8, 8], strides = [1, 1]} : vector<8x96xf32> to vector<8x8xf32>
    %cst_255 = arith.constant dense<0.000000e+00> : vector<8x8xf32>
    %657 = tpu.matmul %654, %655, %cst_255 {dimension_numbers = #tpu.dot_dimension_numbers<[1], [1], [0], [0], [0, 0, 1, 0], [], []>} : vector<8x8xf32>, vector<8x8xf32>, vector<8x8xf32> -> vector<8x8xf32>
    %cst_256 = arith.constant 0.353553385 : f32
    %658 = vector.broadcast %cst_256 : f32 to vector<8x8xf32>
    %659 = arith.mulf %657, %658 : vector<8x8xf32>
    %cst_257 = arith.constant dense<0xFF800000> : vector<8xf32>
    %660 = vector.multi_reduction <maximumf>, %659, %cst_257 [1] : vector<8x8xf32> to vector<8xf32>
    %661 = vector.shape_cast %660 : vector<8xf32> to vector<8x1xf32>
    %662 = vector.broadcast %661 : vector<8x1xf32> to vector<8x8xf32>
    %663 = arith.subf %659, %662 : vector<8x8xf32>
    %664 = math.exp %663 : vector<8x8xf32>
    %cst_258 = arith.constant dense<0.000000e+00> : vector<8xf32>
    %665 = vector.multi_reduction <add>, %664, %cst_258 [1] : vector<8x8xf32> to vector<8xf32>
    %666 = vector.shape_cast %665 : vector<8xf32> to vector<8x1xf32>
    %667 = vector.broadcast %666 : vector<8x1xf32> to vector<8x8xf32>
    %668 = arith.divf %664, %667 : vector<8x8xf32>
    %cst_259 = arith.constant dense<0.000000e+00> : vector<8x8xf32>
    %669 = tpu.matmul %668, %656, %cst_259 {dimension_numbers = #tpu.dot_dimension_numbers<[1], [0], [0], [1], [0, 0, 1, 1], [], []>} : vector<8x8xf32>, vector<8x8xf32>, vector<8x8xf32> -> vector<8x8xf32>
    %670 = tpu.concatenate %621, %637, %653, %669 in 1 : vector<8x8xf32>, vector<8x8xf32>, vector<8x8xf32>, vector<8x8xf32> -> vector<8x32xf32>
    %671 = vector.extract_strided_slice %604 {offsets = [8, 0], sizes = [8, 96], strides = [1, 1]} : vector<16x96xf32> to vector<8x96xf32>
    %672 = vector.extract_strided_slice %671 {offsets = [0, 0], sizes = [8, 8], strides = [1, 1]} : vector<8x96xf32> to vector<8x8xf32>
    %673 = vector.extract_strided_slice %671 {offsets = [0, 32], sizes = [8, 8], strides = [1, 1]} : vector<8x96xf32> to vector<8x8xf32>
    %674 = vector.extract_strided_slice %671 {offsets = [0, 64], sizes = [8, 8], strides = [1, 1]} : vector<8x96xf32> to vector<8x8xf32>
    %cst_260 = arith.constant dense<0.000000e+00> : vector<8x8xf32>
    %675 = tpu.matmul %672, %673, %cst_260 {dimension_numbers = #tpu.dot_dimension_numbers<[1], [1], [0], [0], [0, 0, 1, 0], [], []>} : vector<8x8xf32>, vector<8x8xf32>, vector<8x8xf32> -> vector<8x8xf32>
    %cst_261 = arith.constant 0.353553385 : f32
    %676 = vector.broadcast %cst_261 : f32 to vector<8x8xf32>
    %677 = arith.mulf %675, %676 : vector<8x8xf32>
    %cst_262 = arith.constant dense<0xFF800000> : vector<8xf32>
    %678 = vector.multi_reduction <maximumf>, %677, %cst_262 [1] : vector<8x8xf32> to vector<8xf32>
    %679 = vector.shape_cast %678 : vector<8xf32> to vector<8x1xf32>
    %680 = vector.broadcast %679 : vector<8x1xf32> to vector<8x8xf32>
    %681 = arith.subf %677, %680 : vector<8x8xf32>
    %682 = math.exp %681 : vector<8x8xf32>
    %cst_263 = arith.constant dense<0.000000e+00> : vector<8xf32>
    %683 = vector.multi_reduction <add>, %682, %cst_263 [1] : vector<8x8xf32> to vector<8xf32>
    %684 = vector.shape_cast %683 : vector<8xf32> to vector<8x1xf32>
    %685 = vector.broadcast %684 : vector<8x1xf32> to vector<8x8xf32>
    %686 = arith.divf %682, %685 : vector<8x8xf32>
    %cst_264 = arith.constant dense<0.000000e+00> : vector<8x8xf32>
    %687 = tpu.matmul %686, %674, %cst_264 {dimension_numbers = #tpu.dot_dimension_numbers<[1], [0], [0], [1], [0, 0, 1, 1], [], []>} : vector<8x8xf32>, vector<8x8xf32>, vector<8x8xf32> -> vector<8x8xf32>
    %688 = vector.extract_strided_slice %671 {offsets = [0, 8], sizes = [8, 8], strides = [1, 1]} : vector<8x96xf32> to vector<8x8xf32>
    %689 = vector.extract_strided_slice %671 {offsets = [0, 40], sizes = [8, 8], strides = [1, 1]} : vector<8x96xf32> to vector<8x8xf32>
    %690 = vector.extract_strided_slice %671 {offsets = [0, 72], sizes = [8, 8], strides = [1, 1]} : vector<8x96xf32> to vector<8x8xf32>
    %cst_265 = arith.constant dense<0.000000e+00> : vector<8x8xf32>
    %691 = tpu.matmul %688, %689, %cst_265 {dimension_numbers = #tpu.dot_dimension_numbers<[1], [1], [0], [0], [0, 0, 1, 0], [], []>} : vector<8x8xf32>, vector<8x8xf32>, vector<8x8xf32> -> vector<8x8xf32>
    %cst_266 = arith.constant 0.353553385 : f32
    %692 = vector.broadcast %cst_266 : f32 to vector<8x8xf32>
    %693 = arith.mulf %691, %692 : vector<8x8xf32>
    %cst_267 = arith.constant dense<0xFF800000> : vector<8xf32>
    %694 = vector.multi_reduction <maximumf>, %693, %cst_267 [1] : vector<8x8xf32> to vector<8xf32>
    %695 = vector.shape_cast %694 : vector<8xf32> to vector<8x1xf32>
    %696 = vector.broadcast %695 : vector<8x1xf32> to vector<8x8xf32>
    %697 = arith.subf %693, %696 : vector<8x8xf32>
    %698 = math.exp %697 : vector<8x8xf32>
    %cst_268 = arith.constant dense<0.000000e+00> : vector<8xf32>
    %699 = vector.multi_reduction <add>, %698, %cst_268 [1] : vector<8x8xf32> to vector<8xf32>
    %700 = vector.shape_cast %699 : vector<8xf32> to vector<8x1xf32>
    %701 = vector.broadcast %700 : vector<8x1xf32> to vector<8x8xf32>
    %702 = arith.divf %698, %701 : vector<8x8xf32>
    %cst_269 = arith.constant dense<0.000000e+00> : vector<8x8xf32>
    %703 = tpu.matmul %702, %690, %cst_269 {dimension_numbers = #tpu.dot_dimension_numbers<[1], [0], [0], [1], [0, 0, 1, 1], [], []>} : vector<8x8xf32>, vector<8x8xf32>, vector<8x8xf32> -> vector<8x8xf32>
    %704 = vector.extract_strided_slice %671 {offsets = [0, 16], sizes = [8, 8], strides = [1, 1]} : vector<8x96xf32> to vector<8x8xf32>
    %705 = vector.extract_strided_slice %671 {offsets = [0, 48], sizes = [8, 8], strides = [1, 1]} : vector<8x96xf32> to vector<8x8xf32>
    %706 = vector.extract_strided_slice %671 {offsets = [0, 80], sizes = [8, 8], strides = [1, 1]} : vector<8x96xf32> to vector<8x8xf32>
    %cst_270 = arith.constant dense<0.000000e+00> : vector<8x8xf32>
    %707 = tpu.matmul %704, %705, %cst_270 {dimension_numbers = #tpu.dot_dimension_numbers<[1], [1], [0], [0], [0, 0, 1, 0], [], []>} : vector<8x8xf32>, vector<8x8xf32>, vector<8x8xf32> -> vector<8x8xf32>
    %cst_271 = arith.constant 0.353553385 : f32
    %708 = vector.broadcast %cst_271 : f32 to vector<8x8xf32>
    %709 = arith.mulf %707, %708 : vector<8x8xf32>
    %cst_272 = arith.constant dense<0xFF800000> : vector<8xf32>
    %710 = vector.multi_reduction <maximumf>, %709, %cst_272 [1] : vector<8x8xf32> to vector<8xf32>
    %711 = vector.shape_cast %710 : vector<8xf32> to vector<8x1xf32>
    %712 = vector.broadcast %711 : vector<8x1xf32> to vector<8x8xf32>
    %713 = arith.subf %709, %712 : vector<8x8xf32>
    %714 = math.exp %713 : vector<8x8xf32>
    %cst_273 = arith.constant dense<0.000000e+00> : vector<8xf32>
    %715 = vector.multi_reduction <add>, %714, %cst_273 [1] : vector<8x8xf32> to vector<8xf32>
    %716 = vector.shape_cast %715 : vector<8xf32> to vector<8x1xf32>
    %717 = vector.broadcast %716 : vector<8x1xf32> to vector<8x8xf32>
    %718 = arith.divf %714, %717 : vector<8x8xf32>
    %cst_274 = arith.constant dense<0.000000e+00> : vector<8x8xf32>
    %719 = tpu.matmul %718, %706, %cst_274 {dimension_numbers = #tpu.dot_dimension_numbers<[1], [0], [0], [1], [0, 0, 1, 1], [], []>} : vector<8x8xf32>, vector<8x8xf32>, vector<8x8xf32> -> vector<8x8xf32>
    %720 = vector.extract_strided_slice %671 {offsets = [0, 24], sizes = [8, 8], strides = [1, 1]} : vector<8x96xf32> to vector<8x8xf32>
    %721 = vector.extract_strided_slice %671 {offsets = [0, 56], sizes = [8, 8], strides = [1, 1]} : vector<8x96xf32> to vector<8x8xf32>
    %722 = vector.extract_strided_slice %671 {offsets = [0, 88], sizes = [8, 8], strides = [1, 1]} : vector<8x96xf32> to vector<8x8xf32>
    %cst_275 = arith.constant dense<0.000000e+00> : vector<8x8xf32>
    %723 = tpu.matmul %720, %721, %cst_275 {dimension_numbers = #tpu.dot_dimension_numbers<[1], [1], [0], [0], [0, 0, 1, 0], [], []>} : vector<8x8xf32>, vector<8x8xf32>, vector<8x8xf32> -> vector<8x8xf32>
    %cst_276 = arith.constant 0.353553385 : f32
    %724 = vector.broadcast %cst_276 : f32 to vector<8x8xf32>
    %725 = arith.mulf %723, %724 : vector<8x8xf32>
    %cst_277 = arith.constant dense<0xFF800000> : vector<8xf32>
    %726 = vector.multi_reduction <maximumf>, %725, %cst_277 [1] : vector<8x8xf32> to vector<8xf32>
    %727 = vector.shape_cast %726 : vector<8xf32> to vector<8x1xf32>
    %728 = vector.broadcast %727 : vector<8x1xf32> to vector<8x8xf32>
    %729 = arith.subf %725, %728 : vector<8x8xf32>
    %730 = math.exp %729 : vector<8x8xf32>
    %cst_278 = arith.constant dense<0.000000e+00> : vector<8xf32>
    %731 = vector.multi_reduction <add>, %730, %cst_278 [1] : vector<8x8xf32> to vector<8xf32>
    %732 = vector.shape_cast %731 : vector<8xf32> to vector<8x1xf32>
    %733 = vector.broadcast %732 : vector<8x1xf32> to vector<8x8xf32>
    %734 = arith.divf %730, %733 : vector<8x8xf32>
    %cst_279 = arith.constant dense<0.000000e+00> : vector<8x8xf32>
    %735 = tpu.matmul %734, %722, %cst_279 {dimension_numbers = #tpu.dot_dimension_numbers<[1], [0], [0], [1], [0, 0, 1, 1], [], []>} : vector<8x8xf32>, vector<8x8xf32>, vector<8x8xf32> -> vector<8x8xf32>
    %736 = tpu.concatenate %687, %703, %719, %735 in 1 : vector<8x8xf32>, vector<8x8xf32>, vector<8x8xf32>, vector<8x8xf32> -> vector<8x32xf32>
    %737 = tpu.concatenate %670, %736 in 0 : vector<8x32xf32>, vector<8x32xf32> -> vector<16x32xf32>
    %c0_280 = arith.constant 0 : index
    %c0_281 = arith.constant 0 : index
    %c0_282 = arith.constant 0 : index
    %738 = vector.load %arg13[%c0_280, %c0_281, %c0_282] : memref<2x32x32xf32, #tpu.memory_space<vmem>>, vector<1x32x32xf32>
    %739 = vector.shape_cast %738 : vector<1x32x32xf32> to vector<32x32xf32>
    %cst_283 = arith.constant dense<0.000000e+00> : vector<16x32xf32>
    %740 = tpu.matmul %737, %739, %cst_283 {dimension_numbers = #tpu.dot_dimension_numbers<[1], [0], [0], [1], [0, 0, 1, 1], [], []>} : vector<16x32xf32>, vector<32x32xf32>, vector<16x32xf32> -> vector<16x32xf32>
    %741 = arith.addf %571, %740 : vector<16x32xf32>
    %c0_284 = arith.constant 0 : index
    %c0_285 = arith.constant 0 : index
    %c0_286 = arith.constant 0 : index
    %742 = vector.load %arg14[%c0_284, %c0_285, %c0_286] : memref<2x1x32xf32, #tpu.memory_space<vmem>>, vector<1x1x32xf32>
    %743 = vector.shape_cast %742 : vector<1x1x32xf32> to vector<1x32xf32>
    %744 = vector.broadcast %743 : vector<1x32xf32> to vector<16x32xf32>
    %745 = arith.addf %741, %744 : vector<16x32xf32>
    %c0_287 = arith.constant 0 : index
    %c0_288 = arith.constant 0 : index
    %c0_289 = arith.constant 0 : index
    %746 = vector.load %arg17[%c0_287, %c0_288, %c0_289] : memref<2x1x32xf32, #tpu.memory_space<vmem>>, vector<1x1x32xf32>
    %747 = vector.shape_cast %746 : vector<1x1x32xf32> to vector<1x32xf32>
    %c0_290 = arith.constant 0 : index
    %c0_291 = arith.constant 0 : index
    %c0_292 = arith.constant 0 : index
    %748 = vector.load %arg18[%c0_290, %c0_291, %c0_292] : memref<2x1x32xf32, #tpu.memory_space<vmem>>, vector<1x1x32xf32>
    %749 = vector.shape_cast %748 : vector<1x1x32xf32> to vector<1x32xf32>
    %cst_293 = arith.constant dense<0.000000e+00> : vector<16xf32>
    %750 = vector.multi_reduction <add>, %745, %cst_293 [1] : vector<16x32xf32> to vector<16xf32>
    %751 = vector.shape_cast %750 : vector<16xf32> to vector<16x1xf32>
    %cst_294 = arith.constant 3.200000e+01 : f32
    %752 = vector.broadcast %cst_294 : f32 to vector<16x1xf32>
    %753 = arith.divf %751, %752 : vector<16x1xf32>
    %754 = vector.broadcast %753 : vector<16x1xf32> to vector<16x32xf32>
    %755 = arith.subf %745, %754 : vector<16x32xf32>
    %756 = arith.mulf %755, %755 : vector<16x32xf32>
    %cst_295 = arith.constant dense<0.000000e+00> : vector<16xf32>
    %757 = vector.multi_reduction <add>, %756, %cst_295 [1] : vector<16x32xf32> to vector<16xf32>
    %758 = vector.shape_cast %757 : vector<16xf32> to vector<16x1xf32>
    %cst_296 = arith.constant 3.200000e+01 : f32
    %759 = vector.broadcast %cst_296 : f32 to vector<16x1xf32>
    %760 = arith.divf %758, %759 : vector<16x1xf32>
    %761 = vector.broadcast %753 : vector<16x1xf32> to vector<16x32xf32>
    %762 = arith.subf %745, %761 : vector<16x32xf32>
    %cst_297 = arith.constant 9.99999974E-6 : f32
    %763 = vector.broadcast %cst_297 : f32 to vector<16x1xf32>
    %764 = arith.addf %760, %763 : vector<16x1xf32>
    %765 = math.rsqrt %764 : vector<16x1xf32>
    %766 = vector.broadcast %765 : vector<16x1xf32> to vector<16x32xf32>
    %767 = arith.mulf %762, %766 : vector<16x32xf32>
    %768 = vector.broadcast %747 : vector<1x32xf32> to vector<16x32xf32>
    %769 = arith.mulf %767, %768 : vector<16x32xf32>
    %770 = vector.broadcast %749 : vector<1x32xf32> to vector<16x32xf32>
    %771 = arith.addf %769, %770 : vector<16x32xf32>
    %c0_298 = arith.constant 0 : index
    %c0_299 = arith.constant 0 : index
    %c0_300 = arith.constant 0 : index
    %772 = vector.load %arg19[%c0_298, %c0_299, %c0_300] : memref<2x32x128xf32, #tpu.memory_space<vmem>>, vector<1x32x128xf32>
    %773 = vector.shape_cast %772 : vector<1x32x128xf32> to vector<32x128xf32>
    %cst_301 = arith.constant dense<0.000000e+00> : vector<16x128xf32>
    %774 = tpu.matmul %771, %773, %cst_301 {dimension_numbers = #tpu.dot_dimension_numbers<[1], [0], [0], [1], [0, 0, 1, 1], [], []>} : vector<16x32xf32>, vector<32x128xf32>, vector<16x128xf32> -> vector<16x128xf32>
    %c0_302 = arith.constant 0 : index
    %c0_303 = arith.constant 0 : index
    %c0_304 = arith.constant 0 : index
    %775 = vector.load %arg20[%c0_302, %c0_303, %c0_304] : memref<2x1x128xf32, #tpu.memory_space<vmem>>, vector<1x1x128xf32>
    %776 = vector.shape_cast %775 : vector<1x1x128xf32> to vector<1x128xf32>
    %777 = vector.broadcast %776 : vector<1x128xf32> to vector<16x128xf32>
    %778 = arith.addf %774, %777 : vector<16x128xf32>
    %cst_305 = arith.constant 0.000000e+00 : f32
    %779 = vector.broadcast %cst_305 : f32 to vector<16x128xf32>
    %780 = arith.maximumf %778, %779 : vector<16x128xf32>
    %c0_306 = arith.constant 0 : index
    %c0_307 = arith.constant 0 : index
    %c0_308 = arith.constant 0 : index
    %781 = vector.load %arg21[%c0_306, %c0_307, %c0_308] : memref<2x128x32xf32, #tpu.memory_space<vmem>>, vector<1x128x32xf32>
    %782 = vector.shape_cast %781 : vector<1x128x32xf32> to vector<128x32xf32>
    %cst_309 = arith.constant dense<0.000000e+00> : vector<16x32xf32>
    %783 = tpu.matmul %780, %782, %cst_309 {dimension_numbers = #tpu.dot_dimension_numbers<[1], [0], [0], [1], [0, 0, 1, 1], [], []>} : vector<16x128xf32>, vector<128x32xf32>, vector<16x32xf32> -> vector<16x32xf32>
    %784 = arith.addf %745, %783 : vector<16x32xf32>
    %c0_310 = arith.constant 0 : index
    %c0_311 = arith.constant 0 : index
    %c0_312 = arith.constant 0 : index
    %785 = vector.load %arg22[%c0_310, %c0_311, %c0_312] : memref<2x1x32xf32, #tpu.memory_space<vmem>>, vector<1x1x32xf32>
    %786 = vector.shape_cast %785 : vector<1x1x32xf32> to vector<1x32xf32>
    %787 = vector.broadcast %786 : vector<1x32xf32> to vector<16x32xf32>
    %788 = arith.addf %784, %787 : vector<16x32xf32>
    %c1_313 = arith.constant 1 : index
    %c0_314 = arith.constant 0 : index
    %c0_315 = arith.constant 0 : index
    %789 = vector.load %arg15[%c1_313, %c0_314, %c0_315] : memref<2x1x32xf32, #tpu.memory_space<vmem>>, vector<1x1x32xf32>
    %790 = vector.shape_cast %789 : vector<1x1x32xf32> to vector<1x32xf32>
    %c1_316 = arith.constant 1 : index
    %c0_317 = arith.constant 0 : index
    %c0_318 = arith.constant 0 : index
    %791 = vector.load %arg16[%c1_316, %c0_317, %c0_318] : memref<2x1x32xf32, #tpu.memory_space<vmem>>, vector<1x1x32xf32>
    %792 = vector.shape_cast %791 : vector<1x1x32xf32> to vector<1x32xf32>
    %cst_319 = arith.constant dense<0.000000e+00> : vector<16xf32>
    %793 = vector.multi_reduction <add>, %788, %cst_319 [1] : vector<16x32xf32> to vector<16xf32>
    %794 = vector.shape_cast %793 : vector<16xf32> to vector<16x1xf32>
    %cst_320 = arith.constant 3.200000e+01 : f32
    %795 = vector.broadcast %cst_320 : f32 to vector<16x1xf32>
    %796 = arith.divf %794, %795 : vector<16x1xf32>
    %797 = vector.broadcast %796 : vector<16x1xf32> to vector<16x32xf32>
    %798 = arith.subf %788, %797 : vector<16x32xf32>
    %799 = arith.mulf %798, %798 : vector<16x32xf32>
    %cst_321 = arith.constant dense<0.000000e+00> : vector<16xf32>
    %800 = vector.multi_reduction <add>, %799, %cst_321 [1] : vector<16x32xf32> to vector<16xf32>
    %801 = vector.shape_cast %800 : vector<16xf32> to vector<16x1xf32>
    %cst_322 = arith.constant 3.200000e+01 : f32
    %802 = vector.broadcast %cst_322 : f32 to vector<16x1xf32>
    %803 = arith.divf %801, %802 : vector<16x1xf32>
    %804 = vector.broadcast %796 : vector<16x1xf32> to vector<16x32xf32>
    %805 = arith.subf %788, %804 : vector<16x32xf32>
    %cst_323 = arith.constant 9.99999974E-6 : f32
    %806 = vector.broadcast %cst_323 : f32 to vector<16x1xf32>
    %807 = arith.addf %803, %806 : vector<16x1xf32>
    %808 = math.rsqrt %807 : vector<16x1xf32>
    %809 = vector.broadcast %808 : vector<16x1xf32> to vector<16x32xf32>
    %810 = arith.mulf %805, %809 : vector<16x32xf32>
    %811 = vector.broadcast %790 : vector<1x32xf32> to vector<16x32xf32>
    %812 = arith.mulf %810, %811 : vector<16x32xf32>
    %813 = vector.broadcast %792 : vector<1x32xf32> to vector<16x32xf32>
    %814 = arith.addf %812, %813 : vector<16x32xf32>
    %c1_324 = arith.constant 1 : index
    %c0_325 = arith.constant 0 : index
    %c0_326 = arith.constant 0 : index
    %815 = vector.load %arg11[%c1_324, %c0_325, %c0_326] : memref<2x32x96xf32, #tpu.memory_space<vmem>>, vector<1x32x96xf32>
    %816 = vector.shape_cast %815 : vector<1x32x96xf32> to vector<32x96xf32>
    %cst_327 = arith.constant dense<0.000000e+00> : vector<16x96xf32>
    %817 = tpu.matmul %814, %816, %cst_327 {dimension_numbers = #tpu.dot_dimension_numbers<[1], [0], [0], [1], [0, 0, 1, 1], [], []>} : vector<16x32xf32>, vector<32x96xf32>, vector<16x96xf32> -> vector<16x96xf32>
    %c1_328 = arith.constant 1 : index
    %c0_329 = arith.constant 0 : index
    %c0_330 = arith.constant 0 : index
    %818 = vector.load %arg12[%c1_328, %c0_329, %c0_330] : memref<2x1x96xf32, #tpu.memory_space<vmem>>, vector<1x1x96xf32>
    %819 = vector.shape_cast %818 : vector<1x1x96xf32> to vector<1x96xf32>
    %820 = vector.broadcast %819 : vector<1x96xf32> to vector<16x96xf32>
    %821 = arith.addf %817, %820 : vector<16x96xf32>
    %822 = vector.extract_strided_slice %821 {offsets = [0, 0], sizes = [8, 96], strides = [1, 1]} : vector<16x96xf32> to vector<8x96xf32>
    %823 = vector.extract_strided_slice %822 {offsets = [0, 0], sizes = [8, 8], strides = [1, 1]} : vector<8x96xf32> to vector<8x8xf32>
    %824 = vector.extract_strided_slice %822 {offsets = [0, 32], sizes = [8, 8], strides = [1, 1]} : vector<8x96xf32> to vector<8x8xf32>
    %825 = vector.extract_strided_slice %822 {offsets = [0, 64], sizes = [8, 8], strides = [1, 1]} : vector<8x96xf32> to vector<8x8xf32>
    %cst_331 = arith.constant dense<0.000000e+00> : vector<8x8xf32>
    %826 = tpu.matmul %823, %824, %cst_331 {dimension_numbers = #tpu.dot_dimension_numbers<[1], [1], [0], [0], [0, 0, 1, 0], [], []>} : vector<8x8xf32>, vector<8x8xf32>, vector<8x8xf32> -> vector<8x8xf32>
    %cst_332 = arith.constant 0.353553385 : f32
    %827 = vector.broadcast %cst_332 : f32 to vector<8x8xf32>
    %828 = arith.mulf %826, %827 : vector<8x8xf32>
    %cst_333 = arith.constant dense<0xFF800000> : vector<8xf32>
    %829 = vector.multi_reduction <maximumf>, %828, %cst_333 [1] : vector<8x8xf32> to vector<8xf32>
    %830 = vector.shape_cast %829 : vector<8xf32> to vector<8x1xf32>
    %831 = vector.broadcast %830 : vector<8x1xf32> to vector<8x8xf32>
    %832 = arith.subf %828, %831 : vector<8x8xf32>
    %833 = math.exp %832 : vector<8x8xf32>
    %cst_334 = arith.constant dense<0.000000e+00> : vector<8xf32>
    %834 = vector.multi_reduction <add>, %833, %cst_334 [1] : vector<8x8xf32> to vector<8xf32>
    %835 = vector.shape_cast %834 : vector<8xf32> to vector<8x1xf32>
    %836 = vector.broadcast %835 : vector<8x1xf32> to vector<8x8xf32>
    %837 = arith.divf %833, %836 : vector<8x8xf32>
    %cst_335 = arith.constant dense<0.000000e+00> : vector<8x8xf32>
    %838 = tpu.matmul %837, %825, %cst_335 {dimension_numbers = #tpu.dot_dimension_numbers<[1], [0], [0], [1], [0, 0, 1, 1], [], []>} : vector<8x8xf32>, vector<8x8xf32>, vector<8x8xf32> -> vector<8x8xf32>
    %839 = vector.extract_strided_slice %822 {offsets = [0, 8], sizes = [8, 8], strides = [1, 1]} : vector<8x96xf32> to vector<8x8xf32>
    %840 = vector.extract_strided_slice %822 {offsets = [0, 40], sizes = [8, 8], strides = [1, 1]} : vector<8x96xf32> to vector<8x8xf32>
    %841 = vector.extract_strided_slice %822 {offsets = [0, 72], sizes = [8, 8], strides = [1, 1]} : vector<8x96xf32> to vector<8x8xf32>
    %cst_336 = arith.constant dense<0.000000e+00> : vector<8x8xf32>
    %842 = tpu.matmul %839, %840, %cst_336 {dimension_numbers = #tpu.dot_dimension_numbers<[1], [1], [0], [0], [0, 0, 1, 0], [], []>} : vector<8x8xf32>, vector<8x8xf32>, vector<8x8xf32> -> vector<8x8xf32>
    %cst_337 = arith.constant 0.353553385 : f32
    %843 = vector.broadcast %cst_337 : f32 to vector<8x8xf32>
    %844 = arith.mulf %842, %843 : vector<8x8xf32>
    %cst_338 = arith.constant dense<0xFF800000> : vector<8xf32>
    %845 = vector.multi_reduction <maximumf>, %844, %cst_338 [1] : vector<8x8xf32> to vector<8xf32>
    %846 = vector.shape_cast %845 : vector<8xf32> to vector<8x1xf32>
    %847 = vector.broadcast %846 : vector<8x1xf32> to vector<8x8xf32>
    %848 = arith.subf %844, %847 : vector<8x8xf32>
    %849 = math.exp %848 : vector<8x8xf32>
    %cst_339 = arith.constant dense<0.000000e+00> : vector<8xf32>
    %850 = vector.multi_reduction <add>, %849, %cst_339 [1] : vector<8x8xf32> to vector<8xf32>
    %851 = vector.shape_cast %850 : vector<8xf32> to vector<8x1xf32>
    %852 = vector.broadcast %851 : vector<8x1xf32> to vector<8x8xf32>
    %853 = arith.divf %849, %852 : vector<8x8xf32>
    %cst_340 = arith.constant dense<0.000000e+00> : vector<8x8xf32>
    %854 = tpu.matmul %853, %841, %cst_340 {dimension_numbers = #tpu.dot_dimension_numbers<[1], [0], [0], [1], [0, 0, 1, 1], [], []>} : vector<8x8xf32>, vector<8x8xf32>, vector<8x8xf32> -> vector<8x8xf32>
    %855 = vector.extract_strided_slice %822 {offsets = [0, 16], sizes = [8, 8], strides = [1, 1]} : vector<8x96xf32> to vector<8x8xf32>
    %856 = vector.extract_strided_slice %822 {offsets = [0, 48], sizes = [8, 8], strides = [1, 1]} : vector<8x96xf32> to vector<8x8xf32>
    %857 = vector.extract_strided_slice %822 {offsets = [0, 80], sizes = [8, 8], strides = [1, 1]} : vector<8x96xf32> to vector<8x8xf32>
    %cst_341 = arith.constant dense<0.000000e+00> : vector<8x8xf32>
    %858 = tpu.matmul %855, %856, %cst_341 {dimension_numbers = #tpu.dot_dimension_numbers<[1], [1], [0], [0], [0, 0, 1, 0], [], []>} : vector<8x8xf32>, vector<8x8xf32>, vector<8x8xf32> -> vector<8x8xf32>
    %cst_342 = arith.constant 0.353553385 : f32
    %859 = vector.broadcast %cst_342 : f32 to vector<8x8xf32>
    %860 = arith.mulf %858, %859 : vector<8x8xf32>
    %cst_343 = arith.constant dense<0xFF800000> : vector<8xf32>
    %861 = vector.multi_reduction <maximumf>, %860, %cst_343 [1] : vector<8x8xf32> to vector<8xf32>
    %862 = vector.shape_cast %861 : vector<8xf32> to vector<8x1xf32>
    %863 = vector.broadcast %862 : vector<8x1xf32> to vector<8x8xf32>
    %864 = arith.subf %860, %863 : vector<8x8xf32>
    %865 = math.exp %864 : vector<8x8xf32>
    %cst_344 = arith.constant dense<0.000000e+00> : vector<8xf32>
    %866 = vector.multi_reduction <add>, %865, %cst_344 [1] : vector<8x8xf32> to vector<8xf32>
    %867 = vector.shape_cast %866 : vector<8xf32> to vector<8x1xf32>
    %868 = vector.broadcast %867 : vector<8x1xf32> to vector<8x8xf32>
    %869 = arith.divf %865, %868 : vector<8x8xf32>
    %cst_345 = arith.constant dense<0.000000e+00> : vector<8x8xf32>
    %870 = tpu.matmul %869, %857, %cst_345 {dimension_numbers = #tpu.dot_dimension_numbers<[1], [0], [0], [1], [0, 0, 1, 1], [], []>} : vector<8x8xf32>, vector<8x8xf32>, vector<8x8xf32> -> vector<8x8xf32>
    %871 = vector.extract_strided_slice %822 {offsets = [0, 24], sizes = [8, 8], strides = [1, 1]} : vector<8x96xf32> to vector<8x8xf32>
    %872 = vector.extract_strided_slice %822 {offsets = [0, 56], sizes = [8, 8], strides = [1, 1]} : vector<8x96xf32> to vector<8x8xf32>
    %873 = vector.extract_strided_slice %822 {offsets = [0, 88], sizes = [8, 8], strides = [1, 1]} : vector<8x96xf32> to vector<8x8xf32>
    %cst_346 = arith.constant dense<0.000000e+00> : vector<8x8xf32>
    %874 = tpu.matmul %871, %872, %cst_346 {dimension_numbers = #tpu.dot_dimension_numbers<[1], [1], [0], [0], [0, 0, 1, 0], [], []>} : vector<8x8xf32>, vector<8x8xf32>, vector<8x8xf32> -> vector<8x8xf32>
    %cst_347 = arith.constant 0.353553385 : f32
    %875 = vector.broadcast %cst_347 : f32 to vector<8x8xf32>
    %876 = arith.mulf %874, %875 : vector<8x8xf32>
    %cst_348 = arith.constant dense<0xFF800000> : vector<8xf32>
    %877 = vector.multi_reduction <maximumf>, %876, %cst_348 [1] : vector<8x8xf32> to vector<8xf32>
    %878 = vector.shape_cast %877 : vector<8xf32> to vector<8x1xf32>
    %879 = vector.broadcast %878 : vector<8x1xf32> to vector<8x8xf32>
    %880 = arith.subf %876, %879 : vector<8x8xf32>
    %881 = math.exp %880 : vector<8x8xf32>
    %cst_349 = arith.constant dense<0.000000e+00> : vector<8xf32>
    %882 = vector.multi_reduction <add>, %881, %cst_349 [1] : vector<8x8xf32> to vector<8xf32>
    %883 = vector.shape_cast %882 : vector<8xf32> to vector<8x1xf32>
    %884 = vector.broadcast %883 : vector<8x1xf32> to vector<8x8xf32>
    %885 = arith.divf %881, %884 : vector<8x8xf32>
    %cst_350 = arith.constant dense<0.000000e+00> : vector<8x8xf32>
    %886 = tpu.matmul %885, %873, %cst_350 {dimension_numbers = #tpu.dot_dimension_numbers<[1], [0], [0], [1], [0, 0, 1, 1], [], []>} : vector<8x8xf32>, vector<8x8xf32>, vector<8x8xf32> -> vector<8x8xf32>
    %887 = tpu.concatenate %838, %854, %870, %886 in 1 : vector<8x8xf32>, vector<8x8xf32>, vector<8x8xf32>, vector<8x8xf32> -> vector<8x32xf32>
    %888 = vector.extract_strided_slice %821 {offsets = [8, 0], sizes = [8, 96], strides = [1, 1]} : vector<16x96xf32> to vector<8x96xf32>
    %889 = vector.extract_strided_slice %888 {offsets = [0, 0], sizes = [8, 8], strides = [1, 1]} : vector<8x96xf32> to vector<8x8xf32>
    %890 = vector.extract_strided_slice %888 {offsets = [0, 32], sizes = [8, 8], strides = [1, 1]} : vector<8x96xf32> to vector<8x8xf32>
    %891 = vector.extract_strided_slice %888 {offsets = [0, 64], sizes = [8, 8], strides = [1, 1]} : vector<8x96xf32> to vector<8x8xf32>
    %cst_351 = arith.constant dense<0.000000e+00> : vector<8x8xf32>
    %892 = tpu.matmul %889, %890, %cst_351 {dimension_numbers = #tpu.dot_dimension_numbers<[1], [1], [0], [0], [0, 0, 1, 0], [], []>} : vector<8x8xf32>, vector<8x8xf32>, vector<8x8xf32> -> vector<8x8xf32>
    %cst_352 = arith.constant 0.353553385 : f32
    %893 = vector.broadcast %cst_352 : f32 to vector<8x8xf32>
    %894 = arith.mulf %892, %893 : vector<8x8xf32>
    %cst_353 = arith.constant dense<0xFF800000> : vector<8xf32>
    %895 = vector.multi_reduction <maximumf>, %894, %cst_353 [1] : vector<8x8xf32> to vector<8xf32>
    %896 = vector.shape_cast %895 : vector<8xf32> to vector<8x1xf32>
    %897 = vector.broadcast %896 : vector<8x1xf32> to vector<8x8xf32>
    %898 = arith.subf %894, %897 : vector<8x8xf32>
    %899 = math.exp %898 : vector<8x8xf32>
    %cst_354 = arith.constant dense<0.000000e+00> : vector<8xf32>
    %900 = vector.multi_reduction <add>, %899, %cst_354 [1] : vector<8x8xf32> to vector<8xf32>
    %901 = vector.shape_cast %900 : vector<8xf32> to vector<8x1xf32>
    %902 = vector.broadcast %901 : vector<8x1xf32> to vector<8x8xf32>
    %903 = arith.divf %899, %902 : vector<8x8xf32>
    %cst_355 = arith.constant dense<0.000000e+00> : vector<8x8xf32>
    %904 = tpu.matmul %903, %891, %cst_355 {dimension_numbers = #tpu.dot_dimension_numbers<[1], [0], [0], [1], [0, 0, 1, 1], [], []>} : vector<8x8xf32>, vector<8x8xf32>, vector<8x8xf32> -> vector<8x8xf32>
    %905 = vector.extract_strided_slice %888 {offsets = [0, 8], sizes = [8, 8], strides = [1, 1]} : vector<8x96xf32> to vector<8x8xf32>
    %906 = vector.extract_strided_slice %888 {offsets = [0, 40], sizes = [8, 8], strides = [1, 1]} : vector<8x96xf32> to vector<8x8xf32>
    %907 = vector.extract_strided_slice %888 {offsets = [0, 72], sizes = [8, 8], strides = [1, 1]} : vector<8x96xf32> to vector<8x8xf32>
    %cst_356 = arith.constant dense<0.000000e+00> : vector<8x8xf32>
    %908 = tpu.matmul %905, %906, %cst_356 {dimension_numbers = #tpu.dot_dimension_numbers<[1], [1], [0], [0], [0, 0, 1, 0], [], []>} : vector<8x8xf32>, vector<8x8xf32>, vector<8x8xf32> -> vector<8x8xf32>
    %cst_357 = arith.constant 0.353553385 : f32
    %909 = vector.broadcast %cst_357 : f32 to vector<8x8xf32>
    %910 = arith.mulf %908, %909 : vector<8x8xf32>
    %cst_358 = arith.constant dense<0xFF800000> : vector<8xf32>
    %911 = vector.multi_reduction <maximumf>, %910, %cst_358 [1] : vector<8x8xf32> to vector<8xf32>
    %912 = vector.shape_cast %911 : vector<8xf32> to vector<8x1xf32>
    %913 = vector.broadcast %912 : vector<8x1xf32> to vector<8x8xf32>
    %914 = arith.subf %910, %913 : vector<8x8xf32>
    %915 = math.exp %914 : vector<8x8xf32>
    %cst_359 = arith.constant dense<0.000000e+00> : vector<8xf32>
    %916 = vector.multi_reduction <add>, %915, %cst_359 [1] : vector<8x8xf32> to vector<8xf32>
    %917 = vector.shape_cast %916 : vector<8xf32> to vector<8x1xf32>
    %918 = vector.broadcast %917 : vector<8x1xf32> to vector<8x8xf32>
    %919 = arith.divf %915, %918 : vector<8x8xf32>
    %cst_360 = arith.constant dense<0.000000e+00> : vector<8x8xf32>
    %920 = tpu.matmul %919, %907, %cst_360 {dimension_numbers = #tpu.dot_dimension_numbers<[1], [0], [0], [1], [0, 0, 1, 1], [], []>} : vector<8x8xf32>, vector<8x8xf32>, vector<8x8xf32> -> vector<8x8xf32>
    %921 = vector.extract_strided_slice %888 {offsets = [0, 16], sizes = [8, 8], strides = [1, 1]} : vector<8x96xf32> to vector<8x8xf32>
    %922 = vector.extract_strided_slice %888 {offsets = [0, 48], sizes = [8, 8], strides = [1, 1]} : vector<8x96xf32> to vector<8x8xf32>
    %923 = vector.extract_strided_slice %888 {offsets = [0, 80], sizes = [8, 8], strides = [1, 1]} : vector<8x96xf32> to vector<8x8xf32>
    %cst_361 = arith.constant dense<0.000000e+00> : vector<8x8xf32>
    %924 = tpu.matmul %921, %922, %cst_361 {dimension_numbers = #tpu.dot_dimension_numbers<[1], [1], [0], [0], [0, 0, 1, 0], [], []>} : vector<8x8xf32>, vector<8x8xf32>, vector<8x8xf32> -> vector<8x8xf32>
    %cst_362 = arith.constant 0.353553385 : f32
    %925 = vector.broadcast %cst_362 : f32 to vector<8x8xf32>
    %926 = arith.mulf %924, %925 : vector<8x8xf32>
    %cst_363 = arith.constant dense<0xFF800000> : vector<8xf32>
    %927 = vector.multi_reduction <maximumf>, %926, %cst_363 [1] : vector<8x8xf32> to vector<8xf32>
    %928 = vector.shape_cast %927 : vector<8xf32> to vector<8x1xf32>
    %929 = vector.broadcast %928 : vector<8x1xf32> to vector<8x8xf32>
    %930 = arith.subf %926, %929 : vector<8x8xf32>
    %931 = math.exp %930 : vector<8x8xf32>
    %cst_364 = arith.constant dense<0.000000e+00> : vector<8xf32>
    %932 = vector.multi_reduction <add>, %931, %cst_364 [1] : vector<8x8xf32> to vector<8xf32>
    %933 = vector.shape_cast %932 : vector<8xf32> to vector<8x1xf32>
    %934 = vector.broadcast %933 : vector<8x1xf32> to vector<8x8xf32>
    %935 = arith.divf %931, %934 : vector<8x8xf32>
    %cst_365 = arith.constant dense<0.000000e+00> : vector<8x8xf32>
    %936 = tpu.matmul %935, %923, %cst_365 {dimension_numbers = #tpu.dot_dimension_numbers<[1], [0], [0], [1], [0, 0, 1, 1], [], []>} : vector<8x8xf32>, vector<8x8xf32>, vector<8x8xf32> -> vector<8x8xf32>
    %937 = vector.extract_strided_slice %888 {offsets = [0, 24], sizes = [8, 8], strides = [1, 1]} : vector<8x96xf32> to vector<8x8xf32>
    %938 = vector.extract_strided_slice %888 {offsets = [0, 56], sizes = [8, 8], strides = [1, 1]} : vector<8x96xf32> to vector<8x8xf32>
    %939 = vector.extract_strided_slice %888 {offsets = [0, 88], sizes = [8, 8], strides = [1, 1]} : vector<8x96xf32> to vector<8x8xf32>
    %cst_366 = arith.constant dense<0.000000e+00> : vector<8x8xf32>
    %940 = tpu.matmul %937, %938, %cst_366 {dimension_numbers = #tpu.dot_dimension_numbers<[1], [1], [0], [0], [0, 0, 1, 0], [], []>} : vector<8x8xf32>, vector<8x8xf32>, vector<8x8xf32> -> vector<8x8xf32>
    %cst_367 = arith.constant 0.353553385 : f32
    %941 = vector.broadcast %cst_367 : f32 to vector<8x8xf32>
    %942 = arith.mulf %940, %941 : vector<8x8xf32>
    %cst_368 = arith.constant dense<0xFF800000> : vector<8xf32>
    %943 = vector.multi_reduction <maximumf>, %942, %cst_368 [1] : vector<8x8xf32> to vector<8xf32>
    %944 = vector.shape_cast %943 : vector<8xf32> to vector<8x1xf32>
    %945 = vector.broadcast %944 : vector<8x1xf32> to vector<8x8xf32>
    %946 = arith.subf %942, %945 : vector<8x8xf32>
    %947 = math.exp %946 : vector<8x8xf32>
    %cst_369 = arith.constant dense<0.000000e+00> : vector<8xf32>
    %948 = vector.multi_reduction <add>, %947, %cst_369 [1] : vector<8x8xf32> to vector<8xf32>
    %949 = vector.shape_cast %948 : vector<8xf32> to vector<8x1xf32>
    %950 = vector.broadcast %949 : vector<8x1xf32> to vector<8x8xf32>
    %951 = arith.divf %947, %950 : vector<8x8xf32>
    %cst_370 = arith.constant dense<0.000000e+00> : vector<8x8xf32>
    %952 = tpu.matmul %951, %939, %cst_370 {dimension_numbers = #tpu.dot_dimension_numbers<[1], [0], [0], [1], [0, 0, 1, 1], [], []>} : vector<8x8xf32>, vector<8x8xf32>, vector<8x8xf32> -> vector<8x8xf32>
    %953 = tpu.concatenate %904, %920, %936, %952 in 1 : vector<8x8xf32>, vector<8x8xf32>, vector<8x8xf32>, vector<8x8xf32> -> vector<8x32xf32>
    %954 = tpu.concatenate %887, %953 in 0 : vector<8x32xf32>, vector<8x32xf32> -> vector<16x32xf32>
    %c1_371 = arith.constant 1 : index
    %c0_372 = arith.constant 0 : index
    %c0_373 = arith.constant 0 : index
    %955 = vector.load %arg13[%c1_371, %c0_372, %c0_373] : memref<2x32x32xf32, #tpu.memory_space<vmem>>, vector<1x32x32xf32>
    %956 = vector.shape_cast %955 : vector<1x32x32xf32> to vector<32x32xf32>
    %cst_374 = arith.constant dense<0.000000e+00> : vector<16x32xf32>
    %957 = tpu.matmul %954, %956, %cst_374 {dimension_numbers = #tpu.dot_dimension_numbers<[1], [0], [0], [1], [0, 0, 1, 1], [], []>} : vector<16x32xf32>, vector<32x32xf32>, vector<16x32xf32> -> vector<16x32xf32>
    %958 = arith.addf %788, %957 : vector<16x32xf32>
    %c1_375 = arith.constant 1 : index
    %c0_376 = arith.constant 0 : index
    %c0_377 = arith.constant 0 : index
    %959 = vector.load %arg14[%c1_375, %c0_376, %c0_377] : memref<2x1x32xf32, #tpu.memory_space<vmem>>, vector<1x1x32xf32>
    %960 = vector.shape_cast %959 : vector<1x1x32xf32> to vector<1x32xf32>
    %961 = vector.broadcast %960 : vector<1x32xf32> to vector<16x32xf32>
    %962 = arith.addf %958, %961 : vector<16x32xf32>
    %c1_378 = arith.constant 1 : index
    %c0_379 = arith.constant 0 : index
    %c0_380 = arith.constant 0 : index
    %963 = vector.load %arg17[%c1_378, %c0_379, %c0_380] : memref<2x1x32xf32, #tpu.memory_space<vmem>>, vector<1x1x32xf32>
    %964 = vector.shape_cast %963 : vector<1x1x32xf32> to vector<1x32xf32>
    %c1_381 = arith.constant 1 : index
    %c0_382 = arith.constant 0 : index
    %c0_383 = arith.constant 0 : index
    %965 = vector.load %arg18[%c1_381, %c0_382, %c0_383] : memref<2x1x32xf32, #tpu.memory_space<vmem>>, vector<1x1x32xf32>
    %966 = vector.shape_cast %965 : vector<1x1x32xf32> to vector<1x32xf32>
    %cst_384 = arith.constant dense<0.000000e+00> : vector<16xf32>
    %967 = vector.multi_reduction <add>, %962, %cst_384 [1] : vector<16x32xf32> to vector<16xf32>
    %968 = vector.shape_cast %967 : vector<16xf32> to vector<16x1xf32>
    %cst_385 = arith.constant 3.200000e+01 : f32
    %969 = vector.broadcast %cst_385 : f32 to vector<16x1xf32>
    %970 = arith.divf %968, %969 : vector<16x1xf32>
    %971 = vector.broadcast %970 : vector<16x1xf32> to vector<16x32xf32>
    %972 = arith.subf %962, %971 : vector<16x32xf32>
    %973 = arith.mulf %972, %972 : vector<16x32xf32>
    %cst_386 = arith.constant dense<0.000000e+00> : vector<16xf32>
    %974 = vector.multi_reduction <add>, %973, %cst_386 [1] : vector<16x32xf32> to vector<16xf32>
    %975 = vector.shape_cast %974 : vector<16xf32> to vector<16x1xf32>
    %cst_387 = arith.constant 3.200000e+01 : f32
    %976 = vector.broadcast %cst_387 : f32 to vector<16x1xf32>
    %977 = arith.divf %975, %976 : vector<16x1xf32>
    %978 = vector.broadcast %970 : vector<16x1xf32> to vector<16x32xf32>
    %979 = arith.subf %962, %978 : vector<16x32xf32>
    %cst_388 = arith.constant 9.99999974E-6 : f32
    %980 = vector.broadcast %cst_388 : f32 to vector<16x1xf32>
    %981 = arith.addf %977, %980 : vector<16x1xf32>
    %982 = math.rsqrt %981 : vector<16x1xf32>
    %983 = vector.broadcast %982 : vector<16x1xf32> to vector<16x32xf32>
    %984 = arith.mulf %979, %983 : vector<16x32xf32>
    %985 = vector.broadcast %964 : vector<1x32xf32> to vector<16x32xf32>
    %986 = arith.mulf %984, %985 : vector<16x32xf32>
    %987 = vector.broadcast %966 : vector<1x32xf32> to vector<16x32xf32>
    %988 = arith.addf %986, %987 : vector<16x32xf32>
    %c1_389 = arith.constant 1 : index
    %c0_390 = arith.constant 0 : index
    %c0_391 = arith.constant 0 : index
    %989 = vector.load %arg19[%c1_389, %c0_390, %c0_391] : memref<2x32x128xf32, #tpu.memory_space<vmem>>, vector<1x32x128xf32>
    %990 = vector.shape_cast %989 : vector<1x32x128xf32> to vector<32x128xf32>
    %cst_392 = arith.constant dense<0.000000e+00> : vector<16x128xf32>
    %991 = tpu.matmul %988, %990, %cst_392 {dimension_numbers = #tpu.dot_dimension_numbers<[1], [0], [0], [1], [0, 0, 1, 1], [], []>} : vector<16x32xf32>, vector<32x128xf32>, vector<16x128xf32> -> vector<16x128xf32>
    %c1_393 = arith.constant 1 : index
    %c0_394 = arith.constant 0 : index
    %c0_395 = arith.constant 0 : index
    %992 = vector.load %arg20[%c1_393, %c0_394, %c0_395] : memref<2x1x128xf32, #tpu.memory_space<vmem>>, vector<1x1x128xf32>
    %993 = vector.shape_cast %992 : vector<1x1x128xf32> to vector<1x128xf32>
    %994 = vector.broadcast %993 : vector<1x128xf32> to vector<16x128xf32>
    %995 = arith.addf %991, %994 : vector<16x128xf32>
    %cst_396 = arith.constant 0.000000e+00 : f32
    %996 = vector.broadcast %cst_396 : f32 to vector<16x128xf32>
    %997 = arith.maximumf %995, %996 : vector<16x128xf32>
    %c1_397 = arith.constant 1 : index
    %c0_398 = arith.constant 0 : index
    %c0_399 = arith.constant 0 : index
    %998 = vector.load %arg21[%c1_397, %c0_398, %c0_399] : memref<2x128x32xf32, #tpu.memory_space<vmem>>, vector<1x128x32xf32>
    %999 = vector.shape_cast %998 : vector<1x128x32xf32> to vector<128x32xf32>
    %cst_400 = arith.constant dense<0.000000e+00> : vector<16x32xf32>
    %1000 = tpu.matmul %997, %999, %cst_400 {dimension_numbers = #tpu.dot_dimension_numbers<[1], [0], [0], [1], [0, 0, 1, 1], [], []>} : vector<16x128xf32>, vector<128x32xf32>, vector<16x32xf32> -> vector<16x32xf32>
    %1001 = arith.addf %962, %1000 : vector<16x32xf32>
    %c1_401 = arith.constant 1 : index
    %c0_402 = arith.constant 0 : index
    %c0_403 = arith.constant 0 : index
    %1002 = vector.load %arg22[%c1_401, %c0_402, %c0_403] : memref<2x1x32xf32, #tpu.memory_space<vmem>>, vector<1x1x32xf32>
    %1003 = vector.shape_cast %1002 : vector<1x1x32xf32> to vector<1x32xf32>
    %1004 = vector.broadcast %1003 : vector<1x32xf32> to vector<16x32xf32>
    %1005 = arith.addf %1001, %1004 : vector<16x32xf32>
    %1006 = vector.extract_strided_slice %1005 {offsets = [0, 0], sizes = [1, 32], strides = [1, 1]} : vector<16x32xf32> to vector<1x32xf32>
    %1007 = vector.extract_strided_slice %1005 {offsets = [8, 0], sizes = [1, 32], strides = [1, 1]} : vector<16x32xf32> to vector<1x32xf32>
    %1008 = vector.extract_strided_slice %1005 {offsets = [1, 0], sizes = [1, 32], strides = [1, 1]} : vector<16x32xf32> to vector<1x32xf32>
    %1009 = vector.extract_strided_slice %1005 {offsets = [9, 0], sizes = [1, 32], strides = [1, 1]} : vector<16x32xf32> to vector<1x32xf32>
    %1010 = vector.extract_strided_slice %1005 {offsets = [2, 0], sizes = [1, 32], strides = [1, 1]} : vector<16x32xf32> to vector<1x32xf32>
    %1011 = vector.extract_strided_slice %1005 {offsets = [10, 0], sizes = [1, 32], strides = [1, 1]} : vector<16x32xf32> to vector<1x32xf32>
    %1012 = vector.extract_strided_slice %1005 {offsets = [3, 0], sizes = [1, 32], strides = [1, 1]} : vector<16x32xf32> to vector<1x32xf32>
    %1013 = vector.extract_strided_slice %1005 {offsets = [11, 0], sizes = [1, 32], strides = [1, 1]} : vector<16x32xf32> to vector<1x32xf32>
    %1014 = vector.extract_strided_slice %1005 {offsets = [4, 0], sizes = [1, 32], strides = [1, 1]} : vector<16x32xf32> to vector<1x32xf32>
    %1015 = vector.extract_strided_slice %1005 {offsets = [12, 0], sizes = [1, 32], strides = [1, 1]} : vector<16x32xf32> to vector<1x32xf32>
    %1016 = vector.extract_strided_slice %1005 {offsets = [5, 0], sizes = [1, 32], strides = [1, 1]} : vector<16x32xf32> to vector<1x32xf32>
    %1017 = vector.extract_strided_slice %1005 {offsets = [13, 0], sizes = [1, 32], strides = [1, 1]} : vector<16x32xf32> to vector<1x32xf32>
    %1018 = vector.extract_strided_slice %1005 {offsets = [6, 0], sizes = [1, 32], strides = [1, 1]} : vector<16x32xf32> to vector<1x32xf32>
    %1019 = vector.extract_strided_slice %1005 {offsets = [14, 0], sizes = [1, 32], strides = [1, 1]} : vector<16x32xf32> to vector<1x32xf32>
    %1020 = vector.extract_strided_slice %1005 {offsets = [7, 0], sizes = [1, 32], strides = [1, 1]} : vector<16x32xf32> to vector<1x32xf32>
    %1021 = vector.extract_strided_slice %1005 {offsets = [15, 0], sizes = [1, 32], strides = [1, 1]} : vector<16x32xf32> to vector<1x32xf32>
    %1022 = tpu.concatenate %1006, %1007, %1008, %1009, %1010, %1011, %1012, %1013, %1014, %1015, %1016, %1017, %1018, %1019, %1020, %1021 in 0 : vector<1x32xf32>, vector<1x32xf32>, vector<1x32xf32>, vector<1x32xf32>, vector<1x32xf32>, vector<1x32xf32>, vector<1x32xf32>, vector<1x32xf32>, vector<1x32xf32>, vector<1x32xf32>, vector<1x32xf32>, vector<1x32xf32>, vector<1x32xf32>, vector<1x32xf32>, vector<1x32xf32>, vector<1x32xf32> -> vector<16x32xf32>
    %c0_404 = arith.constant 0 : index
    %c0_405 = arith.constant 0 : index
    %1023 = vector.load %arg23[%c0_404, %c0_405] : memref<32x256xf32, #tpu.memory_space<vmem>>, vector<32x256xf32>
    %cst_406 = arith.constant dense<0.000000e+00> : vector<16x256xf32>
    %1024 = tpu.matmul %1022, %1023, %cst_406 {dimension_numbers = #tpu.dot_dimension_numbers<[1], [0], [0], [1], [0, 0, 1, 1], [], []>} : vector<16x32xf32>, vector<32x256xf32>, vector<16x256xf32> -> vector<16x256xf32>
    %c0_407 = arith.constant 0 : index
    %c0_408 = arith.constant 0 : index
    %1025 = vector.load %arg24[%c0_407, %c0_408] : memref<1x256xf32, #tpu.memory_space<vmem>>, vector<1x256xf32>
    %1026 = vector.broadcast %1025 : vector<1x256xf32> to vector<16x256xf32>
    %1027 = arith.addf %1024, %1026 : vector<16x256xf32>
    %c0_409 = arith.constant 0 : index
    %c0_410 = arith.constant 0 : index
    %1028 = vector.load %arg25[%c0_409, %c0_410] : memref<32x256xf32, #tpu.memory_space<vmem>>, vector<32x256xf32>
    %cst_411 = arith.constant 0.000000e+00 : f32
    %1029 = vector.broadcast %cst_411 : f32 to vector<2x32xf32>
    %1030 = tpu.concatenate %1029, %1029 in 0 : vector<2x32xf32>, vector<2x32xf32> -> vector<4x32xf32>
    %cst_412 = arith.constant dense<0.000000e+00> : vector<4x256xf32>
    %1031 = tpu.matmul %1030, %1028, %cst_412 {dimension_numbers = #tpu.dot_dimension_numbers<[1], [0], [0], [1], [0, 0, 1, 1], [], []>} : vector<4x32xf32>, vector<32x256xf32>, vector<4x256xf32> -> vector<4x256xf32>
    %1032 = vector.extract_strided_slice %1027 {offsets = [0, 0], sizes = [2, 128], strides = [1, 1]} : vector<16x256xf32> to vector<2x128xf32>
    %1033 = vector.extract_strided_slice %1031 {offsets = [0, 0], sizes = [2, 128], strides = [1, 1]} : vector<4x256xf32> to vector<2x128xf32>
    %1034 = arith.addf %1032, %1033 : vector<2x128xf32>
    %1035 = vector.extract_strided_slice %1027 {offsets = [14, 128], sizes = [2, 128], strides = [1, 1]} : vector<16x256xf32> to vector<2x128xf32>
    %1036 = vector.extract_strided_slice %1031 {offsets = [2, 128], sizes = [2, 128], strides = [1, 1]} : vector<4x256xf32> to vector<2x128xf32>
    %1037 = arith.addf %1035, %1036 : vector<2x128xf32>
    %1038 = vector.extract_strided_slice %1034 {offsets = [0, 0], sizes = [2, 32], strides = [1, 1]} : vector<2x128xf32> to vector<2x32xf32>
    %cst_413 = arith.constant 0.000000e+00 : f32
    %1039 = vector.broadcast %cst_413 : f32 to vector<2x32xf32>
    %1040 = arith.subf %1039, %1038 : vector<2x32xf32>
    %1041 = math.exp %1040 : vector<2x32xf32>
    %cst_414 = arith.constant 1.000000e+00 : f32
    %1042 = vector.broadcast %cst_414 : f32 to vector<2x32xf32>
    %1043 = arith.addf %1042, %1041 : vector<2x32xf32>
    %cst_415 = arith.constant 1.000000e+00 : f32
    %1044 = vector.broadcast %cst_415 : f32 to vector<2x32xf32>
    %1045 = arith.divf %1044, %1043 : vector<2x32xf32>
    %1046 = vector.extract_strided_slice %1034 {offsets = [0, 32], sizes = [2, 32], strides = [1, 1]} : vector<2x128xf32> to vector<2x32xf32>
    %cst_416 = arith.constant 0.000000e+00 : f32
    %1047 = vector.broadcast %cst_416 : f32 to vector<2x32xf32>
    %1048 = arith.subf %1047, %1046 : vector<2x32xf32>
    %1049 = math.exp %1048 : vector<2x32xf32>
    %cst_417 = arith.constant 1.000000e+00 : f32
    %1050 = vector.broadcast %cst_417 : f32 to vector<2x32xf32>
    %1051 = arith.addf %1050, %1049 : vector<2x32xf32>
    %cst_418 = arith.constant 1.000000e+00 : f32
    %1052 = vector.broadcast %cst_418 : f32 to vector<2x32xf32>
    %1053 = arith.divf %1052, %1051 : vector<2x32xf32>
    %1054 = vector.extract_strided_slice %1034 {offsets = [0, 64], sizes = [2, 32], strides = [1, 1]} : vector<2x128xf32> to vector<2x32xf32>
    %1055 = math.tanh %1054 : vector<2x32xf32>
    %1056 = vector.extract_strided_slice %1034 {offsets = [0, 96], sizes = [2, 32], strides = [1, 1]} : vector<2x128xf32> to vector<2x32xf32>
    %cst_419 = arith.constant 0.000000e+00 : f32
    %1057 = vector.broadcast %cst_419 : f32 to vector<2x32xf32>
    %1058 = arith.subf %1057, %1056 : vector<2x32xf32>
    %1059 = math.exp %1058 : vector<2x32xf32>
    %cst_420 = arith.constant 1.000000e+00 : f32
    %1060 = vector.broadcast %cst_420 : f32 to vector<2x32xf32>
    %1061 = arith.addf %1060, %1059 : vector<2x32xf32>
    %cst_421 = arith.constant 1.000000e+00 : f32
    %1062 = vector.broadcast %cst_421 : f32 to vector<2x32xf32>
    %1063 = arith.divf %1062, %1061 : vector<2x32xf32>
    %1064 = arith.mulf %1053, %1029 : vector<2x32xf32>
    %1065 = arith.mulf %1045, %1055 : vector<2x32xf32>
    %1066 = arith.addf %1064, %1065 : vector<2x32xf32>
    %1067 = math.tanh %1066 : vector<2x32xf32>
    %1068 = arith.mulf %1063, %1067 : vector<2x32xf32>
    %1069 = vector.extract_strided_slice %1037 {offsets = [0, 0], sizes = [2, 32], strides = [1, 1]} : vector<2x128xf32> to vector<2x32xf32>
    %cst_422 = arith.constant 0.000000e+00 : f32
    %1070 = vector.broadcast %cst_422 : f32 to vector<2x32xf32>
    %1071 = arith.subf %1070, %1069 : vector<2x32xf32>
    %1072 = math.exp %1071 : vector<2x32xf32>
    %cst_423 = arith.constant 1.000000e+00 : f32
    %1073 = vector.broadcast %cst_423 : f32 to vector<2x32xf32>
    %1074 = arith.addf %1073, %1072 : vector<2x32xf32>
    %cst_424 = arith.constant 1.000000e+00 : f32
    %1075 = vector.broadcast %cst_424 : f32 to vector<2x32xf32>
    %1076 = arith.divf %1075, %1074 : vector<2x32xf32>
    %1077 = vector.extract_strided_slice %1037 {offsets = [0, 32], sizes = [2, 32], strides = [1, 1]} : vector<2x128xf32> to vector<2x32xf32>
    %cst_425 = arith.constant 0.000000e+00 : f32
    %1078 = vector.broadcast %cst_425 : f32 to vector<2x32xf32>
    %1079 = arith.subf %1078, %1077 : vector<2x32xf32>
    %1080 = math.exp %1079 : vector<2x32xf32>
    %cst_426 = arith.constant 1.000000e+00 : f32
    %1081 = vector.broadcast %cst_426 : f32 to vector<2x32xf32>
    %1082 = arith.addf %1081, %1080 : vector<2x32xf32>
    %cst_427 = arith.constant 1.000000e+00 : f32
    %1083 = vector.broadcast %cst_427 : f32 to vector<2x32xf32>
    %1084 = arith.divf %1083, %1082 : vector<2x32xf32>
    %1085 = vector.extract_strided_slice %1037 {offsets = [0, 64], sizes = [2, 32], strides = [1, 1]} : vector<2x128xf32> to vector<2x32xf32>
    %1086 = math.tanh %1085 : vector<2x32xf32>
    %1087 = vector.extract_strided_slice %1037 {offsets = [0, 96], sizes = [2, 32], strides = [1, 1]} : vector<2x128xf32> to vector<2x32xf32>
    %cst_428 = arith.constant 0.000000e+00 : f32
    %1088 = vector.broadcast %cst_428 : f32 to vector<2x32xf32>
    %1089 = arith.subf %1088, %1087 : vector<2x32xf32>
    %1090 = math.exp %1089 : vector<2x32xf32>
    %cst_429 = arith.constant 1.000000e+00 : f32
    %1091 = vector.broadcast %cst_429 : f32 to vector<2x32xf32>
    %1092 = arith.addf %1091, %1090 : vector<2x32xf32>
    %cst_430 = arith.constant 1.000000e+00 : f32
    %1093 = vector.broadcast %cst_430 : f32 to vector<2x32xf32>
    %1094 = arith.divf %1093, %1092 : vector<2x32xf32>
    %1095 = arith.mulf %1084, %1029 : vector<2x32xf32>
    %1096 = arith.mulf %1076, %1086 : vector<2x32xf32>
    %1097 = arith.addf %1095, %1096 : vector<2x32xf32>
    %1098 = math.tanh %1097 : vector<2x32xf32>
    %1099 = arith.mulf %1094, %1098 : vector<2x32xf32>
    %1100 = tpu.concatenate %1068, %1099 in 0 : vector<2x32xf32>, vector<2x32xf32> -> vector<4x32xf32>
    %cst_431 = arith.constant dense<0.000000e+00> : vector<4x256xf32>
    %1101 = tpu.matmul %1100, %1028, %cst_431 {dimension_numbers = #tpu.dot_dimension_numbers<[1], [0], [0], [1], [0, 0, 1, 1], [], []>} : vector<4x32xf32>, vector<32x256xf32>, vector<4x256xf32> -> vector<4x256xf32>
    %1102 = vector.extract_strided_slice %1027 {offsets = [2, 0], sizes = [2, 128], strides = [1, 1]} : vector<16x256xf32> to vector<2x128xf32>
    %1103 = vector.extract_strided_slice %1101 {offsets = [0, 0], sizes = [2, 128], strides = [1, 1]} : vector<4x256xf32> to vector<2x128xf32>
    %1104 = arith.addf %1102, %1103 : vector<2x128xf32>
    %1105 = vector.extract_strided_slice %1027 {offsets = [12, 128], sizes = [2, 128], strides = [1, 1]} : vector<16x256xf32> to vector<2x128xf32>
    %1106 = vector.extract_strided_slice %1101 {offsets = [2, 128], sizes = [2, 128], strides = [1, 1]} : vector<4x256xf32> to vector<2x128xf32>
    %1107 = arith.addf %1105, %1106 : vector<2x128xf32>
    %1108 = vector.extract_strided_slice %1104 {offsets = [0, 0], sizes = [2, 32], strides = [1, 1]} : vector<2x128xf32> to vector<2x32xf32>
    %cst_432 = arith.constant 0.000000e+00 : f32
    %1109 = vector.broadcast %cst_432 : f32 to vector<2x32xf32>
    %1110 = arith.subf %1109, %1108 : vector<2x32xf32>
    %1111 = math.exp %1110 : vector<2x32xf32>
    %cst_433 = arith.constant 1.000000e+00 : f32
    %1112 = vector.broadcast %cst_433 : f32 to vector<2x32xf32>
    %1113 = arith.addf %1112, %1111 : vector<2x32xf32>
    %cst_434 = arith.constant 1.000000e+00 : f32
    %1114 = vector.broadcast %cst_434 : f32 to vector<2x32xf32>
    %1115 = arith.divf %1114, %1113 : vector<2x32xf32>
    %1116 = vector.extract_strided_slice %1104 {offsets = [0, 32], sizes = [2, 32], strides = [1, 1]} : vector<2x128xf32> to vector<2x32xf32>
    %cst_435 = arith.constant 0.000000e+00 : f32
    %1117 = vector.broadcast %cst_435 : f32 to vector<2x32xf32>
    %1118 = arith.subf %1117, %1116 : vector<2x32xf32>
    %1119 = math.exp %1118 : vector<2x32xf32>
    %cst_436 = arith.constant 1.000000e+00 : f32
    %1120 = vector.broadcast %cst_436 : f32 to vector<2x32xf32>
    %1121 = arith.addf %1120, %1119 : vector<2x32xf32>
    %cst_437 = arith.constant 1.000000e+00 : f32
    %1122 = vector.broadcast %cst_437 : f32 to vector<2x32xf32>
    %1123 = arith.divf %1122, %1121 : vector<2x32xf32>
    %1124 = vector.extract_strided_slice %1104 {offsets = [0, 64], sizes = [2, 32], strides = [1, 1]} : vector<2x128xf32> to vector<2x32xf32>
    %1125 = math.tanh %1124 : vector<2x32xf32>
    %1126 = vector.extract_strided_slice %1104 {offsets = [0, 96], sizes = [2, 32], strides = [1, 1]} : vector<2x128xf32> to vector<2x32xf32>
    %cst_438 = arith.constant 0.000000e+00 : f32
    %1127 = vector.broadcast %cst_438 : f32 to vector<2x32xf32>
    %1128 = arith.subf %1127, %1126 : vector<2x32xf32>
    %1129 = math.exp %1128 : vector<2x32xf32>
    %cst_439 = arith.constant 1.000000e+00 : f32
    %1130 = vector.broadcast %cst_439 : f32 to vector<2x32xf32>
    %1131 = arith.addf %1130, %1129 : vector<2x32xf32>
    %cst_440 = arith.constant 1.000000e+00 : f32
    %1132 = vector.broadcast %cst_440 : f32 to vector<2x32xf32>
    %1133 = arith.divf %1132, %1131 : vector<2x32xf32>
    %1134 = arith.mulf %1123, %1066 : vector<2x32xf32>
    %1135 = arith.mulf %1115, %1125 : vector<2x32xf32>
    %1136 = arith.addf %1134, %1135 : vector<2x32xf32>
    %1137 = math.tanh %1136 : vector<2x32xf32>
    %1138 = arith.mulf %1133, %1137 : vector<2x32xf32>
    %1139 = vector.extract_strided_slice %1107 {offsets = [0, 0], sizes = [2, 32], strides = [1, 1]} : vector<2x128xf32> to vector<2x32xf32>
    %cst_441 = arith.constant 0.000000e+00 : f32
    %1140 = vector.broadcast %cst_441 : f32 to vector<2x32xf32>
    %1141 = arith.subf %1140, %1139 : vector<2x32xf32>
    %1142 = math.exp %1141 : vector<2x32xf32>
    %cst_442 = arith.constant 1.000000e+00 : f32
    %1143 = vector.broadcast %cst_442 : f32 to vector<2x32xf32>
    %1144 = arith.addf %1143, %1142 : vector<2x32xf32>
    %cst_443 = arith.constant 1.000000e+00 : f32
    %1145 = vector.broadcast %cst_443 : f32 to vector<2x32xf32>
    %1146 = arith.divf %1145, %1144 : vector<2x32xf32>
    %1147 = vector.extract_strided_slice %1107 {offsets = [0, 32], sizes = [2, 32], strides = [1, 1]} : vector<2x128xf32> to vector<2x32xf32>
    %cst_444 = arith.constant 0.000000e+00 : f32
    %1148 = vector.broadcast %cst_444 : f32 to vector<2x32xf32>
    %1149 = arith.subf %1148, %1147 : vector<2x32xf32>
    %1150 = math.exp %1149 : vector<2x32xf32>
    %cst_445 = arith.constant 1.000000e+00 : f32
    %1151 = vector.broadcast %cst_445 : f32 to vector<2x32xf32>
    %1152 = arith.addf %1151, %1150 : vector<2x32xf32>
    %cst_446 = arith.constant 1.000000e+00 : f32
    %1153 = vector.broadcast %cst_446 : f32 to vector<2x32xf32>
    %1154 = arith.divf %1153, %1152 : vector<2x32xf32>
    %1155 = vector.extract_strided_slice %1107 {offsets = [0, 64], sizes = [2, 32], strides = [1, 1]} : vector<2x128xf32> to vector<2x32xf32>
    %1156 = math.tanh %1155 : vector<2x32xf32>
    %1157 = vector.extract_strided_slice %1107 {offsets = [0, 96], sizes = [2, 32], strides = [1, 1]} : vector<2x128xf32> to vector<2x32xf32>
    %cst_447 = arith.constant 0.000000e+00 : f32
    %1158 = vector.broadcast %cst_447 : f32 to vector<2x32xf32>
    %1159 = arith.subf %1158, %1157 : vector<2x32xf32>
    %1160 = math.exp %1159 : vector<2x32xf32>
    %cst_448 = arith.constant 1.000000e+00 : f32
    %1161 = vector.broadcast %cst_448 : f32 to vector<2x32xf32>
    %1162 = arith.addf %1161, %1160 : vector<2x32xf32>
    %cst_449 = arith.constant 1.000000e+00 : f32
    %1163 = vector.broadcast %cst_449 : f32 to vector<2x32xf32>
    %1164 = arith.divf %1163, %1162 : vector<2x32xf32>
    %1165 = arith.mulf %1154, %1097 : vector<2x32xf32>
    %1166 = arith.mulf %1146, %1156 : vector<2x32xf32>
    %1167 = arith.addf %1165, %1166 : vector<2x32xf32>
    %1168 = math.tanh %1167 : vector<2x32xf32>
    %1169 = arith.mulf %1164, %1168 : vector<2x32xf32>
    %1170 = tpu.concatenate %1138, %1169 in 0 : vector<2x32xf32>, vector<2x32xf32> -> vector<4x32xf32>
    %cst_450 = arith.constant dense<0.000000e+00> : vector<4x256xf32>
    %1171 = tpu.matmul %1170, %1028, %cst_450 {dimension_numbers = #tpu.dot_dimension_numbers<[1], [0], [0], [1], [0, 0, 1, 1], [], []>} : vector<4x32xf32>, vector<32x256xf32>, vector<4x256xf32> -> vector<4x256xf32>
    %1172 = vector.extract_strided_slice %1027 {offsets = [4, 0], sizes = [2, 128], strides = [1, 1]} : vector<16x256xf32> to vector<2x128xf32>
    %1173 = vector.extract_strided_slice %1171 {offsets = [0, 0], sizes = [2, 128], strides = [1, 1]} : vector<4x256xf32> to vector<2x128xf32>
    %1174 = arith.addf %1172, %1173 : vector<2x128xf32>
    %1175 = vector.extract_strided_slice %1027 {offsets = [10, 128], sizes = [2, 128], strides = [1, 1]} : vector<16x256xf32> to vector<2x128xf32>
    %1176 = vector.extract_strided_slice %1171 {offsets = [2, 128], sizes = [2, 128], strides = [1, 1]} : vector<4x256xf32> to vector<2x128xf32>
    %1177 = arith.addf %1175, %1176 : vector<2x128xf32>
    %1178 = vector.extract_strided_slice %1174 {offsets = [0, 0], sizes = [2, 32], strides = [1, 1]} : vector<2x128xf32> to vector<2x32xf32>
    %cst_451 = arith.constant 0.000000e+00 : f32
    %1179 = vector.broadcast %cst_451 : f32 to vector<2x32xf32>
    %1180 = arith.subf %1179, %1178 : vector<2x32xf32>
    %1181 = math.exp %1180 : vector<2x32xf32>
    %cst_452 = arith.constant 1.000000e+00 : f32
    %1182 = vector.broadcast %cst_452 : f32 to vector<2x32xf32>
    %1183 = arith.addf %1182, %1181 : vector<2x32xf32>
    %cst_453 = arith.constant 1.000000e+00 : f32
    %1184 = vector.broadcast %cst_453 : f32 to vector<2x32xf32>
    %1185 = arith.divf %1184, %1183 : vector<2x32xf32>
    %1186 = vector.extract_strided_slice %1174 {offsets = [0, 32], sizes = [2, 32], strides = [1, 1]} : vector<2x128xf32> to vector<2x32xf32>
    %cst_454 = arith.constant 0.000000e+00 : f32
    %1187 = vector.broadcast %cst_454 : f32 to vector<2x32xf32>
    %1188 = arith.subf %1187, %1186 : vector<2x32xf32>
    %1189 = math.exp %1188 : vector<2x32xf32>
    %cst_455 = arith.constant 1.000000e+00 : f32
    %1190 = vector.broadcast %cst_455 : f32 to vector<2x32xf32>
    %1191 = arith.addf %1190, %1189 : vector<2x32xf32>
    %cst_456 = arith.constant 1.000000e+00 : f32
    %1192 = vector.broadcast %cst_456 : f32 to vector<2x32xf32>
    %1193 = arith.divf %1192, %1191 : vector<2x32xf32>
    %1194 = vector.extract_strided_slice %1174 {offsets = [0, 64], sizes = [2, 32], strides = [1, 1]} : vector<2x128xf32> to vector<2x32xf32>
    %1195 = math.tanh %1194 : vector<2x32xf32>
    %1196 = vector.extract_strided_slice %1174 {offsets = [0, 96], sizes = [2, 32], strides = [1, 1]} : vector<2x128xf32> to vector<2x32xf32>
    %cst_457 = arith.constant 0.000000e+00 : f32
    %1197 = vector.broadcast %cst_457 : f32 to vector<2x32xf32>
    %1198 = arith.subf %1197, %1196 : vector<2x32xf32>
    %1199 = math.exp %1198 : vector<2x32xf32>
    %cst_458 = arith.constant 1.000000e+00 : f32
    %1200 = vector.broadcast %cst_458 : f32 to vector<2x32xf32>
    %1201 = arith.addf %1200, %1199 : vector<2x32xf32>
    %cst_459 = arith.constant 1.000000e+00 : f32
    %1202 = vector.broadcast %cst_459 : f32 to vector<2x32xf32>
    %1203 = arith.divf %1202, %1201 : vector<2x32xf32>
    %1204 = arith.mulf %1193, %1136 : vector<2x32xf32>
    %1205 = arith.mulf %1185, %1195 : vector<2x32xf32>
    %1206 = arith.addf %1204, %1205 : vector<2x32xf32>
    %1207 = math.tanh %1206 : vector<2x32xf32>
    %1208 = arith.mulf %1203, %1207 : vector<2x32xf32>
    %1209 = vector.extract_strided_slice %1177 {offsets = [0, 0], sizes = [2, 32], strides = [1, 1]} : vector<2x128xf32> to vector<2x32xf32>
    %cst_460 = arith.constant 0.000000e+00 : f32
    %1210 = vector.broadcast %cst_460 : f32 to vector<2x32xf32>
    %1211 = arith.subf %1210, %1209 : vector<2x32xf32>
    %1212 = math.exp %1211 : vector<2x32xf32>
    %cst_461 = arith.constant 1.000000e+00 : f32
    %1213 = vector.broadcast %cst_461 : f32 to vector<2x32xf32>
    %1214 = arith.addf %1213, %1212 : vector<2x32xf32>
    %cst_462 = arith.constant 1.000000e+00 : f32
    %1215 = vector.broadcast %cst_462 : f32 to vector<2x32xf32>
    %1216 = arith.divf %1215, %1214 : vector<2x32xf32>
    %1217 = vector.extract_strided_slice %1177 {offsets = [0, 32], sizes = [2, 32], strides = [1, 1]} : vector<2x128xf32> to vector<2x32xf32>
    %cst_463 = arith.constant 0.000000e+00 : f32
    %1218 = vector.broadcast %cst_463 : f32 to vector<2x32xf32>
    %1219 = arith.subf %1218, %1217 : vector<2x32xf32>
    %1220 = math.exp %1219 : vector<2x32xf32>
    %cst_464 = arith.constant 1.000000e+00 : f32
    %1221 = vector.broadcast %cst_464 : f32 to vector<2x32xf32>
    %1222 = arith.addf %1221, %1220 : vector<2x32xf32>
    %cst_465 = arith.constant 1.000000e+00 : f32
    %1223 = vector.broadcast %cst_465 : f32 to vector<2x32xf32>
    %1224 = arith.divf %1223, %1222 : vector<2x32xf32>
    %1225 = vector.extract_strided_slice %1177 {offsets = [0, 64], sizes = [2, 32], strides = [1, 1]} : vector<2x128xf32> to vector<2x32xf32>
    %1226 = math.tanh %1225 : vector<2x32xf32>
    %1227 = vector.extract_strided_slice %1177 {offsets = [0, 96], sizes = [2, 32], strides = [1, 1]} : vector<2x128xf32> to vector<2x32xf32>
    %cst_466 = arith.constant 0.000000e+00 : f32
    %1228 = vector.broadcast %cst_466 : f32 to vector<2x32xf32>
    %1229 = arith.subf %1228, %1227 : vector<2x32xf32>
    %1230 = math.exp %1229 : vector<2x32xf32>
    %cst_467 = arith.constant 1.000000e+00 : f32
    %1231 = vector.broadcast %cst_467 : f32 to vector<2x32xf32>
    %1232 = arith.addf %1231, %1230 : vector<2x32xf32>
    %cst_468 = arith.constant 1.000000e+00 : f32
    %1233 = vector.broadcast %cst_468 : f32 to vector<2x32xf32>
    %1234 = arith.divf %1233, %1232 : vector<2x32xf32>
    %1235 = arith.mulf %1224, %1167 : vector<2x32xf32>
    %1236 = arith.mulf %1216, %1226 : vector<2x32xf32>
    %1237 = arith.addf %1235, %1236 : vector<2x32xf32>
    %1238 = math.tanh %1237 : vector<2x32xf32>
    %1239 = arith.mulf %1234, %1238 : vector<2x32xf32>
    %1240 = tpu.concatenate %1208, %1239 in 0 : vector<2x32xf32>, vector<2x32xf32> -> vector<4x32xf32>
    %cst_469 = arith.constant dense<0.000000e+00> : vector<4x256xf32>
    %1241 = tpu.matmul %1240, %1028, %cst_469 {dimension_numbers = #tpu.dot_dimension_numbers<[1], [0], [0], [1], [0, 0, 1, 1], [], []>} : vector<4x32xf32>, vector<32x256xf32>, vector<4x256xf32> -> vector<4x256xf32>
    %1242 = vector.extract_strided_slice %1027 {offsets = [6, 0], sizes = [2, 128], strides = [1, 1]} : vector<16x256xf32> to vector<2x128xf32>
    %1243 = vector.extract_strided_slice %1241 {offsets = [0, 0], sizes = [2, 128], strides = [1, 1]} : vector<4x256xf32> to vector<2x128xf32>
    %1244 = arith.addf %1242, %1243 : vector<2x128xf32>
    %1245 = vector.extract_strided_slice %1027 {offsets = [8, 128], sizes = [2, 128], strides = [1, 1]} : vector<16x256xf32> to vector<2x128xf32>
    %1246 = vector.extract_strided_slice %1241 {offsets = [2, 128], sizes = [2, 128], strides = [1, 1]} : vector<4x256xf32> to vector<2x128xf32>
    %1247 = arith.addf %1245, %1246 : vector<2x128xf32>
    %1248 = vector.extract_strided_slice %1244 {offsets = [0, 0], sizes = [2, 32], strides = [1, 1]} : vector<2x128xf32> to vector<2x32xf32>
    %cst_470 = arith.constant 0.000000e+00 : f32
    %1249 = vector.broadcast %cst_470 : f32 to vector<2x32xf32>
    %1250 = arith.subf %1249, %1248 : vector<2x32xf32>
    %1251 = math.exp %1250 : vector<2x32xf32>
    %cst_471 = arith.constant 1.000000e+00 : f32
    %1252 = vector.broadcast %cst_471 : f32 to vector<2x32xf32>
    %1253 = arith.addf %1252, %1251 : vector<2x32xf32>
    %cst_472 = arith.constant 1.000000e+00 : f32
    %1254 = vector.broadcast %cst_472 : f32 to vector<2x32xf32>
    %1255 = arith.divf %1254, %1253 : vector<2x32xf32>
    %1256 = vector.extract_strided_slice %1244 {offsets = [0, 32], sizes = [2, 32], strides = [1, 1]} : vector<2x128xf32> to vector<2x32xf32>
    %cst_473 = arith.constant 0.000000e+00 : f32
    %1257 = vector.broadcast %cst_473 : f32 to vector<2x32xf32>
    %1258 = arith.subf %1257, %1256 : vector<2x32xf32>
    %1259 = math.exp %1258 : vector<2x32xf32>
    %cst_474 = arith.constant 1.000000e+00 : f32
    %1260 = vector.broadcast %cst_474 : f32 to vector<2x32xf32>
    %1261 = arith.addf %1260, %1259 : vector<2x32xf32>
    %cst_475 = arith.constant 1.000000e+00 : f32
    %1262 = vector.broadcast %cst_475 : f32 to vector<2x32xf32>
    %1263 = arith.divf %1262, %1261 : vector<2x32xf32>
    %1264 = vector.extract_strided_slice %1244 {offsets = [0, 64], sizes = [2, 32], strides = [1, 1]} : vector<2x128xf32> to vector<2x32xf32>
    %1265 = math.tanh %1264 : vector<2x32xf32>
    %1266 = vector.extract_strided_slice %1244 {offsets = [0, 96], sizes = [2, 32], strides = [1, 1]} : vector<2x128xf32> to vector<2x32xf32>
    %cst_476 = arith.constant 0.000000e+00 : f32
    %1267 = vector.broadcast %cst_476 : f32 to vector<2x32xf32>
    %1268 = arith.subf %1267, %1266 : vector<2x32xf32>
    %1269 = math.exp %1268 : vector<2x32xf32>
    %cst_477 = arith.constant 1.000000e+00 : f32
    %1270 = vector.broadcast %cst_477 : f32 to vector<2x32xf32>
    %1271 = arith.addf %1270, %1269 : vector<2x32xf32>
    %cst_478 = arith.constant 1.000000e+00 : f32
    %1272 = vector.broadcast %cst_478 : f32 to vector<2x32xf32>
    %1273 = arith.divf %1272, %1271 : vector<2x32xf32>
    %1274 = arith.mulf %1263, %1206 : vector<2x32xf32>
    %1275 = arith.mulf %1255, %1265 : vector<2x32xf32>
    %1276 = arith.addf %1274, %1275 : vector<2x32xf32>
    %1277 = math.tanh %1276 : vector<2x32xf32>
    %1278 = arith.mulf %1273, %1277 : vector<2x32xf32>
    %1279 = vector.extract_strided_slice %1247 {offsets = [0, 0], sizes = [2, 32], strides = [1, 1]} : vector<2x128xf32> to vector<2x32xf32>
    %cst_479 = arith.constant 0.000000e+00 : f32
    %1280 = vector.broadcast %cst_479 : f32 to vector<2x32xf32>
    %1281 = arith.subf %1280, %1279 : vector<2x32xf32>
    %1282 = math.exp %1281 : vector<2x32xf32>
    %cst_480 = arith.constant 1.000000e+00 : f32
    %1283 = vector.broadcast %cst_480 : f32 to vector<2x32xf32>
    %1284 = arith.addf %1283, %1282 : vector<2x32xf32>
    %cst_481 = arith.constant 1.000000e+00 : f32
    %1285 = vector.broadcast %cst_481 : f32 to vector<2x32xf32>
    %1286 = arith.divf %1285, %1284 : vector<2x32xf32>
    %1287 = vector.extract_strided_slice %1247 {offsets = [0, 32], sizes = [2, 32], strides = [1, 1]} : vector<2x128xf32> to vector<2x32xf32>
    %cst_482 = arith.constant 0.000000e+00 : f32
    %1288 = vector.broadcast %cst_482 : f32 to vector<2x32xf32>
    %1289 = arith.subf %1288, %1287 : vector<2x32xf32>
    %1290 = math.exp %1289 : vector<2x32xf32>
    %cst_483 = arith.constant 1.000000e+00 : f32
    %1291 = vector.broadcast %cst_483 : f32 to vector<2x32xf32>
    %1292 = arith.addf %1291, %1290 : vector<2x32xf32>
    %cst_484 = arith.constant 1.000000e+00 : f32
    %1293 = vector.broadcast %cst_484 : f32 to vector<2x32xf32>
    %1294 = arith.divf %1293, %1292 : vector<2x32xf32>
    %1295 = vector.extract_strided_slice %1247 {offsets = [0, 64], sizes = [2, 32], strides = [1, 1]} : vector<2x128xf32> to vector<2x32xf32>
    %1296 = math.tanh %1295 : vector<2x32xf32>
    %1297 = vector.extract_strided_slice %1247 {offsets = [0, 96], sizes = [2, 32], strides = [1, 1]} : vector<2x128xf32> to vector<2x32xf32>
    %cst_485 = arith.constant 0.000000e+00 : f32
    %1298 = vector.broadcast %cst_485 : f32 to vector<2x32xf32>
    %1299 = arith.subf %1298, %1297 : vector<2x32xf32>
    %1300 = math.exp %1299 : vector<2x32xf32>
    %cst_486 = arith.constant 1.000000e+00 : f32
    %1301 = vector.broadcast %cst_486 : f32 to vector<2x32xf32>
    %1302 = arith.addf %1301, %1300 : vector<2x32xf32>
    %cst_487 = arith.constant 1.000000e+00 : f32
    %1303 = vector.broadcast %cst_487 : f32 to vector<2x32xf32>
    %1304 = arith.divf %1303, %1302 : vector<2x32xf32>
    %1305 = arith.mulf %1294, %1237 : vector<2x32xf32>
    %1306 = arith.mulf %1286, %1296 : vector<2x32xf32>
    %1307 = arith.addf %1305, %1306 : vector<2x32xf32>
    %1308 = math.tanh %1307 : vector<2x32xf32>
    %1309 = arith.mulf %1304, %1308 : vector<2x32xf32>
    %1310 = tpu.concatenate %1278, %1309 in 0 : vector<2x32xf32>, vector<2x32xf32> -> vector<4x32xf32>
    %cst_488 = arith.constant dense<0.000000e+00> : vector<4x256xf32>
    %1311 = tpu.matmul %1310, %1028, %cst_488 {dimension_numbers = #tpu.dot_dimension_numbers<[1], [0], [0], [1], [0, 0, 1, 1], [], []>} : vector<4x32xf32>, vector<32x256xf32>, vector<4x256xf32> -> vector<4x256xf32>
    %1312 = vector.extract_strided_slice %1027 {offsets = [8, 0], sizes = [2, 128], strides = [1, 1]} : vector<16x256xf32> to vector<2x128xf32>
    %1313 = vector.extract_strided_slice %1311 {offsets = [0, 0], sizes = [2, 128], strides = [1, 1]} : vector<4x256xf32> to vector<2x128xf32>
    %1314 = arith.addf %1312, %1313 : vector<2x128xf32>
    %1315 = vector.extract_strided_slice %1027 {offsets = [6, 128], sizes = [2, 128], strides = [1, 1]} : vector<16x256xf32> to vector<2x128xf32>
    %1316 = vector.extract_strided_slice %1311 {offsets = [2, 128], sizes = [2, 128], strides = [1, 1]} : vector<4x256xf32> to vector<2x128xf32>
    %1317 = arith.addf %1315, %1316 : vector<2x128xf32>
    %1318 = vector.extract_strided_slice %1314 {offsets = [0, 0], sizes = [2, 32], strides = [1, 1]} : vector<2x128xf32> to vector<2x32xf32>
    %cst_489 = arith.constant 0.000000e+00 : f32
    %1319 = vector.broadcast %cst_489 : f32 to vector<2x32xf32>
    %1320 = arith.subf %1319, %1318 : vector<2x32xf32>
    %1321 = math.exp %1320 : vector<2x32xf32>
    %cst_490 = arith.constant 1.000000e+00 : f32
    %1322 = vector.broadcast %cst_490 : f32 to vector<2x32xf32>
    %1323 = arith.addf %1322, %1321 : vector<2x32xf32>
    %cst_491 = arith.constant 1.000000e+00 : f32
    %1324 = vector.broadcast %cst_491 : f32 to vector<2x32xf32>
    %1325 = arith.divf %1324, %1323 : vector<2x32xf32>
    %1326 = vector.extract_strided_slice %1314 {offsets = [0, 32], sizes = [2, 32], strides = [1, 1]} : vector<2x128xf32> to vector<2x32xf32>
    %cst_492 = arith.constant 0.000000e+00 : f32
    %1327 = vector.broadcast %cst_492 : f32 to vector<2x32xf32>
    %1328 = arith.subf %1327, %1326 : vector<2x32xf32>
    %1329 = math.exp %1328 : vector<2x32xf32>
    %cst_493 = arith.constant 1.000000e+00 : f32
    %1330 = vector.broadcast %cst_493 : f32 to vector<2x32xf32>
    %1331 = arith.addf %1330, %1329 : vector<2x32xf32>
    %cst_494 = arith.constant 1.000000e+00 : f32
    %1332 = vector.broadcast %cst_494 : f32 to vector<2x32xf32>
    %1333 = arith.divf %1332, %1331 : vector<2x32xf32>
    %1334 = vector.extract_strided_slice %1314 {offsets = [0, 64], sizes = [2, 32], strides = [1, 1]} : vector<2x128xf32> to vector<2x32xf32>
    %1335 = math.tanh %1334 : vector<2x32xf32>
    %1336 = vector.extract_strided_slice %1314 {offsets = [0, 96], sizes = [2, 32], strides = [1, 1]} : vector<2x128xf32> to vector<2x32xf32>
    %cst_495 = arith.constant 0.000000e+00 : f32
    %1337 = vector.broadcast %cst_495 : f32 to vector<2x32xf32>
    %1338 = arith.subf %1337, %1336 : vector<2x32xf32>
    %1339 = math.exp %1338 : vector<2x32xf32>
    %cst_496 = arith.constant 1.000000e+00 : f32
    %1340 = vector.broadcast %cst_496 : f32 to vector<2x32xf32>
    %1341 = arith.addf %1340, %1339 : vector<2x32xf32>
    %cst_497 = arith.constant 1.000000e+00 : f32
    %1342 = vector.broadcast %cst_497 : f32 to vector<2x32xf32>
    %1343 = arith.divf %1342, %1341 : vector<2x32xf32>
    %1344 = arith.mulf %1333, %1276 : vector<2x32xf32>
    %1345 = arith.mulf %1325, %1335 : vector<2x32xf32>
    %1346 = arith.addf %1344, %1345 : vector<2x32xf32>
    %1347 = math.tanh %1346 : vector<2x32xf32>
    %1348 = arith.mulf %1343, %1347 : vector<2x32xf32>
    %1349 = vector.extract_strided_slice %1317 {offsets = [0, 0], sizes = [2, 32], strides = [1, 1]} : vector<2x128xf32> to vector<2x32xf32>
    %cst_498 = arith.constant 0.000000e+00 : f32
    %1350 = vector.broadcast %cst_498 : f32 to vector<2x32xf32>
    %1351 = arith.subf %1350, %1349 : vector<2x32xf32>
    %1352 = math.exp %1351 : vector<2x32xf32>
    %cst_499 = arith.constant 1.000000e+00 : f32
    %1353 = vector.broadcast %cst_499 : f32 to vector<2x32xf32>
    %1354 = arith.addf %1353, %1352 : vector<2x32xf32>
    %cst_500 = arith.constant 1.000000e+00 : f32
    %1355 = vector.broadcast %cst_500 : f32 to vector<2x32xf32>
    %1356 = arith.divf %1355, %1354 : vector<2x32xf32>
    %1357 = vector.extract_strided_slice %1317 {offsets = [0, 32], sizes = [2, 32], strides = [1, 1]} : vector<2x128xf32> to vector<2x32xf32>
    %cst_501 = arith.constant 0.000000e+00 : f32
    %1358 = vector.broadcast %cst_501 : f32 to vector<2x32xf32>
    %1359 = arith.subf %1358, %1357 : vector<2x32xf32>
    %1360 = math.exp %1359 : vector<2x32xf32>
    %cst_502 = arith.constant 1.000000e+00 : f32
    %1361 = vector.broadcast %cst_502 : f32 to vector<2x32xf32>
    %1362 = arith.addf %1361, %1360 : vector<2x32xf32>
    %cst_503 = arith.constant 1.000000e+00 : f32
    %1363 = vector.broadcast %cst_503 : f32 to vector<2x32xf32>
    %1364 = arith.divf %1363, %1362 : vector<2x32xf32>
    %1365 = vector.extract_strided_slice %1317 {offsets = [0, 64], sizes = [2, 32], strides = [1, 1]} : vector<2x128xf32> to vector<2x32xf32>
    %1366 = math.tanh %1365 : vector<2x32xf32>
    %1367 = vector.extract_strided_slice %1317 {offsets = [0, 96], sizes = [2, 32], strides = [1, 1]} : vector<2x128xf32> to vector<2x32xf32>
    %cst_504 = arith.constant 0.000000e+00 : f32
    %1368 = vector.broadcast %cst_504 : f32 to vector<2x32xf32>
    %1369 = arith.subf %1368, %1367 : vector<2x32xf32>
    %1370 = math.exp %1369 : vector<2x32xf32>
    %cst_505 = arith.constant 1.000000e+00 : f32
    %1371 = vector.broadcast %cst_505 : f32 to vector<2x32xf32>
    %1372 = arith.addf %1371, %1370 : vector<2x32xf32>
    %cst_506 = arith.constant 1.000000e+00 : f32
    %1373 = vector.broadcast %cst_506 : f32 to vector<2x32xf32>
    %1374 = arith.divf %1373, %1372 : vector<2x32xf32>
    %1375 = arith.mulf %1364, %1307 : vector<2x32xf32>
    %1376 = arith.mulf %1356, %1366 : vector<2x32xf32>
    %1377 = arith.addf %1375, %1376 : vector<2x32xf32>
    %1378 = math.tanh %1377 : vector<2x32xf32>
    %1379 = arith.mulf %1374, %1378 : vector<2x32xf32>
    %1380 = tpu.concatenate %1348, %1379 in 0 : vector<2x32xf32>, vector<2x32xf32> -> vector<4x32xf32>
    %cst_507 = arith.constant dense<0.000000e+00> : vector<4x256xf32>
    %1381 = tpu.matmul %1380, %1028, %cst_507 {dimension_numbers = #tpu.dot_dimension_numbers<[1], [0], [0], [1], [0, 0, 1, 1], [], []>} : vector<4x32xf32>, vector<32x256xf32>, vector<4x256xf32> -> vector<4x256xf32>
    %1382 = vector.extract_strided_slice %1027 {offsets = [10, 0], sizes = [2, 128], strides = [1, 1]} : vector<16x256xf32> to vector<2x128xf32>
    %1383 = vector.extract_strided_slice %1381 {offsets = [0, 0], sizes = [2, 128], strides = [1, 1]} : vector<4x256xf32> to vector<2x128xf32>
    %1384 = arith.addf %1382, %1383 : vector<2x128xf32>
    %1385 = vector.extract_strided_slice %1027 {offsets = [4, 128], sizes = [2, 128], strides = [1, 1]} : vector<16x256xf32> to vector<2x128xf32>
    %1386 = vector.extract_strided_slice %1381 {offsets = [2, 128], sizes = [2, 128], strides = [1, 1]} : vector<4x256xf32> to vector<2x128xf32>
    %1387 = arith.addf %1385, %1386 : vector<2x128xf32>
    %1388 = vector.extract_strided_slice %1384 {offsets = [0, 0], sizes = [2, 32], strides = [1, 1]} : vector<2x128xf32> to vector<2x32xf32>
    %cst_508 = arith.constant 0.000000e+00 : f32
    %1389 = vector.broadcast %cst_508 : f32 to vector<2x32xf32>
    %1390 = arith.subf %1389, %1388 : vector<2x32xf32>
    %1391 = math.exp %1390 : vector<2x32xf32>
    %cst_509 = arith.constant 1.000000e+00 : f32
    %1392 = vector.broadcast %cst_509 : f32 to vector<2x32xf32>
    %1393 = arith.addf %1392, %1391 : vector<2x32xf32>
    %cst_510 = arith.constant 1.000000e+00 : f32
    %1394 = vector.broadcast %cst_510 : f32 to vector<2x32xf32>
    %1395 = arith.divf %1394, %1393 : vector<2x32xf32>
    %1396 = vector.extract_strided_slice %1384 {offsets = [0, 32], sizes = [2, 32], strides = [1, 1]} : vector<2x128xf32> to vector<2x32xf32>
    %cst_511 = arith.constant 0.000000e+00 : f32
    %1397 = vector.broadcast %cst_511 : f32 to vector<2x32xf32>
    %1398 = arith.subf %1397, %1396 : vector<2x32xf32>
    %1399 = math.exp %1398 : vector<2x32xf32>
    %cst_512 = arith.constant 1.000000e+00 : f32
    %1400 = vector.broadcast %cst_512 : f32 to vector<2x32xf32>
    %1401 = arith.addf %1400, %1399 : vector<2x32xf32>
    %cst_513 = arith.constant 1.000000e+00 : f32
    %1402 = vector.broadcast %cst_513 : f32 to vector<2x32xf32>
    %1403 = arith.divf %1402, %1401 : vector<2x32xf32>
    %1404 = vector.extract_strided_slice %1384 {offsets = [0, 64], sizes = [2, 32], strides = [1, 1]} : vector<2x128xf32> to vector<2x32xf32>
    %1405 = math.tanh %1404 : vector<2x32xf32>
    %1406 = vector.extract_strided_slice %1384 {offsets = [0, 96], sizes = [2, 32], strides = [1, 1]} : vector<2x128xf32> to vector<2x32xf32>
    %cst_514 = arith.constant 0.000000e+00 : f32
    %1407 = vector.broadcast %cst_514 : f32 to vector<2x32xf32>
    %1408 = arith.subf %1407, %1406 : vector<2x32xf32>
    %1409 = math.exp %1408 : vector<2x32xf32>
    %cst_515 = arith.constant 1.000000e+00 : f32
    %1410 = vector.broadcast %cst_515 : f32 to vector<2x32xf32>
    %1411 = arith.addf %1410, %1409 : vector<2x32xf32>
    %cst_516 = arith.constant 1.000000e+00 : f32
    %1412 = vector.broadcast %cst_516 : f32 to vector<2x32xf32>
    %1413 = arith.divf %1412, %1411 : vector<2x32xf32>
    %1414 = arith.mulf %1403, %1346 : vector<2x32xf32>
    %1415 = arith.mulf %1395, %1405 : vector<2x32xf32>
    %1416 = arith.addf %1414, %1415 : vector<2x32xf32>
    %1417 = math.tanh %1416 : vector<2x32xf32>
    %1418 = arith.mulf %1413, %1417 : vector<2x32xf32>
    %1419 = vector.extract_strided_slice %1387 {offsets = [0, 0], sizes = [2, 32], strides = [1, 1]} : vector<2x128xf32> to vector<2x32xf32>
    %cst_517 = arith.constant 0.000000e+00 : f32
    %1420 = vector.broadcast %cst_517 : f32 to vector<2x32xf32>
    %1421 = arith.subf %1420, %1419 : vector<2x32xf32>
    %1422 = math.exp %1421 : vector<2x32xf32>
    %cst_518 = arith.constant 1.000000e+00 : f32
    %1423 = vector.broadcast %cst_518 : f32 to vector<2x32xf32>
    %1424 = arith.addf %1423, %1422 : vector<2x32xf32>
    %cst_519 = arith.constant 1.000000e+00 : f32
    %1425 = vector.broadcast %cst_519 : f32 to vector<2x32xf32>
    %1426 = arith.divf %1425, %1424 : vector<2x32xf32>
    %1427 = vector.extract_strided_slice %1387 {offsets = [0, 32], sizes = [2, 32], strides = [1, 1]} : vector<2x128xf32> to vector<2x32xf32>
    %cst_520 = arith.constant 0.000000e+00 : f32
    %1428 = vector.broadcast %cst_520 : f32 to vector<2x32xf32>
    %1429 = arith.subf %1428, %1427 : vector<2x32xf32>
    %1430 = math.exp %1429 : vector<2x32xf32>
    %cst_521 = arith.constant 1.000000e+00 : f32
    %1431 = vector.broadcast %cst_521 : f32 to vector<2x32xf32>
    %1432 = arith.addf %1431, %1430 : vector<2x32xf32>
    %cst_522 = arith.constant 1.000000e+00 : f32
    %1433 = vector.broadcast %cst_522 : f32 to vector<2x32xf32>
    %1434 = arith.divf %1433, %1432 : vector<2x32xf32>
    %1435 = vector.extract_strided_slice %1387 {offsets = [0, 64], sizes = [2, 32], strides = [1, 1]} : vector<2x128xf32> to vector<2x32xf32>
    %1436 = math.tanh %1435 : vector<2x32xf32>
    %1437 = vector.extract_strided_slice %1387 {offsets = [0, 96], sizes = [2, 32], strides = [1, 1]} : vector<2x128xf32> to vector<2x32xf32>
    %cst_523 = arith.constant 0.000000e+00 : f32
    %1438 = vector.broadcast %cst_523 : f32 to vector<2x32xf32>
    %1439 = arith.subf %1438, %1437 : vector<2x32xf32>
    %1440 = math.exp %1439 : vector<2x32xf32>
    %cst_524 = arith.constant 1.000000e+00 : f32
    %1441 = vector.broadcast %cst_524 : f32 to vector<2x32xf32>
    %1442 = arith.addf %1441, %1440 : vector<2x32xf32>
    %cst_525 = arith.constant 1.000000e+00 : f32
    %1443 = vector.broadcast %cst_525 : f32 to vector<2x32xf32>
    %1444 = arith.divf %1443, %1442 : vector<2x32xf32>
    %1445 = arith.mulf %1434, %1377 : vector<2x32xf32>
    %1446 = arith.mulf %1426, %1436 : vector<2x32xf32>
    %1447 = arith.addf %1445, %1446 : vector<2x32xf32>
    %1448 = math.tanh %1447 : vector<2x32xf32>
    %1449 = arith.mulf %1444, %1448 : vector<2x32xf32>
    %1450 = tpu.concatenate %1418, %1449 in 0 : vector<2x32xf32>, vector<2x32xf32> -> vector<4x32xf32>
    %cst_526 = arith.constant dense<0.000000e+00> : vector<4x256xf32>
    %1451 = tpu.matmul %1450, %1028, %cst_526 {dimension_numbers = #tpu.dot_dimension_numbers<[1], [0], [0], [1], [0, 0, 1, 1], [], []>} : vector<4x32xf32>, vector<32x256xf32>, vector<4x256xf32> -> vector<4x256xf32>
    %1452 = vector.extract_strided_slice %1027 {offsets = [12, 0], sizes = [2, 128], strides = [1, 1]} : vector<16x256xf32> to vector<2x128xf32>
    %1453 = vector.extract_strided_slice %1451 {offsets = [0, 0], sizes = [2, 128], strides = [1, 1]} : vector<4x256xf32> to vector<2x128xf32>
    %1454 = arith.addf %1452, %1453 : vector<2x128xf32>
    %1455 = vector.extract_strided_slice %1027 {offsets = [2, 128], sizes = [2, 128], strides = [1, 1]} : vector<16x256xf32> to vector<2x128xf32>
    %1456 = vector.extract_strided_slice %1451 {offsets = [2, 128], sizes = [2, 128], strides = [1, 1]} : vector<4x256xf32> to vector<2x128xf32>
    %1457 = arith.addf %1455, %1456 : vector<2x128xf32>
    %1458 = vector.extract_strided_slice %1454 {offsets = [0, 0], sizes = [2, 32], strides = [1, 1]} : vector<2x128xf32> to vector<2x32xf32>
    %cst_527 = arith.constant 0.000000e+00 : f32
    %1459 = vector.broadcast %cst_527 : f32 to vector<2x32xf32>
    %1460 = arith.subf %1459, %1458 : vector<2x32xf32>
    %1461 = math.exp %1460 : vector<2x32xf32>
    %cst_528 = arith.constant 1.000000e+00 : f32
    %1462 = vector.broadcast %cst_528 : f32 to vector<2x32xf32>
    %1463 = arith.addf %1462, %1461 : vector<2x32xf32>
    %cst_529 = arith.constant 1.000000e+00 : f32
    %1464 = vector.broadcast %cst_529 : f32 to vector<2x32xf32>
    %1465 = arith.divf %1464, %1463 : vector<2x32xf32>
    %1466 = vector.extract_strided_slice %1454 {offsets = [0, 32], sizes = [2, 32], strides = [1, 1]} : vector<2x128xf32> to vector<2x32xf32>
    %cst_530 = arith.constant 0.000000e+00 : f32
    %1467 = vector.broadcast %cst_530 : f32 to vector<2x32xf32>
    %1468 = arith.subf %1467, %1466 : vector<2x32xf32>
    %1469 = math.exp %1468 : vector<2x32xf32>
    %cst_531 = arith.constant 1.000000e+00 : f32
    %1470 = vector.broadcast %cst_531 : f32 to vector<2x32xf32>
    %1471 = arith.addf %1470, %1469 : vector<2x32xf32>
    %cst_532 = arith.constant 1.000000e+00 : f32
    %1472 = vector.broadcast %cst_532 : f32 to vector<2x32xf32>
    %1473 = arith.divf %1472, %1471 : vector<2x32xf32>
    %1474 = vector.extract_strided_slice %1454 {offsets = [0, 64], sizes = [2, 32], strides = [1, 1]} : vector<2x128xf32> to vector<2x32xf32>
    %1475 = math.tanh %1474 : vector<2x32xf32>
    %1476 = vector.extract_strided_slice %1454 {offsets = [0, 96], sizes = [2, 32], strides = [1, 1]} : vector<2x128xf32> to vector<2x32xf32>
    %cst_533 = arith.constant 0.000000e+00 : f32
    %1477 = vector.broadcast %cst_533 : f32 to vector<2x32xf32>
    %1478 = arith.subf %1477, %1476 : vector<2x32xf32>
    %1479 = math.exp %1478 : vector<2x32xf32>
    %cst_534 = arith.constant 1.000000e+00 : f32
    %1480 = vector.broadcast %cst_534 : f32 to vector<2x32xf32>
    %1481 = arith.addf %1480, %1479 : vector<2x32xf32>
    %cst_535 = arith.constant 1.000000e+00 : f32
    %1482 = vector.broadcast %cst_535 : f32 to vector<2x32xf32>
    %1483 = arith.divf %1482, %1481 : vector<2x32xf32>
    %1484 = arith.mulf %1473, %1416 : vector<2x32xf32>
    %1485 = arith.mulf %1465, %1475 : vector<2x32xf32>
    %1486 = arith.addf %1484, %1485 : vector<2x32xf32>
    %1487 = math.tanh %1486 : vector<2x32xf32>
    %1488 = arith.mulf %1483, %1487 : vector<2x32xf32>
    %1489 = vector.extract_strided_slice %1457 {offsets = [0, 0], sizes = [2, 32], strides = [1, 1]} : vector<2x128xf32> to vector<2x32xf32>
    %cst_536 = arith.constant 0.000000e+00 : f32
    %1490 = vector.broadcast %cst_536 : f32 to vector<2x32xf32>
    %1491 = arith.subf %1490, %1489 : vector<2x32xf32>
    %1492 = math.exp %1491 : vector<2x32xf32>
    %cst_537 = arith.constant 1.000000e+00 : f32
    %1493 = vector.broadcast %cst_537 : f32 to vector<2x32xf32>
    %1494 = arith.addf %1493, %1492 : vector<2x32xf32>
    %cst_538 = arith.constant 1.000000e+00 : f32
    %1495 = vector.broadcast %cst_538 : f32 to vector<2x32xf32>
    %1496 = arith.divf %1495, %1494 : vector<2x32xf32>
    %1497 = vector.extract_strided_slice %1457 {offsets = [0, 32], sizes = [2, 32], strides = [1, 1]} : vector<2x128xf32> to vector<2x32xf32>
    %cst_539 = arith.constant 0.000000e+00 : f32
    %1498 = vector.broadcast %cst_539 : f32 to vector<2x32xf32>
    %1499 = arith.subf %1498, %1497 : vector<2x32xf32>
    %1500 = math.exp %1499 : vector<2x32xf32>
    %cst_540 = arith.constant 1.000000e+00 : f32
    %1501 = vector.broadcast %cst_540 : f32 to vector<2x32xf32>
    %1502 = arith.addf %1501, %1500 : vector<2x32xf32>
    %cst_541 = arith.constant 1.000000e+00 : f32
    %1503 = vector.broadcast %cst_541 : f32 to vector<2x32xf32>
    %1504 = arith.divf %1503, %1502 : vector<2x32xf32>
    %1505 = vector.extract_strided_slice %1457 {offsets = [0, 64], sizes = [2, 32], strides = [1, 1]} : vector<2x128xf32> to vector<2x32xf32>
    %1506 = math.tanh %1505 : vector<2x32xf32>
    %1507 = vector.extract_strided_slice %1457 {offsets = [0, 96], sizes = [2, 32], strides = [1, 1]} : vector<2x128xf32> to vector<2x32xf32>
    %cst_542 = arith.constant 0.000000e+00 : f32
    %1508 = vector.broadcast %cst_542 : f32 to vector<2x32xf32>
    %1509 = arith.subf %1508, %1507 : vector<2x32xf32>
    %1510 = math.exp %1509 : vector<2x32xf32>
    %cst_543 = arith.constant 1.000000e+00 : f32
    %1511 = vector.broadcast %cst_543 : f32 to vector<2x32xf32>
    %1512 = arith.addf %1511, %1510 : vector<2x32xf32>
    %cst_544 = arith.constant 1.000000e+00 : f32
    %1513 = vector.broadcast %cst_544 : f32 to vector<2x32xf32>
    %1514 = arith.divf %1513, %1512 : vector<2x32xf32>
    %1515 = arith.mulf %1504, %1447 : vector<2x32xf32>
    %1516 = arith.mulf %1496, %1506 : vector<2x32xf32>
    %1517 = arith.addf %1515, %1516 : vector<2x32xf32>
    %1518 = math.tanh %1517 : vector<2x32xf32>
    %1519 = arith.mulf %1514, %1518 : vector<2x32xf32>
    %1520 = tpu.concatenate %1488, %1519 in 0 : vector<2x32xf32>, vector<2x32xf32> -> vector<4x32xf32>
    %cst_545 = arith.constant dense<0.000000e+00> : vector<4x256xf32>
    %1521 = tpu.matmul %1520, %1028, %cst_545 {dimension_numbers = #tpu.dot_dimension_numbers<[1], [0], [0], [1], [0, 0, 1, 1], [], []>} : vector<4x32xf32>, vector<32x256xf32>, vector<4x256xf32> -> vector<4x256xf32>
    %1522 = vector.extract_strided_slice %1027 {offsets = [14, 0], sizes = [2, 128], strides = [1, 1]} : vector<16x256xf32> to vector<2x128xf32>
    %1523 = vector.extract_strided_slice %1521 {offsets = [0, 0], sizes = [2, 128], strides = [1, 1]} : vector<4x256xf32> to vector<2x128xf32>
    %1524 = arith.addf %1522, %1523 : vector<2x128xf32>
    %1525 = vector.extract_strided_slice %1027 {offsets = [0, 128], sizes = [2, 128], strides = [1, 1]} : vector<16x256xf32> to vector<2x128xf32>
    %1526 = vector.extract_strided_slice %1521 {offsets = [2, 128], sizes = [2, 128], strides = [1, 1]} : vector<4x256xf32> to vector<2x128xf32>
    %1527 = arith.addf %1525, %1526 : vector<2x128xf32>
    %1528 = vector.extract_strided_slice %1524 {offsets = [0, 0], sizes = [2, 32], strides = [1, 1]} : vector<2x128xf32> to vector<2x32xf32>
    %cst_546 = arith.constant 0.000000e+00 : f32
    %1529 = vector.broadcast %cst_546 : f32 to vector<2x32xf32>
    %1530 = arith.subf %1529, %1528 : vector<2x32xf32>
    %1531 = math.exp %1530 : vector<2x32xf32>
    %cst_547 = arith.constant 1.000000e+00 : f32
    %1532 = vector.broadcast %cst_547 : f32 to vector<2x32xf32>
    %1533 = arith.addf %1532, %1531 : vector<2x32xf32>
    %cst_548 = arith.constant 1.000000e+00 : f32
    %1534 = vector.broadcast %cst_548 : f32 to vector<2x32xf32>
    %1535 = arith.divf %1534, %1533 : vector<2x32xf32>
    %1536 = vector.extract_strided_slice %1524 {offsets = [0, 32], sizes = [2, 32], strides = [1, 1]} : vector<2x128xf32> to vector<2x32xf32>
    %cst_549 = arith.constant 0.000000e+00 : f32
    %1537 = vector.broadcast %cst_549 : f32 to vector<2x32xf32>
    %1538 = arith.subf %1537, %1536 : vector<2x32xf32>
    %1539 = math.exp %1538 : vector<2x32xf32>
    %cst_550 = arith.constant 1.000000e+00 : f32
    %1540 = vector.broadcast %cst_550 : f32 to vector<2x32xf32>
    %1541 = arith.addf %1540, %1539 : vector<2x32xf32>
    %cst_551 = arith.constant 1.000000e+00 : f32
    %1542 = vector.broadcast %cst_551 : f32 to vector<2x32xf32>
    %1543 = arith.divf %1542, %1541 : vector<2x32xf32>
    %1544 = vector.extract_strided_slice %1524 {offsets = [0, 64], sizes = [2, 32], strides = [1, 1]} : vector<2x128xf32> to vector<2x32xf32>
    %1545 = math.tanh %1544 : vector<2x32xf32>
    %1546 = vector.extract_strided_slice %1524 {offsets = [0, 96], sizes = [2, 32], strides = [1, 1]} : vector<2x128xf32> to vector<2x32xf32>
    %cst_552 = arith.constant 0.000000e+00 : f32
    %1547 = vector.broadcast %cst_552 : f32 to vector<2x32xf32>
    %1548 = arith.subf %1547, %1546 : vector<2x32xf32>
    %1549 = math.exp %1548 : vector<2x32xf32>
    %cst_553 = arith.constant 1.000000e+00 : f32
    %1550 = vector.broadcast %cst_553 : f32 to vector<2x32xf32>
    %1551 = arith.addf %1550, %1549 : vector<2x32xf32>
    %cst_554 = arith.constant 1.000000e+00 : f32
    %1552 = vector.broadcast %cst_554 : f32 to vector<2x32xf32>
    %1553 = arith.divf %1552, %1551 : vector<2x32xf32>
    %1554 = arith.mulf %1543, %1486 : vector<2x32xf32>
    %1555 = arith.mulf %1535, %1545 : vector<2x32xf32>
    %1556 = arith.addf %1554, %1555 : vector<2x32xf32>
    %1557 = math.tanh %1556 : vector<2x32xf32>
    %1558 = arith.mulf %1553, %1557 : vector<2x32xf32>
    %1559 = vector.extract_strided_slice %1527 {offsets = [0, 0], sizes = [2, 32], strides = [1, 1]} : vector<2x128xf32> to vector<2x32xf32>
    %cst_555 = arith.constant 0.000000e+00 : f32
    %1560 = vector.broadcast %cst_555 : f32 to vector<2x32xf32>
    %1561 = arith.subf %1560, %1559 : vector<2x32xf32>
    %1562 = math.exp %1561 : vector<2x32xf32>
    %cst_556 = arith.constant 1.000000e+00 : f32
    %1563 = vector.broadcast %cst_556 : f32 to vector<2x32xf32>
    %1564 = arith.addf %1563, %1562 : vector<2x32xf32>
    %cst_557 = arith.constant 1.000000e+00 : f32
    %1565 = vector.broadcast %cst_557 : f32 to vector<2x32xf32>
    %1566 = arith.divf %1565, %1564 : vector<2x32xf32>
    %1567 = vector.extract_strided_slice %1527 {offsets = [0, 32], sizes = [2, 32], strides = [1, 1]} : vector<2x128xf32> to vector<2x32xf32>
    %cst_558 = arith.constant 0.000000e+00 : f32
    %1568 = vector.broadcast %cst_558 : f32 to vector<2x32xf32>
    %1569 = arith.subf %1568, %1567 : vector<2x32xf32>
    %1570 = math.exp %1569 : vector<2x32xf32>
    %cst_559 = arith.constant 1.000000e+00 : f32
    %1571 = vector.broadcast %cst_559 : f32 to vector<2x32xf32>
    %1572 = arith.addf %1571, %1570 : vector<2x32xf32>
    %cst_560 = arith.constant 1.000000e+00 : f32
    %1573 = vector.broadcast %cst_560 : f32 to vector<2x32xf32>
    %1574 = arith.divf %1573, %1572 : vector<2x32xf32>
    %1575 = vector.extract_strided_slice %1527 {offsets = [0, 64], sizes = [2, 32], strides = [1, 1]} : vector<2x128xf32> to vector<2x32xf32>
    %1576 = math.tanh %1575 : vector<2x32xf32>
    %1577 = vector.extract_strided_slice %1527 {offsets = [0, 96], sizes = [2, 32], strides = [1, 1]} : vector<2x128xf32> to vector<2x32xf32>
    %cst_561 = arith.constant 0.000000e+00 : f32
    %1578 = vector.broadcast %cst_561 : f32 to vector<2x32xf32>
    %1579 = arith.subf %1578, %1577 : vector<2x32xf32>
    %1580 = math.exp %1579 : vector<2x32xf32>
    %cst_562 = arith.constant 1.000000e+00 : f32
    %1581 = vector.broadcast %cst_562 : f32 to vector<2x32xf32>
    %1582 = arith.addf %1581, %1580 : vector<2x32xf32>
    %cst_563 = arith.constant 1.000000e+00 : f32
    %1583 = vector.broadcast %cst_563 : f32 to vector<2x32xf32>
    %1584 = arith.divf %1583, %1582 : vector<2x32xf32>
    %1585 = arith.mulf %1574, %1517 : vector<2x32xf32>
    %1586 = arith.mulf %1566, %1576 : vector<2x32xf32>
    %1587 = arith.addf %1585, %1586 : vector<2x32xf32>
    %1588 = math.tanh %1587 : vector<2x32xf32>
    %1589 = arith.mulf %1584, %1588 : vector<2x32xf32>
    %1590 = tpu.concatenate %1068, %1589 in 1 : vector<2x32xf32>, vector<2x32xf32> -> vector<2x64xf32>
    %1591 = tpu.concatenate %1138, %1519 in 1 : vector<2x32xf32>, vector<2x32xf32> -> vector<2x64xf32>
    %1592 = tpu.concatenate %1208, %1449 in 1 : vector<2x32xf32>, vector<2x32xf32> -> vector<2x64xf32>
    %1593 = tpu.concatenate %1278, %1379 in 1 : vector<2x32xf32>, vector<2x32xf32> -> vector<2x64xf32>
    %1594 = tpu.concatenate %1348, %1309 in 1 : vector<2x32xf32>, vector<2x32xf32> -> vector<2x64xf32>
    %1595 = tpu.concatenate %1418, %1239 in 1 : vector<2x32xf32>, vector<2x32xf32> -> vector<2x64xf32>
    %1596 = tpu.concatenate %1488, %1169 in 1 : vector<2x32xf32>, vector<2x32xf32> -> vector<2x64xf32>
    %1597 = tpu.concatenate %1558, %1099 in 1 : vector<2x32xf32>, vector<2x32xf32> -> vector<2x64xf32>
    %1598 = tpu.concatenate %1590, %1591, %1592, %1593, %1594, %1595, %1596, %1597 in 0 : vector<2x64xf32>, vector<2x64xf32>, vector<2x64xf32>, vector<2x64xf32>, vector<2x64xf32>, vector<2x64xf32>, vector<2x64xf32>, vector<2x64xf32> -> vector<16x64xf32>
    %c0_564 = arith.constant 0 : index
    %c0_565 = arith.constant 0 : index
    %1599 = vector.load %arg26[%c0_564, %c0_565] : memref<64x256xf32, #tpu.memory_space<vmem>>, vector<64x256xf32>
    %cst_566 = arith.constant dense<0.000000e+00> : vector<16x256xf32>
    %1600 = tpu.matmul %1598, %1599, %cst_566 {dimension_numbers = #tpu.dot_dimension_numbers<[1], [0], [0], [1], [0, 0, 1, 1], [], []>} : vector<16x64xf32>, vector<64x256xf32>, vector<16x256xf32> -> vector<16x256xf32>
    %c0_567 = arith.constant 0 : index
    %c0_568 = arith.constant 0 : index
    %1601 = vector.load %arg27[%c0_567, %c0_568] : memref<1x256xf32, #tpu.memory_space<vmem>>, vector<1x256xf32>
    %1602 = vector.broadcast %1601 : vector<1x256xf32> to vector<16x256xf32>
    %1603 = arith.addf %1600, %1602 : vector<16x256xf32>
    %c0_569 = arith.constant 0 : index
    %c0_570 = arith.constant 0 : index
    %1604 = vector.load %arg28[%c0_569, %c0_570] : memref<32x128xf32, #tpu.memory_space<vmem>>, vector<32x128xf32>
    %1605 = vector.extract_strided_slice %1603 {offsets = [0, 0], sizes = [2, 128], strides = [1, 1]} : vector<16x256xf32> to vector<2x128xf32>
    %cst_571 = arith.constant dense<0.000000e+00> : vector<2x128xf32>
    %1606 = tpu.matmul %1029, %1604, %cst_571 {dimension_numbers = #tpu.dot_dimension_numbers<[1], [0], [0], [1], [0, 0, 1, 1], [], []>} : vector<2x32xf32>, vector<32x128xf32>, vector<2x128xf32> -> vector<2x128xf32>
    %1607 = arith.addf %1605, %1606 : vector<2x128xf32>
    %1608 = vector.extract_strided_slice %1607 {offsets = [0, 0], sizes = [2, 32], strides = [1, 1]} : vector<2x128xf32> to vector<2x32xf32>
    %cst_572 = arith.constant 0.000000e+00 : f32
    %1609 = vector.broadcast %cst_572 : f32 to vector<2x32xf32>
    %1610 = arith.subf %1609, %1608 : vector<2x32xf32>
    %1611 = math.exp %1610 : vector<2x32xf32>
    %cst_573 = arith.constant 1.000000e+00 : f32
    %1612 = vector.broadcast %cst_573 : f32 to vector<2x32xf32>
    %1613 = arith.addf %1612, %1611 : vector<2x32xf32>
    %cst_574 = arith.constant 1.000000e+00 : f32
    %1614 = vector.broadcast %cst_574 : f32 to vector<2x32xf32>
    %1615 = arith.divf %1614, %1613 : vector<2x32xf32>
    %1616 = vector.extract_strided_slice %1607 {offsets = [0, 32], sizes = [2, 32], strides = [1, 1]} : vector<2x128xf32> to vector<2x32xf32>
    %cst_575 = arith.constant 0.000000e+00 : f32
    %1617 = vector.broadcast %cst_575 : f32 to vector<2x32xf32>
    %1618 = arith.subf %1617, %1616 : vector<2x32xf32>
    %1619 = math.exp %1618 : vector<2x32xf32>
    %cst_576 = arith.constant 1.000000e+00 : f32
    %1620 = vector.broadcast %cst_576 : f32 to vector<2x32xf32>
    %1621 = arith.addf %1620, %1619 : vector<2x32xf32>
    %cst_577 = arith.constant 1.000000e+00 : f32
    %1622 = vector.broadcast %cst_577 : f32 to vector<2x32xf32>
    %1623 = arith.divf %1622, %1621 : vector<2x32xf32>
    %1624 = vector.extract_strided_slice %1607 {offsets = [0, 64], sizes = [2, 32], strides = [1, 1]} : vector<2x128xf32> to vector<2x32xf32>
    %1625 = math.tanh %1624 : vector<2x32xf32>
    %1626 = vector.extract_strided_slice %1607 {offsets = [0, 96], sizes = [2, 32], strides = [1, 1]} : vector<2x128xf32> to vector<2x32xf32>
    %cst_578 = arith.constant 0.000000e+00 : f32
    %1627 = vector.broadcast %cst_578 : f32 to vector<2x32xf32>
    %1628 = arith.subf %1627, %1626 : vector<2x32xf32>
    %1629 = math.exp %1628 : vector<2x32xf32>
    %cst_579 = arith.constant 1.000000e+00 : f32
    %1630 = vector.broadcast %cst_579 : f32 to vector<2x32xf32>
    %1631 = arith.addf %1630, %1629 : vector<2x32xf32>
    %cst_580 = arith.constant 1.000000e+00 : f32
    %1632 = vector.broadcast %cst_580 : f32 to vector<2x32xf32>
    %1633 = arith.divf %1632, %1631 : vector<2x32xf32>
    %1634 = arith.mulf %1623, %1029 : vector<2x32xf32>
    %1635 = arith.mulf %1615, %1625 : vector<2x32xf32>
    %1636 = arith.addf %1634, %1635 : vector<2x32xf32>
    %1637 = math.tanh %1636 : vector<2x32xf32>
    %1638 = arith.mulf %1633, %1637 : vector<2x32xf32>
    %1639 = vector.extract_strided_slice %1603 {offsets = [2, 0], sizes = [2, 128], strides = [1, 1]} : vector<16x256xf32> to vector<2x128xf32>
    %cst_581 = arith.constant dense<0.000000e+00> : vector<2x128xf32>
    %1640 = tpu.matmul %1638, %1604, %cst_581 {dimension_numbers = #tpu.dot_dimension_numbers<[1], [0], [0], [1], [0, 0, 1, 1], [], []>} : vector<2x32xf32>, vector<32x128xf32>, vector<2x128xf32> -> vector<2x128xf32>
    %1641 = arith.addf %1639, %1640 : vector<2x128xf32>
    %1642 = vector.extract_strided_slice %1641 {offsets = [0, 0], sizes = [2, 32], strides = [1, 1]} : vector<2x128xf32> to vector<2x32xf32>
    %cst_582 = arith.constant 0.000000e+00 : f32
    %1643 = vector.broadcast %cst_582 : f32 to vector<2x32xf32>
    %1644 = arith.subf %1643, %1642 : vector<2x32xf32>
    %1645 = math.exp %1644 : vector<2x32xf32>
    %cst_583 = arith.constant 1.000000e+00 : f32
    %1646 = vector.broadcast %cst_583 : f32 to vector<2x32xf32>
    %1647 = arith.addf %1646, %1645 : vector<2x32xf32>
    %cst_584 = arith.constant 1.000000e+00 : f32
    %1648 = vector.broadcast %cst_584 : f32 to vector<2x32xf32>
    %1649 = arith.divf %1648, %1647 : vector<2x32xf32>
    %1650 = vector.extract_strided_slice %1641 {offsets = [0, 32], sizes = [2, 32], strides = [1, 1]} : vector<2x128xf32> to vector<2x32xf32>
    %cst_585 = arith.constant 0.000000e+00 : f32
    %1651 = vector.broadcast %cst_585 : f32 to vector<2x32xf32>
    %1652 = arith.subf %1651, %1650 : vector<2x32xf32>
    %1653 = math.exp %1652 : vector<2x32xf32>
    %cst_586 = arith.constant 1.000000e+00 : f32
    %1654 = vector.broadcast %cst_586 : f32 to vector<2x32xf32>
    %1655 = arith.addf %1654, %1653 : vector<2x32xf32>
    %cst_587 = arith.constant 1.000000e+00 : f32
    %1656 = vector.broadcast %cst_587 : f32 to vector<2x32xf32>
    %1657 = arith.divf %1656, %1655 : vector<2x32xf32>
    %1658 = vector.extract_strided_slice %1641 {offsets = [0, 64], sizes = [2, 32], strides = [1, 1]} : vector<2x128xf32> to vector<2x32xf32>
    %1659 = math.tanh %1658 : vector<2x32xf32>
    %1660 = vector.extract_strided_slice %1641 {offsets = [0, 96], sizes = [2, 32], strides = [1, 1]} : vector<2x128xf32> to vector<2x32xf32>
    %cst_588 = arith.constant 0.000000e+00 : f32
    %1661 = vector.broadcast %cst_588 : f32 to vector<2x32xf32>
    %1662 = arith.subf %1661, %1660 : vector<2x32xf32>
    %1663 = math.exp %1662 : vector<2x32xf32>
    %cst_589 = arith.constant 1.000000e+00 : f32
    %1664 = vector.broadcast %cst_589 : f32 to vector<2x32xf32>
    %1665 = arith.addf %1664, %1663 : vector<2x32xf32>
    %cst_590 = arith.constant 1.000000e+00 : f32
    %1666 = vector.broadcast %cst_590 : f32 to vector<2x32xf32>
    %1667 = arith.divf %1666, %1665 : vector<2x32xf32>
    %1668 = arith.mulf %1657, %1636 : vector<2x32xf32>
    %1669 = arith.mulf %1649, %1659 : vector<2x32xf32>
    %1670 = arith.addf %1668, %1669 : vector<2x32xf32>
    %1671 = math.tanh %1670 : vector<2x32xf32>
    %1672 = arith.mulf %1667, %1671 : vector<2x32xf32>
    %1673 = vector.extract_strided_slice %1603 {offsets = [4, 0], sizes = [2, 128], strides = [1, 1]} : vector<16x256xf32> to vector<2x128xf32>
    %cst_591 = arith.constant dense<0.000000e+00> : vector<2x128xf32>
    %1674 = tpu.matmul %1672, %1604, %cst_591 {dimension_numbers = #tpu.dot_dimension_numbers<[1], [0], [0], [1], [0, 0, 1, 1], [], []>} : vector<2x32xf32>, vector<32x128xf32>, vector<2x128xf32> -> vector<2x128xf32>
    %1675 = arith.addf %1673, %1674 : vector<2x128xf32>
    %1676 = vector.extract_strided_slice %1675 {offsets = [0, 0], sizes = [2, 32], strides = [1, 1]} : vector<2x128xf32> to vector<2x32xf32>
    %cst_592 = arith.constant 0.000000e+00 : f32
    %1677 = vector.broadcast %cst_592 : f32 to vector<2x32xf32>
    %1678 = arith.subf %1677, %1676 : vector<2x32xf32>
    %1679 = math.exp %1678 : vector<2x32xf32>
    %cst_593 = arith.constant 1.000000e+00 : f32
    %1680 = vector.broadcast %cst_593 : f32 to vector<2x32xf32>
    %1681 = arith.addf %1680, %1679 : vector<2x32xf32>
    %cst_594 = arith.constant 1.000000e+00 : f32
    %1682 = vector.broadcast %cst_594 : f32 to vector<2x32xf32>
    %1683 = arith.divf %1682, %1681 : vector<2x32xf32>
    %1684 = vector.extract_strided_slice %1675 {offsets = [0, 32], sizes = [2, 32], strides = [1, 1]} : vector<2x128xf32> to vector<2x32xf32>
    %cst_595 = arith.constant 0.000000e+00 : f32
    %1685 = vector.broadcast %cst_595 : f32 to vector<2x32xf32>
    %1686 = arith.subf %1685, %1684 : vector<2x32xf32>
    %1687 = math.exp %1686 : vector<2x32xf32>
    %cst_596 = arith.constant 1.000000e+00 : f32
    %1688 = vector.broadcast %cst_596 : f32 to vector<2x32xf32>
    %1689 = arith.addf %1688, %1687 : vector<2x32xf32>
    %cst_597 = arith.constant 1.000000e+00 : f32
    %1690 = vector.broadcast %cst_597 : f32 to vector<2x32xf32>
    %1691 = arith.divf %1690, %1689 : vector<2x32xf32>
    %1692 = vector.extract_strided_slice %1675 {offsets = [0, 64], sizes = [2, 32], strides = [1, 1]} : vector<2x128xf32> to vector<2x32xf32>
    %1693 = math.tanh %1692 : vector<2x32xf32>
    %1694 = vector.extract_strided_slice %1675 {offsets = [0, 96], sizes = [2, 32], strides = [1, 1]} : vector<2x128xf32> to vector<2x32xf32>
    %cst_598 = arith.constant 0.000000e+00 : f32
    %1695 = vector.broadcast %cst_598 : f32 to vector<2x32xf32>
    %1696 = arith.subf %1695, %1694 : vector<2x32xf32>
    %1697 = math.exp %1696 : vector<2x32xf32>
    %cst_599 = arith.constant 1.000000e+00 : f32
    %1698 = vector.broadcast %cst_599 : f32 to vector<2x32xf32>
    %1699 = arith.addf %1698, %1697 : vector<2x32xf32>
    %cst_600 = arith.constant 1.000000e+00 : f32
    %1700 = vector.broadcast %cst_600 : f32 to vector<2x32xf32>
    %1701 = arith.divf %1700, %1699 : vector<2x32xf32>
    %1702 = arith.mulf %1691, %1670 : vector<2x32xf32>
    %1703 = arith.mulf %1683, %1693 : vector<2x32xf32>
    %1704 = arith.addf %1702, %1703 : vector<2x32xf32>
    %1705 = math.tanh %1704 : vector<2x32xf32>
    %1706 = arith.mulf %1701, %1705 : vector<2x32xf32>
    %1707 = vector.extract_strided_slice %1603 {offsets = [6, 0], sizes = [2, 128], strides = [1, 1]} : vector<16x256xf32> to vector<2x128xf32>
    %cst_601 = arith.constant dense<0.000000e+00> : vector<2x128xf32>
    %1708 = tpu.matmul %1706, %1604, %cst_601 {dimension_numbers = #tpu.dot_dimension_numbers<[1], [0], [0], [1], [0, 0, 1, 1], [], []>} : vector<2x32xf32>, vector<32x128xf32>, vector<2x128xf32> -> vector<2x128xf32>
    %1709 = arith.addf %1707, %1708 : vector<2x128xf32>
    %1710 = vector.extract_strided_slice %1709 {offsets = [0, 0], sizes = [2, 32], strides = [1, 1]} : vector<2x128xf32> to vector<2x32xf32>
    %cst_602 = arith.constant 0.000000e+00 : f32
    %1711 = vector.broadcast %cst_602 : f32 to vector<2x32xf32>
    %1712 = arith.subf %1711, %1710 : vector<2x32xf32>
    %1713 = math.exp %1712 : vector<2x32xf32>
    %cst_603 = arith.constant 1.000000e+00 : f32
    %1714 = vector.broadcast %cst_603 : f32 to vector<2x32xf32>
    %1715 = arith.addf %1714, %1713 : vector<2x32xf32>
    %cst_604 = arith.constant 1.000000e+00 : f32
    %1716 = vector.broadcast %cst_604 : f32 to vector<2x32xf32>
    %1717 = arith.divf %1716, %1715 : vector<2x32xf32>
    %1718 = vector.extract_strided_slice %1709 {offsets = [0, 32], sizes = [2, 32], strides = [1, 1]} : vector<2x128xf32> to vector<2x32xf32>
    %cst_605 = arith.constant 0.000000e+00 : f32
    %1719 = vector.broadcast %cst_605 : f32 to vector<2x32xf32>
    %1720 = arith.subf %1719, %1718 : vector<2x32xf32>
    %1721 = math.exp %1720 : vector<2x32xf32>
    %cst_606 = arith.constant 1.000000e+00 : f32
    %1722 = vector.broadcast %cst_606 : f32 to vector<2x32xf32>
    %1723 = arith.addf %1722, %1721 : vector<2x32xf32>
    %cst_607 = arith.constant 1.000000e+00 : f32
    %1724 = vector.broadcast %cst_607 : f32 to vector<2x32xf32>
    %1725 = arith.divf %1724, %1723 : vector<2x32xf32>
    %1726 = vector.extract_strided_slice %1709 {offsets = [0, 64], sizes = [2, 32], strides = [1, 1]} : vector<2x128xf32> to vector<2x32xf32>
    %1727 = math.tanh %1726 : vector<2x32xf32>
    %1728 = vector.extract_strided_slice %1709 {offsets = [0, 96], sizes = [2, 32], strides = [1, 1]} : vector<2x128xf32> to vector<2x32xf32>
    %cst_608 = arith.constant 0.000000e+00 : f32
    %1729 = vector.broadcast %cst_608 : f32 to vector<2x32xf32>
    %1730 = arith.subf %1729, %1728 : vector<2x32xf32>
    %1731 = math.exp %1730 : vector<2x32xf32>
    %cst_609 = arith.constant 1.000000e+00 : f32
    %1732 = vector.broadcast %cst_609 : f32 to vector<2x32xf32>
    %1733 = arith.addf %1732, %1731 : vector<2x32xf32>
    %cst_610 = arith.constant 1.000000e+00 : f32
    %1734 = vector.broadcast %cst_610 : f32 to vector<2x32xf32>
    %1735 = arith.divf %1734, %1733 : vector<2x32xf32>
    %1736 = arith.mulf %1725, %1704 : vector<2x32xf32>
    %1737 = arith.mulf %1717, %1727 : vector<2x32xf32>
    %1738 = arith.addf %1736, %1737 : vector<2x32xf32>
    %1739 = math.tanh %1738 : vector<2x32xf32>
    %1740 = arith.mulf %1735, %1739 : vector<2x32xf32>
    %1741 = vector.extract_strided_slice %1603 {offsets = [8, 0], sizes = [2, 128], strides = [1, 1]} : vector<16x256xf32> to vector<2x128xf32>
    %cst_611 = arith.constant dense<0.000000e+00> : vector<2x128xf32>
    %1742 = tpu.matmul %1740, %1604, %cst_611 {dimension_numbers = #tpu.dot_dimension_numbers<[1], [0], [0], [1], [0, 0, 1, 1], [], []>} : vector<2x32xf32>, vector<32x128xf32>, vector<2x128xf32> -> vector<2x128xf32>
    %1743 = arith.addf %1741, %1742 : vector<2x128xf32>
    %1744 = vector.extract_strided_slice %1743 {offsets = [0, 0], sizes = [2, 32], strides = [1, 1]} : vector<2x128xf32> to vector<2x32xf32>
    %cst_612 = arith.constant 0.000000e+00 : f32
    %1745 = vector.broadcast %cst_612 : f32 to vector<2x32xf32>
    %1746 = arith.subf %1745, %1744 : vector<2x32xf32>
    %1747 = math.exp %1746 : vector<2x32xf32>
    %cst_613 = arith.constant 1.000000e+00 : f32
    %1748 = vector.broadcast %cst_613 : f32 to vector<2x32xf32>
    %1749 = arith.addf %1748, %1747 : vector<2x32xf32>
    %cst_614 = arith.constant 1.000000e+00 : f32
    %1750 = vector.broadcast %cst_614 : f32 to vector<2x32xf32>
    %1751 = arith.divf %1750, %1749 : vector<2x32xf32>
    %1752 = vector.extract_strided_slice %1743 {offsets = [0, 32], sizes = [2, 32], strides = [1, 1]} : vector<2x128xf32> to vector<2x32xf32>
    %cst_615 = arith.constant 0.000000e+00 : f32
    %1753 = vector.broadcast %cst_615 : f32 to vector<2x32xf32>
    %1754 = arith.subf %1753, %1752 : vector<2x32xf32>
    %1755 = math.exp %1754 : vector<2x32xf32>
    %cst_616 = arith.constant 1.000000e+00 : f32
    %1756 = vector.broadcast %cst_616 : f32 to vector<2x32xf32>
    %1757 = arith.addf %1756, %1755 : vector<2x32xf32>
    %cst_617 = arith.constant 1.000000e+00 : f32
    %1758 = vector.broadcast %cst_617 : f32 to vector<2x32xf32>
    %1759 = arith.divf %1758, %1757 : vector<2x32xf32>
    %1760 = vector.extract_strided_slice %1743 {offsets = [0, 64], sizes = [2, 32], strides = [1, 1]} : vector<2x128xf32> to vector<2x32xf32>
    %1761 = math.tanh %1760 : vector<2x32xf32>
    %1762 = vector.extract_strided_slice %1743 {offsets = [0, 96], sizes = [2, 32], strides = [1, 1]} : vector<2x128xf32> to vector<2x32xf32>
    %cst_618 = arith.constant 0.000000e+00 : f32
    %1763 = vector.broadcast %cst_618 : f32 to vector<2x32xf32>
    %1764 = arith.subf %1763, %1762 : vector<2x32xf32>
    %1765 = math.exp %1764 : vector<2x32xf32>
    %cst_619 = arith.constant 1.000000e+00 : f32
    %1766 = vector.broadcast %cst_619 : f32 to vector<2x32xf32>
    %1767 = arith.addf %1766, %1765 : vector<2x32xf32>
    %cst_620 = arith.constant 1.000000e+00 : f32
    %1768 = vector.broadcast %cst_620 : f32 to vector<2x32xf32>
    %1769 = arith.divf %1768, %1767 : vector<2x32xf32>
    %1770 = arith.mulf %1759, %1738 : vector<2x32xf32>
    %1771 = arith.mulf %1751, %1761 : vector<2x32xf32>
    %1772 = arith.addf %1770, %1771 : vector<2x32xf32>
    %1773 = math.tanh %1772 : vector<2x32xf32>
    %1774 = arith.mulf %1769, %1773 : vector<2x32xf32>
    %1775 = vector.extract_strided_slice %1603 {offsets = [10, 0], sizes = [2, 128], strides = [1, 1]} : vector<16x256xf32> to vector<2x128xf32>
    %cst_621 = arith.constant dense<0.000000e+00> : vector<2x128xf32>
    %1776 = tpu.matmul %1774, %1604, %cst_621 {dimension_numbers = #tpu.dot_dimension_numbers<[1], [0], [0], [1], [0, 0, 1, 1], [], []>} : vector<2x32xf32>, vector<32x128xf32>, vector<2x128xf32> -> vector<2x128xf32>
    %1777 = arith.addf %1775, %1776 : vector<2x128xf32>
    %1778 = vector.extract_strided_slice %1777 {offsets = [0, 0], sizes = [2, 32], strides = [1, 1]} : vector<2x128xf32> to vector<2x32xf32>
    %cst_622 = arith.constant 0.000000e+00 : f32
    %1779 = vector.broadcast %cst_622 : f32 to vector<2x32xf32>
    %1780 = arith.subf %1779, %1778 : vector<2x32xf32>
    %1781 = math.exp %1780 : vector<2x32xf32>
    %cst_623 = arith.constant 1.000000e+00 : f32
    %1782 = vector.broadcast %cst_623 : f32 to vector<2x32xf32>
    %1783 = arith.addf %1782, %1781 : vector<2x32xf32>
    %cst_624 = arith.constant 1.000000e+00 : f32
    %1784 = vector.broadcast %cst_624 : f32 to vector<2x32xf32>
    %1785 = arith.divf %1784, %1783 : vector<2x32xf32>
    %1786 = vector.extract_strided_slice %1777 {offsets = [0, 32], sizes = [2, 32], strides = [1, 1]} : vector<2x128xf32> to vector<2x32xf32>
    %cst_625 = arith.constant 0.000000e+00 : f32
    %1787 = vector.broadcast %cst_625 : f32 to vector<2x32xf32>
    %1788 = arith.subf %1787, %1786 : vector<2x32xf32>
    %1789 = math.exp %1788 : vector<2x32xf32>
    %cst_626 = arith.constant 1.000000e+00 : f32
    %1790 = vector.broadcast %cst_626 : f32 to vector<2x32xf32>
    %1791 = arith.addf %1790, %1789 : vector<2x32xf32>
    %cst_627 = arith.constant 1.000000e+00 : f32
    %1792 = vector.broadcast %cst_627 : f32 to vector<2x32xf32>
    %1793 = arith.divf %1792, %1791 : vector<2x32xf32>
    %1794 = vector.extract_strided_slice %1777 {offsets = [0, 64], sizes = [2, 32], strides = [1, 1]} : vector<2x128xf32> to vector<2x32xf32>
    %1795 = math.tanh %1794 : vector<2x32xf32>
    %1796 = vector.extract_strided_slice %1777 {offsets = [0, 96], sizes = [2, 32], strides = [1, 1]} : vector<2x128xf32> to vector<2x32xf32>
    %cst_628 = arith.constant 0.000000e+00 : f32
    %1797 = vector.broadcast %cst_628 : f32 to vector<2x32xf32>
    %1798 = arith.subf %1797, %1796 : vector<2x32xf32>
    %1799 = math.exp %1798 : vector<2x32xf32>
    %cst_629 = arith.constant 1.000000e+00 : f32
    %1800 = vector.broadcast %cst_629 : f32 to vector<2x32xf32>
    %1801 = arith.addf %1800, %1799 : vector<2x32xf32>
    %cst_630 = arith.constant 1.000000e+00 : f32
    %1802 = vector.broadcast %cst_630 : f32 to vector<2x32xf32>
    %1803 = arith.divf %1802, %1801 : vector<2x32xf32>
    %1804 = arith.mulf %1793, %1772 : vector<2x32xf32>
    %1805 = arith.mulf %1785, %1795 : vector<2x32xf32>
    %1806 = arith.addf %1804, %1805 : vector<2x32xf32>
    %1807 = math.tanh %1806 : vector<2x32xf32>
    %1808 = arith.mulf %1803, %1807 : vector<2x32xf32>
    %1809 = vector.extract_strided_slice %1603 {offsets = [12, 0], sizes = [2, 128], strides = [1, 1]} : vector<16x256xf32> to vector<2x128xf32>
    %cst_631 = arith.constant dense<0.000000e+00> : vector<2x128xf32>
    %1810 = tpu.matmul %1808, %1604, %cst_631 {dimension_numbers = #tpu.dot_dimension_numbers<[1], [0], [0], [1], [0, 0, 1, 1], [], []>} : vector<2x32xf32>, vector<32x128xf32>, vector<2x128xf32> -> vector<2x128xf32>
    %1811 = arith.addf %1809, %1810 : vector<2x128xf32>
    %1812 = vector.extract_strided_slice %1811 {offsets = [0, 0], sizes = [2, 32], strides = [1, 1]} : vector<2x128xf32> to vector<2x32xf32>
    %cst_632 = arith.constant 0.000000e+00 : f32
    %1813 = vector.broadcast %cst_632 : f32 to vector<2x32xf32>
    %1814 = arith.subf %1813, %1812 : vector<2x32xf32>
    %1815 = math.exp %1814 : vector<2x32xf32>
    %cst_633 = arith.constant 1.000000e+00 : f32
    %1816 = vector.broadcast %cst_633 : f32 to vector<2x32xf32>
    %1817 = arith.addf %1816, %1815 : vector<2x32xf32>
    %cst_634 = arith.constant 1.000000e+00 : f32
    %1818 = vector.broadcast %cst_634 : f32 to vector<2x32xf32>
    %1819 = arith.divf %1818, %1817 : vector<2x32xf32>
    %1820 = vector.extract_strided_slice %1811 {offsets = [0, 32], sizes = [2, 32], strides = [1, 1]} : vector<2x128xf32> to vector<2x32xf32>
    %cst_635 = arith.constant 0.000000e+00 : f32
    %1821 = vector.broadcast %cst_635 : f32 to vector<2x32xf32>
    %1822 = arith.subf %1821, %1820 : vector<2x32xf32>
    %1823 = math.exp %1822 : vector<2x32xf32>
    %cst_636 = arith.constant 1.000000e+00 : f32
    %1824 = vector.broadcast %cst_636 : f32 to vector<2x32xf32>
    %1825 = arith.addf %1824, %1823 : vector<2x32xf32>
    %cst_637 = arith.constant 1.000000e+00 : f32
    %1826 = vector.broadcast %cst_637 : f32 to vector<2x32xf32>
    %1827 = arith.divf %1826, %1825 : vector<2x32xf32>
    %1828 = vector.extract_strided_slice %1811 {offsets = [0, 64], sizes = [2, 32], strides = [1, 1]} : vector<2x128xf32> to vector<2x32xf32>
    %1829 = math.tanh %1828 : vector<2x32xf32>
    %1830 = vector.extract_strided_slice %1811 {offsets = [0, 96], sizes = [2, 32], strides = [1, 1]} : vector<2x128xf32> to vector<2x32xf32>
    %cst_638 = arith.constant 0.000000e+00 : f32
    %1831 = vector.broadcast %cst_638 : f32 to vector<2x32xf32>
    %1832 = arith.subf %1831, %1830 : vector<2x32xf32>
    %1833 = math.exp %1832 : vector<2x32xf32>
    %cst_639 = arith.constant 1.000000e+00 : f32
    %1834 = vector.broadcast %cst_639 : f32 to vector<2x32xf32>
    %1835 = arith.addf %1834, %1833 : vector<2x32xf32>
    %cst_640 = arith.constant 1.000000e+00 : f32
    %1836 = vector.broadcast %cst_640 : f32 to vector<2x32xf32>
    %1837 = arith.divf %1836, %1835 : vector<2x32xf32>
    %1838 = arith.mulf %1827, %1806 : vector<2x32xf32>
    %1839 = arith.mulf %1819, %1829 : vector<2x32xf32>
    %1840 = arith.addf %1838, %1839 : vector<2x32xf32>
    %1841 = math.tanh %1840 : vector<2x32xf32>
    %1842 = arith.mulf %1837, %1841 : vector<2x32xf32>
    %1843 = vector.extract_strided_slice %1603 {offsets = [14, 0], sizes = [2, 128], strides = [1, 1]} : vector<16x256xf32> to vector<2x128xf32>
    %cst_641 = arith.constant dense<0.000000e+00> : vector<2x128xf32>
    %1844 = tpu.matmul %1842, %1604, %cst_641 {dimension_numbers = #tpu.dot_dimension_numbers<[1], [0], [0], [1], [0, 0, 1, 1], [], []>} : vector<2x32xf32>, vector<32x128xf32>, vector<2x128xf32> -> vector<2x128xf32>
    %1845 = arith.addf %1843, %1844 : vector<2x128xf32>
    %1846 = vector.extract_strided_slice %1845 {offsets = [0, 0], sizes = [2, 32], strides = [1, 1]} : vector<2x128xf32> to vector<2x32xf32>
    %cst_642 = arith.constant 0.000000e+00 : f32
    %1847 = vector.broadcast %cst_642 : f32 to vector<2x32xf32>
    %1848 = arith.subf %1847, %1846 : vector<2x32xf32>
    %1849 = math.exp %1848 : vector<2x32xf32>
    %cst_643 = arith.constant 1.000000e+00 : f32
    %1850 = vector.broadcast %cst_643 : f32 to vector<2x32xf32>
    %1851 = arith.addf %1850, %1849 : vector<2x32xf32>
    %cst_644 = arith.constant 1.000000e+00 : f32
    %1852 = vector.broadcast %cst_644 : f32 to vector<2x32xf32>
    %1853 = arith.divf %1852, %1851 : vector<2x32xf32>
    %1854 = vector.extract_strided_slice %1845 {offsets = [0, 32], sizes = [2, 32], strides = [1, 1]} : vector<2x128xf32> to vector<2x32xf32>
    %cst_645 = arith.constant 0.000000e+00 : f32
    %1855 = vector.broadcast %cst_645 : f32 to vector<2x32xf32>
    %1856 = arith.subf %1855, %1854 : vector<2x32xf32>
    %1857 = math.exp %1856 : vector<2x32xf32>
    %cst_646 = arith.constant 1.000000e+00 : f32
    %1858 = vector.broadcast %cst_646 : f32 to vector<2x32xf32>
    %1859 = arith.addf %1858, %1857 : vector<2x32xf32>
    %cst_647 = arith.constant 1.000000e+00 : f32
    %1860 = vector.broadcast %cst_647 : f32 to vector<2x32xf32>
    %1861 = arith.divf %1860, %1859 : vector<2x32xf32>
    %1862 = vector.extract_strided_slice %1845 {offsets = [0, 64], sizes = [2, 32], strides = [1, 1]} : vector<2x128xf32> to vector<2x32xf32>
    %1863 = math.tanh %1862 : vector<2x32xf32>
    %1864 = vector.extract_strided_slice %1845 {offsets = [0, 96], sizes = [2, 32], strides = [1, 1]} : vector<2x128xf32> to vector<2x32xf32>
    %cst_648 = arith.constant 0.000000e+00 : f32
    %1865 = vector.broadcast %cst_648 : f32 to vector<2x32xf32>
    %1866 = arith.subf %1865, %1864 : vector<2x32xf32>
    %1867 = math.exp %1866 : vector<2x32xf32>
    %cst_649 = arith.constant 1.000000e+00 : f32
    %1868 = vector.broadcast %cst_649 : f32 to vector<2x32xf32>
    %1869 = arith.addf %1868, %1867 : vector<2x32xf32>
    %cst_650 = arith.constant 1.000000e+00 : f32
    %1870 = vector.broadcast %cst_650 : f32 to vector<2x32xf32>
    %1871 = arith.divf %1870, %1869 : vector<2x32xf32>
    %1872 = arith.mulf %1861, %1840 : vector<2x32xf32>
    %1873 = arith.mulf %1853, %1863 : vector<2x32xf32>
    %1874 = arith.addf %1872, %1873 : vector<2x32xf32>
    %1875 = math.tanh %1874 : vector<2x32xf32>
    %1876 = arith.mulf %1871, %1875 : vector<2x32xf32>
    %1877 = vector.extract_strided_slice %1603 {offsets = [14, 128], sizes = [2, 128], strides = [1, 1]} : vector<16x256xf32> to vector<2x128xf32>
    %1878 = vector.extract_strided_slice %1877 {offsets = [0, 0], sizes = [2, 32], strides = [1, 1]} : vector<2x128xf32> to vector<2x32xf32>
    %cst_651 = arith.constant 0.000000e+00 : f32
    %1879 = vector.broadcast %cst_651 : f32 to vector<2x32xf32>
    %1880 = arith.subf %1879, %1878 : vector<2x32xf32>
    %1881 = math.exp %1880 : vector<2x32xf32>
    %cst_652 = arith.constant 1.000000e+00 : f32
    %1882 = vector.broadcast %cst_652 : f32 to vector<2x32xf32>
    %1883 = arith.addf %1882, %1881 : vector<2x32xf32>
    %cst_653 = arith.constant 1.000000e+00 : f32
    %1884 = vector.broadcast %cst_653 : f32 to vector<2x32xf32>
    %1885 = arith.divf %1884, %1883 : vector<2x32xf32>
    %1886 = vector.extract_strided_slice %1877 {offsets = [0, 32], sizes = [2, 32], strides = [1, 1]} : vector<2x128xf32> to vector<2x32xf32>
    %cst_654 = arith.constant 0.000000e+00 : f32
    %1887 = vector.broadcast %cst_654 : f32 to vector<2x32xf32>
    %1888 = arith.subf %1887, %1886 : vector<2x32xf32>
    %1889 = math.exp %1888 : vector<2x32xf32>
    %cst_655 = arith.constant 1.000000e+00 : f32
    %1890 = vector.broadcast %cst_655 : f32 to vector<2x32xf32>
    %1891 = arith.addf %1890, %1889 : vector<2x32xf32>
    %cst_656 = arith.constant 1.000000e+00 : f32
    %1892 = vector.broadcast %cst_656 : f32 to vector<2x32xf32>
    %1893 = arith.divf %1892, %1891 : vector<2x32xf32>
    %1894 = vector.extract_strided_slice %1877 {offsets = [0, 64], sizes = [2, 32], strides = [1, 1]} : vector<2x128xf32> to vector<2x32xf32>
    %1895 = math.tanh %1894 : vector<2x32xf32>
    %1896 = vector.extract_strided_slice %1877 {offsets = [0, 96], sizes = [2, 32], strides = [1, 1]} : vector<2x128xf32> to vector<2x32xf32>
    %cst_657 = arith.constant 0.000000e+00 : f32
    %1897 = vector.broadcast %cst_657 : f32 to vector<2x32xf32>
    %1898 = arith.subf %1897, %1896 : vector<2x32xf32>
    %1899 = math.exp %1898 : vector<2x32xf32>
    %cst_658 = arith.constant 1.000000e+00 : f32
    %1900 = vector.broadcast %cst_658 : f32 to vector<2x32xf32>
    %1901 = arith.addf %1900, %1899 : vector<2x32xf32>
    %cst_659 = arith.constant 1.000000e+00 : f32
    %1902 = vector.broadcast %cst_659 : f32 to vector<2x32xf32>
    %1903 = arith.divf %1902, %1901 : vector<2x32xf32>
    %1904 = arith.mulf %1893, %1029 : vector<2x32xf32>
    %1905 = arith.mulf %1885, %1895 : vector<2x32xf32>
    %1906 = arith.addf %1904, %1905 : vector<2x32xf32>
    %1907 = math.tanh %1906 : vector<2x32xf32>
    %1908 = arith.mulf %1903, %1907 : vector<2x32xf32>
    %1909 = tpu.concatenate %1876, %1908 in 1 : vector<2x32xf32>, vector<2x32xf32> -> vector<2x64xf32>
    %c0_660 = arith.constant 0 : index
    %c0_661 = arith.constant 0 : index
    %1910 = vector.load %arg29[%c0_660, %c0_661] : memref<64x64xf32, #tpu.memory_space<vmem>>, vector<64x64xf32>
    %cst_662 = arith.constant dense<0.000000e+00> : vector<2x64xf32>
    %1911 = tpu.matmul %1909, %1910, %cst_662 {dimension_numbers = #tpu.dot_dimension_numbers<[1], [0], [0], [1], [0, 0, 1, 1], [], []>} : vector<2x64xf32>, vector<64x64xf32>, vector<2x64xf32> -> vector<2x64xf32>
    %c0_663 = arith.constant 0 : index
    %c0_664 = arith.constant 0 : index
    %1912 = vector.load %arg30[%c0_663, %c0_664] : memref<1x64xf32, #tpu.memory_space<vmem>>, vector<1x64xf32>
    %1913 = vector.broadcast %1912 : vector<1x64xf32> to vector<2x64xf32>
    %1914 = arith.addf %1911, %1913 : vector<2x64xf32>
    %cst_665 = arith.constant 0.000000e+00 : f32
    %1915 = vector.broadcast %cst_665 : f32 to vector<2x64xf32>
    %1916 = arith.maximumf %1914, %1915 : vector<2x64xf32>
    %c0_666 = arith.constant 0 : index
    %c0_667 = arith.constant 0 : index
    %1917 = vector.load %arg31[%c0_666, %c0_667] : memref<64x32xf32, #tpu.memory_space<vmem>>, vector<64x32xf32>
    %cst_668 = arith.constant dense<0.000000e+00> : vector<2x32xf32>
    %1918 = tpu.matmul %1916, %1917, %cst_668 {dimension_numbers = #tpu.dot_dimension_numbers<[1], [0], [0], [1], [0, 0, 1, 1], [], []>} : vector<2x64xf32>, vector<64x32xf32>, vector<2x32xf32> -> vector<2x32xf32>
    %c0_669 = arith.constant 0 : index
    %c0_670 = arith.constant 0 : index
    %1919 = vector.load %arg32[%c0_669, %c0_670] : memref<1x32xf32, #tpu.memory_space<vmem>>, vector<1x32xf32>
    %1920 = vector.broadcast %1919 : vector<1x32xf32> to vector<2x32xf32>
    %1921 = arith.addf %1918, %1920 : vector<2x32xf32>
    %cst_671 = arith.constant 0.000000e+00 : f32
    %1922 = vector.broadcast %cst_671 : f32 to vector<2x32xf32>
    %1923 = arith.maximumf %1921, %1922 : vector<2x32xf32>
    %c0_672 = arith.constant 0 : index
    %c0_673 = arith.constant 0 : index
    %1924 = vector.load %arg33[%c0_672, %c0_673] : memref<32x8xf32, #tpu.memory_space<vmem>>, vector<32x8xf32>
    %cst_674 = arith.constant dense<0.000000e+00> : vector<2x8xf32>
    %1925 = tpu.matmul %1923, %1924, %cst_674 {dimension_numbers = #tpu.dot_dimension_numbers<[1], [0], [0], [1], [0, 0, 1, 1], [], []>} : vector<2x32xf32>, vector<32x8xf32>, vector<2x8xf32> -> vector<2x8xf32>
    %c0_675 = arith.constant 0 : index
    %c0_676 = arith.constant 0 : index
    %1926 = vector.load %arg34[%c0_675, %c0_676] : memref<1x8xf32, #tpu.memory_space<vmem>>, vector<1x8xf32>
    %1927 = vector.broadcast %1926 : vector<1x8xf32> to vector<2x8xf32>
    %1928 = arith.addf %1925, %1927 : vector<2x8xf32>
    %1929 = vector.extract_strided_slice %1928 {offsets = [0, 0], sizes = [2, 4], strides = [1, 1]} : vector<2x8xf32> to vector<2x4xf32>
    %1930 = vector.extract_strided_slice %1928 {offsets = [0, 4], sizes = [2, 4], strides = [1, 1]} : vector<2x8xf32> to vector<2x4xf32>
    %cst_677 = arith.constant 2.000000e+01 : f32
    %1931 = vector.broadcast %cst_677 : f32 to vector<2x4xf32>
    %1932 = arith.cmpf ogt, %1930, %1931 : vector<2x4xf32>
    %cst_678 = arith.constant 0.000000e+00 : f32
    %1933 = vector.broadcast %cst_678 : f32 to vector<2x4xf32>
    %1934 = arith.maximumf %1930, %1933 : vector<2x4xf32>
    %1935 = math.absf %1930 : vector<2x4xf32>
    %cst_679 = arith.constant 0.000000e+00 : f32
    %1936 = vector.broadcast %cst_679 : f32 to vector<2x4xf32>
    %1937 = arith.subf %1936, %1935 : vector<2x4xf32>
    %1938 = math.exp %1937 : vector<2x4xf32>
    %cst_680 = arith.constant 1.000000e+00 : f32
    %1939 = vector.broadcast %cst_680 : f32 to vector<2x4xf32>
    %1940 = arith.addf %1939, %1938 : vector<2x4xf32>
    %1941 = math.log %1940 : vector<2x4xf32>
    %1942 = arith.addf %1934, %1941 : vector<2x4xf32>
    %1943 = arith.select %1932, %1930, %1942 : vector<2x4xi1>, vector<2x4xf32>
    %c0_681 = arith.constant 0 : index
    %c0_682 = arith.constant 0 : index
    %1944 = vector.load %arg35[%c0_681, %c0_682] : memref<64x16xf32, #tpu.memory_space<vmem>>, vector<64x16xf32>
    %cst_683 = arith.constant dense<0.000000e+00> : vector<2x16xf32>
    %1945 = tpu.matmul %1909, %1944, %cst_683 {dimension_numbers = #tpu.dot_dimension_numbers<[1], [0], [0], [1], [0, 0, 1, 1], [], []>} : vector<2x64xf32>, vector<64x16xf32>, vector<2x16xf32> -> vector<2x16xf32>
    %c0_684 = arith.constant 0 : index
    %c0_685 = arith.constant 0 : index
    %1946 = vector.load %arg36[%c0_684, %c0_685] : memref<1x16xf32, #tpu.memory_space<vmem>>, vector<1x16xf32>
    %1947 = vector.broadcast %1946 : vector<1x16xf32> to vector<2x16xf32>
    %1948 = arith.addf %1945, %1947 : vector<2x16xf32>
    %1949 = tpu.concatenate %1929, %1943, %1948, %1909 in 1 : vector<2x4xf32>, vector<2x4xf32>, vector<2x16xf32>, vector<2x64xf32> -> vector<2x88xf32>
    %c0_686 = arith.constant 0 : index
    %c0_687 = arith.constant 0 : index
    %1950 = vector.load %arg37[%c0_686, %c0_687] : memref<2x88xf32, #tpu.memory_space<vmem>>, vector<2x88xf32>
    tpu.vector_store %arg37[%c0_686, %c0_687], %1949 {strides = array<i32>} : memref<2x88xf32, #tpu.memory_space<vmem>>, vector<2x88xf32>,
    return
  }
}

</mosaic_0001>

<bundles_post_ra>
// kernel: advanced_stock_predictor_forward.1
= control target key start
LH: loop header
LB: loop body
LE: loop exit
PB: predicated region body
PF: predicated region fallthrough
CT: control target
= control target key end

     0   :  { %s14538_s6 = smov 1   ;;  %s14539_s10 = smov 2   ;;  %s16525_s0 = inlined_call_operand.smem [shape: u32[38], index: -1, kind: input, shape index: {}] }
   0x1   :  { %s14623_s5 = sld [smem:[%s16525_s0]]   ;;  %s14540_s14 = smov 3  }
   0x2   :  { %s14628_s9 = sld [smem:[%s16525_s0 + %s14538_s6]]   ;;  %s14541_s18 = smov 4  }
   0x3   :  { %s14633_s13 = sld [smem:[%s16525_s0 + %s14539_s10]]   ;;  %s14542_s22 = smov 5  }
   0x4   :  { %s14638_s17 = sld [smem:[%s16525_s0 + %s14540_s14]]   ;;  %s14543_s26 = smov 6  }
   0x5   :  { %s14643_s21 = sld [smem:[%s16525_s0 + %s14541_s18]]   ;;  %s14544_s30 = smov 7  }
   0x6   :  { %s14648_s25 = sld [smem:[%s16525_s0 + %s14542_s22]]   ;;  %s14545_s4 = smov 8  }
   0x7   :  { %16545 = sst [smem:[#allocation44_spill]] %s14623_s5  ;;  %s14546_s10 = smov 9  }
   0x8   :  { %s14653_s29 = sld [smem:[%s16525_s0 + %s14543_s26]]   ;;  %s14547_s15 = smov 10  }
   0x9   :  { %16546 = sst [smem:[#allocation45_spill]] %s14633_s13  ;;  %s14548_s20 = smov 11  }
   0xa   :  { %16547 = sst [smem:[#allocation46_spill]] %s14638_s17  ;;  %s14549_s26 = smov 12  }
   0xb   :  { %s14658_s3 = sld [smem:[%s16525_s0 + %s14544_s30]]   ;;  %s14550_s1 = smov 13  }
   0xc   :  { %16548 = sst [smem:[#allocation47_spill]] %s14648_s25  ;;  %s14551_s7 = smov 14  }
   0xd   :  { %s14663_s8 = sld [smem:[%s16525_s0 + %s14545_s4]]   ;;  %s14553_s22 = smov 16  }
   0xe   :  { %s14668_s14 = sld [smem:[%s16525_s0 + %s14546_s10]]   ;;  %s14554_s28 = smov 17  }
   0xf   :  { %s14673_s19 = sld [smem:[%s16525_s0 + %s14547_s15]]   ;;  %s14552_s15 = smov 15  }
  0x10   :  { %s14678_s24 = sld [smem:[%s16525_s0 + %s14548_s20]]  }
  0x11   :  { %16549 = sst [smem:[#allocation48_spill]] %s14658_s3 }
  0x12   :  { %s14683_s30 = sld [smem:[%s16525_s0 + %s14549_s26]]  }
  0x13   :  { %s14688_s6 = sld [smem:[%s16525_s0 + %s14550_s1]]  }
  0x14   :  { %s14693_s12 = sld [smem:[%s16525_s0 + %s14551_s7]]   ;;  %s14555_s7 = smov 18  }
  0x15   :  { %s14698_s20 = sld [smem:[%s16525_s0 + %s14552_s15]]   ;;  %s14556_s15 = smov 19  }
  0x16   :  { %16550 = sst [smem:[#allocation49_spill]] %s14678_s24 }
  0x17   :  { %s14703_s27 = sld [smem:[%s16525_s0 + %s14553_s22]]   ;;  %s14557_s22 = smov 20  }
  0x18   :  { %s14708_s4 = sld [smem:[%s16525_s0 + %s14554_s28]]   ;;  %s14558_s28 = smov 21  }
  0x19   :  { %16551 = sst [smem:[#allocation50_spill]] %s14688_s6 }
  0x1a   :  { %s14713_s6 = sld [smem:[%s16525_s0 + %s14555_s7]]   ;;  %s14559_s7 = smov 22  }
  0x1b   :  { %s14718_s24 = sld [smem:[%s16525_s0 + %s14556_s15]]   ;;  %s14560_s15 = smov 23  }
  0x1c   :  { %s14723_s3 = sld [smem:[%s16525_s0 + %s14557_s22]]   ;;  %s14561_s22 = smov 24  }
  0x1d   :  { %s14728_s25 = sld [smem:[%s16525_s0 + %s14558_s28]]   ;;  %s14562_s28 = smov 25  }
  0x1e   :  { %16552 = sst [smem:[#allocation51_spill]] %s14708_s4 }
  0x1f   :  { %s14733_s13 = sld [smem:[%s16525_s0 + %s14559_s7]]   ;;  %s14563_s7 = smov 26  }
  0x20   :  { %s14743_s17 = sld [smem:[%s16525_s0 + %s14561_s22]]   ;;  %s14565_s22 = smov 28  }
  0x21   :  { %16553 = sst [smem:[#allocation52_spill]] %s14718_s24 }
  0x22   :  { %16554 = sst [smem:[#allocation53_spill]] %s14723_s3 }
  0x23   :  { %16555 = sst [smem:[#allocation54_spill]] %s14728_s25 }
  0x24   :  { %s14738_s24 = sld [smem:[%s16525_s0 + %s14560_s15]]   ;;  %s14564_s15 = smov 27  }
  0x25   :  { %s14748_s25 = sld [smem:[%s16525_s0 + %s14562_s28]]   ;;  %s14566_s28 = smov 29  }
  0x26   :  { %16557 = sst [smem:[#allocation56_spill]] %s14743_s17 }
  0x27   :  { %s14753_s5 = sld [smem:[%s16525_s0 + %s14563_s7]]   ;;  %s14567_s7 = smov 30  }
  0x28   :  { %s14763_s17 = sld [smem:[%s16525_s0 + %s14565_s22]]   ;;  %s14569_s22 = smov 32  }
  0x2a   :  { %16556 = sst [smem:[#allocation55_spill]] %s14738_s24 }
  0x2b   :  { %16558 = sst [smem:[#allocation57_spill]] %s14748_s25 }
  0x2c   :  { %s14758_s24 = sld [smem:[%s16525_s0 + %s14564_s15]]   ;;  %s14568_s15 = smov 31  }
  0x2d   :  { %16559 = sst [smem:[#allocation58_spill]] %s14753_s5 }
  0x2e   :  { %16560 = sst [smem:[#allocation59_spill]] %s14763_s17 }
  0x2f   :  { %s14768_s25 = sld [smem:[%s16525_s0 + %s14566_s28]]   ;;  %s14570_s28 = smov 33  }
  0x30   :  { %s14773_s5 = sld [smem:[%s16525_s0 + %s14567_s7]]   ;;  %s14571_s7 = smov 34  }
  0x31   :  { %s14778_s3 = sld [smem:[%s16525_s0 + %s14568_s15]]   ;;  %s14572_s15 = smov 35  }
  0x32   :  { %s14783_s17 = sld [smem:[%s16525_s0 + %s14569_s22]]   ;;  %s14573_s22 = smov 36  }
  0x33   :  { %s14788_s4 = sld [smem:[%s16525_s0 + %s14570_s28]]   ;;  %s14574_s28 = smov 37  }
  0x36   :  { %16561 = sst [smem:[#allocation60_spill]] %s14773_s5 }
  0x37   :  { %16562 = sst [smem:[#allocation61_spill]] %s14778_s3 }
  0x38   :  { %16563 = sst [smem:[#allocation62_spill]] %s14783_s17 }
  0x39   :  { %16564 = sst [smem:[#allocation63_spill]] %s14788_s4 }
  0x3a   :  { %s14793_s5 = sld [smem:[%s16525_s0 + %s14571_s7]]  }
  0x3b   :  { %s14798_s3 = sld [smem:[%s16525_s0 + %s14572_s15]]  }
  0x3c   :  { %s14803_s17 = sld [smem:[%s16525_s0 + %s14573_s22]]  }
  0x3d   :  { %s14808_s4 = sld [smem:[%s16525_s0 + %s14574_s28]]  }
  0x3e   :  { %80 = vsyncpa [#allocation3], 0 }
  0x3f   :  { %81 = vsyncpa [#allocation5], 0 }
  0x40   :  { %82 = vsyncpa [#allocation8], 0 }
  0x41   :  { %83 = vsyncpa [#allocation11], 0 }
  0x42   :  { %84 = vsyncpa [#allocation14], 0 }
  0x43   :  { %85 = vsyncpa [#allocation17], 0 }
  0x44   :  { %86 = vsyncpa [#allocation20], 0 }
  0x45   :  { %87 = vsyncpa [#allocation23], 0 }
  0x46   :  { %88 = vsyncpa [#allocation26], 0 }
  0x47   :  { %89 = vsyncpa [#allocation29], 0 }
  0x48   :  { %90 = vsyncpa [#allocation32], 0  ;;  %s14575_s7 = smov [#allocation4]   ;;  %s14576_s11 = smov [#allocation7]  }
  0x49   :  { %s113_s10 = sshll.u32 %s14575_s7, 4  ;;  %s139_s15 = sshll.u32 %s14576_s11, 4  ;;  %s114_s10 = int_to_ptr.vmem [resolvable:$true] %s113_s10  ;;  %s140_s15 = int_to_ptr.vmem [resolvable:$true] %s139_s15 }
  0x4a   :  { %s14076_s0 = scalar_lea.hbm %s14643_s21, 48 }
  0x4b   :  { %p14077_p0 = scmp.ne.s32.totalorder %s14643_s21, %s14076_s0  ;;  %p14080_p1 = scmp.lt.u32.totalorder %s14076_s0, %s14643_s21 }
  0x4d   :  { %p14082_p2 = pnand %p14080_p1, %p14077_p0 }
  0x4f   :  { %14085 = shalt.err (!%p14082_p2)
}
  0x50   :  { %s14086_s16 = scalar_lea.vmem %s114_s10, 48  ;;  %s14090_s18 = scalar_lea.vmem %s114_s10, 64 }
  0x51   :  { %p14087_p3 = scmp.ne.s32.totalorder %s114_s10, %s14086_s16  ;;  %p14091_p4 = scmp.lt.s32.totalorder %s114_s10, %s114_s10 }
  0x52   :  { %p14092_p5 = scmp.lt.s32.totalorder %s14090_s18, %s14086_s16 }
  0x54   :  { %p14093_p6 = por %p14092_p5, %p14091_p4 }
  0x56   :  { %p14094_p7 = pnand %p14093_p6, %p14087_p3 }
  0x58   :  { %14097 = shalt.err (!%p14094_p7)
}
  0x59   :  { %116 = dma.hbm_to_vmem [thread:$0]  %s14643_s21, 48, %s114_s10, [#allocation5]  }
  0x5a   :  { %s14098_s22 = scalar_lea.hbm %s14663_s8, 16 }
  0x5b   :  { %p14099_p8 = scmp.ne.s32.totalorder %s14663_s8, %s14098_s22  ;;  %p14102_p9 = scmp.lt.u32.totalorder %s14098_s22, %s14663_s8 }
  0x5d   :  { %p14104_p10 = pnand %p14102_p9, %p14099_p8 }
  0x5f   :  { %14107 = shalt.err (!%p14104_p10)
}
  0x60   :  { %s14108_s23 = scalar_lea.vmem %s140_s15, 16  ;;  %s14112_s26 = scalar_lea.vmem %s140_s15, 32 }
  0x61   :  { %p14109_p11 = scmp.ne.s32.totalorder %s140_s15, %s14108_s23  ;;  %p14113_p12 = scmp.lt.s32.totalorder %s140_s15, %s140_s15 }
  0x62   :  { %p14114_p13 = scmp.lt.s32.totalorder %s14112_s26, %s14108_s23 }
  0x64   :  { %p14115_p0 = por %p14114_p13, %p14113_p12 }
  0x66   :  { %p14116_p1 = pnand %p14115_p0, %p14109_p11 }
  0x68   :  { %14119 = shalt.err (!%p14116_p1)
}
  0x69   :  { %142 = dma.hbm_to_vmem [thread:$0]  %s14663_s8, 16, %s140_s15, [#allocation8]  }
  0x6a   :  { %s14577_s28 = smov [#allocation10]   ;;  %s14120_s1 = scalar_lea.hbm %s14673_s19, 16 }
  0x6b   :  { %s159_s21 = sshll.u32 %s14577_s28, 4  ;;  %p14121_p2 = scmp.ne.s32.totalorder %s14673_s19, %s14120_s1  ;;  %s160_s21 = int_to_ptr.vmem [resolvable:$true] %s159_s21 }
  0x6c   :  { %p14124_p3 = scmp.lt.u32.totalorder %s14120_s1, %s14673_s19 }
  0x6e   :  { %p14126_p4 = pnand %p14124_p3, %p14121_p2 }
  0x70   :  { %14129 = shalt.err (!%p14126_p4)
}
  0x71   :  { %s14130_s2 = scalar_lea.vmem %s160_s21, 16  ;;  %s14134_s7 = scalar_lea.vmem %s160_s21, 32 }
  0x72   :  { %p14131_p5 = scmp.ne.s32.totalorder %s160_s21, %s14130_s2  ;;  %p14135_p6 = scmp.lt.s32.totalorder %s160_s21, %s160_s21 }
  0x73   :  { %p14136_p7 = scmp.lt.s32.totalorder %s14134_s7, %s14130_s2 }
  0x75   :  { %p14137_p8 = por %p14136_p7, %p14135_p6 }
  0x77   :  { %p14138_p9 = pnand %p14137_p8, %p14131_p5 }
  0x79   :  { %14141 = shalt.err (!%p14138_p9)
}
  0x7a   :  { %162 = dma.hbm_to_vmem [thread:$0]  %s14673_s19, 16, %s160_s21, [#allocation11]  }
  0x7b   :  { %s14578_s8 = smov [#allocation13]   ;;  %s14579_s11 = smov [#allocation16]  }
  0x7c   :  { %s184_s10 = sshll.u32 %s14578_s8, 4  ;;  %s208_s15 = sshll.u32 %s14579_s11, 4  ;;  %s185_s10 = int_to_ptr.vmem [resolvable:$true] %s184_s10  ;;  %s209_s15 = int_to_ptr.vmem [resolvable:$true] %s208_s15 }
  0x7d   :  { %s14142_s0 = scalar_lea.hbm %s14693_s12, 32 }
  0x7e   :  { %p14143_p10 = scmp.ne.s32.totalorder %s14693_s12, %s14142_s0  ;;  %p14146_p11 = scmp.lt.u32.totalorder %s14142_s0, %s14693_s12 }
  0x80   :  { %p14148_p12 = pnand %p14146_p11, %p14143_p10 }
  0x82   :  { %14151 = shalt.err (!%p14148_p12)
}
  0x83   :  { %s14152_s16 = scalar_lea.vmem %s185_s10, 32  ;;  %p14157_p0 = scmp.lt.s32.totalorder %s185_s10, %s185_s10 }
  0x84   :  { %p14153_p13 = scmp.ne.s32.totalorder %s185_s10, %s14152_s16  ;;  %p14158_p1 = scmp.lt.s32.totalorder %s14152_s16, %s14152_s16 }
  0x86   :  { %p14159_p2 = por %p14158_p1, %p14157_p0 }
  0x88   :  { %p14160_p3 = pnand %p14159_p2, %p14153_p13 }
  0x8a   :  { %14163 = shalt.err (!%p14160_p3)
}
  0x8b   :  { %s14580_s18 = smov 16   ;;  %s14581_s19 = smov 1  }
  0x8c   :  { %190 = dma.hbm_to_vmem [thread:$0]  %s14693_s12, 32, %s185_s10, [#allocation14], %s14580_s18, %s14580_s18, %s14581_s19  }
  0x8d   :  { %s14164_s22 = scalar_lea.hbm %s14703_s27, 32 }
  0x8e   :  { %p14165_p4 = scmp.ne.s32.totalorder %s14703_s27, %s14164_s22  ;;  %p14168_p5 = scmp.lt.u32.totalorder %s14164_s22, %s14703_s27 }
  0x90   :  { %p14170_p6 = pnand %p14168_p5, %p14165_p4 }
  0x92   :  { %14173 = shalt.err (!%p14170_p6)
}
  0x93   :  { %s14174_s23 = scalar_lea.vmem %s209_s15, 32  ;;  %p14179_p8 = scmp.lt.s32.totalorder %s209_s15, %s209_s15 }
  0x94   :  { %p14175_p7 = scmp.ne.s32.totalorder %s209_s15, %s14174_s23  ;;  %p14180_p9 = scmp.lt.s32.totalorder %s14174_s23, %s14174_s23 }
  0x96   :  { %p14181_p10 = por %p14180_p9, %p14179_p8 }
  0x98   :  { %p14182_p11 = pnand %p14181_p10, %p14175_p7 }
  0x9a   :  { %14185 = shalt.err (!%p14182_p11)
}
  0x9b   :  { %214 = dma.hbm_to_vmem [thread:$0]  %s14703_s27, 32, %s209_s15, [#allocation17], %s14580_s18, %s14580_s18, %s14581_s19  }
  0x9c   :  { %s14582_s12 = smov [#allocation19]   ;;  %s14583_s28 = smov [#allocation22]  }
  0x9d   :  { %s232_s26 = sshll.u32 %s14582_s12, 4  ;;  %s260_s21 = sshll.u32 %s14583_s28, 4  ;;  %s233_s26 = int_to_ptr.vmem [resolvable:$true] %s232_s26  ;;  %s261_s21 = int_to_ptr.vmem [resolvable:$true] %s260_s21 }
  0x9e   :  { %s14186_s1 = scalar_lea.hbm %s14713_s6, 32 }
  0x9f   :  { %p14187_p12 = scmp.ne.s32.totalorder %s14713_s6, %s14186_s1  ;;  %p14190_p13 = scmp.lt.u32.totalorder %s14186_s1, %s14713_s6 }
  0xa1   :  { %p14192_p0 = pnand %p14190_p13, %p14187_p12 }
  0xa3   :  { %14195 = shalt.err (!%p14192_p0)
}
  0xa4   :  { %s14196_s2 = scalar_lea.vmem %s233_s26, 32  ;;  %p14201_p2 = scmp.lt.s32.totalorder %s233_s26, %s233_s26 }
  0xa5   :  { %p14197_p1 = scmp.ne.s32.totalorder %s233_s26, %s14196_s2  ;;  %p14202_p3 = scmp.lt.s32.totalorder %s14196_s2, %s14196_s2 }
  0xa7   :  { %p14203_p4 = por %p14202_p3, %p14201_p2 }
  0xa9   :  { %p14204_p5 = pnand %p14203_p4, %p14197_p1 }
  0xab   :  { %14207 = shalt.err (!%p14204_p5)
}
  0xac   :  { %238 = dma.hbm_to_vmem [thread:$0]  %s14713_s6, 32, %s233_s26, [#allocation20], %s14580_s18, %s14580_s18, %s14581_s19  }
  0xad   :  { %s14208_s27 = scalar_lea.hbm %s14733_s13, 32 }
  0xae   :  { %p14209_p6 = scmp.ne.s32.totalorder %s14733_s13, %s14208_s27  ;;  %p14212_p7 = scmp.lt.u32.totalorder %s14208_s27, %s14733_s13 }
  0xb0   :  { %p14214_p8 = pnand %p14212_p7, %p14209_p6 }
  0xb2   :  { %14217 = shalt.err (!%p14214_p8)
}
  0xb3   :  { %s14218_s7 = scalar_lea.vmem %s261_s21, 32  ;;  %p14223_p10 = scmp.lt.s32.totalorder %s261_s21, %s261_s21 }
  0xb4   :  { %p14219_p9 = scmp.ne.s32.totalorder %s261_s21, %s14218_s7  ;;  %p14224_p11 = scmp.lt.s32.totalorder %s14218_s7, %s14218_s7 }
  0xb6   :  { %p14225_p12 = por %p14224_p11, %p14223_p10 }
  0xb8   :  { %p14226_p13 = pnand %p14225_p12, %p14219_p9 }
  0xba   :  { %14229 = shalt.err (!%p14226_p13)
}
  0xbb   :  { %266 = dma.hbm_to_vmem [thread:$0]  %s14733_s13, 32, %s261_s21, [#allocation23], %s14580_s18, %s14580_s18, %s14581_s19  }
  0xbc   :  { %s14584_s6 = smov [#allocation25]   ;;  %s14230_s10 = scalar_lea.hbm %s14758_s24, 32 }
  0xbd   :  { %s289_s8 = sshll.u32 %s14584_s6, 4  ;;  %p14231_p0 = scmp.ne.s32.totalorder %s14758_s24, %s14230_s10  ;;  %s290_s8 = int_to_ptr.vmem [resolvable:$true] %s289_s8 }
  0xbe   :  { %p14234_p1 = scmp.lt.u32.totalorder %s14230_s10, %s14758_s24 }
  0xc0   :  { %p14236_p2 = pnand %p14234_p1, %p14231_p0 }
  0xc2   :  { %14239 = shalt.err (!%p14236_p2)
}
  0xc3   :  { %s14240_s11 = scalar_lea.vmem %s290_s8, 32  ;;  %p14245_p4 = scmp.lt.s32.totalorder %s290_s8, %s290_s8 }
  0xc4   :  { %p14241_p3 = scmp.ne.s32.totalorder %s290_s8, %s14240_s11  ;;  %p14246_p5 = scmp.lt.s32.totalorder %s14240_s11, %s14240_s11 }
  0xc6   :  { %p14247_p6 = por %p14246_p5, %p14245_p4 }
  0xc8   :  { %p14248_p7 = pnand %p14247_p6, %p14241_p3 }
  0xca   :  { %14251 = shalt.err (!%p14248_p7)
}
  0xcb   :  { %292 = dma.hbm_to_vmem [thread:$0]  %s14758_s24, 32, %s290_s8, [#allocation26]  }
  0xcc   :  { %s14585_s13 = smov [#allocation28]   ;;  %s14586_s0 = smov [#allocation2]  }
  0xcd   :  { %s310_s15 = sshll.u32 %s14585_s13, 4  ;;  %s99_s16 = sshll.u32 %s14586_s0, 4  ;;  %s311_s15 = int_to_ptr.vmem [resolvable:$true] %s310_s15  ;;  %s100_s16 = int_to_ptr.vmem [resolvable:$true] %s99_s16 }
  0xce   :  { %s14252_s22 = scalar_lea.hbm %s14768_s25, 1024 }
  0xcf   :  { %p14253_p8 = scmp.ne.s32.totalorder %s14768_s25, %s14252_s22  ;;  %p14256_p9 = scmp.lt.u32.totalorder %s14252_s22, %s14768_s25 }
  0xd1   :  { %p14258_p10 = pnand %p14256_p9, %p14253_p8 }
  0xd3   :  { %14261 = shalt.err (!%p14258_p10)
}
  0xd4   :  { %s14262_s23 = scalar_lea.vmem %s311_s15, 1024  ;;  %p14267_p12 = scmp.lt.s32.totalorder %s311_s15, %s311_s15 }
  0xd5   :  { %p14263_p11 = scmp.ne.s32.totalorder %s311_s15, %s14262_s23  ;;  %p14268_p13 = scmp.lt.s32.totalorder %s14262_s23, %s14262_s23 }
  0xd7   :  { %p14269_p0 = por %p14268_p13, %p14267_p12 }
  0xd9   :  { %p14270_p1 = pnand %p14269_p0, %p14263_p11 }
  0xdb   :  { %14273 = shalt.err (!%p14270_p1)
}
  0xdc   :  { %s14587_s12 = smov 128   ;;  %s14588_s24 = smov 8  }
  0xdd   :  { %316 = dma.hbm_to_vmem [thread:$0]  %s14768_s25, 1024, %s311_s15, [#allocation29], %s14587_s12, %s14587_s12, %s14588_s24  }
  0xde   :  { %s14274_s26 = scalar_lea.hbm %s14628_s9, 128 }
  0xdf   :  { %p14275_p2 = scmp.ne.s32.totalorder %s14628_s9, %s14274_s26  ;;  %p14278_p3 = scmp.lt.u32.totalorder %s14274_s26, %s14628_s9 }
  0xe1   :  { %p14280_p4 = pnand %p14278_p3, %p14275_p2 }
  0xe3   :  { %14283 = shalt.err (!%p14280_p4)
}
  0xe4   :  { %s14284_s28 = scalar_lea.vmem %s100_s16, 128  ;;  %p14289_p6 = scmp.lt.s32.totalorder %s100_s16, %s100_s16 }
  0xe5   :  { %p14285_p5 = scmp.ne.s32.totalorder %s100_s16, %s14284_s28  ;;  %p14290_p7 = scmp.lt.s32.totalorder %s14284_s28, %s14284_s28 }
  0xe7   :  { %p14291_p8 = por %p14290_p7, %p14289_p6 }
  0xe9   :  { %p14292_p9 = pnand %p14291_p8, %p14285_p5 }
  0xeb   :  { %14295 = shalt.err (!%p14292_p9)
}
  0xec   :  { %102 = dma.hbm_to_vmem [thread:$0]  %s14628_s9, 128, %s100_s16, [#allocation3]  }
  0xed   :  { %s14589_s21 = smov [#allocation6]   ;;  %s14590_s25 = smov [#allocation9]  }
  0xee   :  { %s124_s1 = sshll.u32 %s14589_s21, 4  ;;  %s149_s2 = sshll.u32 %s14590_s25, 4  ;;  %s125_s1 = int_to_ptr.vmem [resolvable:$true] %s124_s1  ;;  %s150_s2 = int_to_ptr.vmem [resolvable:$true] %s149_s2 }
  0xef   :  { %s14296_s27 = scalar_lea.hbm %s14653_s29, 48 }
  0xf0   :  { %p14297_p10 = scmp.ne.s32.totalorder %s14653_s29, %s14296_s27  ;;  %p14300_p11 = scmp.lt.u32.totalorder %s14296_s27, %s14653_s29 }
  0xf2   :  { %p14302_p12 = pnand %p14300_p11, %p14297_p10 }
  0xf4   :  { %14305 = shalt.err (!%p14302_p12)
}
  0xf5   :  { %s14306_s7 = scalar_lea.vmem %s125_s1, 48  ;;  %s14310_s6 = scalar_lea.vmem %s125_s1, 64 }
  0xf6   :  { %p14307_p13 = scmp.ne.s32.totalorder %s125_s1, %s14306_s7  ;;  %p14311_p0 = scmp.lt.s32.totalorder %s125_s1, %s125_s1 }
  0xf7   :  { %p14312_p1 = scmp.lt.s32.totalorder %s14310_s6, %s14306_s7 }
  0xf9   :  { %p14313_p2 = por %p14312_p1, %p14311_p0 }
  0xfb   :  { %p14314_p3 = pnand %p14313_p2, %p14307_p13 }
  0xfd   :  { %14317 = shalt.err (!%p14314_p3)
}
  0xfe   :  { %130 = dma.hbm_to_vmem [thread:$0]  %s14653_s29, 48, %s125_s1, [#allocation5], %s14580_s18, %s14580_s18, %s14581_s19  }
  0xff   :  { %s14318_s9 = scalar_lea.hbm %s14668_s14, 16 }
 0x100   :  { %p14319_p4 = scmp.ne.s32.totalorder %s14668_s14, %s14318_s9  ;;  %p14322_p5 = scmp.lt.u32.totalorder %s14318_s9, %s14668_s14 }
 0x102   :  { %p14324_p6 = pnand %p14322_p5, %p14319_p4 }
 0x104   :  { %14327 = shalt.err (!%p14324_p6)
}
 0x105   :  { %s14328_s8 = scalar_lea.vmem %s150_s2, 16  ;;  %s14332_s10 = scalar_lea.vmem %s150_s2, 32 }
 0x106   :  { %p14329_p7 = scmp.ne.s32.totalorder %s150_s2, %s14328_s8  ;;  %p14333_p8 = scmp.lt.s32.totalorder %s150_s2, %s150_s2 }
 0x107   :  { %p14334_p9 = scmp.lt.s32.totalorder %s14332_s10, %s14328_s8 }
 0x109   :  { %p14335_p10 = por %p14334_p9, %p14333_p8 }
 0x10b   :  { %p14336_p11 = pnand %p14335_p10, %p14329_p7 }
 0x10d   :  { %14339 = shalt.err (!%p14336_p11)
}
 0x10e   :  { %152 = dma.hbm_to_vmem [thread:$0]  %s14668_s14, 16, %s150_s2, [#allocation8]  }
 0x10f   :  { %s14591_s11 = smov [#allocation12]   ;;  %s14592_s13 = smov [#allocation15]  }
 0x110   :  { %s170_s29 = sshll.u32 %s14591_s11, 4  ;;  %s196_s15 = sshll.u32 %s14592_s13, 4  ;;  %s171_s29 = int_to_ptr.vmem [resolvable:$true] %s170_s29  ;;  %s14876_s15 = int_to_ptr.vmem [resolvable:$true] %s196_s15 }
 0x111   :  { %s14340_s0 = scalar_lea.hbm %s14683_s30, 32 }
 0x112   :  { %p14341_p12 = scmp.ne.s32.totalorder %s14683_s30, %s14340_s0  ;;  %p14344_p13 = scmp.lt.u32.totalorder %s14340_s0, %s14683_s30 }
 0x114   :  { %p14346_p0 = pnand %p14344_p13, %p14341_p12 }
 0x116   :  { %14349 = shalt.err (!%p14346_p0)
}
 0x117   :  { %s14350_s16 = scalar_lea.vmem %s171_s29, 32  ;;  %p14355_p2 = scmp.lt.s32.totalorder %s171_s29, %s171_s29 }
 0x118   :  { %p14351_p1 = scmp.ne.s32.totalorder %s171_s29, %s14350_s16  ;;  %p14356_p3 = scmp.lt.s32.totalorder %s14350_s16, %s14350_s16 }
 0x11a   :  { %p14357_p4 = por %p14356_p3, %p14355_p2 }
 0x11c   :  { %p14358_p5 = pnand %p14357_p4, %p14351_p1 }
 0x11e   :  { %14361 = shalt.err (!%p14358_p5)
}
 0x11f   :  { %176 = dma.hbm_to_vmem [thread:$0]  %s14683_s30, 32, %s171_s29, [#allocation11], %s14580_s18, %s14580_s18, %s14581_s19  }
 0x120   :  { %s14362_s14 = scalar_lea.hbm %s14698_s20, 32 }
 0x121   :  { %p14363_p6 = scmp.ne.s32.totalorder %s14698_s20, %s14362_s14  ;;  %p14366_p7 = scmp.lt.u32.totalorder %s14362_s14, %s14698_s20 }
 0x123   :  { %p14368_p8 = pnand %p14366_p7, %p14363_p6 }
 0x125   :  { %14371 = shalt.err (!%p14368_p8)
}
 0x126   :  { %s14372_s22 = scalar_lea.vmem %s14876_s15, 32  ;;  %p14377_p10 = scmp.lt.s32.totalorder %s14876_s15, %s14876_s15 }
 0x127   :  { %p14373_p9 = scmp.ne.s32.totalorder %s14876_s15, %s14372_s22  ;;  %p14378_p11 = scmp.lt.s32.totalorder %s14372_s22, %s14372_s22 }
 0x129   :  { %p14379_p12 = por %p14378_p11, %p14377_p10 }
 0x12b   :  { %p14380_p13 = pnand %p14379_p12, %p14373_p9 }
 0x12d   :  { %14383 = shalt.err (!%p14380_p13)
}
 0x12e   :  { %s16565_s30 = sld [smem:[#allocation51_spill]]  ;;  %s14593_s23 = smov [#allocation18]  }
 0x12f   :  { %202 = dma.hbm_to_vmem [thread:$0]  %s14698_s20, 32, %s14876_s15, [#allocation14], %s14580_s18, %s14580_s18, %s14581_s19  }
 0x130   :  { %s220_s26 = sshll.u32 %s14593_s23, 4  ;;  %s14594_s28 = smov [#allocation21]   ;;  %s221_s26 = int_to_ptr.vmem [resolvable:$true] %s220_s26 }
 0x131   :  { %s246_s21 = sshll.u32 %s14594_s28, 4  ;;  %s14897_s21 = int_to_ptr.vmem [resolvable:$true] %s246_s21 }
 0x134   :  { %s14384_s1 = scalar_lea.hbm %s16565_s30, 32 }
 0x135   :  { %p14385_p0 = scmp.ne.s32.totalorder %s16565_s30, %s14384_s1  ;;  %p14388_p1 = scmp.lt.u32.totalorder %s14384_s1, %s16565_s30 }
 0x137   :  { %p14390_p2 = pnand %p14388_p1, %p14385_p0 }
 0x139   :  { %14393 = shalt.err (!%p14390_p2)
}
 0x13a   :  { %s14394_s25 = scalar_lea.vmem %s221_s26, 32  ;;  %p14399_p4 = scmp.lt.s32.totalorder %s221_s26, %s221_s26 }
 0x13b   :  { %p14395_p3 = scmp.ne.s32.totalorder %s221_s26, %s14394_s25  ;;  %p14400_p5 = scmp.lt.s32.totalorder %s14394_s25, %s14394_s25 }
 0x13d   :  { %p14401_p6 = por %p14400_p5, %p14399_p4 }
 0x13f   :  { %p14402_p7 = pnand %p14401_p6, %p14395_p3 }
 0x141   :  { %14405 = shalt.err (!%p14402_p7)
}
 0x142   :  { %s16566_s20 = sld [smem:[#allocation53_spill]] }
 0x143   :  { %226 = dma.hbm_to_vmem [thread:$0]  %s16565_s30, 32, %s221_s26, [#allocation17], %s14580_s18, %s14580_s18, %s14581_s19  }
 0x148   :  { %s14406_s2 = scalar_lea.hbm %s16566_s20, 32 }
 0x149   :  { %p14407_p8 = scmp.ne.s32.totalorder %s16566_s20, %s14406_s2  ;;  %p14410_p9 = scmp.lt.u32.totalorder %s14406_s2, %s16566_s20 }
 0x14b   :  { %p14412_p10 = pnand %p14410_p9, %p14407_p8 }
 0x14d   :  { %14415 = shalt.err (!%p14412_p10)
}
 0x14e   :  { %s14416_s27 = scalar_lea.vmem %s14897_s21, 32  ;;  %p14421_p12 = scmp.lt.s32.totalorder %s14897_s21, %s14897_s21 }
 0x14f   :  { %p14417_p11 = scmp.ne.s32.totalorder %s14897_s21, %s14416_s27  ;;  %p14422_p13 = scmp.lt.s32.totalorder %s14416_s27, %s14416_s27 }
 0x151   :  { %p14423_p0 = por %p14422_p13, %p14421_p12 }
 0x153   :  { %p14424_p1 = pnand %p14423_p0, %p14417_p11 }
 0x155   :  { %14427 = shalt.err (!%p14424_p1)
}
 0x156   :  { %s16567_s7 = sld [smem:[#allocation56_spill]]  ;;  %s14595_s6 = smov [#allocation24]  }
 0x157   :  { %252 = dma.hbm_to_vmem [thread:$0]  %s16566_s20, 32, %s14897_s21, [#allocation20], %s14580_s18, %s14580_s18, %s14581_s19  }
 0x158   :  { %s275_s9 = sshll.u32 %s14595_s6, 4  ;;  %s14596_s8 = smov [#allocation27]   ;;  %s276_s9 = int_to_ptr.vmem [resolvable:$true] %s275_s9 }
 0x159   :  { %s298_s10 = sshll.u32 %s14596_s8, 4  ;;  %s14918_s10 = int_to_ptr.vmem [resolvable:$true] %s298_s10 }
 0x15c   :  { %s14428_s11 = scalar_lea.hbm %s16567_s7, 32 }
 0x15d   :  { %p14429_p2 = scmp.ne.s32.totalorder %s16567_s7, %s14428_s11  ;;  %p14432_p3 = scmp.lt.u32.totalorder %s14428_s11, %s16567_s7 }
 0x15f   :  { %p14434_p4 = pnand %p14432_p3, %p14429_p2 }
 0x161   :  { %14437 = shalt.err (!%p14434_p4)
}
 0x162   :  { %s14438_s29 = scalar_lea.vmem %s276_s9, 32  ;;  %p14443_p6 = scmp.lt.s32.totalorder %s276_s9, %s276_s9 }
 0x163   :  { %p14439_p5 = scmp.ne.s32.totalorder %s276_s9, %s14438_s29  ;;  %p14444_p7 = scmp.lt.s32.totalorder %s14438_s29, %s14438_s29 }
 0x165   :  { %p14445_p8 = por %p14444_p7, %p14443_p6 }
 0x167   :  { %p14446_p9 = pnand %p14445_p8, %p14439_p5 }
 0x169   :  { %14449 = shalt.err (!%p14446_p9)
}
 0x16a   :  { %s16568_s19 = sld [smem:[#allocation59_spill]] }
 0x16b   :  { %278 = dma.hbm_to_vmem [thread:$0]  %s16567_s7, 32, %s276_s9, [#allocation23]  }
 0x170   :  { %s14450_s13 = scalar_lea.hbm %s16568_s19, 512 }
 0x171   :  { %p14451_p10 = scmp.ne.s32.totalorder %s16568_s19, %s14450_s13  ;;  %p14454_p11 = scmp.lt.u32.totalorder %s14450_s13, %s16568_s19 }
 0x173   :  { %p14456_p12 = pnand %p14454_p11, %p14451_p10 }
 0x175   :  { %14459 = shalt.err (!%p14456_p12)
}
 0x176   :  { %s14460_s15 = scalar_lea.vmem %s14918_s10, 512  ;;  %p14465_p0 = scmp.lt.s32.totalorder %s14918_s10, %s14918_s10 }
 0x177   :  { %p14461_p13 = scmp.ne.s32.totalorder %s14918_s10, %s14460_s15  ;;  %p14466_p1 = scmp.lt.s32.totalorder %s14460_s15, %s14460_s15 }
 0x179   :  { %p14467_p2 = por %p14466_p1, %p14465_p0 }
 0x17b   :  { %p14468_p3 = pnand %p14467_p2, %p14461_p13 }
 0x17d   :  { %14471 = shalt.err (!%p14468_p3)
}
 0x17e   :  { %s16569_s0 = sld [smem:[#allocation60_spill]]  ;;  %s14597_s16 = smov [#allocation30]  }
 0x17f   :  { %304 = dma.hbm_to_vmem [thread:$0]  %s16568_s19, 512, %s14918_s10, [#allocation26], %s14587_s12, %s14587_s12, %s14588_s24  }
 0x180   :  { %s323_s14 = sshll.u32 %s14597_s16, 4  ;;  %s14598_s22 = smov [#allocation31]   ;;  %s324_s14 = int_to_ptr.vmem [resolvable:$true] %s323_s14 }
 0x181   :  { %s335_s30 = sshll.u32 %s14598_s22, 4  ;;  %s336_s30 = int_to_ptr.vmem [resolvable:$true] %s335_s30 }
 0x184   :  { %s14472_s23 = scalar_lea.hbm %s16569_s0, 16 }
 0x185   :  { %p14473_p4 = scmp.ne.s32.totalorder %s16569_s0, %s14472_s23  ;;  %p14476_p5 = scmp.lt.u32.totalorder %s14472_s23, %s16569_s0 }
 0x187   :  { %p14478_p6 = pnand %p14476_p5, %p14473_p4 }
 0x189   :  { %14481 = shalt.err (!%p14478_p6)
}
 0x18a   :  { %s14482_s26 = scalar_lea.vmem %s324_s14, 16  ;;  %s14486_s28 = scalar_lea.vmem %s324_s14, 32 }
 0x18b   :  { %p14483_p7 = scmp.ne.s32.totalorder %s324_s14, %s14482_s26  ;;  %p14487_p8 = scmp.lt.s32.totalorder %s324_s14, %s324_s14 }
 0x18c   :  { %p14488_p9 = scmp.lt.s32.totalorder %s14486_s28, %s14482_s26 }
 0x18e   :  { %p14489_p10 = por %p14488_p9, %p14487_p8 }
 0x190   :  { %p14490_p11 = pnand %p14489_p10, %p14483_p7 }
 0x192   :  { %14493 = shalt.err (!%p14490_p11)
}
 0x193   :  { %s16570_s12 = sld [smem:[#allocation62_spill]] }
 0x194   :  { %326 = dma.hbm_to_vmem [thread:$0]  %s16569_s0, 16, %s324_s14, [#allocation29]  }
 0x199   :  { %s14494_s21 = scalar_lea.hbm %s16570_s12, 16 }
 0x19a   :  { %p14495_p12 = scmp.ne.s32.totalorder %s16570_s12, %s14494_s21  ;;  %p14498_p13 = scmp.lt.u32.totalorder %s14494_s21, %s16570_s12 }
 0x19c   :  { %p14500_p0 = pnand %p14498_p13, %p14495_p12 }
 0x19e   :  { %14503 = shalt.err (!%p14500_p0)
}
 0x19f   :  { %s14504_s1 = scalar_lea.vmem %s336_s30, 16  ;;  %s14508_s25 = scalar_lea.vmem %s336_s30, 32 }
 0x1a0   :  { %p14505_p1 = scmp.ne.s32.totalorder %s336_s30, %s14504_s1  ;;  %p14509_p2 = scmp.lt.s32.totalorder %s336_s30, %s336_s30 }
 0x1a1   :  { %p14510_p3 = scmp.lt.s32.totalorder %s14508_s25, %s14504_s1 }
 0x1a3   :  { %p14511_p4 = por %p14510_p3, %p14509_p2 }
 0x1a5   :  { %p14512_p5 = pnand %p14511_p4, %p14505_p1 }
 0x1a7   :  { %14515 = shalt.err (!%p14512_p5)
}
 0x1a8   :  { %338 = dma.hbm_to_vmem [thread:$0]  %s16570_s12, 16, %s336_s30, [#allocation32]  }
 0x1a9   :  { %14516 = dma.done.wait [#allocation3], 128  }
 0x1aa   :  { %14517 = vsyncadd [#allocation3], 4294967168 }
 0x1ab   :  { %14518 = dma.done.wait [#allocation5], 96  }
 0x1ac   :  { %14519 = vsyncadd [#allocation5], 4294967200 }
 0x1ad   :  { %14520 = dma.done.wait [#allocation8], 32  }
 0x1ae   :  { %14521 = vsyncadd [#allocation8], 4294967264 }
 0x1af   :  { %14522 = dma.done.wait [#allocation11], 48  }
 0x1b0   :  { %14523 = vsyncadd [#allocation11], 4294967248 }
 0x1b1   :  { %14524 = dma.done.wait [#allocation14], 64  }
 0x1b2   :  { %14525 = vsyncadd [#allocation14], 4294967232 }
 0x1b3   :  { %14526 = dma.done.wait [#allocation17], 64  }
 0x1b4   :  { %14527 = vsyncadd [#allocation17], 4294967232 }
 0x1b5   :  { %14528 = dma.done.wait [#allocation20], 64  }
 0x1b6   :  { %14529 = vsyncadd [#allocation20], 4294967232 }
 0x1b7   :  { %14530 = dma.done.wait [#allocation23], 64  }
 0x1b8   :  { %14531 = vsyncadd [#allocation23], 4294967232 }
 0x1b9   :  { %14532 = dma.done.wait [#allocation26], 544  }
 0x1ba   :  { %14533 = vsyncadd [#allocation26], 4294966752 }
 0x1bb   :  { %14534 = dma.done.wait [#allocation29], 1040  }
 0x1bc   :  { %14535 = vsyncadd [#allocation29], 4294966256 }
 0x1bd   :  { %14536 = dma.done.wait [#allocation32], 16  }
 0x1be   :  { %14537 = vsyncadd [#allocation32], 4294967280  ;;  %s16571_s20 = sld [smem:[#allocation44_spill]]  ;;  %s16572_s2 = sld [smem:[#allocation46_spill]]  ;;  %vm421_vm0 = vcmask 64512   ;;  %v413_v0 = vld [vmem:[#allocation2] sm:$0xff]  ;;  %v407_v27 = vlaneseq }
 0x1bf   :  { %12448 = vmatprep.subr.mxu0 %v413_v0  ;;  %s16573_s27 = sld [smem:[#allocation45_spill]]  ;;  %v14599_v18 = vmov 0.0   ;;  %vm532_vm1 = vcmask 261120   ;;  %vm14600_vm2 = vmmov 0   ;;  %v515_v30 = vld [vmem:[#allocation4] sm:$0x7] }
 0x1c0   :  { %12449 = vmatpush3.msra.mxu0 %v413_v0  ;;  %603 = vmatprep.mubr.f32.mxu1 %v14599_v18  ;;  %v14977_v28 = vshrl.u32 %v407_v27, 7  ;;  %s14601_s7 = smov 120   ;;  %s14602_s6 = smov 96   ;;  %v15044_v53 = vand.u32 127, %v407_v27  ;;  %vm1372_vm4 = vcmask 130048   ;;  %vm1374_vm5 = vcmask 195584  }
 0x1c1   :  { %12464 = vmatprep.subr.mxu0 %v14599_v18  ;;  %s14603_s9 = smov 80   ;;  %s14604_s8 = smov 88   ;;  %vm3009_vm9 = vcmask 523264   ;;  %vm5302_vm10 = vcmask 785408   ;;  %vm9129_vm11 = vcmask 1040384   ;;  %vm9131_vm12 = vcmask 1041408  }
 0x1c2   :  { %v14984_v29 = vsub.s32 0, %v14977_v28  ;;  %v14988_v33 = vsub.s32 1, %v14977_v28  ;;  %v527_v36 = vsub.s32 2, %v14977_v28  ;;  %s14605_s10 = smov 72   ;;  %s14606_s11 = smov 112   ;;  %vm769_vm3 = vcmp.ge.s32.totalorder %v15044_v53, 6 }
 0x1c3   :  { %s14607_s29 = smov 104   ;;  %s14608_s19 = smov 56   ;;  %vm1542_vm6 = vcmp.ge.s32.totalorder %v15044_v53, 4  ;;  %vm2233_vm7 = vcmp.ge.s32.totalorder %v14977_v28, 4  ;;  %vm1460_vm8 = vcmp.ge.s32.totalorder %v14977_v28, 6  ;;  %vm9133_vm13 = vcmask 1042432  }
 0x1c4   :  { %v411_v1 = vld [vmem:[%s16571_s20] sm:$0xff]  ;;  %v412_v2 = vld [vmem:[%s16571_s20 + $0x8] sm:$0xff]  ;;  %v506_v7 = vld [vmem:[%s16572_s2 + $0x18] sm:$0xff]  ;;  %v520_v31 = vrot.slane %v515_v30, %v14984_v29  ;;  %v15000_v37 = vrot.slane %v515_v30, %v14988_v33  ;;  %v15004_v41 = vrot.slane %v515_v30, %v527_v36  ;;  %s14609_s13 = smov 64   ;;  %s14610_s15 = smov 48   ;;  %vm9135_vm14 = vcmask 1043456  }
 0x1c5   :  { %12450 = vmatprep.mubr.msk.f32.mxu0 %vm421_vm0, %v411_v1  ;;  %v504_v3 = vld [vmem:[%s16572_s2 + $0x8] sm:$0xff]  ;;  %v507_v4 = vld [vmem:[%s16572_s2 + $0x20] sm:$0xff]  ;;  %v510_v9 = vld [vmem:[%s16572_s2 + $0x38] sm:$0xff]  ;;  %s14611_s0 = smov 40   ;;  %s16574_s16 = sld [smem:[#allocation47_spill]]  ;;  %vm9137_vm15 = vcmask 1044480  }
 0x1c6   :  { %v503_v5 = vld [vmem:[%s16572_s2] sm:$0xff]  ;;  %v13249_v6 = vpack.c.bf16 %v507_v4, %v504_v3  ;;  %12451 = vmatmul.mubr.msk.f32.vlgmr.msra.gmra.mrb[0].mxu0 %vm421_vm0, %v412_v2  ;;  %v513_v10 = vld [vmem:[%s16572_s2 + $0x50] sm:$0xff]  ;;  %v512_v13 = vld [vmem:[%s16572_s2 + $0x48] sm:$0xff]  ;;  %s14613_s14 = smov 32   ;;  %s14614_s22 = smov 24  }
 0x1c7   :  { %v13251_v8 = vpack.c.bf16 %v506_v7, %v503_v5  ;;  %v13253_v11 = vpack.c.bf16 %v513_v10, %v510_v9  ;;  %v509_v12 = vld [vmem:[%s16572_s2 + $0x30] sm:$0xff]  ;;  %v508_v16 = vld [vmem:[%s16572_s2 + $0x28] sm:$0xff]  ;;  %v11860_v19 = vld [vmem:[%s16573_s27] ss:$0 sm:$0xff]  ;;  %12466 = vmatprep.mubr.msk.f32.mxu0 %vm14600_vm2, %v14599_v18  ;;  %s16575_s30 = sld [smem:[#allocation48_spill]]  ;;  %s16576_s23 = sld [smem:[#allocation49_spill]] }
 0x1c8   :  { %13250 = vmatprep.subr.bf16.mxu1 %v13249_v6  ;;  %v13255_v14 = vpack.c.bf16 %v512_v13, %v509_v12  ;;  %v505_v15 = vld [vmem:[%s16572_s2 + $0x10] sm:$0xff]  ;;  %v511_v20 = vld [vmem:[%s16572_s2 + $0x40] sm:$0xff]  ;;  %v514_v21 = vld [vmem:[%s16572_s2 + $0x58] sm:$0xff]  ;;  %s16577_s26 = sld [smem:[#allocation50_spill]]  ;;  %s16578_s28 = sld [smem:[#allocation52_spill]] }
 0x1c9   :  { %13252 = vmatpush1.bf16.msra.mxu1 %v13251_v8  ;;  %v13257_v17 = vpack.c.bf16 %v508_v16, %v505_v15  ;;  %v13261_v25 = vpack.c.bf16 %v514_v21, %v511_v20  ;;  %s16579_s12 = sld [smem:[#allocation54_spill]]  ;;  %s16581_s21 = sld [smem:[#allocation57_spill]] }
 0x1ca   :  { %13254 = vmatprep.subr.bf16.mxu1 %v13253_v11  ;;  %s16582_s1 = sld [smem:[#allocation58_spill]]  ;;  %s16583_s25 = sld [smem:[#allocation61_spill]] }
 0x1cb   :  { %s16584_s20 = sld [smem:[#allocation63_spill]] }
 0x1cd   :  { %13256 = vmatpush1.bf16.msra.mxu1 %v13255_v14 }
 0x1ce   :  { %13258 = vmatprep.subr.bf16.mxu1 %v13257_v17 }
 0x299   :  { %v12452_v22 = vpop.f32.mrb[0].mxu0 }
 0x29a   :  { %v494_v23 = vpop.f32.mrb[1].mxu0  ;;  %v14968_v26 = vadd.f32 %v12452_v22, %v11860_v19 }
 0x29b   :  { %v14963_v24 = vadd.f32 %v11860_v19, %v494_v23 }
 0x29d   :  { %11863 = vmatmul.mubr.msk.f32.vlgmr.msra.gmra.mrb[0].mxu1 %vm532_vm1, %v14963_v24 }
 0x29e   :  { %13260 = vmatpush3.bf16.msra.mxu1 %v13257_v17  ;;  %609 = vmatprep.mubr.f32.mxu1 %v14599_v18 }
 0x29f   :  { %13262 = vmatprep.subr.bf16.mxu1 %v13261_v25 }
 0x2a1   :  { %11864 = vmatmul.mubr.msk.f32.gmra.mrb[2].mxu1 %vm532_vm1, %v14968_v26 }
 0x2a2   :  { %13264 = vmatpush3.bf16.msra.mxu1 %v13261_v25  ;;  %12461 = vmatprep.mubr.msk.f32.mxu1 %vm532_vm1, %v14963_v24 }
 0x2a3   :  { %12469 = vmatprep.subr.mxu1 %v14599_v18 }
 0x2a5   :  { %12462 = vmatmul.mubr.msk.f32.vlgmr.msra.gmra.mrb[4].mxu1 %vm532_vm1, %v14968_v26 }
 0x2a6   :  { %12471 = vmatprep.mubr.msk.f32.mxu1 %vm14600_vm2, %v14599_v18 }
 0x370   :  { %v605_v32 = vpop.f32.mrb[0].mxu1 }
 0x371   :  { %v14990_v34 = vadd.f32 %v605_v32, %v520_v31  ;;  %v14992_v35 = vpop.f32.mrb[1].mxu1 }
 0x373   :  { %858 = vrot.lane.b32.xlu1 %v14990_v34, %s14601_s7  ;;  %692 = vrot.lane.b32.xlu0 %v14990_v34, %s14602_s6 }
 0x374   :  { %v611_v38 = vpop.f32.mrb[2].mxu1 }
 0x375   :  { %v15002_v39 = vadd.f32 %v611_v38, %v520_v31  ;;  %v613_v40 = vpop.f32.mrb[3].mxu1 }
 0x376   :  { %v15007_v42 = vadd.f32 %v613_v40, %v15000_v37 }
 0x377   :  { %1027 = vrot.lane.b32.xlu1 %v14990_v34, %s14603_s9  ;;  %860 = vrot.lane.b32.xlu0 %v14990_v34, %s14604_s8 }
 0x378   :  { %v12463_v43 = vpop.f32.mrb[4].mxu1 }
 0x379   :  { %v15014_v44 = vadd.f32 %v12463_v43, %v15004_v41  ;;  %v15016_v45 = vpop.f32.mrb[5].mxu1 }
 0x37b   :  { %1194 = vrot.lane.b32.xlu1 %v14990_v34, %s14605_s10  ;;  %1025 = vrot.lane.b32.xlu0 %v14990_v34, %s14606_s11 }
 0x37f   :  { %1192 = vrot.lane.b32.xlu0 %v14990_v34, %s14607_s29 }
 0x3e5   :  { %v859_v46 = vpop.permute.xlu1 %858  ;;  %v693_v47 = vpop.permute.xlu0 %692 }
 0x3e6   :  { %12465 = vmatpush3.xpose.msk.msra.mxu0 %vm421_vm0, %v693_v47 }
 0x3e7   :  { %12474 = vmatprep.subr.mxu0 %v14599_v18 }
 0x3e9   :  { %12467 = vmatmul.mubr.msk.f32.vlgmr.msra.gmra.mrb[2].mxu0 %vm421_vm0, %v14990_v34  ;;  %v861_v48 = vpop.permute.xlu0 %860  ;;  %v1028_v49 = vpop.permute.xlu1 %1027 }
 0x3ea   :  { %12475 = vmatpush3.xpose.msk.msra.mxu0 %vm421_vm0, %v861_v48  ;;  %12476 = vmatprep.mubr.msk.f32.mxu0 %vm14600_vm2, %v14599_v18 }
 0x3eb   :  { %12484 = vmatprep.subr.mxu0 %v14599_v18 }
 0x3ed   :  { %12477 = vmatmul.mubr.msk.f32.vlgmr.msra.gmra.mrb[4].mxu0 %vm421_vm0, %v859_v46  ;;  %v1026_v50 = vpop.permute.xlu0 %1025  ;;  %v1195_v51 = vpop.permute.xlu1 %1194 }
 0x3ee   :  { %12485 = vmatpush3.xpose.msk.msra.mxu0 %vm421_vm0, %v1028_v49  ;;  %12486 = vmatprep.mubr.msk.f32.mxu0 %vm14600_vm2, %v14599_v18 }
 0x3ef   :  { %12494 = vmatprep.subr.mxu0 %v14599_v18 }
 0x3f1   :  { %12487 = vmatmul.mubr.msk.f32.vlgmr.msra.gmra.mrb[6].mxu0 %vm421_vm0, %v1026_v50  ;;  %v1193_v52 = vpop.permute.xlu0 %1192 }
 0x3f2   :  { %12495 = vmatpush3.xpose.msk.msra.mxu0 %vm421_vm0, %v1195_v51  ;;  %12496 = vmatprep.mubr.msk.f32.mxu0 %vm14600_vm2, %v14599_v18 }
 0x3f5   :  { %12497 = vmatmul.mubr.msk.f32.vlgmr.msra.gmra.mrb[8].mxu0 %vm421_vm0, %v1193_v52 }
 0x3f6   :  { %12512 = vmatprep.mubr.msk.f32.mxu0 %vm14600_vm2, %v14599_v18 }
 0x4bc   :  { %v764_v54 = vpop.f32.mrb[2].mxu0 }
 0x4bd   :  { %v768_v55 = vmul.f32 0.35355338, %v764_v54  ;;  %v12468_v56 = vpop.f32.mrb[3].mxu0 }
 0x4bf   :  { %v770_v57 = vsel %vm769_vm3, %v768_v55, -1e+30 }
 0x4c0   :  { %v932_v58 = vpop.f32.mrb[4].mxu0  ;;  %v771_v59 = vsel %vm421_vm0, %v770_v57, -inf }
 0x4c1   :  { %v936_v60 = vmul.f32 0.35355338, %v932_v58  ;;  %772 = vmax.xlane.f32.xlu1 %v771_v59  ;;  %v12478_v61 = vpop.f32.mrb[5].mxu0 }
 0x4c2   :  { %v15089_v61 = vadd.f32 %v14992_v35, %v15000_v37 }
 0x4c3   :  { %v937_v62 = vsel %vm769_vm3, %v936_v60, -1e+30 }
 0x4c4   :  { %v1099_v63 = vpop.f32.mrb[6].mxu0  ;;  %v938_v0 = vsel %vm421_vm0, %v937_v62, -inf }
 0x4c5   :  { %v1103_v1 = vmul.f32 0.35355338, %v1099_v63  ;;  %939 = vmax.xlane.f32.xlu0 %v938_v0  ;;  %v12488_v2 = vpop.f32.mrb[7].mxu0  ;;  %v1377_v63 = vld [vmem:[%s16574_s16 + $0x8] sm:$0xff]  ;;  %v1378_v0 = vld [vmem:[%s16574_s16 + $0x10] sm:$0xff] }
 0x4c7   :  { %v1104_v3 = vsel %vm769_vm3, %v1103_v1, -1e+30  ;;  %v14612_v1 = vmov 0.0|0.0  }
 0x4c8   :  { %v1266_v4 = vpop.f32.mrb[8].mxu0  ;;  %v1105_v5 = vsel %vm421_vm0, %v1104_v3, -inf  ;;  %13265 = vmatprep.subr.bf16.mxu0 %v14612_v1 }
 0x4c9   :  { %v1270_v6 = vmul.f32 0.35355338, %v1266_v4  ;;  %1106 = vmax.xlane.f32.xlu0 %v1105_v5  ;;  %v12498_v7 = vpop.f32.mrb[9].mxu0 }
 0x4cb   :  { %v1271_v8 = vsel %vm769_vm3, %v1270_v6, -1e+30 }
 0x4cc   :  { %v1272_v9 = vsel %vm421_vm0, %v1271_v8, -inf }
 0x4cd   :  { %1273 = vmax.xlane.f32.xlu1 %v1272_v9 }
 0x4de   :  { %949 = vrot.lane.b32.xlu1 %v14990_v34, %s14608_s19 }
 0x54e   :  { %v773_v10 = vpop.xlane.xlu1 %772 }
 0x54f   :  { %v774_v11 = vsub.f32 %v770_v57, %v773_v10 }
 0x551   :  { %v775_v12 = vmul.f32 1.442695, %v774_v11 }
 0x552   :  { %v940_v13 = vpop.xlane.xlu0 %939 }
 0x553   :  { %13692 = vpow2.f32 %v775_v12  ;;  %v941_v14 = vsub.f32 %v937_v62, %v940_v13  ;;  %v1376_v62 = vld [vmem:[%s16574_s16] sm:$0xff] }
 0x554   :  { %v15098_v2 = vpack.c.bf16 %v1377_v63, %v1376_v62 }
 0x555   :  { %v942_v15 = vmul.f32 1.442695, %v941_v14 }
 0x556   :  { %v1107_v30 = vpop.xlane.xlu0 %1106  ;;  %13267 = vmatpush3.bf16.msra.mxu0 %v15098_v2 }
 0x557   :  { %13694 = vpow2.f32 %v942_v15  ;;  %v1108_v31 = vsub.f32 %v1104_v3, %v1107_v30  ;;  %v1379_v3 = vld [vmem:[%s16574_s16 + $0x18] sm:$0xff]  ;;  %13268 = vmatprep.subr.bf16.mxu0 %v14612_v1 }
 0x558   :  { %v15102_v4 = vpack.c.bf16 %v1379_v3, %v1378_v0 }
 0x559   :  { %v1109_v32 = vmul.f32 1.442695, %v1108_v31 }
 0x55a   :  { %v1274_v16 = vpop.xlane.xlu1 %1273  ;;  %13270 = vmatpush3.bf16.msra.mxu0 %v15102_v4 }
 0x55b   :  { %v1275_v17 = vsub.f32 %v1271_v8, %v1274_v16  ;;  %12525 = vmatprep.subr.mxu0 %v14599_v18 }
 0x55d   :  { %v13693_v19 = vpop.eup %13692  ;;  %v1276_v20 = vmul.f32 1.442695, %v1275_v17 }
 0x55e   :  { %v777_v21 = vsel %vm421_vm0, %v13693_v19, 0.0  ;;  %v950_v40 = vpop.permute.xlu1 %949 }
 0x55f   :  { %13696 = vpow2.f32 %v1276_v20  ;;  %778 = vadd.xlane.f32.xlu0 %v777_v21 }
 0x560   :  { %13698 = vpow2.f32 %v1109_v32 }
 0x561   :  { %v13695_v22 = vpop.eup %13694 }
 0x562   :  { %v944_v23 = vsel %vm421_vm0, %v13695_v22, 0.0 }
 0x563   :  { %945 = vadd.xlane.f32.xlu1 %v944_v23 }
 0x569   :  { %v13697_v25 = vpop.eup %13696 }
 0x56a   :  { %v1278_v27 = vsel %vm421_vm0, %v13697_v25, 0.0  ;;  %v13699_v36 = vpop.eup %13698 }
 0x56b   :  { %1279 = vadd.xlane.f32.xlu1 %v1278_v27  ;;  %v1111_v38 = vsel %vm421_vm0, %v13699_v36, 0.0 }
 0x575   :  { %782 = vrot.lane.b32.xlu0 %v14990_v34, %s14609_s13 }
 0x57c   :  { %1116 = vrot.lane.b32.xlu1 %v14990_v34, %s14610_s15 }
 0x594   :  { %1112 = vadd.xlane.f32.xlu0 %v1111_v38 }
 0x5aa   :  { %1283 = vrot.lane.b32.xlu0 %v14990_v34, %s14611_s0 }
 0x5ec   :  { %v779_v43 = vpop.xlane.xlu0 %778 }
 0x5ed   :  { %13700 = vrcp.f32 %v779_v43 }
 0x5f0   :  { %v946_v46 = vpop.xlane.xlu1 %945  ;;  %v783_v47 = vpop.permute.xlu0 %782 }
 0x5f1   :  { %13702 = vrcp.f32 %v946_v46  ;;  %12470 = vmatpush3.msra.mxu1 %v783_v47 }
 0x5f2   :  { %12479 = vmatprep.subr.mxu1 %v14599_v18 }
 0x5f7   :  { %v13701_v48 = vpop.eup %13700 }
 0x5f8   :  { %v1280_v49 = vpop.xlane.xlu1 %1279  ;;  %v781_v50 = vmul.f32 %v13701_v48, %v13693_v19 }
 0x5fa   :  { %12472 = vmatmul.mubr.msk.f32.vlgmr.msra.gmra.mrb[6].mxu1 %vm421_vm0, %v781_v50 }
 0x5fb   :  { %v13703_v51 = vpop.eup %13702  ;;  %12480 = vmatpush3.msra.mxu1 %v950_v40  ;;  %12481 = vmatprep.mubr.msk.f32.mxu1 %vm14600_vm2, %v14599_v18 }
 0x5fc   :  { %v1117_v52 = vpop.permute.xlu1 %1116  ;;  %12489 = vmatprep.subr.mxu1 %v14599_v18  ;;  %v948_v54 = vmul.f32 %v13703_v51, %v13695_v22 }
 0x5fe   :  { %12482 = vmatmul.mubr.msk.f32.vlgmr.msra.gmra.mrb[8].mxu1 %vm421_vm0, %v948_v54 }
 0x5ff   :  { %12490 = vmatpush3.msra.mxu1 %v1117_v52  ;;  %12491 = vmatprep.mubr.msk.f32.mxu1 %vm14600_vm2, %v14599_v18 }
 0x600   :  { %12499 = vmatprep.subr.mxu1 %v14599_v18 }
 0x621   :  { %v1113_v55 = vpop.xlane.xlu0 %1112 }
 0x622   :  { %13704 = vrcp.f32 %v1113_v55 }
 0x623   :  { %13706 = vrcp.f32 %v1280_v49 }
 0x625   :  { %v1284_v59 = vpop.permute.xlu0 %1283 }
 0x62c   :  { %v13705_v56 = vpop.eup %13704 }
 0x62d   :  { %v1115_v57 = vmul.f32 %v13705_v56, %v13699_v36  ;;  %v13707_v58 = vpop.eup %13706 }
 0x62e   :  { %v1282_v60 = vmul.f32 %v13707_v58, %v13697_v25 }
 0x62f   :  { %12492 = vmatmul.mubr.msk.f32.vlgmr.msra.gmra.mrb[10].mxu1 %vm421_vm0, %v1115_v57 }
 0x630   :  { %12500 = vmatpush3.msra.mxu1 %v1284_v59  ;;  %12501 = vmatprep.mubr.msk.f32.mxu1 %vm14600_vm2, %v14599_v18 }
 0x631   :  { %12515 = vmatprep.subr.mxu1 %v14599_v18 }
 0x633   :  { %12502 = vmatmul.mubr.msk.f32.vlgmr.msra.gmra.mrb[12].mxu1 %vm421_vm0, %v1282_v60 }
 0x634   :  { %12517 = vmatprep.mubr.msk.f32.mxu1 %vm14600_vm2, %v14599_v18 }
 0x637   :  { %12516 = vmatpush3.xpose.msk.msra.mxu1 %vm421_vm0, %v15089_v61 }
 0x638   :  { %12520 = vmatprep.subr.mxu1 %v14599_v18 }
 0x6cd   :  { %v854_v35 = vpop.f32.mrb[6].mxu1 }
 0x6ce   :  { %v12473_v37 = vpop.f32.mrb[7].mxu1 }
 0x6d1   :  { %v1021_v5 = vpop.f32.mrb[8].mxu1 }
 0x6d2   :  { %1360 = vrot.lane.b32.xlu1 %v1021_v5, %s14588_s24  ;;  %v12483_v6 = vpop.f32.mrb[9].mxu1 }
 0x702   :  { %v1188_v7 = vpop.f32.mrb[10].mxu1 }
 0x703   :  { %1364 = vrot.lane.b32.xlu0 %v1188_v7, %s14580_s18  ;;  %v12493_v8 = vpop.f32.mrb[11].mxu1 }
 0x706   :  { %v1355_v9 = vpop.f32.mrb[12].mxu1 }
 0x707   :  { %1464 = vrot.lane.b32.xlu0 %v14990_v34, %s14613_s14  ;;  %1368 = vrot.lane.b32.xlu1 %v1355_v9, %s14614_s22  ;;  %v12503_v10 = vpop.f32.mrb[13].mxu1 }
 0x70b   :  { %1631 = vrot.lane.b32.xlu0 %v14990_v34, %s14614_s22  ;;  %1633 = vrot.lane.b32.xlu1 %v15089_v61, %s14601_s7 }
 0x70f   :  { %1798 = vrot.lane.b32.xlu0 %v14990_v34, %s14580_s18  ;;  %1800 = vrot.lane.b32.xlu1 %v15089_v61, %s14606_s11 }
 0x713   :  { %1965 = vrot.lane.b32.xlu0 %v14990_v34, %s14588_s24  ;;  %1967 = vrot.lane.b32.xlu1 %v15089_v61, %s14607_s29 }
 0x744   :  { %v1361_v11 = vpop.permute.xlu1 %1360 }
 0x745   :  { %v1371_v13 = vsel %vm421_vm0, %v854_v35, %v1361_v11 }
 0x775   :  { %v1365_v12 = vpop.permute.xlu0 %1364 }
 0x776   :  { %v1373_v14 = vsel %vm1372_vm4, %v1371_v13, %v1365_v12 }
 0x779   :  { %v1369_v15 = vpop.permute.xlu1 %1368  ;;  %v1465_v16 = vpop.permute.xlu0 %1464 }
 0x77a   :  { %v1375_v17 = vsel %vm1374_vm5, %v1373_v14, %v1369_v15  ;;  %12518 = vmatmul.mubr.msk.f32.vlgmr.msra.gmra.mrb[14].mxu1 %vm421_vm0, %v1465_v16 }
 0x77b   :  { %12513 = vmatmul.mubr.msk.f32.vlgmr.msra.gmra.mrb[10].mxu0 %vm532_vm1, %v1375_v17  ;;  %12522 = vmatprep.mubr.msk.f32.mxu1 %vm14600_vm2, %v14599_v18 }
 0x77c   :  { %12527 = vmatprep.mubr.msk.f32.mxu0 %vm14600_vm2, %v14599_v18 }
 0x77d   :  { %v1634_v34 = vpop.permute.xlu1 %1633  ;;  %v1632_v19 = vpop.permute.xlu0 %1631 }
 0x77e   :  { %12526 = vmatpush3.xpose.msk.msra.mxu0 %vm421_vm0, %v1634_v34 }
 0x77f   :  { %12535 = vmatprep.subr.mxu0 %v14599_v18 }
 0x781   :  { %v1801_v20 = vpop.permute.xlu1 %1800  ;;  %12528 = vmatmul.mubr.msk.f32.vlgmr.msra.gmra.mrb[12].mxu0 %vm421_vm0, %v1632_v19  ;;  %v1799_v21 = vpop.permute.xlu0 %1798 }
 0x782   :  { %12536 = vmatpush3.xpose.msk.msra.mxu0 %vm421_vm0, %v1801_v20  ;;  %12537 = vmatprep.mubr.msk.f32.mxu0 %vm14600_vm2, %v14599_v18 }
 0x783   :  { %12545 = vmatprep.subr.mxu0 %v14599_v18 }
 0x785   :  { %v1968_v22 = vpop.permute.xlu1 %1967  ;;  %12538 = vmatmul.mubr.msk.f32.vlgmr.msra.gmra.mrb[14].mxu0 %vm421_vm0, %v1799_v21  ;;  %v1966_v23 = vpop.permute.xlu0 %1965 }
 0x786   :  { %12546 = vmatpush3.xpose.msk.msra.mxu0 %vm421_vm0, %v1968_v22  ;;  %12547 = vmatprep.mubr.msk.f32.mxu0 %vm14600_vm2, %v14599_v18 }
 0x787   :  { %13271 = vmatprep.subr.bf16.mxu0 %v14612_v1 }
 0x789   :  { %12548 = vmatmul.mubr.msk.f32.vlgmr.msra.gmra.mrb[16].mxu0 %vm421_vm0, %v1966_v23 }
 0x78a   :  { %12563 = vmatprep.mubr.msk.f32.mxu0 %vm14600_vm2, %v14599_v18 }
 0x84d   :  { %v1537_v25 = vpop.f32.mrb[14].mxu1 }
 0x84e   :  { %v1541_v27 = vmul.f32 0.35355338, %v1537_v25  ;;  %v15149_v30 = vpop.f32.mrb[10].mxu0  ;;  %v12519_v31 = vpop.f32.mrb[15].mxu1 }
 0x84f   :  { %v12514_v32 = vpop.f32.mrb[11].mxu0 }
 0x850   :  { %v1543_v36 = vsel %vm1542_vm6, %v1541_v27, -1e+30 }
 0x851   :  { %v1544_v38 = vsel %vm421_vm0, %v1543_v36, -inf }
 0x852   :  { %1545 = vmax.xlane.f32.xlu1 %v1544_v38 }
 0x854   :  { %v1705_v40 = vpop.f32.mrb[12].mxu0 }
 0x855   :  { %v1709_v43 = vmul.f32 0.35355338, %v1705_v40  ;;  %v12529_v46 = vpop.f32.mrb[13].mxu0 }
 0x857   :  { %v1710_v47 = vsel %vm1542_vm6, %v1709_v43, -1e+30 }
 0x858   :  { %v1872_v48 = vpop.f32.mrb[14].mxu0  ;;  %v1711_v49 = vsel %vm421_vm0, %v1710_v47, -inf }
 0x859   :  { %v1876_v50 = vmul.f32 0.35355338, %v1872_v48  ;;  %1712 = vmax.xlane.f32.xlu0 %v1711_v49  ;;  %v12539_v51 = vpop.f32.mrb[15].mxu0  ;;  %v11893_v49 = vld [vmem:[%s16574_s16 + $0x20] sm:$0xff] }
 0x85a   :  { %v11895_v51 = vld [vmem:[%s16574_s16 + $0x30] sm:$0xff] }
 0x85b   :  { %v1877_v52 = vsel %vm1542_vm6, %v1876_v50, -1e+30  ;;  %v11894_v50 = vld [vmem:[%s16574_s16 + $0x28] sm:$0xff] }
 0x85c   :  { %v2039_v54 = vpop.f32.mrb[16].mxu0  ;;  %v1878_v55 = vsel %vm421_vm0, %v1877_v52, -inf }
 0x85d   :  { %v2043_v56 = vmul.f32 0.35355338, %v2039_v54  ;;  %1879 = vmax.xlane.f32.xlu0 %v1878_v55  ;;  %v12549_v57 = vpop.f32.mrb[17].mxu0  ;;  %v11896_v54 = vld [vmem:[%s16574_s16 + $0x38] sm:$0xff] }
 0x85e   :  { %v15202_v55 = vpack.c.bf16 %v11896_v54, %v11895_v51 }
 0x85f   :  { %v2044_v58 = vsel %vm1542_vm6, %v2043_v56, -1e+30 }
 0x860   :  { %v2045_v59 = vsel %vm421_vm0, %v2044_v58, -inf }
 0x861   :  { %2046 = vmax.xlane.f32.xlu1 %v2045_v59 }
 0x872   :  { %1722 = vrot.lane.b32.xlu1 %v15089_v61, %s14604_s8 }
 0x8df   :  { %v1546_v60 = vpop.xlane.xlu1 %1545 }
 0x8e0   :  { %v1547_v62 = vsub.f32 %v1543_v36, %v1546_v60 }
 0x8e2   :  { %v1548_v63 = vmul.f32 1.442695, %v1547_v62 }
 0x8e4   :  { %13708 = vpow2.f32 %v1548_v63 }
 0x8e6   :  { %v1713_v0 = vpop.xlane.xlu0 %1712 }
 0x8e7   :  { %v1714_v3 = vsub.f32 %v1710_v47, %v1713_v0 }
 0x8e9   :  { %v1715_v35 = vmul.f32 1.442695, %v1714_v3 }
 0x8ea   :  { %v1880_v13 = vpop.xlane.xlu0 %1879 }
 0x8eb   :  { %13710 = vpow2.f32 %v1715_v35  ;;  %v1881_v14 = vsub.f32 %v1877_v52, %v1880_v13  ;;  %v15198_v52 = vpack.c.bf16 %v11894_v50, %v11893_v49 }
 0x8ed   :  { %v1882_v15 = vmul.f32 1.442695, %v1881_v14  ;;  %13273 = vmatpush3.bf16.msra.mxu0 %v15198_v52 }
 0x8ee   :  { %v13709_v37 = vpop.eup %13708  ;;  %v2047_v5 = vpop.xlane.xlu1 %2046  ;;  %13274 = vmatprep.subr.bf16.mxu0 %v14612_v1 }
 0x8ef   :  { %v2048_v6 = vsub.f32 %v2044_v58, %v2047_v5  ;;  %v1550_v7 = vsel %vm421_vm0, %v13709_v37, 0.0  ;;  %v15227_v5 = vadd.f32 %v15016_v45, %v15004_v41 }
 0x8f0   :  { %1551 = vadd.xlane.f32.xlu0 %v1550_v7 }
 0x8f1   :  { %v2049_v8 = vmul.f32 1.442695, %v2048_v6  ;;  %13276 = vmatpush3.bf16.msra.mxu0 %v15202_v55 }
 0x8f2   :  { %v1723_v19 = vpop.permute.xlu1 %1722  ;;  %12576 = vmatprep.subr.mxu0 %v14599_v18 }
 0x8f3   :  { %13712 = vpow2.f32 %v2049_v8 }
 0x8f4   :  { %13714 = vpow2.f32 %v1882_v15 }
 0x8f5   :  { %v13711_v9 = vpop.eup %13710 }
 0x8f6   :  { %v1717_v10 = vsel %vm421_vm0, %v13711_v9, 0.0 }
 0x8f7   :  { %1718 = vadd.xlane.f32.xlu1 %v1717_v10 }
 0x8fd   :  { %v13713_v11 = vpop.eup %13712 }
 0x8fe   :  { %v2051_v12 = vsel %vm421_vm0, %v13713_v11, 0.0  ;;  %v13715_v16 = vpop.eup %13714 }
 0x8ff   :  { %2052 = vadd.xlane.f32.xlu1 %v2051_v12  ;;  %v1884_v17 = vsel %vm421_vm0, %v13715_v16, 0.0 }
 0x906   :  { %1555 = vrot.lane.b32.xlu0 %v15089_v61, %s14602_s6 }
 0x910   :  { %1889 = vrot.lane.b32.xlu1 %v15089_v61, %s14603_s9 }
 0x925   :  { %1885 = vadd.xlane.f32.xlu0 %v1884_v17 }
 0x93b   :  { %2056 = vrot.lane.b32.xlu0 %v15089_v61, %s14605_s10 }
 0x93f   :  { %2239 = vrot.lane.b32.xlu0 %v15089_v61, %s14613_s14 }
 0x97d   :  { %v1552_v34 = vpop.xlane.xlu0 %1551 }
 0x97e   :  { %13716 = vrcp.f32 %v1552_v34 }
 0x981   :  { %v1556_v20 = vpop.permute.xlu0 %1555 }
 0x982   :  { %12521 = vmatpush3.msra.mxu1 %v1556_v20 }
 0x983   :  { %12530 = vmatprep.subr.mxu1 %v14599_v18 }
 0x984   :  { %v1719_v21 = vpop.xlane.xlu1 %1718 }
 0x985   :  { %13718 = vrcp.f32 %v1719_v21 }
 0x988   :  { %v13717_v22 = vpop.eup %13716 }
 0x989   :  { %v1554_v23 = vmul.f32 %v13717_v22, %v13709_v37 }
 0x98b   :  { %12523 = vmatmul.mubr.msk.f32.vlgmr.msra.gmra.mrb[16].mxu1 %vm421_vm0, %v1554_v23 }
 0x98c   :  { %12531 = vmatpush3.msra.mxu1 %v1723_v19  ;;  %v2053_v25 = vpop.xlane.xlu1 %2052  ;;  %12532 = vmatprep.mubr.msk.f32.mxu1 %vm14600_vm2, %v14599_v18 }
 0x98d   :  { %12540 = vmatprep.subr.mxu1 %v14599_v18 }
 0x98f   :  { %v13719_v27 = vpop.eup %13718 }
 0x990   :  { %v1890_v31 = vpop.permute.xlu1 %1889  ;;  %v1721_v32 = vmul.f32 %v13719_v27, %v13711_v9 }
 0x992   :  { %12533 = vmatmul.mubr.msk.f32.vlgmr.msra.gmra.mrb[18].mxu1 %vm421_vm0, %v1721_v32 }
 0x993   :  { %12541 = vmatpush3.msra.mxu1 %v1890_v31  ;;  %12542 = vmatprep.mubr.msk.f32.mxu1 %vm14600_vm2, %v14599_v18 }
 0x994   :  { %12550 = vmatprep.subr.mxu1 %v14599_v18 }
 0x9b2   :  { %v1886_v36 = vpop.xlane.xlu0 %1885 }
 0x9b3   :  { %13720 = vrcp.f32 %v1886_v36 }
 0x9b4   :  { %13722 = vrcp.f32 %v2053_v25 }
 0x9b6   :  { %v2057_v46 = vpop.permute.xlu0 %2056 }
 0x9ba   :  { %v2240_v48 = vpop.permute.xlu0 %2239 }
 0x9bd   :  { %v13721_v38 = vpop.eup %13720 }
 0x9be   :  { %v1888_v40 = vmul.f32 %v13721_v38, %v13715_v16  ;;  %v13723_v43 = vpop.eup %13722 }
 0x9bf   :  { %v2055_v47 = vmul.f32 %v13723_v43, %v13713_v11 }
 0x9c0   :  { %12543 = vmatmul.mubr.msk.f32.vlgmr.msra.gmra.mrb[20].mxu1 %vm421_vm0, %v1888_v40 }
 0x9c1   :  { %12551 = vmatpush3.msra.mxu1 %v2057_v46  ;;  %12552 = vmatprep.mubr.msk.f32.mxu1 %vm14600_vm2, %v14599_v18 }
 0x9c2   :  { %12566 = vmatprep.subr.mxu1 %v14599_v18 }
 0x9c4   :  { %12553 = vmatmul.mubr.msk.f32.vlgmr.msra.gmra.mrb[22].mxu1 %vm421_vm0, %v2055_v47 }
 0x9c5   :  { %12568 = vmatprep.mubr.msk.f32.mxu1 %vm14600_vm2, %v14599_v18 }
 0x9c8   :  { %12567 = vmatpush3.xpose.msk.msra.mxu1 %vm421_vm0, %v2240_v48 }
 0x9c9   :  { %12571 = vmatprep.subr.mxu1 %v14599_v18 }
 0xa5e   :  { %v1627_v56 = vpop.f32.mrb[16].mxu1 }
 0xa5f   :  { %v12524_v57 = vpop.f32.mrb[17].mxu1 }
 0xa65   :  { %v1794_v58 = vpop.f32.mrb[18].mxu1 }
 0xa66   :  { %2133 = vrot.lane.b32.xlu1 %v1794_v58, %s14588_s24  ;;  %v12534_v59 = vpop.f32.mrb[19].mxu1 }
 0xa93   :  { %v1961_v60 = vpop.f32.mrb[20].mxu1 }
 0xa94   :  { %2137 = vrot.lane.b32.xlu1 %v1961_v60, %s14580_s18  ;;  %v12544_v62 = vpop.f32.mrb[21].mxu1 }
 0xa97   :  { %v2128_v63 = vpop.f32.mrb[22].mxu1 }
 0xa98   :  { %2237 = vrot.lane.b32.xlu1 %v15089_v61, %s14609_s13  ;;  %2141 = vrot.lane.b32.xlu0 %v2128_v63, %s14614_s22  ;;  %v12554_v0 = vpop.f32.mrb[23].mxu1 }
 0xa9c   :  { %2400 = vrot.lane.b32.xlu1 %v15089_v61, %s14608_s19  ;;  %2402 = vrot.lane.b32.xlu0 %v15089_v61, %s14614_s22 }
 0xaa0   :  { %2567 = vrot.lane.b32.xlu1 %v15089_v61, %s14610_s15  ;;  %2569 = vrot.lane.b32.xlu0 %v15089_v61, %s14580_s18 }
 0xaa4   :  { %2733 = vrot.lane.b32.xlu1 %v15089_v61, %s14611_s0  ;;  %2735 = vrot.lane.b32.xlu0 %v15089_v61, %s14588_s24 }
 0xad8   :  { %v2134_v3 = vpop.permute.xlu1 %2133 }
 0xad9   :  { %v2144_v37 = vsel %vm421_vm0, %v1627_v56, %v2134_v3 }
 0xb06   :  { %v2138_v35 = vpop.permute.xlu1 %2137 }
 0xb07   :  { %v2145_v6 = vsel %vm1372_vm4, %v2144_v37, %v2138_v35 }
 0xb0a   :  { %v2238_v7 = vpop.permute.xlu1 %2237  ;;  %v2142_v8 = vpop.permute.xlu0 %2141 }
 0xb0b   :  { %v2146_v9 = vsel %vm1374_vm5, %v2145_v6, %v2142_v8  ;;  %12569 = vmatmul.mubr.msk.f32.vlgmr.msra.gmra.mrb[24].mxu1 %vm421_vm0, %v2238_v7 }
 0xb0c   :  { %12572 = vmatpush3.msra.mxu1 %v15227_v5  ;;  %12564 = vmatmul.mubr.msk.f32.vlgmr.msra.gmra.mrb[18].mxu0 %vm532_vm1, %v2146_v9 }
 0xb0d   :  { %12578 = vmatprep.mubr.msk.f32.mxu0 %vm14600_vm2, %v14599_v18  ;;  %12573 = vmatprep.mubr.msk.f32.mxu1 %vm14600_vm2, %v14599_v18 }
 0xb0e   :  { %v2401_v41 = vpop.permute.xlu1 %2400  ;;  %v2403_v45 = vpop.permute.xlu0 %2402  ;;  %12581 = vmatprep.subr.mxu1 %v14599_v18 }
 0xb0f   :  { %12577 = vmatpush3.xpose.msk.msra.mxu0 %vm421_vm0, %v2403_v45 }
 0xb10   :  { %12586 = vmatprep.subr.mxu0 %v14599_v18 }
 0xb12   :  { %12579 = vmatmul.mubr.msk.f32.vlgmr.msra.gmra.mrb[20].mxu0 %vm421_vm0, %v2401_v41  ;;  %v2570_v61 = vpop.permute.xlu0 %2569  ;;  %v2568_v10 = vpop.permute.xlu1 %2567 }
 0xb13   :  { %12587 = vmatpush3.xpose.msk.msra.mxu0 %vm421_vm0, %v2570_v61  ;;  %12588 = vmatprep.mubr.msk.f32.mxu0 %vm14600_vm2, %v14599_v18 }
 0xb14   :  { %12596 = vmatprep.subr.mxu0 %v14599_v18 }
 0xb16   :  { %12589 = vmatmul.mubr.msk.f32.vlgmr.msra.gmra.mrb[22].mxu0 %vm421_vm0, %v2568_v10  ;;  %v2736_v11 = vpop.permute.xlu0 %2735  ;;  %v2734_v12 = vpop.permute.xlu1 %2733 }
 0xb17   :  { %12597 = vmatpush3.xpose.msk.msra.mxu0 %vm421_vm0, %v2736_v11  ;;  %12598 = vmatprep.mubr.msk.f32.mxu0 %vm14600_vm2, %v14599_v18 }
 0xb18   :  { %13277 = vmatprep.subr.bf16.mxu0 %v14612_v1 }
 0xb1a   :  { %12599 = vmatmul.mubr.msk.f32.vlgmr.msra.gmra.mrb[24].mxu0 %vm421_vm0, %v2734_v12 }
 0xb1b   :  { %12614 = vmatprep.mubr.msk.f32.mxu0 %vm14600_vm2, %v14599_v18 }
 0xbde   :  { %v2311_v13 = vpop.f32.mrb[24].mxu1 }
 0xbdf   :  { %v2315_v14 = vmul.f32 0.35355338, %v2311_v13  ;;  %v15254_v15 = vpop.f32.mrb[18].mxu0  ;;  %v12570_v16 = vpop.f32.mrb[25].mxu1 }
 0xbe0   :  { %v12565_v17 = vpop.f32.mrb[19].mxu0 }
 0xbe1   :  { %v2316_v34 = vsel %vm421_vm0, %v2315_v14, -inf }
 0xbe2   :  { %2317 = vmax.xlane.f32.xlu0 %v2316_v34 }
 0xbe5   :  { %v2474_v19 = vpop.f32.mrb[20].mxu0 }
 0xbe6   :  { %v2478_v20 = vmul.f32 0.35355338, %v2474_v19  ;;  %v12580_v21 = vpop.f32.mrb[21].mxu0 }
 0xbe7   :  { %v11912_v21 = vld [vmem:[%s16574_s16 + $0x48] sm:$0xff] }
 0xbe8   :  { %v2479_v22 = vsel %vm421_vm0, %v2478_v20, -inf }
 0xbe9   :  { %2480 = vmax.xlane.f32.xlu1 %v2479_v22  ;;  %v2641_v23 = vpop.f32.mrb[22].mxu0  ;;  %v11913_v22 = vld [vmem:[%s16574_s16 + $0x50] sm:$0xff] }
 0xbea   :  { %v2645_v25 = vmul.f32 0.35355338, %v2641_v23  ;;  %v12590_v27 = vpop.f32.mrb[23].mxu0 }
 0xbec   :  { %v2646_v31 = vsel %vm421_vm0, %v2645_v25, -inf }
 0xbed   :  { %2647 = vmax.xlane.f32.xlu0 %v2646_v31  ;;  %v2807_v32 = vpop.f32.mrb[24].mxu0 }
 0xbee   :  { %v2811_v36 = vmul.f32 0.35355338, %v2807_v32  ;;  %v12600_v38 = vpop.f32.mrb[25].mxu0 }
 0xbf0   :  { %v2812_v40 = vsel %vm421_vm0, %v2811_v36, -inf }
 0xbf1   :  { %2813 = vmax.xlane.f32.xlu0 %v2812_v40 }
 0xc6f   :  { %v2318_v43 = vpop.xlane.xlu0 %2317 }
 0xc70   :  { %v2319_v46 = vsub.f32 %v2315_v14, %v2318_v43 }
 0xc72   :  { %v2320_v47 = vmul.f32 1.442695, %v2319_v46 }
 0xc74   :  { %13724 = vpow2.f32 %v2320_v47 }
 0xc76   :  { %v2481_v48 = vpop.xlane.xlu1 %2480 }
 0xc77   :  { %v2482_v49 = vsub.f32 %v2478_v20, %v2481_v48  ;;  %v11911_v20 = vld [vmem:[%s16574_s16 + $0x40] sm:$0xff] }
 0xc78   :  { %v15296_v23 = vpack.c.bf16 %v11912_v21, %v11911_v20 }
 0xc79   :  { %v2483_v50 = vmul.f32 1.442695, %v2482_v49 }
 0xc7a   :  { %v2648_v51 = vpop.xlane.xlu0 %2647  ;;  %13279 = vmatpush3.bf16.msra.mxu0 %v15296_v23 }
 0xc7b   :  { %13726 = vpow2.f32 %v2483_v50  ;;  %v2649_v3 = vsub.f32 %v2645_v25, %v2648_v51  ;;  %v11914_v25 = vld [vmem:[%s16574_s16 + $0x58] sm:$0xff]  ;;  %13280 = vmatprep.subr.bf16.mxu0 %v14612_v1 }
 0xc7c   :  { %v15300_v27 = vpack.c.bf16 %v11914_v25, %v11913_v22 }
 0xc7d   :  { %v2650_v35 = vmul.f32 1.442695, %v2649_v3 }
 0xc7e   :  { %v13725_v54 = vpop.eup %13724  ;;  %v2814_v56 = vpop.xlane.xlu0 %2813  ;;  %13282 = vmatpush3.bf16.msra.mxu0 %v15300_v27 }
 0xc7f   :  { %v2815_v57 = vsub.f32 %v2811_v36, %v2814_v56  ;;  %v2322_v58 = vsel %vm421_vm0, %v13725_v54, 0.0  ;;  %12627 = vmatprep.subr.mxu0 %v14599_v18 }
 0xc80   :  { %2323 = vadd.xlane.f32.xlu1 %v2322_v58 }
 0xc81   :  { %v2816_v59 = vmul.f32 1.442695, %v2815_v57 }
 0xc83   :  { %13728 = vpow2.f32 %v2816_v59 }
 0xc84   :  { %13730 = vpow2.f32 %v2650_v35 }
 0xc85   :  { %v13727_v60 = vpop.eup %13726 }
 0xc86   :  { %v2485_v62 = vsel %vm421_vm0, %v13727_v60, 0.0 }
 0xc87   :  { %2486 = vadd.xlane.f32.xlu0 %v2485_v62 }
 0xc8d   :  { %v13729_v63 = vpop.eup %13728 }
 0xc8e   :  { %v2818_v0 = vsel %vm421_vm0, %v13729_v63, 0.0  ;;  %v13731_v37 = vpop.eup %13730 }
 0xc8f   :  { %2819 = vadd.xlane.f32.xlu0 %v2818_v0  ;;  %v2652_v6 = vsel %vm421_vm0, %v13731_v37, 0.0 }
 0xc91   :  { %2491 = vrot.lane.b32.xlu1 %v15227_v5, %s14601_s7 }
 0xca5   :  { %2657 = vrot.lane.b32.xlu0 %v15227_v5, %s14606_s11 }
 0xca9   :  { %3012 = vrot.lane.b32.xlu0 %v15002_v39, %s14602_s6 }
 0xcb5   :  { %2653 = vadd.xlane.f32.xlu1 %v2652_v6 }
 0xcc6   :  { %2823 = vrot.lane.b32.xlu1 %v15227_v5, %s14607_s29 }
 0xd0d   :  { %v2324_v7 = vpop.xlane.xlu1 %2323 }
 0xd0e   :  { %13732 = vrcp.f32 %v2324_v7 }
 0xd11   :  { %v2492_v45 = vpop.permute.xlu1 %2491 }
 0xd14   :  { %v2487_v8 = vpop.xlane.xlu0 %2486 }
 0xd15   :  { %13734 = vrcp.f32 %v2487_v8 }
 0xd18   :  { %v13733_v9 = vpop.eup %13732 }
 0xd19   :  { %v2326_v41 = vmul.f32 %v13733_v9, %v13725_v54 }
 0xd1b   :  { %12574 = vmatmul.mubr.msk.f32.vlgmr.msra.gmra.mrb[26].mxu1 %vm421_vm0, %v2326_v41 }
 0xd1c   :  { %12582 = vmatpush3.msra.mxu1 %v2492_v45  ;;  %v2820_v61 = vpop.xlane.xlu0 %2819  ;;  %12583 = vmatprep.mubr.msk.f32.mxu1 %vm14600_vm2, %v14599_v18 }
 0xd1d   :  { %12591 = vmatprep.subr.mxu1 %v14599_v18 }
 0xd1f   :  { %v13735_v10 = vpop.eup %13734 }
 0xd20   :  { %v2658_v11 = vpop.permute.xlu0 %2657  ;;  %v2489_v12 = vmul.f32 %v13735_v10, %v13727_v60 }
 0xd22   :  { %12584 = vmatmul.mubr.msk.f32.vlgmr.msra.gmra.mrb[28].mxu1 %vm421_vm0, %v2489_v12 }
 0xd23   :  { %12592 = vmatpush3.msra.mxu1 %v2658_v11  ;;  %12593 = vmatprep.mubr.msk.f32.mxu1 %vm14600_vm2, %v14599_v18 }
 0xd24   :  { %12601 = vmatprep.subr.mxu1 %v14599_v18  ;;  %v3013_v19 = vpop.permute.xlu0 %3012 }
 0xd42   :  { %v2654_v5 = vpop.xlane.xlu1 %2653 }
 0xd43   :  { %13736 = vrcp.f32 %v2654_v5 }
 0xd44   :  { %13738 = vrcp.f32 %v2820_v61 }
 0xd46   :  { %v2824_v17 = vpop.permute.xlu1 %2823 }
 0xd4d   :  { %v13737_v13 = vpop.eup %13736 }
 0xd4e   :  { %v2656_v14 = vmul.f32 %v13737_v13, %v13731_v37  ;;  %v13739_v16 = vpop.eup %13738 }
 0xd4f   :  { %v2822_v34 = vmul.f32 %v13739_v16, %v13729_v63 }
 0xd50   :  { %12594 = vmatmul.mubr.msk.f32.vlgmr.msra.gmra.mrb[30].mxu1 %vm421_vm0, %v2656_v14 }
 0xd51   :  { %12602 = vmatpush3.msra.mxu1 %v2824_v17  ;;  %12603 = vmatprep.mubr.msk.f32.mxu1 %vm14600_vm2, %v14599_v18 }
 0xd52   :  { %12617 = vmatprep.subr.mxu1 %v14599_v18 }
 0xd54   :  { %12604 = vmatmul.mubr.msk.f32.vlgmr.msra.gmra.mrb[32].mxu1 %vm421_vm0, %v2822_v34 }
 0xd55   :  { %12619 = vmatprep.mubr.msk.f32.mxu1 %vm14600_vm2, %v14599_v18 }
 0xd58   :  { %12618 = vmatpush3.xpose.msk.msra.mxu1 %vm421_vm0, %v3013_v19 }
 0xd59   :  { %12622 = vmatprep.subr.mxu1 %v14599_v18 }
 0xd5b   :  { %12620 = vmatmul.mubr.msk.f32.vlgmr.msra.gmra.mrb[34].mxu1 %vm421_vm0, %v15002_v39 }
 0xd5c   :  { %12624 = vmatprep.mubr.msk.f32.mxu1 %vm14600_vm2, %v14599_v18 }
 0xdee   :  { %v2396_v31 = vpop.f32.mrb[26].mxu1 }
 0xdef   :  { %v12575_v32 = vpop.f32.mrb[27].mxu1 }
 0xdf5   :  { %v2563_v36 = vpop.f32.mrb[28].mxu1 }
 0xdf6   :  { %2900 = vrot.lane.b32.xlu1 %v2563_v36, %s14588_s24  ;;  %v12585_v38 = vpop.f32.mrb[29].mxu1 }
 0xe23   :  { %v2729_v40 = vpop.f32.mrb[30].mxu1 }
 0xe24   :  { %2904 = vrot.lane.b32.xlu1 %v2729_v40, %s14580_s18  ;;  %v12595_v43 = vpop.f32.mrb[31].mxu1 }
 0xe27   :  { %v2895_v46 = vpop.f32.mrb[32].mxu1 }
 0xe28   :  { %3179 = vrot.lane.b32.xlu1 %v15002_v39, %s14604_s8  ;;  %2908 = vrot.lane.b32.xlu0 %v2895_v46, %s14614_s22  ;;  %v12605_v47 = vpop.f32.mrb[33].mxu1 }
 0xe2c   :  { %3346 = vrot.lane.b32.xlu1 %v15002_v39, %s14603_s9  ;;  %3177 = vrot.lane.b32.xlu0 %v15002_v39, %s14601_s7 }
 0xe2e   :  { %v3084_v48 = vpop.f32.mrb[34].mxu1 }
 0xe2f   :  { %v12621_v49 = vpop.f32.mrb[35].mxu1  ;;  %v3088_v50 = vmul.f32 0.35355338, %v3084_v48 }
 0xe30   :  { %3513 = vrot.lane.b32.xlu1 %v15002_v39, %s14605_s10  ;;  %3344 = vrot.lane.b32.xlu0 %v15002_v39, %s14606_s11 }
 0xe31   :  { %v3089_v51 = vsel %vm769_vm3, %v3088_v50, -1e+30 }
 0xe32   :  { %v3090_v54 = vsel %vm421_vm0, %v3089_v51, -inf }
 0xe34   :  { %3511 = vrot.lane.b32.xlu0 %v15002_v39, %s14607_s29 }
 0xe54   :  { %3091 = vmax.xlane.f32.xlu1 %v3090_v54 }
 0xe68   :  { %v2901_v56 = vpop.permute.xlu1 %2900 }
 0xe69   :  { %v2911_v58 = vsel %vm421_vm0, %v2396_v31, %v2901_v56 }
 0xe96   :  { %v2905_v57 = vpop.permute.xlu1 %2904 }
 0xe97   :  { %v2912_v59 = vsel %vm1372_vm4, %v2911_v58, %v2905_v57 }
 0xe9a   :  { %v3180_v60 = vpop.permute.xlu1 %3179  ;;  %v2909_v62 = vpop.permute.xlu0 %2908 }
 0xe9b   :  { %v2913_v63 = vsel %vm1374_vm5, %v2912_v59, %v2909_v62 }
 0xe9c   :  { %12615 = vmatmul.mubr.msk.f32.vlgmr.msra.gmra.mrb[26].mxu0 %vm532_vm1, %v2913_v63 }
 0xe9d   :  { %12628 = vmatpush3.xpose.msk.msra.mxu0 %vm421_vm0, %v3180_v60  ;;  %12629 = vmatprep.mubr.msk.f32.mxu0 %vm14600_vm2, %v14599_v18 }
 0xe9e   :  { %v3347_v0 = vpop.permute.xlu1 %3346  ;;  %v3178_v3 = vpop.permute.xlu0 %3177  ;;  %12637 = vmatprep.subr.mxu0 %v14599_v18 }
 0xea0   :  { %12630 = vmatmul.mubr.msk.f32.vlgmr.msra.gmra.mrb[28].mxu0 %vm421_vm0, %v3178_v3 }
 0xea1   :  { %12638 = vmatpush3.xpose.msk.msra.mxu0 %vm421_vm0, %v3347_v0  ;;  %12639 = vmatprep.mubr.msk.f32.mxu0 %vm14600_vm2, %v14599_v18 }
 0xea2   :  { %v3514_v35 = vpop.permute.xlu1 %3513  ;;  %v3345_v37 = vpop.permute.xlu0 %3344  ;;  %12647 = vmatprep.subr.mxu0 %v14599_v18 }
 0xea4   :  { %12640 = vmatmul.mubr.msk.f32.vlgmr.msra.gmra.mrb[30].mxu0 %vm421_vm0, %v3345_v37 }
 0xea5   :  { %12648 = vmatpush3.xpose.msk.msra.mxu0 %vm421_vm0, %v3514_v35  ;;  %12649 = vmatprep.mubr.msk.f32.mxu0 %vm14600_vm2, %v14599_v18 }
 0xea6   :  { %v3512_v6 = vpop.permute.xlu0 %3511  ;;  %13283 = vmatprep.subr.bf16.mxu0 %v14612_v1 }
 0xea8   :  { %12650 = vmatmul.mubr.msk.f32.vlgmr.msra.gmra.mrb[32].mxu0 %vm421_vm0, %v3512_v6 }
 0xea9   :  { %13285 = vmatpush3.bf16.msra.mxu0 %v15098_v2  ;;  %12665 = vmatprep.mubr.msk.f32.mxu0 %vm14600_vm2, %v14599_v18 }
 0xeaa   :  { %13286 = vmatprep.subr.bf16.mxu0 %v14612_v1 }
 0xead   :  { %13288 = vmatpush3.bf16.msra.mxu0 %v15102_v4 }
 0xeae   :  { %12678 = vmatprep.subr.mxu0 %v14599_v18 }
 0xee1   :  { %v3092_v7 = vpop.xlane.xlu1 %3091 }
 0xee2   :  { %v3093_v8 = vsub.f32 %v3089_v51, %v3092_v7 }
 0xee4   :  { %v3094_v9 = vmul.f32 1.442695, %v3093_v8 }
 0xee6   :  { %13740 = vpow2.f32 %v3094_v9 }
 0xef0   :  { %v13741_v34 = vpop.eup %13740 }
 0xef1   :  { %v3096_v22 = vsel %vm421_vm0, %v13741_v34, 0.0 }
 0xf6f   :  { %v15348_v41 = vpop.f32.mrb[26].mxu0 }
 0xf70   :  { %v12616_v45 = vpop.f32.mrb[27].mxu0 }
 0xf73   :  { %v3251_v61 = vpop.f32.mrb[28].mxu0 }
 0xf74   :  { %v3255_v10 = vmul.f32 0.35355338, %v3251_v61  ;;  %v12631_v11 = vpop.f32.mrb[29].mxu0 }
 0xf76   :  { %v3256_v2 = vsel %vm769_vm3, %v3255_v10, -1e+30 }
 0xf77   :  { %v3418_v12 = vpop.f32.mrb[30].mxu0  ;;  %v3257_v5 = vsel %vm421_vm0, %v3256_v2, -inf }
 0xf78   :  { %v3422_v13 = vmul.f32 0.35355338, %v3418_v12  ;;  %3258 = vmax.xlane.f32.xlu0 %v3257_v5  ;;  %v12641_v4 = vpop.f32.mrb[31].mxu0 }
 0xf7a   :  { %v3423_v14 = vsel %vm769_vm3, %v3422_v13, -1e+30 }
 0xf7b   :  { %v3585_v16 = vpop.f32.mrb[32].mxu0  ;;  %v3424_v17 = vsel %vm421_vm0, %v3423_v14, -inf }
 0xf7c   :  { %v3589_v19 = vmul.f32 0.35355338, %v3585_v16  ;;  %3425 = vmax.xlane.f32.xlu0 %v3424_v17  ;;  %v12651_v20 = vpop.f32.mrb[33].mxu0 }
 0xf7e   :  { %v3590_v21 = vsel %vm769_vm3, %v3589_v19, -1e+30  ;;  %vm9139_vm3 = vcmask 1045504  }
 0xf7f   :  { %v3591_v25 = vsel %vm421_vm0, %v3590_v21, -inf }
 0xf80   :  { %3097 = vadd.xlane.f32.xlu0 %v3096_v22  ;;  %3592 = vmax.xlane.f32.xlu1 %v3591_v25 }
 0xf91   :  { %3268 = vrot.lane.b32.xlu1 %v15002_v39, %s14608_s19 }
 0xf96   :  { %3101 = vrot.lane.b32.xlu0 %v15002_v39, %s14609_s13 }
0x1005   :  { %v3259_v31 = vpop.xlane.xlu0 %3258 }
0x1006   :  { %v3260_v32 = vsub.f32 %v3256_v2, %v3259_v31 }
0x1008   :  { %v3261_v36 = vmul.f32 1.442695, %v3260_v32 }
0x1009   :  { %v3426_v38 = vpop.xlane.xlu0 %3425 }
0x100a   :  { %13742 = vpow2.f32 %v3261_v36  ;;  %v3427_v40 = vsub.f32 %v3423_v14, %v3426_v38 }
0x100c   :  { %v3428_v43 = vmul.f32 1.442695, %v3427_v40 }
0x100d   :  { %v3593_v46 = vpop.xlane.xlu1 %3592  ;;  %v3098_v47 = vpop.xlane.xlu0 %3097 }
0x100e   :  { %13744 = vpow2.f32 %v3428_v43  ;;  %v3594_v48 = vsub.f32 %v3590_v21, %v3593_v46 }
0x100f   :  { %13746 = vrcp.f32 %v3098_v47 }
0x1010   :  { %v3595_v49 = vmul.f32 1.442695, %v3594_v48 }
0x1011   :  { %v3102_v50 = vpop.permute.xlu0 %3101  ;;  %v3269_v62 = vpop.permute.xlu1 %3268 }
0x1012   :  { %13748 = vpow2.f32 %v3595_v49  ;;  %12623 = vmatpush3.msra.mxu1 %v3102_v50 }
0x1013   :  { %12632 = vmatprep.subr.mxu1 %v14599_v18 }
0x1014   :  { %v13743_v51 = vpop.eup %13742 }
0x1015   :  { %v3263_v54 = vsel %vm421_vm0, %v13743_v51, 0.0 }
0x1016   :  { %3264 = vadd.xlane.f32.xlu1 %v3263_v54 }
0x1018   :  { %v13745_v56 = vpop.eup %13744 }
0x1019   :  { %v13747_v57 = vpop.eup %13746  ;;  %v3430_v58 = vsel %vm421_vm0, %v13745_v56, 0.0 }
0x101a   :  { %3431 = vadd.xlane.f32.xlu0 %v3430_v58  ;;  %v3100_v59 = vmul.f32 %v13747_v57, %v13741_v34 }
0x101c   :  { %v13749_v60 = vpop.eup %13748  ;;  %12625 = vmatmul.mubr.msk.f32.vlgmr.msra.gmra.mrb[36].mxu1 %vm421_vm0, %v3100_v59 }
0x101d   :  { %12633 = vmatpush3.msra.mxu1 %v3269_v62  ;;  %v3597_v63 = vsel %vm421_vm0, %v13749_v60, 0.0  ;;  %12634 = vmatprep.mubr.msk.f32.mxu1 %vm14600_vm2, %v14599_v18 }
0x101e   :  { %3598 = vadd.xlane.f32.xlu1 %v3597_v63  ;;  %12642 = vmatprep.subr.mxu1 %v14599_v18 }
0x102f   :  { %3435 = vrot.lane.b32.xlu1 %v15002_v39, %s14610_s15 }
0x1030   :  { %3602 = vrot.lane.b32.xlu0 %v15002_v39, %s14611_s0 }
0x10a3   :  { %v3265_v0 = vpop.xlane.xlu1 %3264 }
0x10a4   :  { %13750 = vrcp.f32 %v3265_v0 }
0x10a7   :  { %v3432_v3 = vpop.xlane.xlu0 %3431 }
0x10a8   :  { %13752 = vrcp.f32 %v3432_v3 }
0x10ab   :  { %v3599_v35 = vpop.xlane.xlu1 %3598  ;;  %v3603_v45 = vpop.permute.xlu0 %3602 }
0x10ac   :  { %13754 = vrcp.f32 %v3599_v35 }
0x10ae   :  { %v13751_v37 = vpop.eup %13750 }
0x10af   :  { %v3436_v6 = vpop.permute.xlu1 %3435  ;;  %v3267_v7 = vmul.f32 %v13751_v37, %v13743_v51 }
0x10b1   :  { %12635 = vmatmul.mubr.msk.f32.vlgmr.msra.gmra.mrb[38].mxu1 %vm421_vm0, %v3267_v7 }
0x10b2   :  { %v13753_v8 = vpop.eup %13752  ;;  %12643 = vmatpush3.msra.mxu1 %v3436_v6  ;;  %12644 = vmatprep.mubr.msk.f32.mxu1 %vm14600_vm2, %v14599_v18 }
0x10b3   :  { %12652 = vmatprep.subr.mxu1 %v14599_v18  ;;  %v3434_v9 = vmul.f32 %v13753_v8, %v13745_v56 }
0x10b5   :  { %12645 = vmatmul.mubr.msk.f32.vlgmr.msra.gmra.mrb[40].mxu1 %vm421_vm0, %v3434_v9 }
0x10b6   :  { %v13755_v61 = vpop.eup %13754  ;;  %12653 = vmatpush3.msra.mxu1 %v3603_v45  ;;  %12654 = vmatprep.mubr.msk.f32.mxu1 %vm14600_vm2, %v14599_v18 }
0x10b7   :  { %v3601_v10 = vmul.f32 %v13755_v61, %v13749_v60  ;;  %12668 = vmatprep.subr.mxu1 %v14599_v18 }
0x10b9   :  { %12655 = vmatmul.mubr.msk.f32.vlgmr.msra.gmra.mrb[42].mxu1 %vm421_vm0, %v3601_v10 }
0x10ba   :  { %12670 = vmatprep.mubr.msk.f32.mxu1 %vm14600_vm2, %v14599_v18 }
0x10bd   :  { %12669 = vmatpush3.xpose.msk.msra.mxu1 %vm421_vm0, %v15007_v42 }
0x10be   :  { %12673 = vmatprep.subr.mxu1 %v14599_v18 }
0x10ef   :  { %v3173_v11 = vpop.f32.mrb[36].mxu1 }
0x10f0   :  { %v12626_v2 = vpop.f32.mrb[37].mxu1 }
0x1184   :  { %v3340_v12 = vpop.f32.mrb[38].mxu1 }
0x1185   :  { %3679 = vrot.lane.b32.xlu1 %v3340_v12, %s14588_s24  ;;  %v12636_v5 = vpop.f32.mrb[39].mxu1 }
0x1188   :  { %v3507_v13 = vpop.f32.mrb[40].mxu1 }
0x1189   :  { %3683 = vrot.lane.b32.xlu0 %v3507_v13, %s14580_s18  ;;  %v12646_v4 = vpop.f32.mrb[41].mxu1 }
0x118c   :  { %v3674_v14 = vpop.f32.mrb[42].mxu1 }
0x118d   :  { %3767 = vrot.lane.b32.xlu0 %v15002_v39, %s14613_s14  ;;  %3687 = vrot.lane.b32.xlu1 %v3674_v14, %s14614_s22  ;;  %v12656_v16 = vpop.f32.mrb[43].mxu1 }
0x1191   :  { %3933 = vrot.lane.b32.xlu0 %v15002_v39, %s14614_s22  ;;  %3935 = vrot.lane.b32.xlu1 %v15007_v42, %s14601_s7 }
0x1195   :  { %4100 = vrot.lane.b32.xlu0 %v15002_v39, %s14580_s18  ;;  %4102 = vrot.lane.b32.xlu1 %v15007_v42, %s14606_s11 }
0x1199   :  { %4267 = vrot.lane.b32.xlu0 %v15002_v39, %s14588_s24  ;;  %4269 = vrot.lane.b32.xlu1 %v15007_v42, %s14607_s29 }
0x11f7   :  { %v3680_v17 = vpop.permute.xlu1 %3679 }
0x11f8   :  { %v3690_v19 = vsel %vm421_vm0, %v3173_v11, %v3680_v17 }
0x11fb   :  { %v3684_v34 = vpop.permute.xlu0 %3683 }
0x11fc   :  { %v3691_v20 = vsel %vm1372_vm4, %v3690_v19, %v3684_v34 }
0x11ff   :  { %v3688_v21 = vpop.permute.xlu1 %3687  ;;  %v3768_v22 = vpop.permute.xlu0 %3767 }
0x1200   :  { %v3692_v25 = vsel %vm1374_vm5, %v3691_v20, %v3688_v21  ;;  %12671 = vmatmul.mubr.msk.f32.vlgmr.msra.gmra.mrb[44].mxu1 %vm421_vm0, %v3768_v22 }
0x1201   :  { %12666 = vmatmul.mubr.msk.f32.vlgmr.msra.gmra.mrb[34].mxu0 %vm532_vm1, %v3692_v25  ;;  %12675 = vmatprep.mubr.msk.f32.mxu1 %vm14600_vm2, %v14599_v18 }
0x1202   :  { %12680 = vmatprep.mubr.msk.f32.mxu0 %vm14600_vm2, %v14599_v18 }
0x1203   :  { %v3936_v39 = vpop.permute.xlu1 %3935  ;;  %v3934_v31 = vpop.permute.xlu0 %3933 }
0x1204   :  { %12679 = vmatpush3.xpose.msk.msra.mxu0 %vm421_vm0, %v3936_v39 }
0x1205   :  { %12688 = vmatprep.subr.mxu0 %v14599_v18 }
0x1207   :  { %v4103_v32 = vpop.permute.xlu1 %4102  ;;  %12681 = vmatmul.mubr.msk.f32.vlgmr.msra.gmra.mrb[36].mxu0 %vm421_vm0, %v3934_v31  ;;  %v4101_v36 = vpop.permute.xlu0 %4100 }
0x1208   :  { %12689 = vmatpush3.xpose.msk.msra.mxu0 %vm421_vm0, %v4103_v32  ;;  %12690 = vmatprep.mubr.msk.f32.mxu0 %vm14600_vm2, %v14599_v18 }
0x1209   :  { %12698 = vmatprep.subr.mxu0 %v14599_v18 }
0x120b   :  { %v4270_v38 = vpop.permute.xlu1 %4269  ;;  %12691 = vmatmul.mubr.msk.f32.vlgmr.msra.gmra.mrb[38].mxu0 %vm421_vm0, %v4101_v36  ;;  %v4268_v40 = vpop.permute.xlu0 %4267 }
0x120c   :  { %12699 = vmatpush3.xpose.msk.msra.mxu0 %vm421_vm0, %v4270_v38  ;;  %12700 = vmatprep.mubr.msk.f32.mxu0 %vm14600_vm2, %v14599_v18 }
0x120d   :  { %13289 = vmatprep.subr.bf16.mxu0 %v14612_v1 }
0x120f   :  { %12701 = vmatmul.mubr.msk.f32.vlgmr.msra.gmra.mrb[40].mxu0 %vm421_vm0, %v4268_v40 }
0x1210   :  { %13291 = vmatpush3.bf16.msra.mxu0 %v15198_v52  ;;  %12716 = vmatprep.mubr.msk.f32.mxu0 %vm14600_vm2, %v14599_v18 }
0x1211   :  { %13292 = vmatprep.subr.bf16.mxu0 %v14612_v1 }
0x1214   :  { %13294 = vmatpush3.bf16.msra.mxu0 %v15202_v55 }
0x1215   :  { %12729 = vmatprep.subr.mxu0 %v14599_v18 }
0x12d3   :  { %v3840_v43 = vpop.f32.mrb[44].mxu1 }
0x12d4   :  { %v3844_v46 = vmul.f32 0.35355338, %v3840_v43  ;;  %v15435_v47 = vpop.f32.mrb[34].mxu0  ;;  %v12672_v48 = vpop.f32.mrb[45].mxu1 }
0x12d5   :  { %v12667_v49 = vpop.f32.mrb[35].mxu0 }
0x12d6   :  { %v3845_v50 = vsel %vm1542_vm6, %v3844_v46, -1e+30 }
0x12d7   :  { %v3846_v52 = vsel %vm421_vm0, %v3845_v50, -inf }
0x12d8   :  { %3847 = vmax.xlane.f32.xlu1 %v3846_v52 }
0x12da   :  { %v4007_v51 = vpop.f32.mrb[36].mxu0 }
0x12db   :  { %v4011_v54 = vmul.f32 0.35355338, %v4007_v51  ;;  %v12682_v56 = vpop.f32.mrb[37].mxu0 }
0x12dd   :  { %v4012_v55 = vsel %vm1542_vm6, %v4011_v54, -1e+30 }
0x12de   :  { %v4174_v57 = vpop.f32.mrb[38].mxu0  ;;  %v4013_v58 = vsel %vm421_vm0, %v4012_v55, -inf }
0x12df   :  { %v4178_v59 = vmul.f32 0.35355338, %v4174_v57  ;;  %4014 = vmax.xlane.f32.xlu0 %v4013_v58  ;;  %v12692_v60 = vpop.f32.mrb[39].mxu0 }
0x12e1   :  { %v4179_v62 = vsel %vm1542_vm6, %v4178_v59, -1e+30 }
0x12e2   :  { %v4341_v63 = vpop.f32.mrb[40].mxu0  ;;  %v4180_v0 = vsel %vm421_vm0, %v4179_v62, -inf }
0x12e3   :  { %v4345_v3 = vmul.f32 0.35355338, %v4341_v63  ;;  %4181 = vmax.xlane.f32.xlu0 %v4180_v0  ;;  %v12702_v35 = vpop.f32.mrb[41].mxu0 }
0x12e5   :  { %v4346_v37 = vsel %vm1542_vm6, %v4345_v3, -1e+30  ;;  %vm11806_vm6 = vcmask 713728  }
0x12e6   :  { %v4347_v6 = vsel %vm421_vm0, %v4346_v37, -inf }
0x12e7   :  { %4348 = vmax.xlane.f32.xlu1 %v4347_v6 }
0x12f8   :  { %4024 = vrot.lane.b32.xlu1 %v15007_v42, %s14604_s8 }
0x1365   :  { %v3848_v7 = vpop.xlane.xlu1 %3847 }
0x1366   :  { %v3849_v8 = vsub.f32 %v3845_v50, %v3848_v7 }
0x1368   :  { %v3850_v9 = vmul.f32 1.442695, %v3849_v8 }
0x136a   :  { %13756 = vpow2.f32 %v3850_v9 }
0x136c   :  { %v4015_v45 = vpop.xlane.xlu0 %4014 }
0x136d   :  { %v4016_v61 = vsub.f32 %v4012_v55, %v4015_v45 }
0x136f   :  { %v4017_v10 = vmul.f32 1.442695, %v4016_v61 }
0x1370   :  { %v4182_v17 = vpop.xlane.xlu0 %4181 }
0x1371   :  { %13758 = vpow2.f32 %v4017_v10  ;;  %v4183_v34 = vsub.f32 %v4179_v62, %v4182_v17 }
0x1373   :  { %v4184_v19 = vmul.f32 1.442695, %v4183_v34 }
0x1374   :  { %v13757_v11 = vpop.eup %13756  ;;  %v4349_v2 = vpop.xlane.xlu1 %4348 }
0x1375   :  { %v4350_v12 = vsub.f32 %v4346_v37, %v4349_v2  ;;  %v3852_v53 = vsel %vm421_vm0, %v13757_v11, 0.0 }
0x1376   :  { %3853 = vadd.xlane.f32.xlu0 %v3852_v53 }
0x1377   :  { %v4351_v5 = vmul.f32 1.442695, %v4350_v12 }
0x1378   :  { %v4025_v25 = vpop.permute.xlu1 %4024 }
0x1379   :  { %13760 = vpow2.f32 %v4351_v5 }
0x137a   :  { %13762 = vpow2.f32 %v4184_v19 }
0x137b   :  { %v13759_v13 = vpop.eup %13758 }
0x137c   :  { %v4019_v4 = vsel %vm421_vm0, %v13759_v13, 0.0 }
0x137d   :  { %4020 = vadd.xlane.f32.xlu1 %v4019_v4 }
0x1383   :  { %v13761_v14 = vpop.eup %13760 }
0x1384   :  { %v4353_v16 = vsel %vm421_vm0, %v13761_v14, 0.0  ;;  %v13763_v20 = vpop.eup %13762 }
0x1385   :  { %4354 = vadd.xlane.f32.xlu1 %v4353_v16  ;;  %v4186_v21 = vsel %vm421_vm0, %v13763_v20, 0.0 }
0x138c   :  { %3857 = vrot.lane.b32.xlu0 %v15007_v42, %s14602_s6 }
0x1396   :  { %4191 = vrot.lane.b32.xlu1 %v15007_v42, %s14603_s9 }
0x13ab   :  { %4187 = vadd.xlane.f32.xlu0 %v4186_v21 }
0x13c1   :  { %4358 = vrot.lane.b32.xlu0 %v15007_v42, %s14605_s10 }
0x13c5   :  { %4525 = vrot.lane.b32.xlu0 %v15007_v42, %s14613_s14 }
0x1403   :  { %v3854_v22 = vpop.xlane.xlu0 %3853 }
0x1404   :  { %13764 = vrcp.f32 %v3854_v22 }
0x1407   :  { %v3858_v39 = vpop.permute.xlu0 %3857 }
0x1408   :  { %12674 = vmatpush3.msra.mxu1 %v3858_v39 }
0x1409   :  { %12683 = vmatprep.subr.mxu1 %v14599_v18 }
0x140a   :  { %v4021_v31 = vpop.xlane.xlu1 %4020 }
0x140b   :  { %13766 = vrcp.f32 %v4021_v31 }
0x140e   :  { %v13765_v32 = vpop.eup %13764 }
0x140f   :  { %v3856_v36 = vmul.f32 %v13765_v32, %v13757_v11 }
0x1411   :  { %12676 = vmatmul.mubr.msk.f32.vlgmr.msra.gmra.mrb[46].mxu1 %vm421_vm0, %v3856_v36 }
0x1412   :  { %12684 = vmatpush3.msra.mxu1 %v4025_v25  ;;  %v4355_v38 = vpop.xlane.xlu1 %4354  ;;  %12685 = vmatprep.mubr.msk.f32.mxu1 %vm14600_vm2, %v14599_v18 }
0x1413   :  { %12693 = vmatprep.subr.mxu1 %v14599_v18 }
0x1415   :  { %v13767_v40 = vpop.eup %13766 }
0x1416   :  { %v4192_v43 = vpop.permute.xlu1 %4191  ;;  %v4023_v46 = vmul.f32 %v13767_v40, %v13759_v13 }
0x1418   :  { %12686 = vmatmul.mubr.msk.f32.vlgmr.msra.gmra.mrb[48].mxu1 %vm421_vm0, %v4023_v46 }
0x1419   :  { %12694 = vmatpush3.msra.mxu1 %v4192_v43  ;;  %12695 = vmatprep.mubr.msk.f32.mxu1 %vm14600_vm2, %v14599_v18 }
0x141a   :  { %12703 = vmatprep.subr.mxu1 %v14599_v18 }
0x1438   :  { %v4188_v48 = vpop.xlane.xlu0 %4187 }
0x1439   :  { %13768 = vrcp.f32 %v4188_v48 }
0x143a   :  { %13770 = vrcp.f32 %v4355_v38 }
0x143c   :  { %v4359_v51 = vpop.permute.xlu0 %4358 }
0x1440   :  { %v4526_v56 = vpop.permute.xlu0 %4525 }
0x1443   :  { %v13769_v49 = vpop.eup %13768 }
0x1444   :  { %v4190_v50 = vmul.f32 %v13769_v49, %v13763_v20  ;;  %v13771_v52 = vpop.eup %13770 }
0x1445   :  { %v4357_v54 = vmul.f32 %v13771_v52, %v13761_v14 }
0x1446   :  { %12696 = vmatmul.mubr.msk.f32.vlgmr.msra.gmra.mrb[50].mxu1 %vm421_vm0, %v4190_v50 }
0x1447   :  { %12704 = vmatpush3.msra.mxu1 %v4359_v51  ;;  %12705 = vmatprep.mubr.msk.f32.mxu1 %vm14600_vm2, %v14599_v18 }
0x1448   :  { %12719 = vmatprep.subr.mxu1 %v14599_v18 }
0x144a   :  { %12706 = vmatmul.mubr.msk.f32.vlgmr.msra.gmra.mrb[52].mxu1 %vm421_vm0, %v4357_v54 }
0x144b   :  { %12721 = vmatprep.mubr.msk.f32.mxu1 %vm14600_vm2, %v14599_v18 }
0x144e   :  { %12720 = vmatpush3.xpose.msk.msra.mxu1 %vm421_vm0, %v4526_v56 }
0x144f   :  { %12724 = vmatprep.subr.mxu1 %v14599_v18 }
0x14e4   :  { %v3929_v55 = vpop.f32.mrb[46].mxu1 }
0x14e5   :  { %v12677_v57 = vpop.f32.mrb[47].mxu1 }
0x14eb   :  { %v4096_v58 = vpop.f32.mrb[48].mxu1 }
0x14ec   :  { %4435 = vrot.lane.b32.xlu1 %v4096_v58, %s14588_s24  ;;  %v12687_v59 = vpop.f32.mrb[49].mxu1 }
0x1519   :  { %v4263_v60 = vpop.f32.mrb[50].mxu1 }
0x151a   :  { %4439 = vrot.lane.b32.xlu1 %v4263_v60, %s14580_s18  ;;  %v12697_v62 = vpop.f32.mrb[51].mxu1 }
0x151d   :  { %v4430_v63 = vpop.f32.mrb[52].mxu1 }
0x151e   :  { %4523 = vrot.lane.b32.xlu1 %v15007_v42, %s14609_s13  ;;  %4443 = vrot.lane.b32.xlu0 %v4430_v63, %s14614_s22  ;;  %v12707_v0 = vpop.f32.mrb[53].mxu1 }
0x1522   :  { %4686 = vrot.lane.b32.xlu1 %v15007_v42, %s14608_s19  ;;  %4688 = vrot.lane.b32.xlu0 %v15007_v42, %s14614_s22 }
0x1526   :  { %4853 = vrot.lane.b32.xlu1 %v15007_v42, %s14610_s15  ;;  %4855 = vrot.lane.b32.xlu0 %v15007_v42, %s14580_s18 }
0x152a   :  { %5019 = vrot.lane.b32.xlu1 %v15007_v42, %s14611_s0  ;;  %5021 = vrot.lane.b32.xlu0 %v15007_v42, %s14588_s24 }
0x155e   :  { %v4436_v3 = vpop.permute.xlu1 %4435 }
0x155f   :  { %v4446_v37 = vsel %vm421_vm0, %v3929_v55, %v4436_v3 }
0x158c   :  { %v4440_v35 = vpop.permute.xlu1 %4439 }
0x158d   :  { %v4447_v6 = vsel %vm1372_vm4, %v4446_v37, %v4440_v35 }
0x1590   :  { %v4524_v7 = vpop.permute.xlu1 %4523  ;;  %v4444_v8 = vpop.permute.xlu0 %4443 }
0x1591   :  { %v4448_v9 = vsel %vm1374_vm5, %v4447_v6, %v4444_v8  ;;  %12722 = vmatmul.mubr.msk.f32.vlgmr.msra.gmra.mrb[54].mxu1 %vm421_vm0, %v4524_v7 }
0x1592   :  { %12725 = vmatpush3.msra.mxu1 %v15014_v44  ;;  %12717 = vmatmul.mubr.msk.f32.vlgmr.msra.gmra.mrb[42].mxu0 %vm532_vm1, %v4448_v9 }
0x1593   :  { %12731 = vmatprep.mubr.msk.f32.mxu0 %vm14600_vm2, %v14599_v18  ;;  %12726 = vmatprep.mubr.msk.f32.mxu1 %vm14600_vm2, %v14599_v18 }
0x1594   :  { %v4687_v42 = vpop.permute.xlu1 %4686  ;;  %v4689_v45 = vpop.permute.xlu0 %4688  ;;  %12734 = vmatprep.subr.mxu1 %v14599_v18 }
0x1595   :  { %12730 = vmatpush3.xpose.msk.msra.mxu0 %vm421_vm0, %v4689_v45 }
0x1596   :  { %12739 = vmatprep.subr.mxu0 %v14599_v18 }
0x1598   :  { %12732 = vmatmul.mubr.msk.f32.vlgmr.msra.gmra.mrb[44].mxu0 %vm421_vm0, %v4687_v42  ;;  %v4856_v61 = vpop.permute.xlu0 %4855  ;;  %v4854_v10 = vpop.permute.xlu1 %4853 }
0x1599   :  { %12740 = vmatpush3.xpose.msk.msra.mxu0 %vm421_vm0, %v4856_v61  ;;  %12741 = vmatprep.mubr.msk.f32.mxu0 %vm14600_vm2, %v14599_v18 }
0x159a   :  { %12749 = vmatprep.subr.mxu0 %v14599_v18 }
0x159c   :  { %12742 = vmatmul.mubr.msk.f32.vlgmr.msra.gmra.mrb[46].mxu0 %vm421_vm0, %v4854_v10  ;;  %v5022_v11 = vpop.permute.xlu0 %5021  ;;  %v5020_v2 = vpop.permute.xlu1 %5019 }
0x159d   :  { %12750 = vmatpush3.xpose.msk.msra.mxu0 %vm421_vm0, %v5022_v11  ;;  %12751 = vmatprep.mubr.msk.f32.mxu0 %vm14600_vm2, %v14599_v18 }
0x159e   :  { %13295 = vmatprep.subr.bf16.mxu0 %v14612_v1 }
0x15a0   :  { %12752 = vmatmul.mubr.msk.f32.vlgmr.msra.gmra.mrb[48].mxu0 %vm421_vm0, %v5020_v2 }
0x15a1   :  { %13297 = vmatpush3.bf16.msra.mxu0 %v15296_v23  ;;  %12767 = vmatprep.mubr.msk.f32.mxu0 %vm14600_vm2, %v14599_v18 }
0x15a2   :  { %13298 = vmatprep.subr.bf16.mxu0 %v14612_v1 }
0x15a5   :  { %13300 = vmatpush3.bf16.msra.mxu0 %v15300_v27 }
0x1664   :  { %v4597_v12 = vpop.f32.mrb[54].mxu1 }
0x1665   :  { %v4601_v53 = vmul.f32 0.35355338, %v4597_v12  ;;  %v15527_v5 = vpop.f32.mrb[42].mxu0  ;;  %v12723_v13 = vpop.f32.mrb[55].mxu1 }
0x1666   :  { %v12718_v4 = vpop.f32.mrb[43].mxu0 }
0x1667   :  { %v4602_v14 = vsel %vm421_vm0, %v4601_v53, -inf }
0x1668   :  { %4603 = vmax.xlane.f32.xlu0 %v4602_v14  ;;  %v11897_v14 = vld [vmem:[#allocation6 + $0x1] ss:$0 sm:$0xff] }
0x166b   :  { %v4760_v16 = vpop.f32.mrb[44].mxu0 }
0x166c   :  { %v4764_v17 = vmul.f32 0.35355338, %v4760_v16  ;;  %v12733_v34 = vpop.f32.mrb[45].mxu0  ;;  %v2230_v16 = vadd.f32 %v11897_v14, %v15254_v15  ;;  %v11879_v15 = vld [vmem:[#allocation6] ss:$0 sm:$0xff] }
0x166e   :  { %v4765_v23 = vsel %vm421_vm0, %v4764_v17, -inf }
0x166f   :  { %4766 = vmax.xlane.f32.xlu1 %v4765_v23  ;;  %v4927_v19 = vpop.f32.mrb[46].mxu0  ;;  %v2236_v23 = vsel %vm2233_vm7, %v2230_v16, 0.0 }
0x1670   :  { %v4931_v20 = vmul.f32 0.35355338, %v4927_v19  ;;  %v12743_v21 = vpop.f32.mrb[47].mxu0  ;;  %v11915_v19 = vld [vmem:[#allocation6 + $0x2] ss:$0 sm:$0xff] }
0x1672   :  { %v4932_v27 = vsel %vm421_vm0, %v4931_v20, -inf }
0x1673   :  { %4933 = vmax.xlane.f32.xlu0 %v4932_v27  ;;  %v5093_v22 = vpop.f32.mrb[48].mxu0 }
0x1674   :  { %v5097_v25 = vmul.f32 0.35355338, %v5093_v22  ;;  %v12753_v39 = vpop.f32.mrb[49].mxu0  ;;  %v2997_v22 = vadd.f32 %v11915_v19, %v15348_v41 }
0x1676   :  { %v5098_v31 = vsel %vm421_vm0, %v5097_v25, -inf }
0x1677   :  { %5099 = vmax.xlane.f32.xlu0 %v5098_v31 }
0x16f5   :  { %v4604_v32 = vpop.xlane.xlu0 %4603 }
0x16f6   :  { %v4605_v36 = vsub.f32 %v4601_v53, %v4604_v32  ;;  %v1457_v32 = vadd.f32 %v11879_v15, %v15149_v30 }
0x16f8   :  { %v4606_v38 = vmul.f32 1.442695, %v4605_v36  ;;  %v1463_v30 = vsel %vm1460_vm8, %v1457_v32, 0.0 }
0x16fa   :  { %13772 = vpow2.f32 %v4606_v38 }
0x16fc   :  { %v4767_v40 = vpop.xlane.xlu1 %4766 }
0x16fd   :  { %v4768_v43 = vsub.f32 %v4764_v17, %v4767_v40 }
0x16ff   :  { %v4769_v46 = vmul.f32 1.442695, %v4768_v43 }
0x1700   :  { %v4934_v48 = vpop.xlane.xlu0 %4933 }
0x1701   :  { %13774 = vpow2.f32 %v4769_v46  ;;  %v4935_v59 = vsub.f32 %v4931_v20, %v4934_v48  ;;  %v4519_v20 = vadd.f32 %v11897_v14, %v15527_v5 }
0x1703   :  { %v4936_v60 = vmul.f32 1.442695, %v4935_v59  ;;  %v5289_v59 = vld [vmem:[%s16575_s30 + $0x30] sm:$0xff] }
0x1704   :  { %v13773_v49 = vpop.eup %13772  ;;  %v5100_v50 = vpop.xlane.xlu0 %5099 }
0x1705   :  { %v5101_v52 = vsub.f32 %v5097_v25, %v5100_v50  ;;  %v4608_v51 = vsel %vm421_vm0, %v13773_v49, 0.0  ;;  %v4522_v25 = vsel %vm2233_vm7, %v4519_v20, 0.0  ;;  %v5284_v50 = vld [vmem:[%s16575_s30 + $0x8] sm:$0xff] }
0x1706   :  { %4609 = vadd.xlane.f32.xlu1 %v4608_v51 }
0x1707   :  { %v5102_v54 = vmul.f32 1.442695, %v5101_v52  ;;  %v5285_v52 = vld [vmem:[%s16575_s30 + $0x10] sm:$0xff] }
0x1709   :  { %13776 = vpow2.f32 %v5102_v54  ;;  %v5286_v54 = vld [vmem:[%s16575_s30 + $0x18] sm:$0xff] }
0x170a   :  { %13778 = vpow2.f32 %v4936_v60  ;;  %v5290_v60 = vld [vmem:[%s16575_s30 + $0x38] sm:$0xff] }
0x170b   :  { %v13775_v56 = vpop.eup %13774 }
0x170c   :  { %v4771_v55 = vsel %vm421_vm0, %v13775_v56, 0.0 }
0x170d   :  { %4772 = vadd.xlane.f32.xlu0 %v4771_v55  ;;  %v5287_v55 = vld [vmem:[%s16575_s30 + $0x20] sm:$0xff] }
0x1713   :  { %v13777_v57 = vpop.eup %13776 }
0x1714   :  { %v5104_v58 = vsel %vm421_vm0, %v13777_v57, 0.0  ;;  %v13779_v62 = vpop.eup %13778 }
0x1715   :  { %5105 = vadd.xlane.f32.xlu0 %v5104_v58  ;;  %v4938_v63 = vsel %vm421_vm0, %v13779_v62, 0.0 }
0x1717   :  { %4777 = vrot.lane.b32.xlu1 %v15014_v44, %s14601_s7 }
0x172b   :  { %4943 = vrot.lane.b32.xlu0 %v15014_v44, %s14606_s11 }
0x173b   :  { %4939 = vadd.xlane.f32.xlu1 %v4938_v63  ;;  %v5291_v63 = vld [vmem:[%s16575_s30 + $0x40] sm:$0xff] }
0x174c   :  { %5109 = vrot.lane.b32.xlu1 %v15014_v44, %s14607_s29 }
0x1793   :  { %v4610_v0 = vpop.xlane.xlu1 %4609 }
0x1794   :  { %13780 = vrcp.f32 %v4610_v0  ;;  %v5292_v0 = vld [vmem:[%s16575_s30 + $0x48] sm:$0xff] }
0x1797   :  { %v4778_v6 = vpop.permute.xlu1 %4777 }
0x179a   :  { %v4773_v3 = vpop.xlane.xlu0 %4772 }
0x179b   :  { %13782 = vrcp.f32 %v4773_v3  ;;  %v13317_v3 = vpack.c.bf16 %v5292_v0, %v5291_v63 }
0x179e   :  { %v13781_v35 = vpop.eup %13780 }
0x179f   :  { %v4612_v37 = vmul.f32 %v13781_v35, %v13773_v49  ;;  %v5283_v49 = vld [vmem:[%s16575_s30] sm:$0xff]  ;;  %v5293_v35 = vld [vmem:[%s16575_s30 + $0x50] sm:$0xff] }
0x17a0   :  { %v13301_v51 = vpack.c.bf16 %v5284_v50, %v5283_v49 }
0x17a1   :  { %12727 = vmatmul.mubr.msk.f32.vlgmr.msra.gmra.mrb[56].mxu1 %vm421_vm0, %v4612_v37  ;;  %v5294_v37 = vld [vmem:[%s16575_s30 + $0x58] sm:$0xff] }
0x17a2   :  { %12735 = vmatpush3.msra.mxu1 %v4778_v6  ;;  %v5106_v7 = vpop.xlane.xlu0 %5105  ;;  %12736 = vmatprep.mubr.msk.f32.mxu1 %vm14600_vm2, %v14599_v18  ;;  %v13321_v6 = vpack.c.bf16 %v5294_v37, %v5293_v35  ;;  %v5476_v35 = vld [vmem:[%s16576_s23 + $0x8] sm:$0xff]  ;;  %v5477_v37 = vld [vmem:[%s16576_s23 + $0x10] sm:$0xff] }
0x17a3   :  { %12744 = vmatprep.subr.mxu1 %v14599_v18 }
0x17a5   :  { %v13783_v8 = vpop.eup %13782 }
0x17a6   :  { %v4944_v9 = vpop.permute.xlu0 %4943  ;;  %v4775_v42 = vmul.f32 %v13783_v8, %v13775_v56  ;;  %v13305_v56 = vpack.c.bf16 %v5286_v54, %v5285_v52 }
0x17a8   :  { %12737 = vmatmul.mubr.msk.f32.vlgmr.msra.gmra.mrb[58].mxu1 %vm421_vm0, %v4775_v42  ;;  %v3763_v42 = vadd.f32 %v11879_v15, %v15435_v47 }
0x17a9   :  { %12745 = vmatpush3.msra.mxu1 %v4944_v9  ;;  %12746 = vmatprep.mubr.msk.f32.mxu1 %vm14600_vm2, %v14599_v18 }
0x17aa   :  { %12754 = vmatprep.subr.mxu1 %v14599_v18 }
0x17c8   :  { %v4940_v44 = vpop.xlane.xlu1 %4939 }
0x17c9   :  { %13784 = vrcp.f32 %v4940_v44 }
0x17ca   :  { %13786 = vrcp.f32 %v5106_v7 }
0x17cc   :  { %v5110_v11 = vpop.permute.xlu1 %5109 }
0x17d3   :  { %v13785_v45 = vpop.eup %13784 }
0x17d4   :  { %v4942_v61 = vmul.f32 %v13785_v45, %v13779_v62  ;;  %v13787_v10 = vpop.eup %13786  ;;  %v13313_v62 = vpack.c.bf16 %v5290_v60, %v5289_v59  ;;  %v3766_v45 = vsel %vm1460_vm8, %v3763_v42, 0.0 }
0x17d5   :  { %v5108_v2 = vmul.f32 %v13787_v10, %v13777_v57  ;;  %v5288_v57 = vld [vmem:[%s16575_s30 + $0x28] sm:$0xff] }
0x17d6   :  { %12747 = vmatmul.mubr.msk.f32.vlgmr.msra.gmra.mrb[60].mxu1 %vm421_vm0, %v4942_v61  ;;  %v13309_v58 = vpack.c.bf16 %v5288_v57, %v5287_v55 }
0x17d7   :  { %12755 = vmatpush3.msra.mxu1 %v5110_v11  ;;  %12756 = vmatprep.mubr.msk.f32.mxu1 %vm14600_vm2, %v14599_v18 }
0x17d8   :  { %13302 = vmatprep.subr.bf16.mxu1 %v13301_v51 }
0x17da   :  { %12757 = vmatmul.mubr.msk.f32.vlgmr.msra.gmra.mrb[62].mxu1 %vm421_vm0, %v5108_v2  ;;  %v11956_v2 = vld [vmem:[#allocation7] ss:$0 sm:$0xff] }
0x17db   :  { %13304 = vmatpush3.bf16.msra.mxu1 %v13301_v51 }
0x17dc   :  { %13306 = vmatprep.subr.bf16.mxu1 %v13305_v56 }
0x17df   :  { %13308 = vmatpush3.bf16.msra.mxu1 %v13305_v56 }
0x17e0   :  { %13310 = vmatprep.subr.bf16.mxu1 %v13309_v58 }
0x17e3   :  { %13312 = vmatpush3.bf16.msra.mxu1 %v13309_v58 }
0x17e4   :  { %13314 = vmatprep.subr.bf16.mxu1 %v13313_v62 }
0x17e7   :  { %13316 = vmatpush3.bf16.msra.mxu1 %v13313_v62 }
0x17e8   :  { %13318 = vmatprep.subr.bf16.mxu1 %v13317_v3 }
0x17eb   :  { %13320 = vmatpush3.bf16.msra.mxu1 %v13317_v3  ;;  %v5475_v3 = vld [vmem:[%s16576_s23] sm:$0xff] }
0x17ec   :  { %13322 = vmatprep.subr.bf16.mxu1 %v13321_v6 }
0x17ef   :  { %13324 = vmatpush3.bf16.msra.mxu1 %v13321_v6  ;;  %v13325_v6 = vpack.c.bf16 %v5476_v35, %v5475_v3 }
0x17f0   :  { %12823 = vmatprep.subr.mxu1 %v14599_v18 }
0x17f1   :  { %13326 = vmatprep.subr.bf16.mxu0 %v13325_v6 }
0x1874   :  { %v4682_v12 = vpop.f32.mrb[56].mxu1 }
0x1875   :  { %v12728_v53 = vpop.f32.mrb[57].mxu1 }
0x187b   :  { %v4849_v13 = vpop.f32.mrb[58].mxu1 }
0x187c   :  { %5186 = vrot.lane.b32.xlu1 %v4849_v13, %s14588_s24  ;;  %v12738_v4 = vpop.f32.mrb[59].mxu1 }
0x18a9   :  { %v5015_v17 = vpop.f32.mrb[60].mxu1 }
0x18aa   :  { %5190 = vrot.lane.b32.xlu0 %v5015_v17, %s14580_s18  ;;  %v12748_v34 = vpop.f32.mrb[61].mxu1 }
0x18ad   :  { %v5181_v21 = vpop.f32.mrb[62].mxu1 }
0x18ae   :  { %3001 = vrot.lane.b32.xlu0 %v2236_v23, %s14613_s14  ;;  %5194 = vrot.lane.b32.xlu1 %v5181_v21, %s14614_s22  ;;  %v12758_v27 = vpop.f32.mrb[63].mxu1 }
0x18b2   :  { %5274 = vrot.lane.b32.xlu0 %v4522_v25, %s14613_s14  ;;  %3005 = vrot.lane.b32.xlu1 %v2997_v22, %s14609_s13 }
0x18ee   :  { %v5187_v39 = vpop.permute.xlu1 %5186 }
0x18ef   :  { %v5197_v5 = vsel %vm421_vm0, %v4682_v12, %v5187_v39 }
0x191c   :  { %v5191_v31 = vpop.permute.xlu0 %5190 }
0x191d   :  { %v5198_v36 = vsel %vm1372_vm4, %v5197_v5, %v5191_v31 }
0x1920   :  { %v5195_v41 = vpop.permute.xlu1 %5194  ;;  %v3002_v38 = vpop.permute.xlu0 %3001 }
0x1921   :  { %v5199_v40 = vsel %vm1374_vm5, %v5198_v36, %v5195_v41  ;;  %v3008_v43 = vsel %vm532_vm1, %v1463_v30, %v3002_v38  ;;  %v11959_v41 = vld [vmem:[#allocation9] ss:$0 sm:$0xff] }
0x1922   :  { %12768 = vmatmul.mubr.msk.f32.vlgmr.msra.gmra.mrb[50].mxu0 %vm532_vm1, %v5199_v40  ;;  %v11960_v40 = vld [vmem:[#allocation10] ss:$0 sm:$0xff] }
0x1923   :  { %13328 = vmatpush3.bf16.msra.mxu0 %v13325_v6 }
0x1924   :  { %v3006_v46 = vpop.permute.xlu1 %3005  ;;  %v5275_v44 = vpop.permute.xlu0 %5274 }
0x1925   :  { %v3010_v48 = vsel %vm3009_vm9, %v3008_v43, %v3006_v46  ;;  %v5281_v61 = vsel %vm532_vm1, %v3766_v45, %v5275_v44 }
0x1926   :  { %12794 = vmatprep.mubr.msk.f32.mxu1 %vm5302_vm10, %v3010_v48 }
0x19f5   :  { %v5269_v7 = vpop.f32.mrb[50].mxu0 }
0x19f6   :  { %v5270_v8 = vadd.f32 %v11915_v19, %v5269_v7  ;;  %v12769_v9 = vpop.f32.mrb[51].mxu0  ;;  %v5478_v7 = vld [vmem:[%s16576_s23 + $0x18] sm:$0xff] }
0x19f8   :  { %5278 = vrot.lane.b32.xlu1 %v5270_v8, %s14609_s13  ;;  %v13329_v8 = vpack.c.bf16 %v5478_v7, %v5477_v37 }
0x19fa   :  { %13330 = vmatprep.subr.bf16.mxu0 %v13329_v8 }
0x19fb   :  { %13332 = vmatpush3.bf16.msra.mxu0 %v13329_v8 }
0x19fc   :  { %12808 = vmatprep.subr.mxu0 %v14599_v18 }
0x1a6a   :  { %v5279_v10 = vpop.permute.xlu1 %5278 }
0x1a6b   :  { %v5282_v11 = vsel %vm3009_vm9, %v5281_v61, %v5279_v10 }
0x1a6c   :  { %12795 = vmatmul.mubr.msk.f32.vlgmr.msra.gmra.mrb[64].mxu1 %vm5302_vm10, %v5282_v11 }
0x1a6d   :  { %12825 = vmatprep.mubr.msk.f32.mxu1 %vm14600_vm2, %v14599_v18 }
0x1b3f   :  { %v12796_v12 = vpop.f32.mrb[64].mxu1 }
0x1b40   :  { %v5381_v53 = vadd.f32 %v12796_v12, %v11956_v2  ;;  %v5375_v13 = vpop.f32.mrb[65].mxu1 }
0x1b41   :  { %v5376_v4 = vadd.f32 %v11956_v2, %v5375_v13  ;;  %v11961_v2 = vld [vmem:[#allocation15] ss:$0 sm:$0xff] }
0x1b42   :  { %v5385_v47 = vadd.f32 %v5381_v53, %v14968_v26  ;;  %v11962_v53 = vld [vmem:[#allocation16] ss:$0 sm:$0xff] }
0x1b43   :  { %v5384_v28 = vadd.f32 %v5376_v4, %v14963_v24 }
0x1b44   :  { %v5391_v14 = vsel %vm532_vm1, %v5385_v47, 0.0 }
0x1b45   :  { %5392 = vadd.xlane.f32.xlu1 %v5391_v14  ;;  %v5388_v16 = vsel %vm532_vm1, %v5384_v28, 0.0 }
0x1b46   :  { %5389 = vadd.xlane.f32.xlu0 %v5388_v16 }
0x1bd2   :  { %v5393_v17 = vpop.xlane.xlu1 %5392 }
0x1bd3   :  { %v5396_v34 = vmul.f32 0.03125, %v5393_v17  ;;  %v5390_v23 = vpop.xlane.xlu0 %5389  ;;  %v11963_v17 = vld [vmem:[#allocation12] ss:$0 sm:$0xff] }
0x1bd4   :  { %v5395_v19 = vmul.f32 0.03125, %v5390_v23 }
0x1bd5   :  { %v5398_v20 = vsub.f32 %v5385_v47, %v5396_v34 }
0x1bd6   :  { %v5397_v21 = vsub.f32 %v5384_v28, %v5395_v19 }
0x1bd7   :  { %v5400_v25 = vmul.f32 %v5398_v20, %v5398_v20 }
0x1bd8   :  { %v5399_v27 = vmul.f32 %v5397_v21, %v5397_v21 }
0x1bd9   :  { %v5404_v26 = vsel %vm532_vm1, %v5400_v25, 0.0 }
0x1bda   :  { %v5401_v22 = vsel %vm532_vm1, %v5399_v27, 0.0 }
0x1bdb   :  { %5402 = vadd.xlane.f32.xlu0 %v5401_v22 }
0x1bdf   :  { %5405 = vadd.xlane.f32.xlu0 %v5404_v26 }
0x1c68   :  { %v5403_v24 = vpop.xlane.xlu0 %5402 }
0x1c69   :  { %v5407_v15 = vmul.f32 0.03125, %v5403_v24 }
0x1c6b   :  { %v5409_v39 = vadd.f32 1e-05, %v5407_v15 }
0x1c6c   :  { %v5406_v31 = vpop.xlane.xlu0 %5405 }
0x1c6d   :  { %13788 = vrsqrt.f32 %v5409_v39  ;;  %v5408_v32 = vmul.f32 0.03125, %v5406_v31 }
0x1c6f   :  { %v5410_v5 = vadd.f32 1e-05, %v5408_v32 }
0x1c71   :  { %13790 = vrsqrt.f32 %v5410_v5 }
0x1c77   :  { %v13789_v36 = vpop.eup %13788 }
0x1c78   :  { %v5413_v38 = vmul.f32 %v13789_v36, %v5397_v21 }
0x1c7a   :  { %v5421_v30 = vmul.f32 %v11959_v41, %v5413_v38 }
0x1c7b   :  { %v13791_v43 = vpop.eup %13790 }
0x1c7c   :  { %v15604_v46 = vadd.f32 %v11960_v40, %v5421_v30  ;;  %v5414_v48 = vmul.f32 %v13791_v43, %v5398_v20 }
0x1c7e   :  { %v5433_v49 = vsel %vm532_vm1, %v15604_v46, 0.0  ;;  %v5422_v50 = vmul.f32 %v11959_v41, %v5414_v48 }
0x1c7f   :  { %5434 = vadd.xlane.f32.xlu1 %v5433_v49 }
0x1c80   :  { %v15608_v52 = vadd.f32 %v11960_v40, %v5422_v50 }
0x1c82   :  { %v5436_v51 = vsel %vm532_vm1, %v15608_v52, 0.0 }
0x1c83   :  { %5437 = vadd.xlane.f32.xlu0 %v5436_v51 }
0x1d0c   :  { %v5435_v54 = vpop.xlane.xlu1 %5434 }
0x1d0d   :  { %v5439_v56 = vmul.f32 0.03125, %v5435_v54 }
0x1d0f   :  { %v5441_v55 = vsub.f32 %v15604_v46, %v5439_v56 }
0x1d10   :  { %v5438_v57 = vpop.xlane.xlu0 %5437 }
0x1d11   :  { %v5440_v58 = vmul.f32 0.03125, %v5438_v57  ;;  %v5443_v59 = vmul.f32 %v5441_v55, %v5441_v55 }
0x1d13   :  { %v5442_v60 = vsub.f32 %v15608_v52, %v5440_v58  ;;  %v5445_v62 = vsel %vm532_vm1, %v5443_v59, 0.0 }
0x1d14   :  { %5446 = vadd.xlane.f32.xlu1 %v5445_v62 }
0x1d15   :  { %v5444_v63 = vmul.f32 %v5442_v60, %v5442_v60 }
0x1d17   :  { %v5448_v0 = vsel %vm532_vm1, %v5444_v63, 0.0 }
0x1d18   :  { %5449 = vadd.xlane.f32.xlu0 %v5448_v0 }
0x1da1   :  { %v5447_v9 = vpop.xlane.xlu1 %5446 }
0x1da2   :  { %v5451_v42 = vmul.f32 0.03125, %v5447_v9 }
0x1da4   :  { %v5453_v44 = vadd.f32 1e-05, %v5451_v42 }
0x1da5   :  { %v5450_v45 = vpop.xlane.xlu0 %5449 }
0x1da6   :  { %13792 = vrsqrt.f32 %v5453_v44  ;;  %v5452_v61 = vmul.f32 0.03125, %v5450_v45 }
0x1da8   :  { %v5454_v10 = vadd.f32 1e-05, %v5452_v61 }
0x1daa   :  { %13794 = vrsqrt.f32 %v5454_v10 }
0x1db0   :  { %v13793_v11 = vpop.eup %13792 }
0x1db1   :  { %v5457_v12 = vmul.f32 %v13793_v11, %v5441_v55 }
0x1db3   :  { %v5465_v13 = vmul.f32 %v11961_v2, %v5457_v12 }
0x1db4   :  { %v13795_v4 = vpop.eup %13794 }
0x1db5   :  { %v5458_v47 = vmul.f32 %v13795_v4, %v5442_v60  ;;  %v5473_v28 = vadd.f32 %v11962_v53, %v5465_v13 }
0x1db7   :  { %v5466_v14 = vmul.f32 %v11961_v2, %v5458_v47  ;;  %12805 = vmatprep.mubr.msk.f32.mxu0 %vm532_vm1, %v5473_v28 }
0x1db9   :  { %v5474_v16 = vadd.f32 %v11962_v53, %v5466_v14 }
0x1dbb   :  { %12806 = vmatmul.mubr.msk.f32.vlgmr.msra.gmra.mrb[52].mxu0 %vm532_vm1, %v5474_v16 }
0x1dbc   :  { %12810 = vmatprep.mubr.msk.f32.mxu0 %vm14600_vm2, %v14599_v18 }
0x1e8e   :  { %v12807_v34 = vpop.f32.mrb[52].mxu0 }
0x1e8f   :  { %v5558_v23 = vpop.f32.mrb[53].mxu0  ;;  %v15639_v20 = vadd.f32 %v12807_v34, %v11963_v17 }
0x1e90   :  { %v15625_v19 = vadd.f32 %v11963_v17, %v5558_v23 }
0x1e92   :  { %5568 = vrot.lane.b32.xlu1 %v15625_v19, %s14602_s6 }
0x1e96   :  { %5734 = vrot.lane.b32.xlu1 %v15625_v19, %s14604_s8 }
0x1e9a   :  { %5732 = vrot.lane.b32.xlu1 %v15625_v19, %s14601_s7 }
0x1e9e   :  { %5900 = vrot.lane.b32.xlu1 %v15625_v19, %s14603_s9 }
0x1ea2   :  { %5898 = vrot.lane.b32.xlu1 %v15625_v19, %s14606_s11 }
0x1ea6   :  { %6064 = vrot.lane.b32.xlu1 %v15625_v19, %s14607_s29 }
0x1eaa   :  { %6412 = vrot.lane.b32.xlu1 %v15639_v20, %s14604_s8 }
0x1eae   :  { %6578 = vrot.lane.b32.xlu1 %v15639_v20, %s14603_s9 }
0x1eb2   :  { %6744 = vrot.lane.b32.xlu1 %v15639_v20, %s14605_s10 }
0x1f04   :  { %v5569_v21 = vpop.permute.xlu1 %5568 }
0x1f05   :  { %12809 = vmatpush3.xpose.msk.msra.mxu0 %vm421_vm0, %v5569_v21 }
0x1f06   :  { %12813 = vmatprep.subr.mxu0 %v14599_v18 }
0x1f08   :  { %12811 = vmatmul.mubr.msk.f32.vlgmr.msra.gmra.mrb[54].mxu0 %vm421_vm0, %v15625_v19  ;;  %v5735_v5 = vpop.permute.xlu1 %5734 }
0x1f09   :  { %12815 = vmatprep.mubr.msk.f32.mxu0 %vm14600_vm2, %v14599_v18 }
0x1f0c   :  { %v5733_v41 = vpop.permute.xlu1 %5732 }
0x1f10   :  { %v5901_v40 = vpop.permute.xlu1 %5900 }
0x1f14   :  { %v5899_v48 = vpop.permute.xlu1 %5898 }
0x1f18   :  { %v6065_v50 = vpop.permute.xlu1 %6064 }
0x1f1c   :  { %v6413_v54 = vpop.permute.xlu1 %6412 }
0x1f20   :  { %v6579_v55 = vpop.permute.xlu1 %6578 }
0x1f24   :  { %v6745_v58 = vpop.permute.xlu1 %6744 }
0x1fdb   :  { %v5640_v27 = vpop.f32.mrb[54].mxu0 }
0x1fdc   :  { %v5644_v22 = vmul.f32 0.35355338, %v5640_v27  ;;  %v12812_v25 = vpop.f32.mrb[55].mxu0 }
0x1fde   :  { %v5645_v26 = vsel %vm421_vm0, %v5644_v22, -inf }
0x1fdf   :  { %5646 = vmax.xlane.f32.xlu0 %v5645_v26 }
0x206c   :  { %v5647_v24 = vpop.xlane.xlu0 %5646 }
0x206d   :  { %v5648_v15 = vsub.f32 %v5644_v22, %v5647_v24 }
0x206f   :  { %v5649_v39 = vmul.f32 1.442695, %v5648_v15 }
0x2071   :  { %13796 = vpow2.f32 %v5649_v39 }
0x207b   :  { %v13797_v31 = vpop.eup %13796 }
0x207c   :  { %v5651_v32 = vsel %vm421_vm0, %v13797_v31, 0.0 }
0x207d   :  { %5652 = vadd.xlane.f32.xlu0 %v5651_v32 }
0x2093   :  { %5656 = vrot.lane.b32.xlu0 %v15625_v19, %s14609_s13 }
0x2097   :  { %6066 = vrot.lane.b32.xlu0 %v15625_v19, %s14605_s10 }
0x209b   :  { %6246 = vrot.lane.b32.xlu0 %v15639_v20, %s14602_s6 }
0x209f   :  { %6410 = vrot.lane.b32.xlu0 %v15639_v20, %s14601_s7 }
0x20a3   :  { %6576 = vrot.lane.b32.xlu0 %v15639_v20, %s14606_s11 }
0x20a7   :  { %6742 = vrot.lane.b32.xlu0 %v15639_v20, %s14607_s29 }
0x210a   :  { %v5653_v36 = vpop.xlane.xlu0 %5652 }
0x210b   :  { %13798 = vrcp.f32 %v5653_v36 }
0x210e   :  { %v5657_v38 = vpop.permute.xlu0 %5656 }
0x210f   :  { %12814 = vmatpush3.msra.mxu0 %v5657_v38 }
0x2110   :  { %12818 = vmatprep.subr.mxu0 %v14599_v18 }
0x2112   :  { %v6067_v49 = vpop.permute.xlu0 %6066 }
0x2115   :  { %v13799_v30 = vpop.eup %13798 }
0x2116   :  { %v5655_v43 = vmul.f32 %v13799_v30, %v13797_v31  ;;  %v6247_v51 = vpop.permute.xlu0 %6246 }
0x2118   :  { %12816 = vmatmul.mubr.msk.f32.vlgmr.msra.gmra.mrb[56].mxu0 %vm421_vm0, %v5655_v43 }
0x2119   :  { %12819 = vmatpush3.xpose.msk.msra.mxu0 %vm421_vm0, %v5735_v5  ;;  %12820 = vmatprep.mubr.msk.f32.mxu0 %vm14600_vm2, %v14599_v18 }
0x211a   :  { %12828 = vmatprep.subr.mxu0 %v14599_v18  ;;  %v6411_v56 = vpop.permute.xlu0 %6410 }
0x211c   :  { %12821 = vmatmul.mubr.msk.f32.vlgmr.msra.gmra.mrb[58].mxu0 %vm421_vm0, %v5733_v41 }
0x211d   :  { %12829 = vmatpush3.xpose.msk.msra.mxu0 %vm421_vm0, %v5901_v40  ;;  %12830 = vmatprep.mubr.msk.f32.mxu0 %vm14600_vm2, %v14599_v18 }
0x211e   :  { %12838 = vmatprep.subr.mxu0 %v14599_v18  ;;  %v6577_v57 = vpop.permute.xlu0 %6576 }
0x2120   :  { %12831 = vmatmul.mubr.msk.f32.vlgmr.msra.gmra.mrb[60].mxu0 %vm421_vm0, %v5899_v48 }
0x2121   :  { %12839 = vmatpush3.xpose.msk.msra.mxu0 %vm421_vm0, %v6067_v49  ;;  %12840 = vmatprep.mubr.msk.f32.mxu0 %vm14600_vm2, %v14599_v18 }
0x2122   :  { %12848 = vmatprep.subr.mxu0 %v14599_v18  ;;  %v6743_v59 = vpop.permute.xlu0 %6742 }
0x2124   :  { %12841 = vmatmul.mubr.msk.f32.vlgmr.msra.gmra.mrb[62].mxu0 %vm421_vm0, %v6065_v50 }
0x2125   :  { %12849 = vmatpush3.xpose.msk.msra.mxu0 %vm421_vm0, %v6247_v51  ;;  %12850 = vmatprep.mubr.msk.f32.mxu0 %vm14600_vm2, %v14599_v18 }
0x2126   :  { %12858 = vmatprep.subr.mxu0 %v14599_v18 }
0x2128   :  { %12851 = vmatmul.mubr.msk.f32.vlgmr.msra.gmra.mrb[64].mxu0 %vm421_vm0, %v15639_v20 }
0x2129   :  { %12859 = vmatpush3.xpose.msk.msra.mxu0 %vm421_vm0, %v6413_v54  ;;  %12860 = vmatprep.mubr.msk.f32.mxu0 %vm14600_vm2, %v14599_v18 }
0x212a   :  { %12868 = vmatprep.subr.mxu0 %v14599_v18 }
0x212c   :  { %12861 = vmatmul.mubr.msk.f32.vlgmr.msra.gmra.mrb[66].mxu0 %vm421_vm0, %v6411_v56 }
0x212d   :  { %12869 = vmatpush3.xpose.msk.msra.mxu0 %vm421_vm0, %v6579_v55  ;;  %12870 = vmatprep.mubr.msk.f32.mxu0 %vm14600_vm2, %v14599_v18 }
0x212e   :  { %12878 = vmatprep.subr.mxu0 %v14599_v18 }
0x2130   :  { %12871 = vmatmul.mubr.msk.f32.vlgmr.msra.gmra.mrb[68].mxu0 %vm421_vm0, %v6577_v57 }
0x2131   :  { %12879 = vmatpush3.xpose.msk.msra.mxu0 %vm421_vm0, %v6745_v58  ;;  %12880 = vmatprep.mubr.msk.f32.mxu0 %vm14600_vm2, %v14599_v18 }
0x2134   :  { %12881 = vmatmul.mubr.msk.f32.vlgmr.msra.gmra.mrb[70].mxu0 %vm421_vm0, %v6743_v59 }
0x21eb   :  { %v15704_v60 = vpop.f32.mrb[56].mxu0 }
0x21ec   :  { %v12817_v62 = vpop.f32.mrb[57].mxu0 }
0x21ef   :  { %v5806_v63 = vpop.f32.mrb[58].mxu0 }
0x21f0   :  { %v5810_v0 = vmul.f32 0.35355338, %v5806_v63  ;;  %v12822_v3 = vpop.f32.mrb[59].mxu0 }
0x21f2   :  { %v5811_v35 = vsel %vm421_vm0, %v5810_v0, -inf }
0x21f3   :  { %5812 = vmax.xlane.f32.xlu1 %v5811_v35  ;;  %v5972_v37 = vpop.f32.mrb[60].mxu0 }
0x21f4   :  { %v5976_v6 = vmul.f32 0.35355338, %v5972_v37  ;;  %v12832_v7 = vpop.f32.mrb[61].mxu0 }
0x21f6   :  { %v5977_v8 = vsel %vm421_vm0, %v5976_v6, -inf }
0x21f7   :  { %5978 = vmax.xlane.f32.xlu0 %v5977_v8  ;;  %v6138_v9 = vpop.f32.mrb[62].mxu0 }
0x21f8   :  { %v6142_v42 = vmul.f32 0.35355338, %v6138_v9  ;;  %v12842_v44 = vpop.f32.mrb[63].mxu0 }
0x21fa   :  { %v6143_v45 = vsel %vm421_vm0, %v6142_v42, -inf }
0x21fb   :  { %6144 = vmax.xlane.f32.xlu0 %v6143_v45  ;;  %v6318_v61 = vpop.f32.mrb[64].mxu0 }
0x21fc   :  { %v6322_v10 = vmul.f32 0.35355338, %v6318_v61  ;;  %v12852_v11 = vpop.f32.mrb[65].mxu0 }
0x21fe   :  { %v6323_v2 = vsel %vm421_vm0, %v6322_v10, -inf }
0x21ff   :  { %6324 = vmax.xlane.f32.xlu1 %v6323_v2  ;;  %v6484_v12 = vpop.f32.mrb[66].mxu0 }
0x2200   :  { %v6488_v53 = vmul.f32 0.35355338, %v6484_v12  ;;  %v12862_v13 = vpop.f32.mrb[67].mxu0 }
0x2202   :  { %v6489_v4 = vsel %vm421_vm0, %v6488_v53, -inf }
0x2203   :  { %6490 = vmax.xlane.f32.xlu0 %v6489_v4  ;;  %v6650_v47 = vpop.f32.mrb[68].mxu0 }
0x2204   :  { %v6654_v28 = vmul.f32 0.35355338, %v6650_v47  ;;  %v12872_v14 = vpop.f32.mrb[69].mxu0 }
0x2206   :  { %v6655_v16 = vsel %vm421_vm0, %v6654_v28, -inf }
0x2207   :  { %6656 = vmax.xlane.f32.xlu1 %v6655_v16  ;;  %v6816_v17 = vpop.f32.mrb[70].mxu0 }
0x2208   :  { %v6820_v34 = vmul.f32 0.35355338, %v6816_v17  ;;  %v12882_v23 = vpop.f32.mrb[71].mxu0 }
0x220a   :  { %v6821_v21 = vsel %vm421_vm0, %v6820_v34, -inf }
0x220b   :  { %6822 = vmax.xlane.f32.xlu0 %v6821_v21 }
0x2218   :  { %5988 = vrot.lane.b32.xlu1 %v15625_v19, %s14610_s15 }
0x221c   :  { %6154 = vrot.lane.b32.xlu1 %v15625_v19, %s14611_s0 }
0x2221   :  { %5822 = vrot.lane.b32.xlu0 %v15625_v19, %s14608_s19 }
0x2280   :  { %v5813_v27 = vpop.xlane.xlu1 %5812 }
0x2281   :  { %v5814_v22 = vsub.f32 %v5810_v0, %v5813_v27 }
0x2283   :  { %v5815_v25 = vmul.f32 1.442695, %v5814_v22 }
0x2284   :  { %v5979_v26 = vpop.xlane.xlu0 %5978 }
0x2285   :  { %13800 = vpow2.f32 %v5815_v25  ;;  %v5980_v24 = vsub.f32 %v5976_v6, %v5979_v26 }
0x2287   :  { %v5981_v15 = vmul.f32 1.442695, %v5980_v24 }
0x2288   :  { %v6145_v31 = vpop.xlane.xlu0 %6144 }
0x2289   :  { %13802 = vpow2.f32 %v5981_v15  ;;  %v6146_v40 = vsub.f32 %v6142_v42, %v6145_v31 }
0x228b   :  { %v6147_v48 = vmul.f32 1.442695, %v6146_v40  ;;  %v6925_v40 = vld [vmem:[%s16577_s26 + $0x10] sm:$0xff] }
0x228c   :  { %v6325_v30 = vpop.xlane.xlu1 %6324 }
0x228d   :  { %v6326_v43 = vsub.f32 %v6322_v10, %v6325_v30  ;;  %13804 = vpow2.f32 %v6147_v48  ;;  %v6926_v30 = vld [vmem:[%s16577_s26 + $0x18] sm:$0xff] }
0x228e   :  { %v13337_v48 = vpack.c.bf16 %v6926_v30, %v6925_v40  ;;  %v7165_v30 = vld [vmem:[%s16579_s12 + $0x40] sm:$0xff] }
0x228f   :  { %v13801_v39 = vpop.eup %13800  ;;  %v6327_v51 = vmul.f32 1.442695, %v6326_v43 }
0x2290   :  { %v5817_v32 = vsel %vm421_vm0, %v13801_v39, 0.0  ;;  %v6491_v36 = vpop.xlane.xlu0 %6490 }
0x2291   :  { %5818 = vadd.xlane.f32.xlu1 %v5817_v32  ;;  %v6492_v49 = vsub.f32 %v6488_v53, %v6491_v36  ;;  %13806 = vpow2.f32 %v6327_v51  ;;  %v6923_v36 = vld [vmem:[%s16577_s26] sm:$0xff] }
0x2293   :  { %v13803_v5 = vpop.eup %13802  ;;  %v6493_v56 = vmul.f32 1.442695, %v6492_v49 }
0x2294   :  { %v5983_v41 = vsel %vm421_vm0, %v13803_v5, 0.0  ;;  %v6657_v50 = vpop.xlane.xlu1 %6656 }
0x2295   :  { %5984 = vadd.xlane.f32.xlu0 %v5983_v41  ;;  %v6658_v54 = vsub.f32 %v6654_v28, %v6657_v50  ;;  %13808 = vpow2.f32 %v6493_v56  ;;  %v6924_v41 = vld [vmem:[%s16577_s26 + $0x8] sm:$0xff] }
0x2297   :  { %v6659_v57 = vmul.f32 1.442695, %v6658_v54  ;;  %v13805_v59 = vpop.eup %13804 }
0x2298   :  { %v6823_v38 = vpop.xlane.xlu0 %6822  ;;  %v6149_v63 = vsel %vm421_vm0, %v13805_v59, 0.0  ;;  %v5989_v9 = vpop.permute.xlu1 %5988 }
0x2299   :  { %v6824_v55 = vsub.f32 %v6820_v34, %v6823_v38  ;;  %13810 = vpow2.f32 %v6659_v57  ;;  %v13333_v38 = vpack.c.bf16 %v6924_v41, %v6923_v36  ;;  %v7162_v36 = vld [vmem:[%s16579_s12 + $0x28] sm:$0xff] }
0x229b   :  { %v6825_v58 = vmul.f32 1.442695, %v6824_v55  ;;  %v13807_v62 = vpop.eup %13806  ;;  %13334 = vmatprep.subr.bf16.mxu0 %v13333_v38 }
0x229c   :  { %v5823_v19 = vpop.permute.xlu0 %5822  ;;  %v6329_v37 = vsel %vm421_vm0, %v13807_v62, 0.0  ;;  %v6155_v42 = vpop.permute.xlu1 %6154  ;;  %13336 = vmatpush3.bf16.msra.mxu0 %v13333_v38  ;;  %v7163_v38 = vld [vmem:[%s16579_s12 + $0x30] sm:$0xff] }
0x229d   :  { %12824 = vmatpush3.msra.mxu1 %v5823_v19  ;;  %13812 = vpow2.f32 %v6825_v58  ;;  %13338 = vmatprep.subr.bf16.mxu0 %v13337_v48 }
0x229e   :  { %12833 = vmatprep.subr.mxu1 %v14599_v18 }
0x229f   :  { %v13809_v0 = vpop.eup %13808 }
0x22a0   :  { %v6495_v35 = vsel %vm421_vm0, %v13809_v0, 0.0  ;;  %13340 = vmatpush3.bf16.msra.mxu0 %v13337_v48 }
0x22a2   :  { %6500 = vrot.lane.b32.xlu1 %v15639_v20, %s14608_s19 }
0x22a3   :  { %v13811_v3 = vpop.eup %13810 }
0x22a4   :  { %v6661_v8 = vsel %vm421_vm0, %v13811_v3, 0.0 }
0x22a7   :  { %v15729_v6 = vpop.eup %13812 }
0x22a8   :  { %v6827_v7 = vsel %vm421_vm0, %v15729_v6, 0.0 }
0x22ab   :  { %6334 = vrot.lane.b32.xlu0 %v15639_v20, %s14609_s13 }
0x22c6   :  { %6150 = vadd.xlane.f32.xlu1 %v6149_v63 }
0x22ca   :  { %6496 = vadd.xlane.f32.xlu1 %v6495_v35  ;;  %6330 = vadd.xlane.f32.xlu0 %v6329_v37 }
0x22ce   :  { %6828 = vadd.xlane.f32.xlu1 %v6827_v7  ;;  %6662 = vadd.xlane.f32.xlu0 %v6661_v8 }
0x22df   :  { %6832 = vrot.lane.b32.xlu1 %v15639_v20, %s14611_s0 }
0x22e4   :  { %6666 = vrot.lane.b32.xlu0 %v15639_v20, %s14610_s15 }
0x231e   :  { %v5819_v44 = vpop.xlane.xlu1 %5818 }
0x231f   :  { %13814 = vrcp.f32 %v5819_v44 }
0x2322   :  { %v5985_v45 = vpop.xlane.xlu0 %5984  ;;  %v6501_v20 = vpop.permute.xlu1 %6500 }
0x2323   :  { %13816 = vrcp.f32 %v5985_v45 }
0x2326   :  { %v6335_v12 = vpop.permute.xlu0 %6334 }
0x2329   :  { %v13815_v61 = vpop.eup %13814 }
0x232a   :  { %v5821_v10 = vmul.f32 %v13815_v61, %v13801_v39 }
0x232c   :  { %12826 = vmatmul.mubr.msk.f32.vlgmr.msra.gmra.mrb[66].mxu1 %vm421_vm0, %v5821_v10 }
0x232d   :  { %v13817_v11 = vpop.eup %13816  ;;  %12834 = vmatpush3.msra.mxu1 %v5989_v9  ;;  %12835 = vmatprep.mubr.msk.f32.mxu1 %vm14600_vm2, %v14599_v18 }
0x232e   :  { %12843 = vmatprep.subr.mxu1 %v14599_v18  ;;  %v5987_v2 = vmul.f32 %v13817_v11, %v13803_v5 }
0x2330   :  { %12836 = vmatmul.mubr.msk.f32.vlgmr.msra.gmra.mrb[68].mxu1 %vm421_vm0, %v5987_v2 }
0x2331   :  { %12844 = vmatpush3.msra.mxu1 %v6155_v42  ;;  %12845 = vmatprep.mubr.msk.f32.mxu1 %vm14600_vm2, %v14599_v18 }
0x2332   :  { %12853 = vmatprep.subr.mxu1 %v14599_v18 }
0x2353   :  { %v6151_v53 = vpop.xlane.xlu1 %6150 }
0x2354   :  { %13818 = vrcp.f32 %v6151_v53 }
0x2357   :  { %v6331_v13 = vpop.xlane.xlu0 %6330  ;;  %v6497_v4 = vpop.xlane.xlu1 %6496 }
0x2358   :  { %13820 = vrcp.f32 %v6331_v13 }
0x2359   :  { %13822 = vrcp.f32 %v6497_v4 }
0x235b   :  { %v6663_v47 = vpop.xlane.xlu0 %6662  ;;  %v6829_v14 = vpop.xlane.xlu1 %6828 }
0x235c   :  { %13824 = vrcp.f32 %v6663_v47 }
0x235d   :  { %13826 = vrcp.f32 %v6829_v14 }
0x235e   :  { %v13819_v28 = vpop.eup %13818 }
0x235f   :  { %v6153_v16 = vmul.f32 %v13819_v28, %v13805_v59  ;;  %v6667_v22 = vpop.permute.xlu0 %6666  ;;  %v6833_v24 = vpop.permute.xlu1 %6832 }
0x2361   :  { %12846 = vmatmul.mubr.msk.f32.vlgmr.msra.gmra.mrb[70].mxu1 %vm421_vm0, %v6153_v16 }
0x2362   :  { %v13821_v17 = vpop.eup %13820  ;;  %12854 = vmatpush3.msra.mxu1 %v6335_v12  ;;  %12855 = vmatprep.mubr.msk.f32.mxu1 %vm14600_vm2, %v14599_v18 }
0x2363   :  { %12863 = vmatprep.subr.mxu1 %v14599_v18  ;;  %v6333_v34 = vmul.f32 %v13821_v17, %v13807_v62  ;;  %v13823_v23 = vpop.eup %13822 }
0x2364   :  { %v6499_v21 = vmul.f32 %v13823_v23, %v13809_v0  ;;  %v7064_v23 = vld [vmem:[%s16578_s28 + $0x8] sm:$0xff] }
0x2365   :  { %12856 = vmatmul.mubr.msk.f32.vlgmr.msra.gmra.mrb[72].mxu1 %vm421_vm0, %v6333_v34  ;;  %v7063_v34 = vld [vmem:[%s16578_s28] sm:$0xff] }
0x2366   :  { %12864 = vmatpush3.msra.mxu1 %v6501_v20  ;;  %12865 = vmatprep.mubr.msk.f32.mxu1 %vm14600_vm2, %v14599_v18  ;;  %v13825_v27 = vpop.eup %13824 }
0x2367   :  { %12873 = vmatprep.subr.mxu1 %v14599_v18  ;;  %v6665_v25 = vmul.f32 %v13825_v27, %v13811_v3  ;;  %v13827_v26 = vpop.eup %13826  ;;  %v13341_v27 = vpack.c.bf16 %v7064_v23, %v7063_v34 }
0x2368   :  { %v6831_v15 = vmul.f32 %v13827_v26, %v15729_v6  ;;  %v7157_v26 = vld [vmem:[%s16579_s12] sm:$0xff] }
0x2369   :  { %12866 = vmatmul.mubr.msk.f32.vlgmr.msra.gmra.mrb[74].mxu1 %vm421_vm0, %v6499_v21  ;;  %v7065_v21 = vld [vmem:[%s16578_s28 + $0x10] sm:$0xff] }
0x236a   :  { %12874 = vmatpush3.msra.mxu1 %v6667_v22  ;;  %12875 = vmatprep.mubr.msk.f32.mxu1 %vm14600_vm2, %v14599_v18  ;;  %v7066_v22 = vld [vmem:[%s16578_s28 + $0x18] sm:$0xff] }
0x236b   :  { %12883 = vmatprep.subr.mxu1 %v14599_v18 }
0x236d   :  { %12876 = vmatmul.mubr.msk.f32.vlgmr.msra.gmra.mrb[76].mxu1 %vm421_vm0, %v6665_v25  ;;  %v13345_v25 = vpack.c.bf16 %v7066_v22, %v7065_v21 }
0x236e   :  { %12884 = vmatpush3.msra.mxu1 %v6833_v24  ;;  %12885 = vmatprep.mubr.msk.f32.mxu1 %vm14600_vm2, %v14599_v18  ;;  %v7158_v24 = vld [vmem:[%s16579_s12 + $0x8] sm:$0xff] }
0x236f   :  { %13342 = vmatprep.subr.bf16.mxu1 %v13341_v27 }
0x2371   :  { %12886 = vmatmul.mubr.msk.f32.vlgmr.msra.gmra.mrb[78].mxu1 %vm421_vm0, %v6831_v15  ;;  %v7159_v15 = vld [vmem:[%s16579_s12 + $0x10] sm:$0xff] }
0x2372   :  { %13344 = vmatpush3.bf16.msra.mxu1 %v13341_v27 }
0x2373   :  { %13346 = vmatprep.subr.bf16.mxu1 %v13345_v25 }
0x2376   :  { %13348 = vmatpush3.bf16.msra.mxu1 %v13345_v25 }
0x23ff   :  { %v5894_v39 = vpop.f32.mrb[66].mxu1 }
0x2400   :  { %6231 = vrot.lane.b32.xlu0 %v5894_v39, %s14588_s24  ;;  %v12827_v31 = vpop.f32.mrb[67].mxu1  ;;  %v13349_v39 = vpack.c.bf16 %v7158_v24, %v7157_v26 }
0x2401   :  { %v7160_v31 = vld [vmem:[%s16579_s12 + $0x18] sm:$0xff] }
0x2402   :  { %13350 = vmatprep.subr.bf16.mxu0 %v13349_v39 }
0x2403   :  { %v6060_v32 = vpop.f32.mrb[68].mxu1 }
0x2404   :  { %6235 = vrot.lane.b32.xlu1 %v6060_v32, %s14580_s18  ;;  %v12837_v5 = vpop.f32.mrb[69].mxu1  ;;  %v13353_v32 = vpack.c.bf16 %v7160_v31, %v7159_v15 }
0x2405   :  { %v7161_v5 = vld [vmem:[%s16579_s12 + $0x20] sm:$0xff] }
0x2406   :  { %v13357_v41 = vpack.c.bf16 %v7162_v36, %v7161_v5  ;;  %v12001_v5 = vld [vmem:[%s16576_s23 + $0x20] sm:$0xff]  ;;  %v12002_v36 = vld [vmem:[%s16576_s23 + $0x28] sm:$0xff] }
0x2434   :  { %v6226_v19 = vpop.f32.mrb[70].mxu1 }
0x2435   :  { %6239 = vrot.lane.b32.xlu1 %v6226_v19, %s14614_s22  ;;  %v12847_v43 = vpop.f32.mrb[71].mxu1  ;;  %v7164_v19 = vld [vmem:[%s16579_s12 + $0x38] sm:$0xff] }
0x2436   :  { %v13361_v40 = vpack.c.bf16 %v7164_v19, %v7163_v38  ;;  %v7166_v43 = vld [vmem:[%s16579_s12 + $0x48] sm:$0xff]  ;;  %v13381_v38 = vpack.c.bf16 %v12002_v36, %v12001_v5  ;;  %v12004_v19 = vld [vmem:[%s16576_s23 + $0x38] sm:$0xff] }
0x2437   :  { %v13365_v48 = vpack.c.bf16 %v7166_v43, %v7165_v30 }
0x2438   :  { %v6406_v49 = vpop.f32.mrb[72].mxu1  ;;  %13382 = vmatprep.subr.bf16.mxu1 %v13381_v38 }
0x2439   :  { %v12857_v50 = vpop.f32.mrb[73].mxu1 }
0x243a   :  { %v7168_v50 = vld [vmem:[%s16579_s12 + $0x58] sm:$0xff] }
0x243c   :  { %v6572_v51 = vpop.f32.mrb[74].mxu1 }
0x243d   :  { %6909 = vrot.lane.b32.xlu0 %v6572_v51, %s14588_s24  ;;  %v12867_v54 = vpop.f32.mrb[75].mxu1 }
0x243e   :  { %v7169_v54 = vld [vmem:[%s16579_s12 + $0x60] sm:$0xff] }
0x2440   :  { %v6738_v56 = vpop.f32.mrb[76].mxu1 }
0x2441   :  { %6913 = vrot.lane.b32.xlu0 %v6738_v56, %s14580_s18  ;;  %v12877_v55 = vpop.f32.mrb[77].mxu1  ;;  %v7170_v56 = vld [vmem:[%s16579_s12 + $0x68] sm:$0xff] }
0x2442   :  { %v13373_v55 = vpack.c.bf16 %v7170_v56, %v7169_v54  ;;  %v11999_v56 = vld [vmem:[#allocation15 + $0x1] ss:$0 sm:$0xff] }
0x2444   :  { %v6904_v57 = vpop.f32.mrb[78].mxu1 }
0x2445   :  { %6917 = vrot.lane.b32.xlu1 %v6904_v57, %s14614_s22  ;;  %v12887_v58 = vpop.f32.mrb[79].mxu1 }
0x2472   :  { %v6232_v59 = vpop.permute.xlu0 %6231 }
0x2473   :  { %v6242_v63 = vsel %vm421_vm0, %v15704_v60, %v6232_v59  ;;  %v11992_v60 = vld [vmem:[#allocation13] ss:$0 sm:$0xff] }
0x2476   :  { %v6236_v62 = vpop.permute.xlu1 %6235 }
0x2477   :  { %v6243_v0 = vsel %vm1372_vm4, %v6242_v63, %v6236_v62 }
0x24a7   :  { %v6240_v3 = vpop.permute.xlu1 %6239 }
0x24a8   :  { %v6244_v35 = vsel %vm1374_vm5, %v6243_v0, %v6240_v3 }
0x24a9   :  { %12896 = vmatprep.mubr.msk.f32.mxu0 %vm532_vm1, %v6244_v35  ;;  %v11993_v35 = vld [vmem:[#allocation18] ss:$0 sm:$0xff] }
0x24af   :  { %v6910_v37 = vpop.permute.xlu0 %6909 }
0x24b0   :  { %v6920_v7 = vsel %vm421_vm0, %v6406_v49, %v6910_v37  ;;  %v7167_v49 = vld [vmem:[%s16579_s12 + $0x50] sm:$0xff] }
0x24b1   :  { %v13369_v51 = vpack.c.bf16 %v7168_v50, %v7167_v49 }
0x24b3   :  { %v6914_v6 = vpop.permute.xlu0 %6913 }
0x24b4   :  { %v6921_v8 = vsel %vm1372_vm4, %v6920_v7, %v6914_v6  ;;  %v11994_v6 = vld [vmem:[#allocation19] ss:$0 sm:$0xff] }
0x24b7   :  { %v6918_v9 = vpop.permute.xlu1 %6917 }
0x24b8   :  { %v6922_v42 = vsel %vm1374_vm5, %v6921_v8, %v6918_v9 }
0x24b9   :  { %12897 = vmatmul.mubr.msk.f32.vlgmr.msra.gmra.mrb[72].mxu0 %vm532_vm1, %v6922_v42 }
0x24ba   :  { %13352 = vmatpush3.bf16.msra.mxu0 %v13349_v39 }
0x24bb   :  { %13354 = vmatprep.subr.bf16.mxu0 %v13353_v32 }
0x24be   :  { %13356 = vmatpush3.bf16.msra.mxu0 %v13353_v32 }
0x24bf   :  { %13358 = vmatprep.subr.bf16.mxu0 %v13357_v41 }
0x24c2   :  { %13360 = vmatpush3.bf16.msra.mxu0 %v13357_v41  ;;  %v12003_v41 = vld [vmem:[%s16576_s23 + $0x30] sm:$0xff] }
0x24c3   :  { %13362 = vmatprep.subr.bf16.mxu0 %v13361_v40 }
0x24c6   :  { %13364 = vmatpush3.bf16.msra.mxu0 %v13361_v40  ;;  %v13385_v40 = vpack.c.bf16 %v12004_v19, %v12003_v41 }
0x24c7   :  { %13366 = vmatprep.subr.bf16.mxu0 %v13365_v48 }
0x24ca   :  { %13368 = vmatpush3.bf16.msra.mxu0 %v13365_v48 }
0x24cb   :  { %13370 = vmatprep.subr.bf16.mxu0 %v13369_v51 }
0x24ce   :  { %13372 = vmatpush3.bf16.msra.mxu0 %v13369_v51 }
0x24cf   :  { %13374 = vmatprep.subr.bf16.mxu0 %v13373_v55 }
0x24d2   :  { %13376 = vmatpush3.bf16.msra.mxu0 %v13373_v55 }
0x258c   :  { %v12898_v44 = vpop.f32.mrb[72].mxu0 }
0x258d   :  { %v7009_v45 = vadd.f32 %v12898_v44, %v15608_v52  ;;  %v6999_v61 = vpop.f32.mrb[73].mxu0 }
0x258e   :  { %v7008_v10 = vadd.f32 %v6999_v61, %v15604_v46  ;;  %v7172_v61 = vld [vmem:[%s16579_s12 + $0x78] sm:$0xff] }
0x258f   :  { %v15784_v11 = vadd.f32 %v11992_v60, %v7009_v45  ;;  %v7171_v45 = vld [vmem:[%s16579_s12 + $0x70] sm:$0xff] }
0x2590   :  { %v15786_v2 = vadd.f32 %v11992_v60, %v7008_v10  ;;  %v13377_v10 = vpack.c.bf16 %v7172_v61, %v7171_v45 }
0x2591   :  { %v7024_v20 = vsel %vm532_vm1, %v15784_v11, 0.0 }
0x2592   :  { %7025 = vadd.xlane.f32.xlu1 %v7024_v20  ;;  %v7021_v12 = vsel %vm532_vm1, %v15786_v2, 0.0  ;;  %13378 = vmatprep.subr.bf16.mxu0 %v13377_v10  ;;  %v11995_v20 = vld [vmem:[#allocation21] ss:$0 sm:$0xff] }
0x2593   :  { %7022 = vadd.xlane.f32.xlu0 %v7021_v12  ;;  %13380 = vmatpush3.bf16.msra.mxu0 %v13377_v10 }
0x2594   :  { %12986 = vmatprep.subr.mxu0 %v14599_v18 }
0x261f   :  { %v7026_v53 = vpop.xlane.xlu1 %7025 }
0x2620   :  { %v7028_v52 = vmul.f32 0.03125, %v7026_v53  ;;  %v7023_v13 = vpop.xlane.xlu0 %7022 }
0x2621   :  { %v7027_v46 = vmul.f32 0.03125, %v7023_v13 }
0x2622   :  { %v15793_v4 = vsub.f32 %v15784_v11, %v7028_v52 }
0x2623   :  { %v7029_v47 = vsub.f32 %v15786_v2, %v7027_v46 }
0x2624   :  { %v7032_v16 = vmul.f32 %v15793_v4, %v15793_v4 }
0x2625   :  { %v7031_v28 = vmul.f32 %v7029_v47, %v7029_v47 }
0x2626   :  { %v7036_v17 = vsel %vm532_vm1, %v7032_v16, 0.0 }
0x2627   :  { %v7033_v14 = vsel %vm532_vm1, %v7031_v28, 0.0  ;;  %v11998_v28 = vld [vmem:[#allocation22] ss:$0 sm:$0xff] }
0x2628   :  { %7034 = vadd.xlane.f32.xlu0 %v7033_v14 }
0x262c   :  { %7037 = vadd.xlane.f32.xlu0 %v7036_v17 }
0x26b5   :  { %v7035_v57 = vpop.xlane.xlu0 %7034 }
0x26b6   :  { %v7039_v58 = vmul.f32 0.03125, %v7035_v57 }
0x26b8   :  { %v7041_v59 = vadd.f32 1e-05, %v7039_v58 }
0x26b9   :  { %v7038_v62 = vpop.xlane.xlu0 %7037 }
0x26ba   :  { %13828 = vrsqrt.f32 %v7041_v59  ;;  %v7040_v63 = vmul.f32 0.03125, %v7038_v62  ;;  %v12000_v59 = vld [vmem:[#allocation16 + $0x1] ss:$0 sm:$0xff] }
0x26bc   :  { %v7042_v0 = vadd.f32 1e-05, %v7040_v63 }
0x26be   :  { %13830 = vrsqrt.f32 %v7042_v0 }
0x26c4   :  { %v13829_v3 = vpop.eup %13828 }
0x26c5   :  { %v7045_v37 = vmul.f32 %v13829_v3, %v7029_v47 }
0x26c7   :  { %v7053_v7 = vmul.f32 %v11993_v35, %v7045_v37 }
0x26c8   :  { %v13831_v8 = vpop.eup %13830 }
0x26c9   :  { %v7046_v9 = vmul.f32 %v13831_v8, %v15793_v4  ;;  %v7061_v42 = vadd.f32 %v11994_v6, %v7053_v7 }
0x26cb   :  { %v7054_v44 = vmul.f32 %v11993_v35, %v7046_v9  ;;  %12907 = vmatprep.mubr.msk.f32.mxu1 %vm532_vm1, %v7061_v42  ;;  %v12005_v35 = vld [vmem:[#allocation12 + $0x1] ss:$0 sm:$0xff] }
0x26cd   :  { %v7062_v60 = vadd.f32 %v11994_v6, %v7054_v44 }
0x26cf   :  { %12908 = vmatmul.mubr.msk.f32.vlgmr.msra.gmra.mrb[80].mxu1 %vm532_vm1, %v7062_v60 }
0x26d0   :  { %13384 = vmatpush3.bf16.msra.mxu1 %v13381_v38 }
0x26d1   :  { %13386 = vmatprep.subr.bf16.mxu1 %v13385_v40 }
0x26d4   :  { %13388 = vmatpush3.bf16.msra.mxu1 %v13385_v40 }
0x26d5   :  { %12956 = vmatprep.subr.mxu1 %v14599_v18 }
0x27a2   :  { %v12909_v12 = vpop.f32.mrb[80].mxu1 }
0x27a3   :  { %v7152_v53 = vadd.f32 %v12909_v12, %v11995_v20  ;;  %v7146_v52 = vpop.f32.mrb[81].mxu1 }
0x27a4   :  { %v7147_v13 = vadd.f32 %v11995_v20, %v7146_v52 }
0x27a5   :  { %v7156_v4 = vmax.f32 %v7152_v53, 0.0 }
0x27a6   :  { %v7155_v46 = vmax.f32 %v7147_v13, 0.0 }
0x27a8   :  { %12942 = vmatprep.mubr.f32.mxu0 %v7155_v46 }
0x27a9   :  { %12943 = vmatmul.mubr.f32.vlgmr.msra.gmra.mrb[74].mxu0 %v7156_v4 }
0x27aa   :  { %12988 = vmatprep.mubr.msk.f32.mxu0 %vm14600_vm2, %v14599_v18 }
0x287c   :  { %v12944_v47 = vpop.f32.mrb[74].mxu0 }
0x287d   :  { %v7249_v14 = vadd.f32 %v12944_v47, %v15784_v11  ;;  %v7239_v16 = vpop.f32.mrb[75].mxu0 }
0x287e   :  { %v7248_v17 = vadd.f32 %v7239_v16, %v15786_v2 }
0x287f   :  { %v15828_v34 = vadd.f32 %v11998_v28, %v7249_v14 }
0x2880   :  { %v15830_v23 = vadd.f32 %v11998_v28, %v7248_v17 }
0x2881   :  { %v7266_v21 = vsel %vm532_vm1, %v15828_v34, 0.0 }
0x2882   :  { %7267 = vadd.xlane.f32.xlu0 %v7266_v21  ;;  %v7263_v27 = vsel %vm532_vm1, %v15830_v23, 0.0 }
0x2883   :  { %7264 = vadd.xlane.f32.xlu1 %v7263_v27 }
0x290f   :  { %v7268_v22 = vpop.xlane.xlu0 %7267 }
0x2910   :  { %v7270_v11 = vmul.f32 0.03125, %v7268_v22  ;;  %v7265_v25 = vpop.xlane.xlu1 %7264 }
0x2911   :  { %v7269_v2 = vmul.f32 0.03125, %v7265_v25 }
0x2912   :  { %v7272_v26 = vsub.f32 %v15828_v34, %v7270_v11 }
0x2913   :  { %v7271_v24 = vsub.f32 %v15830_v23, %v7269_v2 }
0x2914   :  { %v7274_v15 = vmul.f32 %v7272_v26, %v7272_v26 }
0x2915   :  { %v7273_v39 = vmul.f32 %v7271_v24, %v7271_v24 }
0x2916   :  { %v7278_v31 = vsel %vm532_vm1, %v7274_v15, 0.0 }
0x2917   :  { %7279 = vadd.xlane.f32.xlu0 %v7278_v31  ;;  %v7275_v32 = vsel %vm532_vm1, %v7273_v39, 0.0 }
0x2918   :  { %7276 = vadd.xlane.f32.xlu1 %v7275_v32 }
0x29a4   :  { %v7280_v30 = vpop.xlane.xlu0 %7279 }
0x29a5   :  { %v7282_v43 = vmul.f32 0.03125, %v7280_v30  ;;  %v7277_v48 = vpop.xlane.xlu1 %7276 }
0x29a6   :  { %v7281_v49 = vmul.f32 0.03125, %v7277_v48 }
0x29a7   :  { %v7284_v50 = vadd.f32 1e-05, %v7282_v43 }
0x29a8   :  { %v7283_v51 = vadd.f32 1e-05, %v7281_v49 }
0x29a9   :  { %13832 = vrsqrt.f32 %v7284_v50 }
0x29aa   :  { %13834 = vrsqrt.f32 %v7283_v51 }
0x29b3   :  { %v13833_v54 = vpop.eup %13832 }
0x29b4   :  { %v13835_v55 = vpop.eup %13834  ;;  %v7288_v57 = vmul.f32 %v13833_v54, %v7272_v26 }
0x29b5   :  { %v7287_v58 = vmul.f32 %v13835_v55, %v7271_v24 }
0x29b6   :  { %v7296_v62 = vmul.f32 %v11999_v56, %v7288_v57 }
0x29b7   :  { %v7295_v63 = vmul.f32 %v11999_v56, %v7287_v58 }
0x29b8   :  { %v7304_v3 = vadd.f32 %v12000_v59, %v7296_v62 }
0x29b9   :  { %v7303_v0 = vadd.f32 %v12000_v59, %v7295_v63 }
0x29bb   :  { %12953 = vmatprep.mubr.msk.f32.mxu1 %vm532_vm1, %v7303_v0 }
0x29bc   :  { %12954 = vmatmul.mubr.msk.f32.vlgmr.msra.gmra.mrb[82].mxu1 %vm532_vm1, %v7304_v3 }
0x29bd   :  { %12958 = vmatprep.mubr.msk.f32.mxu1 %vm14600_vm2, %v14599_v18 }
0x2a8f   :  { %v12955_v37 = vpop.f32.mrb[82].mxu1 }
0x2a90   :  { %v15849_v6 = vadd.f32 %v12955_v37, %v12005_v35  ;;  %v7390_v7 = vpop.f32.mrb[83].mxu1 }
0x2a91   :  { %v15851_v8 = vadd.f32 %v12005_v35, %v7390_v7 }
0x2a93   :  { %7400 = vrot.lane.b32.xlu1 %v15851_v8, %s14602_s6 }
0x2a97   :  { %7566 = vrot.lane.b32.xlu1 %v15851_v8, %s14604_s8 }
0x2a9b   :  { %7564 = vrot.lane.b32.xlu1 %v15851_v8, %s14601_s7 }
0x2b05   :  { %v7401_v9 = vpop.permute.xlu1 %7400 }
0x2b06   :  { %12957 = vmatpush3.xpose.msk.msra.mxu1 %vm421_vm0, %v7401_v9 }
0x2b07   :  { %12961 = vmatprep.subr.mxu1 %v14599_v18 }
0x2b09   :  { %12959 = vmatmul.mubr.msk.f32.vlgmr.msra.gmra.mrb[84].mxu1 %vm421_vm0, %v15851_v8  ;;  %v7567_v4 = vpop.permute.xlu1 %7566 }
0x2b0a   :  { %12963 = vmatprep.mubr.msk.f32.mxu1 %vm14600_vm2, %v14599_v18 }
0x2b0d   :  { %v7565_v28 = vpop.permute.xlu1 %7564 }
0x2bdc   :  { %v7472_v42 = vpop.f32.mrb[84].mxu1 }
0x2bdd   :  { %v7476_v44 = vmul.f32 0.35355338, %v7472_v42  ;;  %v12960_v60 = vpop.f32.mrb[85].mxu1 }
0x2bdf   :  { %v7477_v45 = vsel %vm421_vm0, %v7476_v44, -inf }
0x2be0   :  { %7478 = vmax.xlane.f32.xlu0 %v7477_v45 }
0x2c6d   :  { %v7479_v61 = vpop.xlane.xlu0 %7478 }
0x2c6e   :  { %v7480_v10 = vsub.f32 %v7476_v44, %v7479_v61 }
0x2c70   :  { %v7481_v20 = vmul.f32 1.442695, %v7480_v10 }
0x2c72   :  { %13836 = vpow2.f32 %v7481_v20 }
0x2c7c   :  { %v13837_v12 = vpop.eup %13836 }
0x2c7d   :  { %v7483_v53 = vsel %vm421_vm0, %v13837_v12, 0.0 }
0x2c7e   :  { %7484 = vadd.xlane.f32.xlu0 %v7483_v53 }
0x2c94   :  { %7488 = vrot.lane.b32.xlu0 %v15851_v8, %s14609_s13 }
0x2d0b   :  { %v7485_v52 = vpop.xlane.xlu0 %7484 }
0x2d0c   :  { %13838 = vrcp.f32 %v7485_v52 }
0x2d0f   :  { %v7489_v13 = vpop.permute.xlu0 %7488 }
0x2d10   :  { %12962 = vmatpush3.msra.mxu1 %v7489_v13 }
0x2d11   :  { %12966 = vmatprep.subr.mxu1 %v14599_v18 }
0x2d16   :  { %v13839_v46 = vpop.eup %13838 }
0x2d17   :  { %v7487_v47 = vmul.f32 %v13839_v46, %v13837_v12 }
0x2d19   :  { %12964 = vmatmul.mubr.msk.f32.vlgmr.msra.gmra.mrb[86].mxu1 %vm421_vm0, %v7487_v47 }
0x2d1a   :  { %12967 = vmatpush3.xpose.msk.msra.mxu1 %vm421_vm0, %v7567_v4  ;;  %12968 = vmatprep.mubr.msk.f32.mxu1 %vm14600_vm2, %v14599_v18 }
0x2d1b   :  { %12971 = vmatprep.subr.mxu1 %v14599_v18 }
0x2d1d   :  { %12969 = vmatmul.mubr.msk.f32.vlgmr.msra.gmra.mrb[88].mxu1 %vm421_vm0, %v7565_v28 }
0x2d1e   :  { %12973 = vmatprep.mubr.msk.f32.mxu1 %vm14600_vm2, %v14599_v18 }
0x2dec   :  { %v15878_v14 = vpop.f32.mrb[86].mxu1 }
0x2ded   :  { %v12965_v16 = vpop.f32.mrb[87].mxu1 }
0x2df0   :  { %v7638_v17 = vpop.f32.mrb[88].mxu1 }
0x2df1   :  { %v7642_v21 = vmul.f32 0.35355338, %v7638_v17  ;;  %v12970_v27 = vpop.f32.mrb[89].mxu1 }
0x2df3   :  { %v7643_v22 = vsel %vm421_vm0, %v7642_v21, -inf }
0x2df4   :  { %7644 = vmax.xlane.f32.xlu1 %v7643_v22 }
0x2e05   :  { %7654 = vrot.lane.b32.xlu1 %v15851_v8, %s14608_s19 }
0x2e09   :  { %7730 = vrot.lane.b32.xlu1 %v15851_v8, %s14606_s11 }
0x2e0d   :  { %7898 = vrot.lane.b32.xlu1 %v15851_v8, %s14605_s10 }
0x2e11   :  { %8078 = vrot.lane.b32.xlu1 %v15849_v6, %s14602_s6 }
0x2e15   :  { %8242 = vrot.lane.b32.xlu1 %v15849_v6, %s14601_s7 }
0x2e19   :  { %8408 = vrot.lane.b32.xlu1 %v15849_v6, %s14606_s11 }
0x2e1d   :  { %8574 = vrot.lane.b32.xlu1 %v15849_v6, %s14607_s29 }
0x2e81   :  { %v7645_v11 = vpop.xlane.xlu1 %7644 }
0x2e82   :  { %v7646_v25 = vsub.f32 %v7642_v21, %v7645_v11 }
0x2e84   :  { %v7647_v2 = vmul.f32 1.442695, %v7646_v25 }
0x2e85   :  { %v7655_v26 = vpop.permute.xlu1 %7654 }
0x2e86   :  { %13840 = vpow2.f32 %v7647_v2  ;;  %12972 = vmatpush3.msra.mxu1 %v7655_v26 }
0x2e87   :  { %12976 = vmatprep.subr.mxu1 %v14599_v18 }
0x2e89   :  { %v7731_v24 = vpop.permute.xlu1 %7730 }
0x2e8d   :  { %v7899_v15 = vpop.permute.xlu1 %7898 }
0x2e8e   :  { %12987 = vmatpush3.xpose.msk.msra.mxu0 %vm421_vm0, %v7899_v15 }
0x2e8f   :  { %12996 = vmatprep.subr.mxu0 %v14599_v18 }
0x2e90   :  { %v13841_v39 = vpop.eup %13840 }
0x2e91   :  { %v7649_v31 = vsel %vm421_vm0, %v13841_v39, 0.0  ;;  %v8079_v36 = vpop.permute.xlu1 %8078 }
0x2e92   :  { %7650 = vadd.xlane.f32.xlu0 %v7649_v31 }
0x2e95   :  { %v8243_v19 = vpop.permute.xlu1 %8242 }
0x2e99   :  { %v8409_v48 = vpop.permute.xlu1 %8408 }
0x2e9d   :  { %v8575_v50 = vpop.permute.xlu1 %8574 }
0x2ea8   :  { %7732 = vrot.lane.b32.xlu0 %v15851_v8, %s14603_s9 }
0x2eac   :  { %7896 = vrot.lane.b32.xlu0 %v15851_v8, %s14607_s29 }
0x2eb0   :  { %8244 = vrot.lane.b32.xlu0 %v15849_v6, %s14604_s8 }
0x2eb4   :  { %8410 = vrot.lane.b32.xlu0 %v15849_v6, %s14603_s9 }
0x2eb8   :  { %8576 = vrot.lane.b32.xlu0 %v15849_v6, %s14605_s10 }
0x2f1f   :  { %v7651_v32 = vpop.xlane.xlu0 %7650 }
0x2f20   :  { %13842 = vrcp.f32 %v7651_v32 }
0x2f23   :  { %v7733_v5 = vpop.permute.xlu0 %7732 }
0x2f27   :  { %v7897_v41 = vpop.permute.xlu0 %7896 }
0x2f28   :  { %12989 = vmatmul.mubr.msk.f32.vlgmr.msra.gmra.mrb[76].mxu0 %vm421_vm0, %v7897_v41 }
0x2f29   :  { %12997 = vmatpush3.xpose.msk.msra.mxu0 %vm421_vm0, %v8079_v36  ;;  %12998 = vmatprep.mubr.msk.f32.mxu0 %vm14600_vm2, %v14599_v18 }
0x2f2a   :  { %v13843_v38 = vpop.eup %13842  ;;  %13006 = vmatprep.subr.mxu0 %v14599_v18 }
0x2f2b   :  { %v8245_v40 = vpop.permute.xlu0 %8244  ;;  %v7653_v30 = vmul.f32 %v13843_v38, %v13841_v39 }
0x2f2c   :  { %12999 = vmatmul.mubr.msk.f32.vlgmr.msra.gmra.mrb[78].mxu0 %vm421_vm0, %v15849_v6 }
0x2f2d   :  { %13007 = vmatpush3.xpose.msk.msra.mxu0 %vm421_vm0, %v8245_v40  ;;  %12974 = vmatmul.mubr.msk.f32.vlgmr.msra.gmra.mrb[90].mxu1 %vm421_vm0, %v7653_v30 }
0x2f2e   :  { %12977 = vmatpush3.xpose.msk.msra.mxu1 %vm421_vm0, %v7733_v5  ;;  %13008 = vmatprep.mubr.msk.f32.mxu0 %vm14600_vm2, %v14599_v18 }
0x2f2f   :  { %v8411_v43 = vpop.permute.xlu0 %8410  ;;  %13016 = vmatprep.subr.mxu0 %v14599_v18  ;;  %12978 = vmatprep.mubr.msk.f32.mxu1 %vm14600_vm2, %v14599_v18 }
0x2f30   :  { %13009 = vmatmul.mubr.msk.f32.vlgmr.msra.gmra.mrb[80].mxu0 %vm421_vm0, %v8243_v19  ;;  %12981 = vmatprep.subr.mxu1 %v14599_v18 }
0x2f31   :  { %13017 = vmatpush3.xpose.msk.msra.mxu0 %vm421_vm0, %v8411_v43  ;;  %12979 = vmatmul.mubr.msk.f32.vlgmr.msra.gmra.mrb[92].mxu1 %vm421_vm0, %v7731_v24 }
0x2f32   :  { %13018 = vmatprep.mubr.msk.f32.mxu0 %vm14600_vm2, %v14599_v18  ;;  %13026 = vmatprep.subr.mxu0 %v14599_v18 }
0x2f33   :  { %v8577_v49 = vpop.permute.xlu0 %8576  ;;  %12983 = vmatprep.mubr.msk.f32.mxu1 %vm14600_vm2, %v14599_v18 }
0x2f34   :  { %13019 = vmatmul.mubr.msk.f32.vlgmr.msra.gmra.mrb[82].mxu0 %vm421_vm0, %v8409_v48 }
0x2f35   :  { %13027 = vmatpush3.xpose.msk.msra.mxu0 %vm421_vm0, %v8577_v49  ;;  %13028 = vmatprep.mubr.msk.f32.mxu0 %vm14600_vm2, %v14599_v18 }
0x2f38   :  { %13029 = vmatmul.mubr.msk.f32.vlgmr.msra.gmra.mrb[84].mxu0 %vm421_vm0, %v8575_v50 }
0x2ffb   :  { %v7970_v51 = vpop.f32.mrb[76].mxu0 }
0x2ffc   :  { %v7974_v54 = vmul.f32 0.35355338, %v7970_v51  ;;  %v12990_v56 = vpop.f32.mrb[77].mxu0 }
0x2ffe   :  { %v7975_v55 = vsel %vm421_vm0, %v7974_v54, -inf }
0x2fff   :  { %7976 = vmax.xlane.f32.xlu1 %v7975_v55  ;;  %v8150_v57 = vpop.f32.mrb[78].mxu0 }
0x3000   :  { %v15939_v58 = vpop.f32.mrb[90].mxu1  ;;  %v13000_v59 = vpop.f32.mrb[79].mxu0  ;;  %v8154_v7 = vmul.f32 0.35355338, %v8150_v57 }
0x3001   :  { %v12975_v62 = vpop.f32.mrb[91].mxu1 }
0x3002   :  { %v8155_v20 = vsel %vm421_vm0, %v8154_v7, -inf }
0x3003   :  { %v8316_v63 = vpop.f32.mrb[80].mxu0 }
0x3004   :  { %v7804_v0 = vpop.f32.mrb[92].mxu1  ;;  %v13010_v3 = vpop.f32.mrb[81].mxu0  ;;  %v8320_v61 = vmul.f32 0.35355338, %v8316_v63 }
0x3005   :  { %v7808_v35 = vmul.f32 0.35355338, %v7804_v0  ;;  %v12980_v37 = vpop.f32.mrb[93].mxu1 }
0x3006   :  { %v8321_v52 = vsel %vm421_vm0, %v8320_v61, -inf }
0x3007   :  { %v8482_v9 = vpop.f32.mrb[82].mxu0  ;;  %v7809_v42 = vsel %vm421_vm0, %v7808_v35, -inf }
0x3008   :  { %v8486_v44 = vmul.f32 0.35355338, %v8482_v9  ;;  %v13020_v60 = vpop.f32.mrb[83].mxu0  ;;  %7810 = vmax.xlane.f32.xlu0 %v7809_v42 }
0x300a   :  { %v8487_v45 = vsel %vm421_vm0, %v8486_v44, -inf }
0x300b   :  { %8488 = vmax.xlane.f32.xlu1 %v8487_v45  ;;  %v8648_v10 = vpop.f32.mrb[84].mxu0 }
0x300c   :  { %v13030_v12 = vpop.f32.mrb[85].mxu0  ;;  %8156 = vmax.xlane.f32.xlu0 %v8155_v20  ;;  %v8652_v53 = vmul.f32 0.35355338, %v8648_v10 }
0x300e   :  { %v8653_v13 = vsel %vm421_vm0, %v8652_v53, -inf }
0x3010   :  { %8322 = vmax.xlane.f32.xlu0 %v8321_v52  ;;  %v12032_v52 = vld [vmem:[%s16577_s26 + $0x20] sm:$0xff] }
0x3014   :  { %8654 = vmax.xlane.f32.xlu0 %v8653_v13  ;;  %v12033_v13 = vld [vmem:[%s16577_s26 + $0x28] sm:$0xff] }
0x308c   :  { %v7977_v46 = vpop.xlane.xlu1 %7976 }
0x308d   :  { %v7978_v4 = vsub.f32 %v7974_v54, %v7977_v46 }
0x308f   :  { %v7979_v47 = vmul.f32 1.442695, %v7978_v4  ;;  %v13389_v4 = vpack.c.bf16 %v12033_v13, %v12032_v52  ;;  %v12052_v52 = vld [vmem:[%s16579_s12 + $0xa0] sm:$0xff]  ;;  %v12053_v13 = vld [vmem:[%s16579_s12 + $0xa8] sm:$0xff] }
0x3091   :  { %13844 = vpow2.f32 %v7979_v47  ;;  %13390 = vmatprep.subr.bf16.mxu0 %v13389_v4 }
0x3092   :  { %13392 = vmatpush3.bf16.msra.mxu0 %v13389_v4  ;;  %v12054_v4 = vld [vmem:[%s16579_s12 + $0xb0] sm:$0xff] }
0x3095   :  { %v7811_v28 = vpop.xlane.xlu0 %7810 }
0x3096   :  { %v7812_v48 = vsub.f32 %v7808_v35, %v7811_v28  ;;  %v12034_v28 = vld [vmem:[%s16577_s26 + $0x30] sm:$0xff] }
0x3098   :  { %v8489_v16 = vpop.xlane.xlu1 %8488  ;;  %v7813_v49 = vmul.f32 1.442695, %v7812_v48 }
0x3099   :  { %v8490_v17 = vsub.f32 %v8486_v44, %v8489_v16  ;;  %v8157_v21 = vpop.xlane.xlu0 %8156  ;;  %v12035_v16 = vld [vmem:[%s16577_s26 + $0x38] sm:$0xff] }
0x309a   :  { %v8158_v27 = vsub.f32 %v8154_v7, %v8157_v21  ;;  %v13393_v21 = vpack.c.bf16 %v12035_v16, %v12034_v28  ;;  %v12056_v16 = vld [vmem:[%s16579_s12 + $0xc0] sm:$0xff] }
0x309b   :  { %v15946_v22 = vpop.eup %13844  ;;  %v8491_v11 = vmul.f32 1.442695, %v8490_v17 }
0x309c   :  { %v8159_v25 = vmul.f32 1.442695, %v8158_v27  ;;  %v7981_v2 = vsel %vm421_vm0, %v15946_v22, 0.0  ;;  %13394 = vmatprep.subr.bf16.mxu0 %v13393_v21 }
0x309d   :  { %7982 = vadd.xlane.f32.xlu0 %v7981_v2  ;;  %v8323_v26 = vpop.xlane.xlu0 %8322  ;;  %13396 = vmatpush3.bf16.msra.mxu0 %v13393_v21 }
0x309e   :  { %13846 = vpow2.f32 %v8159_v25  ;;  %v8324_v24 = vsub.f32 %v8320_v61, %v8323_v26 }
0x309f   :  { %13848 = vpow2.f32 %v8491_v11 }
0x30a0   :  { %v8325_v15 = vmul.f32 1.442695, %v8324_v24 }
0x30a1   :  { %v8655_v39 = vpop.xlane.xlu0 %8654 }
0x30a2   :  { %13850 = vpow2.f32 %v8325_v15  ;;  %v8656_v31 = vsub.f32 %v8652_v53, %v8655_v39 }
0x30a4   :  { %v8657_v32 = vmul.f32 1.442695, %v8656_v31 }
0x30a6   :  { %13852 = vpow2.f32 %v8657_v32 }
0x30a7   :  { %13854 = vpow2.f32 %v7813_v49 }
0x30a8   :  { %v13847_v5 = vpop.eup %13846 }
0x30a9   :  { %v8161_v36 = vsel %vm421_vm0, %v13847_v5, 0.0  ;;  %v15951_v41 = vpop.eup %13848 }
0x30aa   :  { %8162 = vadd.xlane.f32.xlu1 %v8161_v36  ;;  %v8493_v19 = vsel %vm421_vm0, %v15951_v41, 0.0 }
0x30ac   :  { %v13851_v38 = vpop.eup %13850 }
0x30ad   :  { %v8327_v40 = vsel %vm421_vm0, %v13851_v38, 0.0 }
0x30ae   :  { %8494 = vadd.xlane.f32.xlu1 %v8493_v19  ;;  %8328 = vadd.xlane.f32.xlu0 %v8327_v40 }
0x30b0   :  { %v15956_v30 = vpop.eup %13852 }
0x30b1   :  { %v8659_v43 = vsel %vm421_vm0, %v15956_v30, 0.0  ;;  %v13855_v50 = vpop.eup %13854 }
0x30b2   :  { %8660 = vadd.xlane.f32.xlu0 %v8659_v43  ;;  %v7815_v51 = vsel %vm421_vm0, %v13855_v50, 0.0 }
0x30bf   :  { %7820 = vrot.lane.b32.xlu1 %v15851_v8, %s14610_s15 }
0x30c8   :  { %7986 = vrot.lane.b32.xlu0 %v15851_v8, %s14611_s0 }
0x30cc   :  { %8498 = vrot.lane.b32.xlu0 %v15849_v6, %s14610_s15 }
0x30d0   :  { %8063 = vrot.lane.b32.xlu0 %v15939_v58, %s14588_s24 }
0x30e3   :  { %7816 = vadd.xlane.f32.xlu1 %v7815_v51 }
0x30f4   :  { %8166 = vrot.lane.b32.xlu1 %v15849_v6, %s14609_s13 }
0x30f8   :  { %8332 = vrot.lane.b32.xlu1 %v15849_v6, %s14608_s19 }
0x30fc   :  { %8664 = vrot.lane.b32.xlu1 %v15849_v6, %s14611_s0 }
0x312a   :  { %v7983_v55 = vpop.xlane.xlu0 %7982 }
0x3137   :  { %v8163_v8 = vpop.xlane.xlu1 %8162 }
0x313b   :  { %v8495_v54 = vpop.xlane.xlu1 %8494  ;;  %v8329_v58 = vpop.xlane.xlu0 %8328 }
0x313f   :  { %v7821_v56 = vpop.permute.xlu1 %7820  ;;  %v8661_v59 = vpop.xlane.xlu0 %8660 }
0x3140   :  { %12982 = vmatpush3.msra.mxu1 %v7821_v56 }
0x3141   :  { %12991 = vmatprep.subr.mxu1 %v14599_v18 }
0x3143   :  { %v7987_v3 = vpop.permute.xlu0 %7986 }
0x3147   :  { %v8499_v45 = vpop.permute.xlu0 %8498 }
0x314b   :  { %v8064_v39 = vpop.permute.xlu0 %8063 }
0x314c   :  { %v8074_v32 = vsel %vm421_vm0, %v15878_v14, %v8064_v39  ;;  %v12038_v14 = vld [vmem:[#allocation13 + $0x1] ss:$0 sm:$0xff] }
0x3170   :  { %v7817_v57 = vpop.xlane.xlu1 %7816 }
0x3171   :  { %13856 = vrcp.f32 %v7817_v57 }
0x3172   :  { %13858 = vrcp.f32 %v7983_v55 }
0x3173   :  { %13860 = vrcp.f32 %v8163_v8 }
0x3174   :  { %13862 = vrcp.f32 %v8329_v58  ;;  %v8167_v6 = vpop.permute.xlu1 %8166 }
0x3175   :  { %13864 = vrcp.f32 %v8495_v54 }
0x3176   :  { %13866 = vrcp.f32 %v8661_v59 }
0x3178   :  { %v8333_v42 = vpop.permute.xlu1 %8332 }
0x317b   :  { %v13857_v62 = vpop.eup %13856 }
0x317c   :  { %v7819_v63 = vmul.f32 %v13857_v62, %v13855_v50  ;;  %v13859_v0 = vpop.eup %13858  ;;  %v8665_v20 = vpop.permute.xlu1 %8664 }
0x317d   :  { %v7985_v35 = vmul.f32 %v13859_v0, %v15946_v22  ;;  %v13861_v37 = vpop.eup %13860 }
0x317e   :  { %12984 = vmatmul.mubr.msk.f32.vlgmr.msra.gmra.mrb[94].mxu1 %vm421_vm0, %v7819_v63  ;;  %v8165_v7 = vmul.f32 %v13861_v37, %v13847_v5  ;;  %v13863_v9 = vpop.eup %13862  ;;  %v12041_v37 = vld [vmem:[%s16578_s28 + $0x20] sm:$0xff] }
0x317f   :  { %12992 = vmatpush3.msra.mxu1 %v7987_v3  ;;  %12993 = vmatprep.mubr.msk.f32.mxu1 %vm14600_vm2, %v14599_v18  ;;  %v8331_v44 = vmul.f32 %v13863_v9, %v13851_v38  ;;  %v13865_v60 = vpop.eup %13864  ;;  %v12043_v9 = vld [vmem:[%s16578_s28 + $0x30] sm:$0xff] }
0x3180   :  { %13001 = vmatprep.subr.mxu1 %v14599_v18  ;;  %v8497_v61 = vmul.f32 %v13865_v60, %v15951_v41  ;;  %v13867_v10 = vpop.eup %13866 }
0x3181   :  { %v8663_v12 = vmul.f32 %v13867_v10, %v15956_v30  ;;  %v12050_v10 = vld [vmem:[%s16579_s12 + $0x90] sm:$0xff] }
0x3182   :  { %12994 = vmatmul.mubr.msk.f32.vlgmr.msra.gmra.mrb[96].mxu1 %vm421_vm0, %v7985_v35 }
0x3183   :  { %13002 = vmatpush3.msra.mxu1 %v8167_v6  ;;  %13003 = vmatprep.mubr.msk.f32.mxu1 %vm14600_vm2, %v14599_v18 }
0x3184   :  { %13011 = vmatprep.subr.mxu1 %v14599_v18 }
0x3186   :  { %13004 = vmatmul.mubr.msk.f32.vlgmr.msra.gmra.mrb[98].mxu1 %vm421_vm0, %v8165_v7  ;;  %v12042_v7 = vld [vmem:[%s16578_s28 + $0x28] sm:$0xff] }
0x3187   :  { %13012 = vmatpush3.msra.mxu1 %v8333_v42  ;;  %13013 = vmatprep.mubr.msk.f32.mxu1 %vm14600_vm2, %v14599_v18  ;;  %v13397_v42 = vpack.c.bf16 %v12042_v7, %v12041_v37 }
0x3188   :  { %13021 = vmatprep.subr.mxu1 %v14599_v18 }
0x318a   :  { %13014 = vmatmul.mubr.msk.f32.vlgmr.msra.gmra.mrb[100].mxu1 %vm421_vm0, %v8331_v44  ;;  %v12044_v44 = vld [vmem:[%s16578_s28 + $0x38] sm:$0xff] }
0x318b   :  { %13022 = vmatpush3.msra.mxu1 %v8499_v45  ;;  %13023 = vmatprep.mubr.msk.f32.mxu1 %vm14600_vm2, %v14599_v18  ;;  %v13401_v60 = vpack.c.bf16 %v12044_v44, %v12043_v9  ;;  %v12048_v45 = vld [vmem:[%s16579_s12 + $0x80] sm:$0xff] }
0x318c   :  { %13031 = vmatprep.subr.mxu1 %v14599_v18 }
0x318e   :  { %13024 = vmatmul.mubr.msk.f32.vlgmr.msra.gmra.mrb[102].mxu1 %vm421_vm0, %v8497_v61  ;;  %v12049_v61 = vld [vmem:[%s16579_s12 + $0x88] sm:$0xff] }
0x318f   :  { %13032 = vmatpush3.msra.mxu1 %v8665_v20  ;;  %13033 = vmatprep.mubr.msk.f32.mxu1 %vm14600_vm2, %v14599_v18  ;;  %v13405_v20 = vpack.c.bf16 %v12049_v61, %v12048_v45  ;;  %v9254_v61 = vld [vmem:[%s16581_s21 + $0x8] sm:$0xff] }
0x3190   :  { %13398 = vmatprep.subr.bf16.mxu1 %v13397_v42 }
0x3191   :  { %13406 = vmatprep.subr.bf16.mxu0 %v13405_v20 }
0x3192   :  { %13034 = vmatmul.mubr.msk.f32.vlgmr.msra.gmra.mrb[104].mxu1 %vm421_vm0, %v8663_v12  ;;  %v12051_v12 = vld [vmem:[%s16579_s12 + $0x98] sm:$0xff] }
0x3193   :  { %13400 = vmatpush3.bf16.msra.mxu1 %v13397_v42 }
0x3194   :  { %13402 = vmatprep.subr.bf16.mxu1 %v13401_v60 }
0x3197   :  { %13404 = vmatpush3.bf16.msra.mxu1 %v13401_v60 }
0x3251   :  { %v7892_v53 = vpop.f32.mrb[94].mxu1 }
0x3252   :  { %8067 = vrot.lane.b32.xlu1 %v7892_v53, %s14580_s18  ;;  %v12985_v46 = vpop.f32.mrb[95].mxu1  ;;  %v13409_v53 = vpack.c.bf16 %v12051_v12, %v12050_v10  ;;  %v9256_v10 = vld [vmem:[%s16581_s21 + $0x18] sm:$0xff]  ;;  %v9253_v12 = vld [vmem:[%s16581_s21] sm:$0xff] }
0x3253   :  { %v13413_v46 = vpack.c.bf16 %v12053_v13, %v12052_v52  ;;  %v9258_v13 = vld [vmem:[%s16581_s21 + $0x28] sm:$0xff] }
0x3255   :  { %v8058_v47 = vpop.f32.mrb[96].mxu1 }
0x3256   :  { %8071 = vrot.lane.b32.xlu1 %v8058_v47, %s14614_s22  ;;  %v12995_v17 = vpop.f32.mrb[97].mxu1  ;;  %v12055_v47 = vld [vmem:[%s16579_s12 + $0xb8] sm:$0xff] }
0x3257   :  { %v13417_v28 = vpack.c.bf16 %v12055_v47, %v12054_v4  ;;  %v12057_v17 = vld [vmem:[%s16579_s12 + $0xc8] sm:$0xff]  ;;  %v9257_v4 = vld [vmem:[%s16581_s21 + $0x20] sm:$0xff] }
0x3258   :  { %v13421_v21 = vpack.c.bf16 %v12057_v17, %v12056_v16 }
0x3259   :  { %v8238_v27 = vpop.f32.mrb[98].mxu1 }
0x325a   :  { %v13005_v22 = vpop.f32.mrb[99].mxu1 }
0x325b   :  { %v12059_v22 = vld [vmem:[%s16579_s12 + $0xd8] sm:$0xff] }
0x325d   :  { %v8404_v11 = vpop.f32.mrb[100].mxu1 }
0x325e   :  { %8741 = vrot.lane.b32.xlu0 %v8404_v11, %s14588_s24  ;;  %v13015_v25 = vpop.f32.mrb[101].mxu1 }
0x325f   :  { %v12060_v25 = vld [vmem:[%s16579_s12 + $0xe0] sm:$0xff] }
0x3261   :  { %v8570_v2 = vpop.f32.mrb[102].mxu1 }
0x3262   :  { %8745 = vrot.lane.b32.xlu0 %v8570_v2, %s14580_s18  ;;  %v13025_v26 = vpop.f32.mrb[103].mxu1  ;;  %v12061_v2 = vld [vmem:[%s16579_s12 + $0xe8] sm:$0xff]  ;;  %s16580_s18 = sld [smem:[#allocation55_spill]] }
0x3263   :  { %v13429_v26 = vpack.c.bf16 %v12061_v2, %v12060_v25 }
0x3265   :  { %v8736_v24 = vpop.f32.mrb[104].mxu1 }
0x3266   :  { %8749 = vrot.lane.b32.xlu1 %v8736_v24, %s14614_s22  ;;  %v13035_v15 = vpop.f32.mrb[105].mxu1 }
0x3268   :  { %v9155_v37 = vld [vmem:[%s16580_s18 + $0x28] sm:$0xff]  ;;  %v9157_v7 = vld [vmem:[%s16580_s18 + $0x38] sm:$0xff]  ;;  %v9154_v44 = vld [vmem:[%s16580_s18 + $0x20] sm:$0xff] }
0x3269   :  { %v13441_v42 = vpack.c.bf16 %v9157_v7, %v9155_v37  ;;  %v9156_v60 = vld [vmem:[%s16580_s18 + $0x30] sm:$0xff] }
0x326a   :  { %v13443_v45 = vpack.c.bf16 %v9156_v60, %v9154_v44 }
0x32c4   :  { %v8068_v31 = vpop.permute.xlu1 %8067 }
0x32c5   :  { %v8075_v5 = vsel %vm1372_vm4, %v8074_v32, %v8068_v31 }
0x32c8   :  { %v8072_v36 = vpop.permute.xlu1 %8071 }
0x32c9   :  { %v8076_v41 = vsel %vm1374_vm5, %v8075_v5, %v8072_v36 }
0x32ca   :  { %13044 = vmatprep.mubr.msk.f32.mxu0 %vm532_vm1, %v8076_v41  ;;  %v12039_v41 = vld [vmem:[#allocation18 + $0x1] ss:$0 sm:$0xff] }
0x32d0   :  { %v8742_v38 = vpop.permute.xlu0 %8741 }
0x32d1   :  { %v8752_v40 = vsel %vm421_vm0, %v8238_v27, %v8742_v38  ;;  %v12058_v27 = vld [vmem:[%s16579_s12 + $0xd0] sm:$0xff] }
0x32d2   :  { %v13425_v11 = vpack.c.bf16 %v12059_v22, %v12058_v27 }
0x32d4   :  { %v8746_v19 = vpop.permute.xlu0 %8745 }
0x32d5   :  { %v8753_v30 = vsel %vm1372_vm4, %v8752_v40, %v8746_v19  ;;  %v12040_v19 = vld [vmem:[#allocation19 + $0x1] ss:$0 sm:$0xff]  ;;  %vm9141_vm4 = vcmask 1046528  }
0x32d8   :  { %v8750_v43 = vpop.permute.xlu1 %8749 }
0x32d9   :  { %v8754_v48 = vsel %vm1374_vm5, %v8753_v30, %v8750_v43 }
0x32da   :  { %13045 = vmatmul.mubr.msk.f32.vlgmr.msra.gmra.mrb[86].mxu0 %vm532_vm1, %v8754_v48 }
0x32db   :  { %13408 = vmatpush3.bf16.msra.mxu0 %v13405_v20  ;;  %v16070_v20 = vpack.c.bf16 %v9256_v10, %v9254_v61 }
0x32dc   :  { %13410 = vmatprep.subr.bf16.mxu0 %v13409_v53 }
0x32df   :  { %13412 = vmatpush3.bf16.msra.mxu0 %v13409_v53  ;;  %v9255_v53 = vld [vmem:[%s16581_s21 + $0x10] sm:$0xff] }
0x32e0   :  { %13414 = vmatprep.subr.bf16.mxu0 %v13413_v46  ;;  %v16074_v52 = vpack.c.bf16 %v9255_v53, %v9253_v12 }
0x32e3   :  { %13416 = vmatpush3.bf16.msra.mxu0 %v13413_v46  ;;  %v9260_v46 = vld [vmem:[%s16581_s21 + $0x38] sm:$0xff] }
0x32e4   :  { %13418 = vmatprep.subr.bf16.mxu0 %v13417_v28  ;;  %v16082_v47 = vpack.c.bf16 %v9260_v46, %v9258_v13 }
0x32e7   :  { %13420 = vmatpush3.bf16.msra.mxu0 %v13417_v28  ;;  %v9259_v28 = vld [vmem:[%s16581_s21 + $0x30] sm:$0xff] }
0x32e8   :  { %13422 = vmatprep.subr.bf16.mxu0 %v13421_v21  ;;  %v16085_v16 = vpack.c.bf16 %v9259_v28, %v9257_v4 }
0x32eb   :  { %13424 = vmatpush3.bf16.msra.mxu0 %v13421_v21  ;;  %v12064_v21 = vld [vmem:[#allocation22 + $0x1] ss:$0 sm:$0xff] }
0x32ec   :  { %13426 = vmatprep.subr.bf16.mxu0 %v13425_v11 }
0x32ef   :  { %13428 = vmatpush3.bf16.msra.mxu0 %v13425_v11 }
0x32f0   :  { %13430 = vmatprep.subr.bf16.mxu0 %v13429_v26 }
0x32f3   :  { %13432 = vmatpush3.bf16.msra.mxu0 %v13429_v26 }
0x33ad   :  { %v13046_v49 = vpop.f32.mrb[86].mxu0 }
0x33ae   :  { %v8842_v50 = vadd.f32 %v13046_v49, %v15828_v34  ;;  %v8832_v51 = vpop.f32.mrb[87].mxu0 }
0x33af   :  { %v8841_v8 = vadd.f32 %v8832_v51, %v15830_v23  ;;  %v12063_v51 = vld [vmem:[%s16579_s12 + $0xf8] sm:$0xff] }
0x33b0   :  { %v16019_v54 = vadd.f32 %v12038_v14, %v8842_v50  ;;  %v12062_v50 = vld [vmem:[%s16579_s12 + $0xf0] sm:$0xff] }
0x33b1   :  { %v16021_v56 = vadd.f32 %v12038_v14, %v8841_v8  ;;  %v13433_v8 = vpack.c.bf16 %v12063_v51, %v12062_v50 }
0x33b2   :  { %v8860_v55 = vsel %vm532_vm1, %v16019_v54, 0.0 }
0x33b3   :  { %8861 = vadd.xlane.f32.xlu1 %v8860_v55  ;;  %v8857_v57 = vsel %vm532_vm1, %v16021_v56, 0.0  ;;  %13434 = vmatprep.subr.bf16.mxu0 %v13433_v8  ;;  %v12045_v55 = vld [vmem:[#allocation21 + $0x1] ss:$0 sm:$0xff] }
0x33b4   :  { %8858 = vadd.xlane.f32.xlu0 %v8857_v57  ;;  %13436 = vmatpush3.bf16.msra.mxu0 %v13433_v8 }
0x33b5   :  { %13470 = vmatprep.subr.bf16.mxu0 %v16070_v20 }
0x3440   :  { %v8862_v58 = vpop.xlane.xlu1 %8861 }
0x3441   :  { %v8864_v34 = vmul.f32 0.03125, %v8862_v58  ;;  %v8859_v59 = vpop.xlane.xlu0 %8858 }
0x3442   :  { %v8863_v23 = vmul.f32 0.03125, %v8859_v59 }
0x3443   :  { %v16028_v62 = vsub.f32 %v16019_v54, %v8864_v34 }
0x3444   :  { %v8865_v63 = vsub.f32 %v16021_v56, %v8863_v23 }
0x3445   :  { %v8868_v6 = vmul.f32 %v16028_v62, %v16028_v62 }
0x3446   :  { %v8867_v0 = vmul.f32 %v8865_v63, %v8865_v63 }
0x3447   :  { %v8872_v35 = vsel %vm532_vm1, %v8868_v6, 0.0 }
0x3448   :  { %v8869_v3 = vsel %vm532_vm1, %v8867_v0, 0.0  ;;  %v9153_v0 = vld [vmem:[%s16580_s18 + $0x18] sm:$0xff] }
0x3449   :  { %8870 = vadd.xlane.f32.xlu0 %v8869_v3  ;;  %v9150_v3 = vld [vmem:[%s16580_s18] sm:$0xff] }
0x344d   :  { %8873 = vadd.xlane.f32.xlu0 %v8872_v35  ;;  %v9152_v35 = vld [vmem:[%s16580_s18 + $0x10] sm:$0xff] }
0x344e   :  { %v13439_v9 = vpack.c.bf16 %v9152_v35, %v9150_v3 }
0x34d6   :  { %v8871_v24 = vpop.xlane.xlu0 %8870 }
0x34d7   :  { %v8875_v15 = vmul.f32 0.03125, %v8871_v24 }
0x34d9   :  { %v8877_v39 = vadd.f32 1e-05, %v8875_v15 }
0x34da   :  { %v8874_v31 = vpop.xlane.xlu0 %8873 }
0x34db   :  { %13868 = vrsqrt.f32 %v8877_v39  ;;  %v8876_v32 = vmul.f32 0.03125, %v8874_v31 }
0x34dd   :  { %v8878_v5 = vadd.f32 1e-05, %v8876_v32 }
0x34df   :  { %13870 = vrsqrt.f32 %v8878_v5 }
0x34e5   :  { %v13869_v36 = vpop.eup %13868 }
0x34e6   :  { %v8881_v38 = vmul.f32 %v13869_v36, %v8865_v63  ;;  %v9151_v63 = vld [vmem:[%s16580_s18 + $0x8] sm:$0xff] }
0x34e7   :  { %v13437_v6 = vpack.c.bf16 %v9153_v0, %v9151_v63 }
0x34e8   :  { %v8889_v40 = vmul.f32 %v12039_v41, %v8881_v38 }
0x34e9   :  { %v13871_v30 = vpop.eup %13870  ;;  %13438 = vmatprep.subr.bf16.mxu1 %v13437_v6 }
0x34ea   :  { %v8882_v43 = vmul.f32 %v13871_v30, %v16028_v62  ;;  %v8897_v48 = vadd.f32 %v12040_v19, %v8889_v40 }
0x34ec   :  { %v8890_v49 = vmul.f32 %v12039_v41, %v8882_v43  ;;  %13055 = vmatprep.mubr.msk.f32.mxu1 %vm532_vm1, %v8897_v48 }
0x34ee   :  { %v8898_v14 = vadd.f32 %v12040_v19, %v8890_v49 }
0x34f0   :  { %13056 = vmatmul.mubr.msk.f32.vlgmr.msra.gmra.mrb[106].mxu1 %vm532_vm1, %v8898_v14 }
0x34f1   :  { %9240 = vmatprep.mubr.f32.mxu1 %v14599_v18  ;;  %13440 = vmatpush1.bf16.msra.mxu1 %v13439_v9 }
0x34f2   :  { %13442 = vmatprep.subr.bf16.mxu1 %v13441_v42 }
0x34f5   :  { %13444 = vmatpush1.bf16.msra.mxu1 %v13443_v45 }
0x34f6   :  { %13446 = vmatprep.subr.bf16.mxu1 %v16070_v20 }
0x35c3   :  { %v13057_v57 = vpop.f32.mrb[106].mxu1 }
0x35c4   :  { %v8990_v58 = vadd.f32 %v13057_v57, %v12045_v55  ;;  %v8984_v34 = vpop.f32.mrb[107].mxu1 }
0x35c5   :  { %v8985_v59 = vadd.f32 %v12045_v55, %v8984_v34 }
0x35c6   :  { %v8994_v62 = vmax.f32 %v8990_v58, 0.0 }
0x35c7   :  { %v8993_v23 = vmax.f32 %v8985_v59, 0.0 }
0x35c9   :  { %13090 = vmatprep.mubr.f32.mxu0 %v8993_v23 }
0x35ca   :  { %13091 = vmatmul.mubr.f32.vlgmr.msra.gmra.mrb[88].mxu0 %v8994_v62  ;;  %v9158_v62 = vld [vmem:[#allocation24] sm:$0x3] }
0x35cb   :  { %9745 = vmatprep.mubr.f32.mxu0 %v14599_v18  ;;  %13472 = vmatpush1.bf16.msra.mxu0 %v16074_v52  ;;  %v9167_v63 = vrot.slane %v9158_v62, %v14988_v33  ;;  %v9163_v35 = vrot.slane %v9158_v62, %v14984_v29 }
0x35cc   :  { %13474 = vmatprep.subr.bf16.mxu0 %v16082_v47 }
0x35cf   :  { %13476 = vmatpush1.bf16.msra.mxu0 %v16085_v16 }
0x35d0   :  { %13486 = vmatprep.subr.bf16.mxu0 %v16070_v20 }
0x369d   :  { %v13092_v17 = vpop.f32.mrb[88].mxu0 }
0x369e   :  { %v9088_v27 = vadd.f32 %v13092_v17, %v16019_v54  ;;  %v9078_v22 = vpop.f32.mrb[89].mxu0 }
0x369f   :  { %v9087_v11 = vadd.f32 %v9078_v22, %v16021_v56 }
0x36a0   :  { %v9098_v25 = vadd.f32 %v12064_v21, %v9088_v27 }
0x36a1   :  { %v9097_v2 = vadd.f32 %v12064_v21, %v9087_v11 }
0x36a2   :  { %v9100_v26 = vrot.slane %v9098_v25, 7  ;;  %v9105_v39 = vrot.slane %v9098_v25, 6  ;;  %v9117_v32 = vrot.slane %v9098_v25, 3  ;;  %v9109_v56 = vrot.slane %v9098_v25, 5 }
0x36a3   :  { %v9103_v24 = vrot.slane %v9097_v2, 7  ;;  %v9115_v15 = vrot.slane %v9097_v2, 4  ;;  %v9119_v5 = vrot.slane %v9097_v2, 3  ;;  %v9107_v36 = vrot.slane %v9097_v2, 6 }
0x36a4   :  { %v9130_v31 = vsel %vm9129_vm11, %v9097_v2, %v9100_v26  ;;  %v9121_v38 = vrot.slane %v9098_v25, 2  ;;  %v9111_v40 = vrot.slane %v9097_v2, 5  ;;  %v9123_v43 = vrot.slane %v9097_v2, 2 }
0x36a5   :  { %v9132_v54 = vsel %vm9131_vm12, %v9130_v31, %v9103_v24  ;;  %v9143_v19 = vsel %vm9129_vm11, %v9115_v15, %v9117_v32  ;;  %v9113_v49 = vrot.slane %v9098_v25, 4  ;;  %v9125_v50 = vrot.slane %v9098_v25, 1 }
0x36a6   :  { %v9134_v41 = vsel %vm9133_vm13, %v9132_v54, %v9105_v39  ;;  %v9144_v48 = vsel %vm9131_vm12, %v9143_v19, %v9119_v5  ;;  %v9127_v55 = vrot.slane %v9097_v2, 1 }
0x36a7   :  { %v9136_v30 = vsel %vm9135_vm14, %v9134_v41, %v9107_v36  ;;  %v9145_v51 = vsel %vm9133_vm13, %v9144_v48, %v9121_v38 }
0x36a8   :  { %v9138_v14 = vsel %vm9137_vm15, %v9136_v30, %v9109_v56  ;;  %v9146_v57 = vsel %vm9135_vm14, %v9145_v51, %v9123_v43 }
0x36a9   :  { %v9140_v8 = vsel %vm9139_vm3, %v9138_v14, %v9111_v40  ;;  %v9147_v34 = vsel %vm9137_vm15, %v9146_v57, %v9125_v50 }
0x36aa   :  { %v9142_v58 = vsel %vm9141_vm4, %v9140_v8, %v9113_v49  ;;  %v9148_v59 = vsel %vm9139_vm3, %v9147_v34, %v9127_v55 }
0x36ab   :  { %12065 = vmatmul.mubr.msk.f32.vlgmr.msra.gmra.mrb[108].mxu1 %vm532_vm1, %v9142_v58  ;;  %v9149_v23 = vsel %vm9141_vm4, %v9148_v59, %v9098_v25 }
0x36ac   :  { %13448 = vmatpush1.bf16.msra.mxu1 %v16074_v52  ;;  %9246 = vmatprep.mubr.f32.mxu1 %v14599_v18 }
0x36ad   :  { %13450 = vmatprep.subr.bf16.mxu1 %v16082_v47 }
0x36af   :  { %12066 = vmatmul.mubr.msk.f32.gmra.mrb[110].mxu1 %vm532_vm1, %v9149_v23 }
0x36b0   :  { %13452 = vmatpush1.bf16.msra.mxu1 %v16085_v16  ;;  %9328 = vmatprep.mubr.f32.mxu1 %v14599_v18 }
0x36b1   :  { %13454 = vmatprep.subr.bf16.mxu1 %v16070_v20 }
0x36b3   :  { %9329 = vmatmul.mubr.f32.vlgmr.msra.gmra.mrb[112].mxu1 %v14599_v18 }
0x36b4   :  { %13456 = vmatpush1.bf16.msra.mxu1 %v16074_v52  ;;  %9461 = vmatprep.mubr.f32.mxu1 %v14599_v18 }
0x36b5   :  { %13458 = vmatprep.subr.bf16.mxu1 %v16082_v47 }
0x36b8   :  { %13460 = vmatpush1.bf16.msra.mxu1 %v16085_v16 }
0x36b9   :  { %13462 = vmatprep.subr.bf16.mxu1 %v16070_v20 }
0x377e   :  { %v9242_v0 = vpop.f32.mrb[108].mxu1 }
0x377f   :  { %v9244_v3 = vpop.f32.mrb[109].mxu1  ;;  %v16126_v42 = vadd.f32 %v9242_v0, %v9163_v35 }
0x3780   :  { %v16121_v6 = vadd.f32 %v9244_v3, %v9167_v63 }
0x3782   :  { %v9248_v37 = vpop.f32.mrb[110].mxu1 }
0x3783   :  { %v16124_v7 = vadd.f32 %v9248_v37, %v9163_v35  ;;  %v9250_v9 = vpop.f32.mrb[111].mxu1 }
0x3784   :  { %v16129_v61 = vadd.f32 %v9250_v9, %v9167_v63 }
0x3786   :  { %v9330_v44 = vpop.f32.mrb[112].mxu1 }
0x3787   :  { %v9335_v60 = vadd.f32 %v9330_v44, %v16126_v42  ;;  %v9332_v45 = vpop.f32.mrb[113].mxu1 }
0x3788   :  { %v9337_v10 = vrot.slane %v9332_v45, 4 }
0x3789   :  { %13872 = vtanh.f32 %v9335_v60  ;;  %v9340_v4 = vsub.f32 0.0, %v9335_v60 }
0x378a   :  { %v9339_v12 = vadd.f32 %v9337_v10, %v16129_v61 }
0x378b   :  { %v9341_v17 = vmul.f32 1.442695, %v9340_v4 }
0x378c   :  { %13874 = vtanh.f32 %v9339_v12  ;;  %v9364_v46 = vsub.f32 0.0, %v9339_v12 }
0x378e   :  { %v9365_v28 = vmul.f32 1.442695, %v9364_v46 }
0x3790   :  { %13876 = vpow2.f32 %v9365_v28 }
0x3791   :  { %13878 = vpow2.f32 %v9341_v17 }
0x3793   :  { %v13873_v53 = vpop.eup %13872 }
0x3794   :  { %9349 = vrot.lane.b32.xlu0 %v13873_v53, %s14609_s13 }
0x3796   :  { %v13875_v13 = vpop.eup %13874 }
0x3797   :  { %9373 = vrot.lane.b32.xlu1 %v13875_v13, %s14609_s13 }
0x379a   :  { %v13877_v21 = vpop.eup %13876 }
0x379b   :  { %v9367_v27 = vadd.f32 1.0, %v13877_v21  ;;  %v13879_v22 = vpop.eup %13878 }
0x379c   :  { %v9343_v11 = vadd.f32 1.0, %v13879_v22 }
0x379d   :  { %13880 = vrcp.f32 %v9367_v27 }
0x379e   :  { %13882 = vrcp.f32 %v9343_v11 }
0x37a7   :  { %v13881_v25 = vpop.eup %13880 }
0x37a8   :  { %v13883_v15 = vpop.eup %13882  ;;  %v9371_v31 = vmul.f32 0.0, %v13881_v25 }
0x37a9   :  { %v9347_v36 = vmul.f32 0.0, %v13883_v15 }
0x3806   :  { %v9350_v24 = vpop.permute.xlu0 %9349 }
0x3807   :  { %v9352_v39 = vmul.f32 %v13883_v15, %v9350_v24 }
0x3809   :  { %v9374_v2 = vpop.permute.xlu1 %9373 }
0x380a   :  { %v9376_v26 = vmul.f32 %v13881_v25, %v9374_v2 }
0x380c   :  { %9378 = vrot.lane.b32.xlu1 %v9376_v26, %s14613_s14 }
0x3810   :  { %9354 = vrot.lane.b32.xlu1 %v9352_v39, %s14613_s14 }
0x387e   :  { %v9379_v32 = vpop.permute.xlu1 %9378 }
0x387f   :  { %v9381_v5 = vadd.f32 %v9379_v32, %v9371_v31 }
0x3881   :  { %13884 = vtanh.f32 %v9381_v5  ;;  %v9511_v46 = vrot.slane %v9381_v5, 2 }
0x3882   :  { %v9355_v54 = vpop.permute.xlu1 %9354 }
0x3883   :  { %v9357_v56 = vadd.f32 %v9355_v54, %v9347_v36 }
0x3885   :  { %13886 = vtanh.f32 %v9357_v56  ;;  %v9484_v13 = vrot.slane %v9357_v56, 6 }
0x388b   :  { %v13885_v41 = vpop.eup %13884 }
0x388c   :  { %9384 = vrot.lane.b32.xlu0 %v13885_v41, %s14609_s13 }
0x388f   :  { %v13887_v38 = vpop.eup %13886 }
0x3890   :  { %9360 = vrot.lane.b32.xlu1 %v13887_v38, %s14609_s13 }
0x38fe   :  { %v9385_v19 = vpop.permute.xlu0 %9384 }
0x38ff   :  { %v16138_v40 = vmul.f32 %v13881_v25, %v9385_v19 }
0x3901   :  { %v9389_v43 = vrot.slane %v16138_v40, 4 }
0x3902   :  { %v9361_v30 = vpop.permute.xlu1 %9360 }
0x3903   :  { %v16141_v48 = vmul.f32 %v13883_v15, %v9361_v30 }
0x3905   :  { %v9391_v49 = vsel %vm9131_vm12, %v16141_v48, %v9389_v43 }
0x3906   :  { %9393 = vrot.lane.b32.xlu0 %v9391_v49, %s14613_s14 }
0x3978   :  { %v9394_v14 = vpop.permute.xlu0 %9393 }
0x3979   :  { %12067 = vmatmul.mubr.msk.f32.vlgmr.msra.gmra.mrb[114].mxu1 %vm532_vm1, %v9394_v14 }
0x397a   :  { %13464 = vmatpush1.bf16.msra.mxu1 %v16074_v52  ;;  %9606 = vmatprep.mubr.f32.mxu1 %v14599_v18 }
0x397b   :  { %13466 = vmatprep.subr.bf16.mxu1 %v16082_v47 }
0x397e   :  { %13468 = vmatpush1.bf16.msra.mxu1 %v16085_v16 }
0x397f   :  { %13478 = vmatprep.subr.bf16.mxu1 %v16070_v20 }
0x3a4c   :  { %v9463_v50 = vpop.f32.mrb[114].mxu1 }
0x3a4d   :  { %v9469_v51 = vrot.slane %v9463_v50, 6  ;;  %v9465_v8 = vpop.f32.mrb[115].mxu1 }
0x3a4e   :  { %v9473_v55 = vrot.slane %v9465_v8, 6 }
0x3a4f   :  { %v9471_v57 = vadd.f32 %v9469_v51, %v16126_v42 }
0x3a50   :  { %v9475_v58 = vadd.f32 %v9473_v55, %v16129_v61 }
0x3a51   :  { %13888 = vtanh.f32 %v9471_v57  ;;  %v9476_v23 = vsub.f32 0.0, %v9471_v57 }
0x3a52   :  { %13890 = vtanh.f32 %v9475_v58  ;;  %v9503_v62 = vsub.f32 0.0, %v9475_v58 }
0x3a53   :  { %v9477_v63 = vmul.f32 1.442695, %v9476_v23 }
0x3a54   :  { %v9504_v0 = vmul.f32 1.442695, %v9503_v62 }
0x3a55   :  { %13892 = vpow2.f32 %v9477_v63 }
0x3a56   :  { %13894 = vpow2.f32 %v9504_v0 }
0x3a5b   :  { %v13889_v34 = vpop.eup %13888 }
0x3a5c   :  { %v13891_v59 = vpop.eup %13890  ;;  %9488 = vrot.lane.b32.xlu1 %v13889_v34, %s14609_s13 }
0x3a5d   :  { %9515 = vrot.lane.b32.xlu0 %v13891_v59, %s14609_s13 }
0x3a5f   :  { %v13893_v3 = vpop.eup %13892 }
0x3a60   :  { %v13895_v35 = vpop.eup %13894  ;;  %v9479_v37 = vadd.f32 1.0, %v13893_v3 }
0x3a61   :  { %v9506_v9 = vadd.f32 1.0, %v13895_v35 }
0x3a62   :  { %13896 = vrcp.f32 %v9479_v37 }
0x3a63   :  { %13898 = vrcp.f32 %v9506_v9 }
0x3a6c   :  { %v13897_v44 = vpop.eup %13896 }
0x3a6d   :  { %v13899_v45 = vpop.eup %13898  ;;  %v9486_v4 = vmul.f32 %v13897_v44, %v9484_v13 }
0x3a6e   :  { %v9513_v17 = vmul.f32 %v13899_v45, %v9511_v46 }
0x3ace   :  { %v9489_v60 = vpop.permute.xlu1 %9488 }
0x3acf   :  { %v9491_v10 = vmul.f32 %v13897_v44, %v9489_v60  ;;  %v9516_v12 = vpop.permute.xlu0 %9515 }
0x3ad0   :  { %v9518_v53 = vmul.f32 %v13899_v45, %v9516_v12 }
0x3ad1   :  { %9493 = vrot.lane.b32.xlu1 %v9491_v10, %s14613_s14 }
0x3ad2   :  { %9520 = vrot.lane.b32.xlu0 %v9518_v53, %s14613_s14 }
0x3b43   :  { %v9494_v28 = vpop.permute.xlu1 %9493 }
0x3b44   :  { %v9496_v21 = vadd.f32 %v9494_v28, %v9486_v4  ;;  %v9521_v27 = vpop.permute.xlu0 %9520 }
0x3b45   :  { %v9523_v22 = vadd.f32 %v9521_v27, %v9513_v17 }
0x3b46   :  { %13900 = vtanh.f32 %v9496_v21  ;;  %v9626_v3 = vrot.slane %v9496_v21, 6 }
0x3b47   :  { %13902 = vtanh.f32 %v9523_v22  ;;  %v9653_v0 = vrot.slane %v9523_v22, 2 }
0x3b50   :  { %v13901_v11 = vpop.eup %13900 }
0x3b51   :  { %v13903_v25 = vpop.eup %13902  ;;  %9499 = vrot.lane.b32.xlu1 %v13901_v11, %s14609_s13 }
0x3b52   :  { %9526 = vrot.lane.b32.xlu0 %v13903_v25, %s14609_s13 }
0x3bc3   :  { %v9500_v2 = vpop.permute.xlu1 %9499 }
0x3bc4   :  { %v16160_v26 = vmul.f32 %v13897_v44, %v9500_v2  ;;  %v9527_v24 = vpop.permute.xlu0 %9526 }
0x3bc5   :  { %v16162_v15 = vmul.f32 %v13899_v45, %v9527_v24 }
0x3bc6   :  { %v9531_v39 = vrot.slane %v16160_v26, 2 }
0x3bc7   :  { %v9534_v31 = vrot.slane %v16162_v15, 2 }
0x3bc9   :  { %v9536_v32 = vsel %vm9131_vm12, %v9531_v39, %v9534_v31 }
0x3bca   :  { %9538 = vrot.lane.b32.xlu1 %v9536_v32, %s14613_s14 }
0x3c3c   :  { %v9539_v5 = vpop.permute.xlu1 %9538 }
0x3c3d   :  { %12068 = vmatmul.mubr.msk.f32.vlgmr.msra.gmra.mrb[116].mxu1 %vm532_vm1, %v9539_v5 }
0x3c3e   :  { %13480 = vmatpush1.bf16.msra.mxu1 %v16074_v52  ;;  %9890 = vmatprep.mubr.f32.mxu1 %v14599_v18 }
0x3c3f   :  { %13482 = vmatprep.subr.bf16.mxu1 %v16082_v47 }
0x3c42   :  { %13484 = vmatpush1.bf16.msra.mxu1 %v16085_v16 }
0x3c43   :  { %13494 = vmatprep.subr.bf16.mxu1 %v16070_v20 }
0x3d10   :  { %v9608_v36 = vpop.f32.mrb[116].mxu1 }
0x3d11   :  { %v9614_v54 = vrot.slane %v9608_v36, 4  ;;  %v9610_v56 = vpop.f32.mrb[117].mxu1 }
0x3d12   :  { %v9617_v41 = vadd.f32 %v9610_v56, %v16129_v61 }
0x3d13   :  { %v9616_v38 = vadd.f32 %v9614_v54, %v16126_v42 }
0x3d14   :  { %13904 = vtanh.f32 %v9617_v41  ;;  %v9645_v43 = vsub.f32 0.0, %v9617_v41 }
0x3d15   :  { %13906 = vtanh.f32 %v9616_v38  ;;  %v9618_v49 = vsub.f32 0.0, %v9616_v38 }
0x3d16   :  { %v9646_v14 = vmul.f32 1.442695, %v9645_v43 }
0x3d17   :  { %v9619_v50 = vmul.f32 1.442695, %v9618_v49 }
0x3d18   :  { %13908 = vpow2.f32 %v9646_v14 }
0x3d19   :  { %13910 = vpow2.f32 %v9619_v50 }
0x3d1e   :  { %v13905_v19 = vpop.eup %13904 }
0x3d1f   :  { %v13907_v30 = vpop.eup %13906  ;;  %9657 = vrot.lane.b32.xlu1 %v13905_v19, %s14609_s13 }
0x3d20   :  { %9630 = vrot.lane.b32.xlu0 %v13907_v30, %s14609_s13 }
0x3d22   :  { %v13909_v51 = vpop.eup %13908 }
0x3d23   :  { %v13911_v8 = vpop.eup %13910  ;;  %v9648_v55 = vadd.f32 1.0, %v13909_v51 }
0x3d24   :  { %v9621_v57 = vadd.f32 1.0, %v13911_v8 }
0x3d25   :  { %13912 = vrcp.f32 %v9648_v55 }
0x3d26   :  { %13914 = vrcp.f32 %v9621_v57 }
0x3d2f   :  { %v13913_v58 = vpop.eup %13912 }
0x3d30   :  { %v13915_v59 = vpop.eup %13914  ;;  %v9655_v35 = vmul.f32 %v13913_v58, %v9653_v0 }
0x3d31   :  { %v9628_v9 = vmul.f32 %v13915_v59, %v9626_v3 }
0x3d91   :  { %v9658_v34 = vpop.permute.xlu1 %9657 }
0x3d92   :  { %v9660_v23 = vmul.f32 %v13913_v58, %v9658_v34  ;;  %v9631_v62 = vpop.permute.xlu0 %9630 }
0x3d93   :  { %v9633_v63 = vmul.f32 %v13915_v59, %v9631_v62 }
0x3d94   :  { %9662 = vrot.lane.b32.xlu1 %v9660_v23, %s14613_s14 }
0x3d95   :  { %9635 = vrot.lane.b32.xlu0 %v9633_v63, %s14613_s14 }
0x3e06   :  { %v9663_v37 = vpop.permute.xlu1 %9662 }
0x3e07   :  { %v9665_v44 = vadd.f32 %v9663_v37, %v9655_v35  ;;  %v9636_v60 = vpop.permute.xlu0 %9635 }
0x3e08   :  { %v9638_v45 = vadd.f32 %v9636_v60, %v9628_v9 }
0x3e09   :  { %13916 = vtanh.f32 %v9665_v44  ;;  %v9795_v50 = vrot.slane %v9665_v44, 2 }
0x3e0a   :  { %13918 = vtanh.f32 %v9638_v45  ;;  %v9768_v14 = vrot.slane %v9638_v45, 6 }
0x3e13   :  { %v13917_v10 = vpop.eup %13916 }
0x3e14   :  { %v13919_v12 = vpop.eup %13918  ;;  %9668 = vrot.lane.b32.xlu1 %v13917_v10, %s14609_s13 }
0x3e15   :  { %9641 = vrot.lane.b32.xlu0 %v13919_v12, %s14609_s13 }
0x3e86   :  { %v9669_v53 = vpop.permute.xlu1 %9668 }
0x3e87   :  { %v9642_v13 = vpop.permute.xlu0 %9641  ;;  %v16184_v4 = vmul.f32 %v13913_v58, %v9669_v53 }
0x3e88   :  { %v16182_v46 = vmul.f32 %v13915_v59, %v9642_v13 }
0x3e8a   :  { %v9673_v28 = vrot.slane %v16182_v46, 4 }
0x3e8c   :  { %v9675_v17 = vsel %vm9131_vm12, %v9673_v28, %v16184_v4 }
0x3e8d   :  { %9677 = vrot.lane.b32.xlu0 %v9675_v17, %s14613_s14 }
0x3eff   :  { %v9678_v21 = vpop.permute.xlu0 %9677 }
0x3f00   :  { %12069 = vmatmul.mubr.msk.f32.vlgmr.msra.gmra.mrb[90].mxu0 %vm532_vm1, %v9678_v21 }
0x3f01   :  { %13488 = vmatpush1.bf16.msra.mxu0 %v16074_v52  ;;  %10029 = vmatprep.mubr.f32.mxu0 %v14599_v18 }
0x3f02   :  { %13490 = vmatprep.subr.bf16.mxu0 %v16082_v47 }
0x3f05   :  { %13492 = vmatpush1.bf16.msra.mxu0 %v16085_v16 }
0x3f06   :  { %13502 = vmatprep.subr.bf16.mxu0 %v16070_v20 }
0x3fd3   :  { %v9747_v27 = vpop.f32.mrb[90].mxu0 }
0x3fd4   :  { %v9753_v22 = vrot.slane %v9747_v27, 2  ;;  %v9749_v11 = vpop.f32.mrb[91].mxu0 }
0x3fd5   :  { %v9757_v25 = vrot.slane %v9749_v11, 2 }
0x3fd6   :  { %v9755_v2 = vadd.f32 %v9753_v22, %v16126_v42 }
0x3fd7   :  { %v9759_v24 = vadd.f32 %v9757_v25, %v16129_v61 }
0x3fd8   :  { %13920 = vtanh.f32 %v9755_v2  ;;  %v9760_v32 = vsub.f32 0.0, %v9755_v2 }
0x3fd9   :  { %13922 = vtanh.f32 %v9759_v24  ;;  %v9787_v5 = vsub.f32 0.0, %v9759_v24 }
0x3fda   :  { %v9761_v36 = vmul.f32 1.442695, %v9760_v32 }
0x3fdb   :  { %v9788_v20 = vmul.f32 1.442695, %v9787_v5 }
0x3fdc   :  { %13924 = vpow2.f32 %v9761_v36 }
0x3fdd   :  { %13926 = vpow2.f32 %v9788_v20 }
0x3fe2   :  { %v13921_v39 = vpop.eup %13920 }
0x3fe3   :  { %v13923_v31 = vpop.eup %13922  ;;  %9772 = vrot.lane.b32.xlu1 %v13921_v39, %s14609_s13 }
0x3fe4   :  { %9799 = vrot.lane.b32.xlu0 %v13923_v31, %s14609_s13 }
0x3fe6   :  { %v13925_v54 = vpop.eup %13924 }
0x3fe7   :  { %v13927_v56 = vpop.eup %13926  ;;  %v9763_v41 = vadd.f32 1.0, %v13925_v54 }
0x3fe8   :  { %v9790_v42 = vadd.f32 1.0, %v13927_v56 }
0x3fe9   :  { %13928 = vrcp.f32 %v9763_v41 }
0x3fea   :  { %13930 = vrcp.f32 %v9790_v42 }
0x3ff3   :  { %v13929_v61 = vpop.eup %13928 }
0x3ff4   :  { %v13931_v19 = vpop.eup %13930  ;;  %v9770_v51 = vmul.f32 %v13929_v61, %v9768_v14 }
0x3ff5   :  { %v9797_v55 = vmul.f32 %v13931_v19, %v9795_v50 }
0x4055   :  { %v9773_v38 = vpop.permute.xlu1 %9772 }
0x4056   :  { %v9775_v30 = vmul.f32 %v13929_v61, %v9773_v38  ;;  %v9800_v43 = vpop.permute.xlu0 %9799 }
0x4057   :  { %v9802_v49 = vmul.f32 %v13931_v19, %v9800_v43 }
0x4058   :  { %9777 = vrot.lane.b32.xlu1 %v9775_v30, %s14613_s14 }
0x4059   :  { %9804 = vrot.lane.b32.xlu0 %v9802_v49, %s14613_s14 }
0x40ca   :  { %v9778_v8 = vpop.permute.xlu1 %9777 }
0x40cb   :  { %v9780_v57 = vadd.f32 %v9778_v8, %v9770_v51  ;;  %v9805_v58 = vpop.permute.xlu0 %9804 }
0x40cc   :  { %v9807_v34 = vadd.f32 %v9805_v58, %v9797_v55 }
0x40cd   :  { %13932 = vtanh.f32 %v9780_v57  ;;  %v9910_v54 = vrot.slane %v9780_v57, 6 }
0x40ce   :  { %13934 = vtanh.f32 %v9807_v34  ;;  %v9937_v41 = vrot.slane %v9807_v34, 2 }
0x40d7   :  { %v13933_v59 = vpop.eup %13932 }
0x40d8   :  { %v13935_v23 = vpop.eup %13934  ;;  %9783 = vrot.lane.b32.xlu1 %v13933_v59, %s14609_s13 }
0x40d9   :  { %9810 = vrot.lane.b32.xlu0 %v13935_v23, %s14609_s13 }
0x414a   :  { %v9784_v62 = vpop.permute.xlu1 %9783 }
0x414b   :  { %v16204_v63 = vmul.f32 %v13929_v61, %v9784_v62  ;;  %v9811_v0 = vpop.permute.xlu0 %9810 }
0x414c   :  { %v16206_v3 = vmul.f32 %v13931_v19, %v9811_v0 }
0x414d   :  { %v9815_v35 = vrot.slane %v16204_v63, 6 }
0x414e   :  { %v9818_v37 = vrot.slane %v16206_v3, 6 }
0x4150   :  { %v9820_v9 = vsel %vm9131_vm12, %v9815_v35, %v9818_v37 }
0x4151   :  { %9822 = vrot.lane.b32.xlu1 %v9820_v9, %s14613_s14 }
0x41c3   :  { %v9823_v44 = vpop.permute.xlu1 %9822 }
0x41c4   :  { %12070 = vmatmul.mubr.msk.f32.vlgmr.msra.gmra.mrb[118].mxu1 %vm532_vm1, %v9823_v44 }
0x41c5   :  { %13496 = vmatpush1.bf16.msra.mxu1 %v16074_v52  ;;  %10174 = vmatprep.mubr.f32.mxu1 %v14599_v18 }
0x41c6   :  { %13498 = vmatprep.subr.bf16.mxu1 %v16082_v47 }
0x41c9   :  { %13500 = vmatpush1.bf16.msra.mxu1 %v16085_v16 }
0x4297   :  { %v9892_v60 = vpop.f32.mrb[118].mxu1 }
0x4298   :  { %v9897_v45 = vadd.f32 %v9892_v60, %v16124_v7  ;;  %v9894_v10 = vpop.f32.mrb[119].mxu1 }
0x4299   :  { %v9899_v12 = vrot.slane %v9894_v10, 4 }
0x429a   :  { %13936 = vtanh.f32 %v9897_v45  ;;  %v9902_v17 = vsub.f32 0.0, %v9897_v45 }
0x429b   :  { %v9901_v53 = vadd.f32 %v9899_v12, %v16121_v6 }
0x429c   :  { %v9903_v27 = vmul.f32 1.442695, %v9902_v17 }
0x429d   :  { %13938 = vtanh.f32 %v9901_v53  ;;  %v9929_v21 = vsub.f32 0.0, %v9901_v53 }
0x429e   :  { %13940 = vpow2.f32 %v9903_v27 }
0x429f   :  { %v9930_v22 = vmul.f32 1.442695, %v9929_v21 }
0x42a1   :  { %13942 = vpow2.f32 %v9930_v22 }
0x42a4   :  { %v13937_v13 = vpop.eup %13936 }
0x42a5   :  { %9914 = vrot.lane.b32.xlu1 %v13937_v13, %s14609_s13 }
0x42a7   :  { %v13939_v28 = vpop.eup %13938 }
0x42a8   :  { %9941 = vrot.lane.b32.xlu0 %v13939_v28, %s14609_s13  ;;  %v13941_v11 = vpop.eup %13940 }
0x42a9   :  { %v9905_v2 = vadd.f32 1.0, %v13941_v11 }
0x42ab   :  { %v13943_v25 = vpop.eup %13942  ;;  %13944 = vrcp.f32 %v9905_v2 }
0x42ac   :  { %v9932_v24 = vadd.f32 1.0, %v13943_v25 }
0x42ae   :  { %13946 = vrcp.f32 %v9932_v24 }
0x42b5   :  { %v13945_v39 = vpop.eup %13944 }
0x42b6   :  { %v9912_v56 = vmul.f32 %v13945_v39, %v9910_v54 }
0x42b8   :  { %v13947_v5 = vpop.eup %13946 }
0x42b9   :  { %v9939_v38 = vmul.f32 %v13947_v5, %v9937_v41 }
0x4317   :  { %v9915_v31 = vpop.permute.xlu1 %9914 }
0x4318   :  { %v9917_v32 = vmul.f32 %v13945_v39, %v9915_v31 }
0x431a   :  { %9919 = vrot.lane.b32.xlu1 %v9917_v32, %s14613_s14  ;;  %v9942_v36 = vpop.permute.xlu0 %9941 }
0x431b   :  { %v9944_v20 = vmul.f32 %v13947_v5, %v9942_v36 }
0x431d   :  { %9946 = vrot.lane.b32.xlu0 %v9944_v20, %s14613_s14 }
0x438c   :  { %v9920_v42 = vpop.permute.xlu1 %9919 }
0x438d   :  { %v9922_v61 = vadd.f32 %v9920_v42, %v9912_v56 }
0x438f   :  { %13948 = vtanh.f32 %v9922_v61  ;;  %v9947_v19 = vpop.permute.xlu0 %9946  ;;  %v10052_v22 = vrot.slane %v9922_v61, 6 }
0x4390   :  { %v9949_v30 = vadd.f32 %v9947_v19, %v9939_v38 }
0x4392   :  { %13950 = vtanh.f32 %v9949_v30  ;;  %v10079_v11 = vrot.slane %v9949_v30, 2 }
0x4399   :  { %v13949_v43 = vpop.eup %13948 }
0x439a   :  { %9925 = vrot.lane.b32.xlu1 %v13949_v43, %s14609_s13 }
0x439c   :  { %v13951_v49 = vpop.eup %13950 }
0x439d   :  { %9952 = vrot.lane.b32.xlu0 %v13951_v49, %s14609_s13 }
0x440c   :  { %v9926_v14 = vpop.permute.xlu1 %9925 }
0x440d   :  { %v16227_v8 = vmul.f32 %v13945_v39, %v9926_v14 }
0x440f   :  { %v9953_v50 = vpop.permute.xlu0 %9952 }
0x4410   :  { %v16225_v51 = vmul.f32 %v13947_v5, %v9953_v50 }
0x4412   :  { %v9957_v55 = vrot.slane %v16225_v51, 4 }
0x4414   :  { %v9959_v57 = vsel %vm9131_vm12, %v16227_v8, %v9957_v55 }
0x4415   :  { %9961 = vrot.lane.b32.xlu0 %v9959_v57, %s14613_s14 }
0x4487   :  { %v9962_v58 = vpop.permute.xlu0 %9961 }
0x4488   :  { %12071 = vmatmul.mubr.msk.f32.vlgmr.msra.gmra.mrb[92].mxu0 %vm532_vm1, %v9962_v58 }
0x4489   :  { %13504 = vmatpush1.bf16.msra.mxu0 %v16074_v52  ;;  %10313 = vmatprep.mubr.f32.mxu0 %v14599_v18 }
0x448a   :  { %13506 = vmatprep.subr.bf16.mxu0 %v16082_v47 }
0x448d   :  { %13508 = vmatpush1.bf16.msra.mxu0 %v16085_v16 }
0x448e   :  { %13525 = vmatprep.subr.bf16.mxu0 %v14612_v1 }
0x455b   :  { %v10031_v34 = vpop.f32.mrb[92].mxu0 }
0x455c   :  { %v10037_v59 = vrot.slane %v10031_v34, 6  ;;  %v10033_v23 = vpop.f32.mrb[93].mxu0 }
0x455d   :  { %v10041_v62 = vrot.slane %v10033_v23, 6 }
0x455e   :  { %v10039_v0 = vadd.f32 %v10037_v59, %v16124_v7 }
0x455f   :  { %v10043_v35 = vadd.f32 %v10041_v62, %v16121_v6 }
0x4560   :  { %13952 = vtanh.f32 %v10039_v0  ;;  %v10044_v47 = vsub.f32 0.0, %v10039_v0 }
0x4561   :  { %13954 = vtanh.f32 %v10043_v35  ;;  %v10071_v16 = vsub.f32 0.0, %v10043_v35 }
0x4562   :  { %v10045_v9 = vmul.f32 1.442695, %v10044_v47 }
0x4563   :  { %v10072_v44 = vmul.f32 1.442695, %v10071_v16 }
0x4564   :  { %13956 = vpow2.f32 %v10045_v9 }
0x4565   :  { %13958 = vpow2.f32 %v10072_v44 }
0x456a   :  { %v13953_v37 = vpop.eup %13952 }
0x456b   :  { %v13955_v52 = vpop.eup %13954  ;;  %10056 = vrot.lane.b32.xlu1 %v13953_v37, %s14609_s13 }
0x456c   :  { %10083 = vrot.lane.b32.xlu0 %v13955_v52, %s14609_s13 }
0x456e   :  { %v13957_v60 = vpop.eup %13956 }
0x456f   :  { %v13959_v45 = vpop.eup %13958  ;;  %v10047_v10 = vadd.f32 1.0, %v13957_v60 }
0x4570   :  { %v10074_v12 = vadd.f32 1.0, %v13959_v45 }
0x4571   :  { %13960 = vrcp.f32 %v10047_v10 }
0x4572   :  { %13962 = vrcp.f32 %v10074_v12 }
0x457b   :  { %v13961_v53 = vpop.eup %13960 }
0x457c   :  { %v13963_v28 = vpop.eup %13962  ;;  %v10054_v25 = vmul.f32 %v13961_v53, %v10052_v22 }
0x457d   :  { %v10081_v24 = vmul.f32 %v13963_v28, %v10079_v11 }
0x45dd   :  { %v10057_v13 = vpop.permute.xlu1 %10056 }
0x45de   :  { %v10059_v17 = vmul.f32 %v13961_v53, %v10057_v13  ;;  %v10084_v21 = vpop.permute.xlu0 %10083 }
0x45df   :  { %v10086_v27 = vmul.f32 %v13963_v28, %v10084_v21 }
0x45e0   :  { %10061 = vrot.lane.b32.xlu1 %v10059_v17, %s14613_s14 }
0x45e1   :  { %10088 = vrot.lane.b32.xlu0 %v10086_v27, %s14613_s14 }
0x4652   :  { %v10062_v2 = vpop.permute.xlu1 %10061 }
0x4653   :  { %v10064_v39 = vadd.f32 %v10062_v2, %v10054_v25  ;;  %v10089_v31 = vpop.permute.xlu0 %10088 }
0x4654   :  { %v10091_v32 = vadd.f32 %v10089_v31, %v10081_v24 }
0x4655   :  { %13964 = vtanh.f32 %v10064_v39  ;;  %v10194_v10 = vrot.slane %v10064_v39, 6 }
0x4656   :  { %13966 = vtanh.f32 %v10091_v32  ;;  %v10221_v45 = vrot.slane %v10091_v32, 2 }
0x465f   :  { %v13965_v5 = vpop.eup %13964 }
0x4660   :  { %v13967_v36 = vpop.eup %13966  ;;  %10067 = vrot.lane.b32.xlu1 %v13965_v5, %s14609_s13 }
0x4661   :  { %10094 = vrot.lane.b32.xlu0 %v13967_v36, %s14609_s13 }
0x46d2   :  { %v10068_v20 = vpop.permute.xlu1 %10067 }
0x46d3   :  { %v16247_v54 = vmul.f32 %v13961_v53, %v10068_v20  ;;  %v10095_v56 = vpop.permute.xlu0 %10094 }
0x46d4   :  { %v16249_v41 = vmul.f32 %v13963_v28, %v10095_v56 }
0x46d5   :  { %v10099_v42 = vrot.slane %v16247_v54, 2 }
0x46d6   :  { %v10102_v61 = vrot.slane %v16249_v41, 2 }
0x46d8   :  { %v10104_v38 = vsel %vm9131_vm12, %v10099_v42, %v10102_v61 }
0x46d9   :  { %10106 = vrot.lane.b32.xlu1 %v10104_v38, %s14613_s14 }
0x474b   :  { %v10107_v19 = vpop.permute.xlu1 %10106 }
0x474c   :  { %12072 = vmatmul.mubr.msk.f32.vlgmr.msra.gmra.mrb[120].mxu1 %vm532_vm1, %v10107_v19 }
0x474d   :  { %10548 = vmatprep.mubr.f32.mxu1 %v14599_v18 }
0x481f   :  { %v10176_v30 = vpop.f32.mrb[120].mxu1 }
0x4820   :  { %v10182_v43 = vrot.slane %v10176_v30, 4  ;;  %v10178_v49 = vpop.f32.mrb[121].mxu1 }
0x4821   :  { %v10185_v14 = vadd.f32 %v10178_v49, %v16121_v6 }
0x4822   :  { %v10184_v50 = vadd.f32 %v10182_v43, %v16124_v7 }
0x4823   :  { %13968 = vtanh.f32 %v10185_v14  ;;  %v10213_v58 = vsub.f32 0.0, %v10185_v14 }
0x4824   :  { %13970 = vtanh.f32 %v10184_v50  ;;  %v10186_v34 = vsub.f32 0.0, %v10184_v50 }
0x4825   :  { %v10214_v59 = vmul.f32 1.442695, %v10213_v58  ;;  %v10451_v58 = vld [vmem:[%s16582_s1 + $0x8] sm:$0xff] }
0x4826   :  { %v10187_v23 = vmul.f32 1.442695, %v10186_v34  ;;  %v10450_v34 = vld [vmem:[%s16582_s1] sm:$0xff] }
0x4827   :  { %13972 = vpow2.f32 %v10214_v59 }
0x4828   :  { %13974 = vpow2.f32 %v10187_v23  ;;  %v10455_v23 = vld [vmem:[%s16582_s1 + $0x28] sm:$0xff] }
0x482d   :  { %v13969_v55 = vpop.eup %13968 }
0x482e   :  { %v13971_v57 = vpop.eup %13970  ;;  %10225 = vrot.lane.b32.xlu1 %v13969_v55, %s14609_s13 }
0x482f   :  { %10198 = vrot.lane.b32.xlu0 %v13971_v57, %s14609_s13 }
0x4831   :  { %v13973_v62 = vpop.eup %13972 }
0x4832   :  { %v13975_v0 = vpop.eup %13974  ;;  %v10216_v35 = vadd.f32 1.0, %v13973_v62 }
0x4833   :  { %v10189_v37 = vadd.f32 1.0, %v13975_v0 }
0x4834   :  { %13976 = vrcp.f32 %v10216_v35  ;;  %v10456_v35 = vld [vmem:[%s16582_s1 + $0x30] sm:$0xff] }
0x4835   :  { %13978 = vrcp.f32 %v10189_v37  ;;  %v10459_v37 = vld [vmem:[%s16582_s1 + $0x48] sm:$0xff] }
0x483e   :  { %v13977_v52 = vpop.eup %13976 }
0x483f   :  { %v13979_v16 = vpop.eup %13978  ;;  %v10223_v12 = vmul.f32 %v13977_v52, %v10221_v45 }
0x4840   :  { %v10196_v13 = vmul.f32 %v13979_v16, %v10194_v10  ;;  %v10560_v10 = vld [vmem:[#allocation27] sm:$0xff] }
0x48a0   :  { %v10226_v47 = vpop.permute.xlu1 %10225 }
0x48a1   :  { %v10228_v9 = vmul.f32 %v13977_v52, %v10226_v47  ;;  %v10199_v44 = vpop.permute.xlu0 %10198 }
0x48a2   :  { %v10201_v60 = vmul.f32 %v13979_v16, %v10199_v44  ;;  %v10458_v44 = vld [vmem:[%s16582_s1 + $0x40] sm:$0xff] }
0x48a3   :  { %10230 = vrot.lane.b32.xlu1 %v10228_v9, %s14613_s14 }
0x48a4   :  { %10203 = vrot.lane.b32.xlu0 %v10201_v60, %s14613_s14  ;;  %v10460_v60 = vld [vmem:[%s16582_s1 + $0x50] sm:$0xff] }
0x48a5   :  { %v13519_v45 = vpack.c.bf16 %v10460_v60, %v10458_v44 }
0x4915   :  { %v10231_v53 = vpop.permute.xlu1 %10230 }
0x4916   :  { %v10233_v28 = vadd.f32 %v10231_v53, %v10223_v12  ;;  %v10204_v17 = vpop.permute.xlu0 %10203  ;;  %v10561_v12 = vld [vmem:[#allocation27 + $0x8] sm:$0xff] }
0x4917   :  { %v16263_v21 = vadd.f32 %v10204_v17, %v10196_v13  ;;  %v16305_v53 = vpack.c.bf16 %v10561_v12, %v10560_v10  ;;  %v10463_v13 = vld [vmem:[%s16582_s1 + $0x68] sm:$0xff]  ;;  %v10462_v17 = vld [vmem:[%s16582_s1 + $0x60] sm:$0xff] }
0x4918   :  { %13980 = vtanh.f32 %v10233_v28 }
0x4919   :  { %13982 = vtanh.f32 %v16263_v21 }
0x4922   :  { %v13981_v27 = vpop.eup %13980 }
0x4923   :  { %v13983_v22 = vpop.eup %13982  ;;  %10236 = vrot.lane.b32.xlu1 %v13981_v27, %s14609_s13 }
0x4924   :  { %10209 = vrot.lane.b32.xlu0 %v13983_v22, %s14609_s13  ;;  %v10464_v22 = vld [vmem:[%s16582_s1 + $0x70] sm:$0xff] }
0x4995   :  { %v10237_v11 = vpop.permute.xlu1 %10236 }
0x4996   :  { %v10210_v25 = vpop.permute.xlu0 %10209  ;;  %v10239_v24 = vmul.f32 %v13977_v52, %v10237_v11  ;;  %v10461_v52 = vld [vmem:[%s16582_s1 + $0x58] sm:$0xff]  ;;  %v13523_v11 = vpack.c.bf16 %v10464_v22, %v10462_v17 }
0x4997   :  { %v16268_v2 = vmul.f32 %v13979_v16, %v10210_v25  ;;  %v13517_v9 = vpack.c.bf16 %v10461_v52, %v10459_v37  ;;  %v10562_v25 = vld [vmem:[#allocation27 + $0x10] sm:$0xff] }
0x4999   :  { %v10241_v39 = vrot.slane %v16268_v2, 4 }
0x499b   :  { %v10243_v31 = vsel %vm9131_vm12, %v10241_v39, %v10239_v24 }
0x499c   :  { %10245 = vrot.lane.b32.xlu0 %v10243_v31, %s14613_s14 }
0x4a0e   :  { %v10246_v32 = vpop.permute.xlu0 %10245 }
0x4a0f   :  { %12073 = vmatmul.mubr.msk.f32.vlgmr.msra.gmra.mrb[94].mxu0 %vm532_vm1, %v10246_v32 }
0x4a10   :  { %13101 = vmatprep.mubr.msk.f32.mxu0 %vm14600_vm2, %v14599_v18  ;;  %13527 = vmatpush3.bf16.msra.mxu0 %v16305_v53 }
0x4a11   :  { %13528 = vmatprep.subr.bf16.mxu0 %v14612_v1 }
0x4ae2   :  { %v16276_v5 = vpop.f32.mrb[94].mxu0 }
0x4ae3   :  { %v10317_v36 = vpop.f32.mrb[95].mxu0 }
0x4ae4   :  { %v10325_v20 = vrot.slane %v10317_v36, 2 }
0x4ae6   :  { %v10327_v56 = vadd.f32 %v10325_v20, %v16121_v6  ;;  %v10363_v6 = vrot.slane %v10233_v28, 2  ;;  %v10465_v28 = vld [vmem:[%s16582_s1 + $0x78] sm:$0xff] }
0x4ae7   :  { %v13521_v27 = vpack.c.bf16 %v10465_v28, %v10463_v13 }
0x4ae8   :  { %13984 = vtanh.f32 %v10327_v56  ;;  %v10355_v61 = vsub.f32 0.0, %v10327_v56 }
0x4aea   :  { %v10356_v38 = vmul.f32 1.442695, %v10355_v61 }
0x4aec   :  { %13986 = vpow2.f32 %v10356_v38 }
0x4af2   :  { %v13985_v42 = vpop.eup %13984 }
0x4af3   :  { %10367 = vrot.lane.b32.xlu1 %v13985_v42, %s14609_s13 }
0x4af6   :  { %v13987_v19 = vpop.eup %13986 }
0x4af7   :  { %v10358_v30 = vadd.f32 1.0, %v13987_v19 }
0x4af9   :  { %13988 = vrcp.f32 %v10358_v30 }
0x4b03   :  { %v13989_v43 = vpop.eup %13988 }
0x4b04   :  { %v10365_v50 = vmul.f32 %v13989_v43, %v10363_v6 }
0x4b65   :  { %v10368_v49 = vpop.permute.xlu1 %10367 }
0x4b66   :  { %v10370_v14 = vmul.f32 %v13989_v43, %v10368_v49 }
0x4b68   :  { %10372 = vrot.lane.b32.xlu0 %v10370_v14, %s14613_s14 }
0x4b6c   :  { %10383 = vrot.lane.b32.xlu0 %v16141_v48, %s14613_s14  ;;  %v10453_v48 = vld [vmem:[%s16582_s1 + $0x18] sm:$0xff] }
0x4b6d   :  { %v13509_v59 = vpack.c.bf16 %v10453_v48, %v10451_v58  ;;  %v16341_v58 = vld [vmem:[#allocation25] sm:$0x3] }
0x4b6e   :  { %v16345_v48 = vrot.slane %v16341_v58, %v14984_v29 }
0x4b6f   :  { %13510 = vmatprep.subr.bf16.mxu1 %v13509_v59 }
0x4b70   :  { %10391 = vrot.lane.b32.xlu0 %v16160_v26, %s14613_s14  ;;  %v10452_v26 = vld [vmem:[%s16582_s1 + $0x10] sm:$0xff] }
0x4b71   :  { %v13511_v62 = vpack.c.bf16 %v10452_v26, %v10450_v34 }
0x4b73   :  { %13512 = vmatpush1.bf16.msra.mxu1 %v13511_v62 }
0x4b74   :  { %10399 = vrot.lane.b32.xlu0 %v16182_v46, %s14613_s14  ;;  %v10457_v46 = vld [vmem:[%s16582_s1 + $0x38] sm:$0xff] }
0x4b75   :  { %v13513_v0 = vpack.c.bf16 %v10457_v46, %v10455_v23 }
0x4b77   :  { %13514 = vmatprep.subr.bf16.mxu1 %v13513_v0 }
0x4b78   :  { %10406 = vrot.lane.b32.xlu0 %v16204_v63, %s14613_s14  ;;  %v10454_v63 = vld [vmem:[%s16582_s1 + $0x20] sm:$0xff] }
0x4b79   :  { %v13515_v16 = vpack.c.bf16 %v10456_v35, %v10454_v63 }
0x4b7b   :  { %13516 = vmatpush1.bf16.msra.mxu1 %v13515_v16 }
0x4b7c   :  { %13518 = vmatprep.subr.bf16.mxu1 %v13517_v9 }
0x4b7f   :  { %13520 = vmatpush1.bf16.msra.mxu1 %v13519_v45 }
0x4b80   :  { %13522 = vmatprep.subr.bf16.mxu1 %v13521_v27 }
0x4b83   :  { %13524 = vmatpush1.bf16.msra.mxu1 %v13523_v11 }
0x4b84   :  { %13537 = vmatprep.subr.bf16.mxu1 %v14612_v1 }
0x4bda   :  { %v10373_v55 = vpop.permute.xlu0 %10372 }
0x4bdb   :  { %v10375_v57 = vadd.f32 %v10373_v55, %v10365_v50 }
0x4bdd   :  { %13990 = vtanh.f32 %v10375_v57 }
0x4bde   :  { %v10384_v32 = vpop.permute.xlu0 %10383 }
0x4be2   :  { %v10392_v20 = vpop.permute.xlu0 %10391 }
0x4be6   :  { %v10400_v42 = vpop.permute.xlu0 %10399 }
0x4be7   :  { %v13991_v47 = vpop.eup %13990 }
0x4be8   :  { %10378 = vrot.lane.b32.xlu1 %v13991_v47, %s14609_s13  ;;  %v10321_v47 = vrot.slane %v16276_v5, 2 }
0x4bea   :  { %v10323_v60 = vadd.f32 %v10321_v47, %v16124_v7 }
0x4bec   :  { %10395 = vrot.lane.b32.xlu1 %v10239_v24, %s14609_s13  ;;  %v10563_v24 = vld [vmem:[#allocation27 + $0x18] sm:$0xff]  ;;  %v10328_v12 = vsub.f32 0.0, %v10323_v60 }
0x4bed   :  { %v16313_v39 = vpack.c.bf16 %v10563_v24, %v10562_v25  ;;  %v10336_v24 = vrot.slane %v16263_v21, 6 }
0x4bee   :  { %v10329_v13 = vmul.f32 1.442695, %v10328_v12 }
0x4bef   :  { %13530 = vmatpush3.bf16.msra.mxu0 %v16313_v39 }
0x4bf0   :  { %10402 = vrot.lane.b32.xlu1 %v16249_v41, %s14609_s13  ;;  %13531 = vmatprep.subr.bf16.mxu0 %v14612_v1 }
0x4bf2   :  { %13102 = vmatmul.mubr.f32.vlgmr.msra.gmra.mrb[96].mxu0 %v14599_v18 }
0x4bf3   :  { %13533 = vmatpush3.bf16.msra.mxu0 %v16305_v53  ;;  %13112 = vmatprep.mubr.msk.f32.mxu0 %vm14600_vm2, %v14599_v18 }
0x4bf4   :  { %13534 = vmatprep.subr.bf16.mxu0 %v14612_v1 }
0x4bf7   :  { %13536 = vmatpush3.bf16.msra.mxu0 %v16313_v39 }
0x4bf8   :  { %13543 = vmatprep.subr.bf16.mxu0 %v14612_v1 }
0x4c5a   :  { %v10379_v41 = vpop.permute.xlu1 %10378 }
0x4c5b   :  { %v10381_v31 = vmul.f32 %v13989_v43, %v10379_v41  ;;  %v10407_v43 = vpop.permute.xlu0 %10406 }
0x4c5d   :  { %10387 = vrot.lane.b32.xlu1 %v10381_v31, %s14609_s13 }
0x4c5e   :  { %v10396_v36 = vpop.permute.xlu1 %10395 }
0x4c5f   :  { %v10398_v38 = vsel %vm532_vm1, %v10392_v20, %v10396_v36 }
0x4c61   :  { %10409 = vrot.lane.b32.xlu1 %v16225_v51, %s14609_s13 }
0x4c62   :  { %v10403_v56 = vpop.permute.xlu1 %10402 }
0x4c63   :  { %v10405_v49 = vsel %vm532_vm1, %v10400_v42, %v10403_v56 }
0x4cc5   :  { %v10630_v55 = vpop.f32.mrb[96].mxu0 }
0x4cc6   :  { %v13103_v57 = vpop.f32.mrb[97].mxu0 }
0x4ccf   :  { %v10388_v61 = vpop.permute.xlu1 %10387 }
0x4cd0   :  { %v10390_v19 = vsel %vm532_vm1, %v10384_v32, %v10388_v61 }
0x4cd1   :  { %v10444_v30 = vsel %vm9131_vm12, %v10390_v19, %v10398_v38 }
0x4cd2   :  { %v10445_v6 = vsel %vm9135_vm14, %v10444_v30, %v10405_v49 }
0x4cd3   :  { %v10410_v14 = vpop.permute.xlu1 %10409 }
0x4cd4   :  { %v10412_v51 = vsel %vm532_vm1, %v10407_v43, %v10410_v14 }
0x4cd5   :  { %v10446_v50 = vsel %vm9139_vm3, %v10445_v6, %v10412_v51 }
0x4cd6   :  { %12074 = vmatmul.mubr.msk.f32.vlgmr.msra.gmra.mrb[122].mxu1 %vm3009_vm9, %v10446_v50 }
0x4cd7   :  { %10553 = vmatprep.mubr.f32.mxu1 %v14599_v18  ;;  %13539 = vmatpush3.bf16.msra.mxu1 %v16305_v53 }
0x4cd8   :  { %13540 = vmatprep.subr.bf16.mxu1 %v14612_v1 }
0x4cdb   :  { %13542 = vmatpush3.bf16.msra.mxu1 %v16313_v39 }
0x4cdc   :  { %13549 = vmatprep.subr.bf16.mxu1 %v14612_v1 }
0x4da9   :  { %v10550_v34 = vpop.f32.mrb[122].mxu1 }
0x4daa   :  { %v16348_v59 = vadd.f32 %v10550_v34, %v16345_v48  ;;  %v10552_v26 = vpop.f32.mrb[123].mxu1 }
0x4dac   :  { %v10634_v23 = vadd.f32 %v10630_v55, %v16348_v59 }
0x4dae   :  { %13992 = vtanh.f32 %v10634_v23  ;;  %v10635_v62 = vsub.f32 0.0, %v10634_v23 }
0x4db0   :  { %v10636_v0 = vmul.f32 1.442695, %v10635_v62 }
0x4db2   :  { %13994 = vpow2.f32 %v10636_v0 }
0x4db8   :  { %v13993_v46 = vpop.eup %13992 }
0x4db9   :  { %10644 = vrot.lane.b32.xlu0 %v13993_v46, %s14609_s13 }
0x4dbc   :  { %v13995_v63 = vpop.eup %13994 }
0x4dbd   :  { %v10638_v35 = vadd.f32 1.0, %v13995_v63 }
0x4dbf   :  { %13996 = vrcp.f32 %v10638_v35 }
0x4dc9   :  { %v13997_v37 = vpop.eup %13996 }
0x4dca   :  { %v10642_v16 = vmul.f32 0.0, %v13997_v37 }
0x4e2b   :  { %v10645_v29 = vpop.permute.xlu0 %10644 }
0x4e2c   :  { %v10647_v52 = vmul.f32 %v13997_v37, %v10645_v29 }
0x4e2e   :  { %10649 = vrot.lane.b32.xlu1 %v10647_v52, %s14613_s14 }
0x4ea0   :  { %v10650_v9 = vpop.permute.xlu1 %10649 }
0x4ea1   :  { %v10652_v44 = vadd.f32 %v10650_v9, %v10642_v16 }
0x4ea3   :  { %13998 = vtanh.f32 %v10652_v44  ;;  %v10746_v6 = vrot.slane %v10652_v44, 6 }
0x4ea4   :  { %14000 = vtanh.f32 %v10323_v60 }
0x4ea5   :  { %14002 = vpow2.f32 %v10329_v13 }
0x4ead   :  { %v13999_v45 = vpop.eup %13998 }
0x4eae   :  { %10655 = vrot.lane.b32.xlu0 %v13999_v45, %s14609_s13  ;;  %v14001_v10 = vpop.eup %14000 }
0x4eaf   :  { %v14003_v28 = vpop.eup %14002 }
0x4eb0   :  { %v10331_v17 = vadd.f32 1.0, %v14003_v28 }
0x4eb2   :  { %10340 = vrot.lane.b32.xlu0 %v14001_v10, %s14609_s13  ;;  %14004 = vrcp.f32 %v10331_v17 }
0x4ebc   :  { %v14005_v22 = vpop.eup %14004 }
0x4ebd   :  { %v10338_v41 = vmul.f32 %v14005_v22, %v10336_v24 }
0x4f20   :  { %v10656_v5 = vpop.permute.xlu0 %10655 }
0x4f21   :  { %v10658_v27 = vmul.f32 %v13997_v37, %v10656_v5 }
0x4f23   :  { %10660 = vrot.lane.b32.xlu1 %v10658_v27, %s14613_s14 }
0x4f24   :  { %v10341_v7 = vpop.permute.xlu0 %10340 }
0x4f25   :  { %v10343_v11 = vmul.f32 %v14005_v22, %v10341_v7 }
0x4f27   :  { %10345 = vrot.lane.b32.xlu0 %v10343_v11, %s14613_s14 }
0x4f95   :  { %v10661_v25 = vpop.permute.xlu1 %10660 }
0x4f96   :  { %13113 = vmatmul.mubr.msk.f32.vlgmr.msra.gmra.mrb[98].mxu0 %vm532_vm1, %v10661_v25 }
0x4f97   :  { %13545 = vmatpush3.bf16.msra.mxu0 %v16305_v53  ;;  %13134 = vmatprep.mubr.msk.f32.mxu0 %vm14600_vm2, %v14599_v18 }
0x4f98   :  { %13546 = vmatprep.subr.bf16.mxu0 %v14612_v1 }
0x4f99   :  { %v10346_v31 = vpop.permute.xlu0 %10345 }
0x4f9a   :  { %v10348_v32 = vadd.f32 %v10346_v31, %v10338_v41 }
0x4f9b   :  { %13548 = vmatpush3.bf16.msra.mxu0 %v16313_v39 }
0x4f9c   :  { %14006 = vtanh.f32 %v10348_v32  ;;  %13555 = vmatprep.subr.bf16.mxu0 %v14612_v1 }
0x4fa6   :  { %v14007_v36 = vpop.eup %14006 }
0x4fa7   :  { %10351 = vrot.lane.b32.xlu0 %v14007_v36, %s14609_s13 }
0x4fab   :  { %10414 = vrot.lane.b32.xlu0 %v16227_v8, %s14613_s14 }
0x4faf   :  { %10421 = vrot.lane.b32.xlu0 %v16247_v54, %s14613_s14 }
0x4fb3   :  { %10429 = vrot.lane.b32.xlu0 %v16268_v2, %s14613_s14 }
0x5019   :  { %v10352_v21 = vpop.permute.xlu0 %10351 }
0x501a   :  { %v10354_v20 = vmul.f32 %v14005_v22, %v10352_v21 }
0x501c   :  { %10437 = vrot.lane.b32.xlu0 %v10354_v20, %s14613_s14 }
0x501d   :  { %v10415_v34 = vpop.permute.xlu0 %10414 }
0x5021   :  { %v10422_v0 = vpop.permute.xlu0 %10421 }
0x5025   :  { %v10430_v35 = vpop.permute.xlu0 %10429 }
0x5069   :  { %v10730_v56 = vpop.f32.mrb[98].mxu0 }
0x506a   :  { %v10735_v42 = vrot.slane %v10730_v56, 6  ;;  %v13114_v61 = vpop.f32.mrb[99].mxu0 }
0x506c   :  { %v10737_v38 = vadd.f32 %v10735_v42, %v16348_v59 }
0x506e   :  { %14008 = vtanh.f32 %v10737_v38  ;;  %v10738_v8 = vsub.f32 0.0, %v10737_v38 }
0x5070   :  { %v10739_v30 = vmul.f32 1.442695, %v10738_v8 }
0x5072   :  { %14010 = vpow2.f32 %v10739_v30 }
0x5078   :  { %v14009_v19 = vpop.eup %14008 }
0x5079   :  { %10750 = vrot.lane.b32.xlu1 %v14009_v19, %s14609_s13 }
0x507c   :  { %v14011_v54 = vpop.eup %14010 }
0x507d   :  { %v10741_v43 = vadd.f32 1.0, %v14011_v54 }
0x507f   :  { %14012 = vrcp.f32 %v10741_v43 }
0x5089   :  { %v14013_v2 = vpop.eup %14012 }
0x508a   :  { %v10748_v51 = vmul.f32 %v14013_v2, %v10746_v6 }
0x508e   :  { %v10438_v29 = vpop.permute.xlu0 %10437 }
0x50eb   :  { %v10751_v49 = vpop.permute.xlu1 %10750 }
0x50ec   :  { %v10753_v14 = vmul.f32 %v14013_v2, %v10751_v49 }
0x50ee   :  { %10755 = vrot.lane.b32.xlu1 %v10753_v14, %s14613_s14 }
0x5160   :  { %v10756_v50 = vpop.permute.xlu1 %10755 }
0x5161   :  { %v10758_v55 = vadd.f32 %v10756_v50, %v10748_v51 }
0x5163   :  { %14014 = vtanh.f32 %v10758_v55  ;;  %v10853_v41 = vrot.slane %v10758_v55, 6 }
0x516d   :  { %v14015_v57 = vpop.eup %14014 }
0x516e   :  { %10761 = vrot.lane.b32.xlu1 %v14015_v57, %s14609_s13 }
0x5172   :  { %10417 = vrot.lane.b32.xlu1 %v16206_v3, %s14609_s13 }
0x5176   :  { %10425 = vrot.lane.b32.xlu1 %v16184_v4, %s14609_s13 }
0x517a   :  { %10432 = vrot.lane.b32.xlu1 %v16162_v15, %s14609_s13 }
0x517e   :  { %10440 = vrot.lane.b32.xlu1 %v16138_v40, %s14609_s13 }
0x51e0   :  { %v10762_v26 = vpop.permute.xlu1 %10761 }
0x51e1   :  { %v10764_v23 = vmul.f32 %v14013_v2, %v10762_v26 }
0x51e3   :  { %v10766_v46 = vrot.slane %v10764_v23, 2 }
0x51e4   :  { %v10418_v62 = vpop.permute.xlu1 %10417 }
0x51e5   :  { %10767 = vrot.lane.b32.xlu0 %v10766_v46, %s14613_s14  ;;  %v10420_v15 = vsel %vm532_vm1, %v10415_v34, %v10418_v62 }
0x51e8   :  { %v10426_v63 = vpop.permute.xlu1 %10425 }
0x51e9   :  { %v10428_v37 = vsel %vm532_vm1, %v10422_v0, %v10426_v63 }
0x51ea   :  { %v10447_v40 = vsel %vm9131_vm12, %v10420_v15, %v10428_v37 }
0x51ec   :  { %v10433_v3 = vpop.permute.xlu1 %10432 }
0x51ed   :  { %v10435_v4 = vsel %vm532_vm1, %v10430_v35, %v10433_v3 }
0x51ee   :  { %v10448_v47 = vsel %vm9135_vm14, %v10447_v40, %v10435_v4 }
0x51f0   :  { %v10441_v52 = vpop.permute.xlu1 %10440 }
0x51f1   :  { %v10443_v16 = vsel %vm532_vm1, %v10438_v29, %v10441_v52 }
0x51f2   :  { %v10449_v9 = vsel %vm9139_vm3, %v10448_v47, %v10443_v16 }
0x51f3   :  { %12075 = vmatmul.mubr.msk.f32.gmra.mrb[124].mxu1 %vm3009_vm9, %v10449_v9 }
0x51f4   :  { %13123 = vmatprep.mubr.msk.f32.mxu1 %vm14600_vm2, %v14599_v18 }
0x5257   :  { %v10768_v44 = vpop.permute.xlu0 %10767 }
0x5258   :  { %13124 = vmatmul.mubr.msk.f32.vlgmr.msra.gmra.mrb[126].mxu1 %vm532_vm1, %v10768_v44 }
0x5259   :  { %13551 = vmatpush3.bf16.msra.mxu1 %v16305_v53  ;;  %13145 = vmatprep.mubr.msk.f32.mxu1 %vm14600_vm2, %v14599_v18 }
0x525a   :  { %13552 = vmatprep.subr.bf16.mxu1 %v14612_v1 }
0x525d   :  { %13554 = vmatpush3.bf16.msra.mxu1 %v16313_v39 }
0x525e   :  { %13561 = vmatprep.subr.bf16.mxu1 %v14612_v1 }
0x52c6   :  { %v16405_v60 = vpop.f32.mrb[124].mxu1 }
0x52c7   :  { %v16407_v45 = vpop.f32.mrb[125].mxu1  ;;  %v16435_v63 = vadd.f32 %v16405_v60, %v16345_v48 }
0x532b   :  { %v10837_v10 = vpop.f32.mrb[126].mxu1 }
0x532c   :  { %v10842_v12 = vrot.slane %v10837_v10, 4  ;;  %v13125_v13 = vpop.f32.mrb[127].mxu1 }
0x532e   :  { %v10844_v28 = vadd.f32 %v10842_v12, %v16348_v59 }
0x5330   :  { %14016 = vtanh.f32 %v10844_v28  ;;  %v10845_v5 = vsub.f32 0.0, %v10844_v28 }
0x5332   :  { %v10846_v27 = vmul.f32 1.442695, %v10845_v5 }
0x5334   :  { %14018 = vpow2.f32 %v10846_v27 }
0x533a   :  { %v14017_v17 = vpop.eup %14016 }
0x533b   :  { %10857 = vrot.lane.b32.xlu1 %v14017_v17, %s14609_s13 }
0x533e   :  { %v14019_v22 = vpop.eup %14018 }
0x533f   :  { %v10848_v7 = vadd.f32 1.0, %v14019_v22 }
0x5341   :  { %14020 = vrcp.f32 %v10848_v7 }
0x534b   :  { %v14021_v11 = vpop.eup %14020 }
0x534c   :  { %v10855_v31 = vmul.f32 %v14021_v11, %v10853_v41 }
0x53ad   :  { %v10858_v25 = vpop.permute.xlu1 %10857 }
0x53ae   :  { %v10860_v24 = vmul.f32 %v14021_v11, %v10858_v25 }
0x53b0   :  { %10862 = vrot.lane.b32.xlu0 %v10860_v24, %s14613_s14 }
0x5422   :  { %v10863_v32 = vpop.permute.xlu0 %10862 }
0x5423   :  { %v10865_v36 = vadd.f32 %v10863_v32, %v10855_v31 }
0x5425   :  { %14022 = vtanh.f32 %v10865_v36  ;;  %v10960_v55 = vrot.slane %v10865_v36, 6 }
0x542f   :  { %v14023_v21 = vpop.eup %14022 }
0x5430   :  { %10868 = vrot.lane.b32.xlu1 %v14023_v21, %s14609_s13 }
0x54a2   :  { %v10869_v20 = vpop.permute.xlu1 %10868 }
0x54a3   :  { %v10871_v56 = vmul.f32 %v14021_v11, %v10869_v20 }
0x54a5   :  { %v10873_v42 = vrot.slane %v10871_v56, 4 }
0x54a7   :  { %10874 = vrot.lane.b32.xlu0 %v10873_v42, %s14613_s14 }
0x5519   :  { %v10875_v61 = vpop.permute.xlu0 %10874 }
0x551a   :  { %13135 = vmatmul.mubr.msk.f32.vlgmr.msra.gmra.mrb[100].mxu0 %vm532_vm1, %v10875_v61 }
0x551b   :  { %13557 = vmatpush3.bf16.msra.mxu0 %v16305_v53  ;;  %13156 = vmatprep.mubr.msk.f32.mxu0 %vm14600_vm2, %v14599_v18 }
0x551c   :  { %13558 = vmatprep.subr.bf16.mxu0 %v14612_v1 }
0x551f   :  { %13560 = vmatpush3.bf16.msra.mxu0 %v16313_v39 }
0x5520   :  { %13567 = vmatprep.subr.bf16.mxu0 %v14612_v1 }
0x55ed   :  { %v10944_v38 = vpop.f32.mrb[100].mxu0 }
0x55ee   :  { %v10949_v19 = vrot.slane %v10944_v38, 2  ;;  %v13136_v8 = vpop.f32.mrb[101].mxu0 }
0x55f0   :  { %v10951_v30 = vadd.f32 %v10949_v19, %v16348_v59 }
0x55f2   :  { %14024 = vtanh.f32 %v10951_v30  ;;  %v10952_v43 = vsub.f32 0.0, %v10951_v30 }
0x55f4   :  { %v10953_v2 = vmul.f32 1.442695, %v10952_v43 }
0x55f6   :  { %14026 = vpow2.f32 %v10953_v2 }
0x55fc   :  { %v14025_v54 = vpop.eup %14024 }
0x55fd   :  { %10964 = vrot.lane.b32.xlu1 %v14025_v54, %s14609_s13 }
0x5600   :  { %v14027_v49 = vpop.eup %14026 }
0x5601   :  { %v10955_v14 = vadd.f32 1.0, %v14027_v49 }
0x5603   :  { %14028 = vrcp.f32 %v10955_v14 }
0x560d   :  { %v14029_v6 = vpop.eup %14028 }
0x560e   :  { %v10962_v57 = vmul.f32 %v14029_v6, %v10960_v55 }
0x566f   :  { %v10965_v51 = vpop.permute.xlu1 %10964 }
0x5670   :  { %v10967_v50 = vmul.f32 %v14029_v6, %v10965_v51 }
0x5672   :  { %10969 = vrot.lane.b32.xlu0 %v10967_v50, %s14613_s14 }
0x56e4   :  { %v10970_v34 = vpop.permute.xlu0 %10969 }
0x56e5   :  { %v10972_v26 = vadd.f32 %v10970_v34, %v10962_v57 }
0x56e7   :  { %14030 = vtanh.f32 %v10972_v26  ;;  %v11064_v48 = vrot.slane %v10972_v26, 6 }
0x56f1   :  { %v14031_v59 = vpop.eup %14030 }
0x56f2   :  { %10975 = vrot.lane.b32.xlu1 %v14031_v59, %s14609_s13 }
0x5764   :  { %v10976_v23 = vpop.permute.xlu1 %10975 }
0x5765   :  { %v10978_v46 = vmul.f32 %v14029_v6, %v10976_v23 }
0x5767   :  { %v10980_v62 = vrot.slane %v10978_v46, 6 }
0x5769   :  { %10981 = vrot.lane.b32.xlu0 %v10980_v62, %s14613_s14 }
0x57db   :  { %v10982_v0 = vpop.permute.xlu0 %10981 }
0x57dc   :  { %13146 = vmatmul.mubr.msk.f32.vlgmr.msra.gmra.mrb[128].mxu1 %vm532_vm1, %v10982_v0  ;;  %v10475_v0 = vrot.slane %v16341_v58, %v14988_v33 }
0x57dd   :  { %13563 = vmatpush3.bf16.msra.mxu1 %v16305_v53  ;;  %13167 = vmatprep.mubr.msk.f32.mxu1 %vm14600_vm2, %v14599_v18 }
0x57de   :  { %13564 = vmatprep.subr.bf16.mxu1 %v14612_v1 }
0x57e1   :  { %13566 = vmatpush3.bf16.msra.mxu1 %v16313_v39 }
0x57e2   :  { %13573 = vmatprep.subr.bf16.mxu1 %v14612_v1 }
0x58af   :  { %v11051_v35 = vpop.f32.mrb[128].mxu1 }
0x58b0   :  { %v11055_v3 = vadd.f32 %v11051_v35, %v16435_v63  ;;  %v13147_v37 = vpop.f32.mrb[129].mxu1  ;;  %v10558_v35 = vadd.f32 %v16407_v45, %v10475_v0 }
0x58b2   :  { %14032 = vtanh.f32 %v11055_v3  ;;  %v11056_v15 = vsub.f32 0.0, %v11055_v3 }
0x58b4   :  { %v11057_v29 = vmul.f32 1.442695, %v11056_v15 }
0x58b6   :  { %14034 = vpow2.f32 %v11057_v29  ;;  %v11403_v29 = vsub.f32 0.0, %v10558_v35 }
0x58bc   :  { %v14033_v4 = vpop.eup %14032 }
0x58bd   :  { %11068 = vrot.lane.b32.xlu1 %v14033_v4, %s14609_s13 }
0x58c0   :  { %v14035_v40 = vpop.eup %14034 }
0x58c1   :  { %v11059_v52 = vadd.f32 1.0, %v14035_v40  ;;  %v11404_v40 = vmul.f32 1.442695, %v11403_v29  ;;  %v11616_v29 = vld [vmem:[%s16584_s20 + $0x8] sm:$0xff] }
0x58c3   :  { %14036 = vrcp.f32 %v11059_v52 }
0x58cd   :  { %v14037_v47 = vpop.eup %14036 }
0x58ce   :  { %v11066_v44 = vmul.f32 %v14037_v47, %v11064_v48 }
0x592f   :  { %v11069_v16 = vpop.permute.xlu1 %11068 }
0x5930   :  { %v11071_v9 = vmul.f32 %v14037_v47, %v11069_v16 }
0x5932   :  { %11073 = vrot.lane.b32.xlu0 %v11071_v9, %s14613_s14 }
0x59a4   :  { %v11074_v60 = vpop.permute.xlu0 %11073 }
0x59a5   :  { %v11076_v10 = vadd.f32 %v11074_v60, %v11066_v44 }
0x59a7   :  { %14038 = vtanh.f32 %v11076_v10  ;;  %v11170_v36 = vrot.slane %v11076_v10, 6 }
0x59b1   :  { %v14039_v12 = vpop.eup %14038 }
0x59b2   :  { %11079 = vrot.lane.b32.xlu1 %v14039_v12, %s14609_s13 }
0x5a24   :  { %v11080_v13 = vpop.permute.xlu1 %11079 }
0x5a25   :  { %v11082_v28 = vmul.f32 %v14037_v47, %v11080_v13 }
0x5a27   :  { %11084 = vrot.lane.b32.xlu0 %v11082_v28, %s14613_s14 }
0x5a99   :  { %v11085_v17 = vpop.permute.xlu0 %11084 }
0x5a9a   :  { %13157 = vmatmul.mubr.msk.f32.vlgmr.msra.gmra.mrb[102].mxu0 %vm532_vm1, %v11085_v17 }
0x5a9b   :  { %13569 = vmatpush3.bf16.msra.mxu0 %v16305_v53  ;;  %13178 = vmatprep.mubr.msk.f32.mxu0 %vm14600_vm2, %v14599_v18 }
0x5a9c   :  { %13570 = vmatprep.subr.bf16.mxu0 %v14612_v1 }
0x5a9f   :  { %13572 = vmatpush3.bf16.msra.mxu0 %v16313_v39 }
0x5aa0   :  { %13585 = vmatprep.subr.bf16.mxu0 %v14612_v1 }
0x5b6d   :  { %v11154_v5 = vpop.f32.mrb[102].mxu0 }
0x5b6e   :  { %v11159_v27 = vrot.slane %v11154_v5, 6  ;;  %v13158_v22 = vpop.f32.mrb[103].mxu0 }
0x5b70   :  { %v11161_v7 = vadd.f32 %v11159_v27, %v16435_v63 }
0x5b72   :  { %14040 = vtanh.f32 %v11161_v7  ;;  %v11162_v25 = vsub.f32 0.0, %v11161_v7 }
0x5b74   :  { %v11163_v53 = vmul.f32 1.442695, %v11162_v25 }
0x5b76   :  { %14042 = vpow2.f32 %v11163_v53 }
0x5b7c   :  { %v14041_v11 = vpop.eup %14040 }
0x5b7d   :  { %11174 = vrot.lane.b32.xlu1 %v14041_v11, %s14609_s13 }
0x5b80   :  { %v14043_v24 = vpop.eup %14042 }
0x5b81   :  { %v11165_v41 = vadd.f32 1.0, %v14043_v24 }
0x5b83   :  { %14044 = vrcp.f32 %v11165_v41 }
0x5b8d   :  { %v14045_v31 = vpop.eup %14044 }
0x5b8e   :  { %v11172_v21 = vmul.f32 %v14045_v31, %v11170_v36  ;;  %v11436_v36 = vld [vmem:[#allocation28] sm:$0xff] }
0x5bef   :  { %v11175_v32 = vpop.permute.xlu1 %11174 }
0x5bf0   :  { %v11177_v39 = vmul.f32 %v14045_v31, %v11175_v32 }
0x5bf2   :  { %11179 = vrot.lane.b32.xlu0 %v11177_v39, %s14613_s14 }
0x5c64   :  { %v11180_v20 = vpop.permute.xlu0 %11179 }
0x5c65   :  { %v11182_v56 = vadd.f32 %v11180_v20, %v11172_v21  ;;  %v11437_v21 = vld [vmem:[#allocation28 + $0x8] sm:$0xff]  ;;  %v11438_v20 = vld [vmem:[#allocation28 + $0x10] sm:$0xff] }
0x5c67   :  { %14046 = vtanh.f32 %v11182_v56  ;;  %v11277_v26 = vrot.slane %v11182_v56, 6  ;;  %v13574_v56 = vpack.c.bf16 %v11437_v21, %v11436_v36 }
0x5c71   :  { %v14047_v42 = vpop.eup %14046 }
0x5c72   :  { %11185 = vrot.lane.b32.xlu1 %v14047_v42, %s14609_s13  ;;  %v11439_v42 = vld [vmem:[#allocation28 + $0x18] sm:$0xff] }
0x5ce4   :  { %v11186_v61 = vpop.permute.xlu1 %11185 }
0x5ce5   :  { %v11188_v38 = vmul.f32 %v14045_v31, %v11186_v61  ;;  %v13577_v61 = vpack.c.bf16 %v11439_v42, %v11438_v20 }
0x5ce7   :  { %v11190_v19 = vrot.slane %v11188_v38, 2  ;;  %v11440_v38 = vld [vmem:[#allocation28 + $0x20] sm:$0xff] }
0x5ce9   :  { %11191 = vrot.lane.b32.xlu0 %v11190_v19, %s14613_s14  ;;  %v11441_v19 = vld [vmem:[#allocation28 + $0x28] sm:$0xff] }
0x5d5b   :  { %v11192_v8 = vpop.permute.xlu0 %11191 }
0x5d5c   :  { %13168 = vmatmul.mubr.msk.f32.vlgmr.msra.gmra.mrb[130].mxu1 %vm532_vm1, %v11192_v8  ;;  %v13580_v8 = vpack.c.bf16 %v11441_v19, %v11440_v38 }
0x5d5d   :  { %13197 = vmatprep.mubr.msk.f32.mxu1 %vm14600_vm2, %v14599_v18  ;;  %13575 = vmatpush3.bf16.msra.mxu1 %v13574_v56 }
0x5d5e   :  { %13576 = vmatprep.subr.bf16.mxu1 %v14612_v1 }
0x5d61   :  { %13578 = vmatpush3.bf16.msra.mxu1 %v13577_v61 }
0x5d62   :  { %13579 = vmatprep.subr.bf16.mxu1 %v14612_v1 }
0x5d65   :  { %13581 = vmatpush3.bf16.msra.mxu1 %v13580_v8 }
0x5d66   :  { %13582 = vmatprep.subr.bf16.mxu1 %v14612_v1 }
0x5e2f   :  { %v11261_v30 = vpop.f32.mrb[130].mxu1 }
0x5e30   :  { %v11266_v54 = vrot.slane %v11261_v30, 4  ;;  %v13169_v43 = vpop.f32.mrb[131].mxu1 }
0x5e31   :  { %v11443_v43 = vld [vmem:[#allocation28 + $0x38] sm:$0xff] }
0x5e32   :  { %v11268_v2 = vadd.f32 %v11266_v54, %v16435_v63  ;;  %v11442_v54 = vld [vmem:[#allocation28 + $0x30] sm:$0xff] }
0x5e34   :  { %14048 = vtanh.f32 %v11268_v2  ;;  %v11269_v14 = vsub.f32 0.0, %v11268_v2  ;;  %v13583_v2 = vpack.c.bf16 %v11443_v43, %v11442_v54 }
0x5e36   :  { %v11270_v6 = vmul.f32 1.442695, %v11269_v14  ;;  %13584 = vmatpush3.bf16.msra.mxu1 %v13583_v2 }
0x5e37   :  { %13597 = vmatprep.subr.bf16.mxu1 %v14612_v1 }
0x5e38   :  { %14050 = vpow2.f32 %v11270_v6  ;;  %v11526_v6 = vld [vmem:[%s16583_s25] sm:$0xff] }
0x5e3e   :  { %v14049_v49 = vpop.eup %14048 }
0x5e3f   :  { %11281 = vrot.lane.b32.xlu1 %v14049_v49, %s14609_s13 }
0x5e42   :  { %v14051_v51 = vpop.eup %14050 }
0x5e43   :  { %v11272_v50 = vadd.f32 1.0, %v14051_v51  ;;  %v11527_v51 = vld [vmem:[%s16583_s25 + $0x8] sm:$0xff] }
0x5e45   :  { %14052 = vrcp.f32 %v11272_v50  ;;  %v11528_v50 = vld [vmem:[%s16583_s25 + $0x10] sm:$0xff] }
0x5e4f   :  { %v14053_v55 = vpop.eup %14052 }
0x5e50   :  { %v11279_v59 = vmul.f32 %v14053_v55, %v11277_v26  ;;  %v11530_v26 = vld [vmem:[%s16583_s25 + $0x20] sm:$0xff] }
0x5eb1   :  { %v11282_v57 = vpop.permute.xlu1 %11281 }
0x5eb2   :  { %v11284_v34 = vmul.f32 %v14053_v55, %v11282_v57  ;;  %v11529_v57 = vld [vmem:[%s16583_s25 + $0x18] sm:$0xff] }
0x5eb4   :  { %11286 = vrot.lane.b32.xlu0 %v11284_v34, %s14613_s14  ;;  %v13589_v34 = vpack.c.bf16 %v11529_v57, %v11528_v50 }
0x5f26   :  { %v11287_v23 = vpop.permute.xlu0 %11286 }
0x5f27   :  { %v11289_v46 = vadd.f32 %v11287_v23, %v11279_v59  ;;  %v11531_v59 = vld [vmem:[%s16583_s25 + $0x28] sm:$0xff] }
0x5f28   :  { %v13592_v23 = vpack.c.bf16 %v11531_v59, %v11530_v26 }
0x5f29   :  { %14054 = vtanh.f32 %v11289_v46 }
0x5f2a   :  { %14056 = vtanh.f32 %v10558_v35 }
0x5f2b   :  { %14058 = vpow2.f32 %v11404_v40 }
0x5f33   :  { %v14055_v62 = vpop.eup %14054 }
0x5f34   :  { %11292 = vrot.lane.b32.xlu1 %v14055_v62, %s14609_s13  ;;  %v14057_v15 = vpop.eup %14056 }
0x5f35   :  { %v14059_v52 = vpop.eup %14058 }
0x5f36   :  { %v11406_v47 = vadd.f32 1.0, %v14059_v52  ;;  %v12083_v52 = vld [vmem:[#allocation30] ss:$0 sm:$0xff] }
0x5f38   :  { %14060 = vrcp.f32 %v11406_v47  ;;  %v11710_v47 = vld [vmem:[%s14798_s3] sm:$0xff] }
0x5f42   :  { %v14061_v33 = vpop.eup %14060 }
0x5f43   :  { %v11410_v9 = vmul.f32 0.0, %v14061_v33 }
0x5fa6   :  { %v11293_v3 = vpop.permute.xlu1 %11292 }
0x5fa7   :  { %v11295_v37 = vmul.f32 %v14053_v55, %v11293_v3  ;;  %v13586_v55 = vpack.c.bf16 %v11527_v51, %v11526_v6  ;;  %v11532_v3 = vld [vmem:[%s16583_s25 + $0x30] sm:$0xff] }
0x5fa9   :  { %v11297_v4 = vrot.slane %v11295_v37, 4  ;;  %v11533_v37 = vld [vmem:[%s16583_s25 + $0x38] sm:$0xff] }
0x5fab   :  { %11298 = vrot.lane.b32.xlu0 %v11297_v4, %s14613_s14  ;;  %v13595_v4 = vpack.c.bf16 %v11533_v37, %v11532_v3 }
0x5faf   :  { %11412 = vrot.lane.b32.xlu0 %v14057_v15, %s14609_s13  ;;  %v11615_v15 = vld [vmem:[%s16584_s20] sm:$0xff] }
0x5fb0   :  { %v13598_v40 = vpack.c.bf16 %v11616_v29, %v11615_v15 }
0x601d   :  { %v11299_v16 = vpop.permute.xlu0 %11298 }
0x601e   :  { %13179 = vmatmul.mubr.msk.f32.vlgmr.msra.gmra.mrb[104].mxu0 %vm532_vm1, %v11299_v16  ;;  %v11711_v16 = vld [vmem:[%s14798_s3 + $0x8] sm:$0xff] }
0x601f   :  { %13216 = vmatprep.mubr.msk.f32.mxu0 %vm14600_vm2, %v14599_v18  ;;  %13587 = vmatpush3.bf16.msra.mxu0 %v13586_v55 }
0x6020   :  { %13588 = vmatprep.subr.bf16.mxu0 %v14612_v1 }
0x6021   :  { %v11413_v58 = vpop.permute.xlu0 %11412 }
0x6022   :  { %v11415_v45 = vmul.f32 %v14061_v33, %v11413_v58 }
0x6023   :  { %13590 = vmatpush3.bf16.msra.mxu0 %v13589_v34 }
0x6024   :  { %11417 = vrot.lane.b32.xlu0 %v11415_v45, %s14613_s14  ;;  %13591 = vmatprep.subr.bf16.mxu0 %v14612_v1 }
0x6027   :  { %13593 = vmatpush3.bf16.msra.mxu0 %v13592_v23 }
0x6028   :  { %13594 = vmatprep.subr.bf16.mxu0 %v14612_v1 }
0x602b   :  { %13596 = vmatpush3.bf16.msra.mxu0 %v13595_v4 }
0x602c   :  { %13603 = vmatprep.subr.bf16.mxu0 %v14612_v1 }
0x6096   :  { %v11418_v48 = vpop.permute.xlu0 %11417 }
0x6097   :  { %v11420_v44 = vadd.f32 %v11418_v48, %v11410_v9  ;;  %v13604_v9 = vpack.c.bf16 %v11711_v16, %v11710_v47 }
0x6099   :  { %14062 = vtanh.f32 %v11420_v44  ;;  %v11712_v44 = vld [vmem:[%s14798_s3 + $0x10] sm:$0xff] }
0x60a3   :  { %v14063_v60 = vpop.eup %14062 }
0x60a4   :  { %11423 = vrot.lane.b32.xlu0 %v14063_v60, %s14609_s13  ;;  %v11713_v60 = vld [vmem:[%s14798_s3 + $0x18] sm:$0xff] }
0x60f1   :  { %v11368_v10 = vpop.f32.mrb[104].mxu0 }
0x60f2   :  { %v11373_v12 = vrot.slane %v11368_v10, 2  ;;  %v13180_v13 = vpop.f32.mrb[105].mxu0  ;;  %v13607_v10 = vpack.c.bf16 %v11713_v60, %v11712_v44 }
0x60f3   :  { %v11715_v13 = vld [vmem:[%s14798_s3 + $0x28] sm:$0xff] }
0x60f4   :  { %v11375_v28 = vadd.f32 %v11373_v12, %v16435_v63  ;;  %v11384_v63 = vrot.slane %v11289_v46, 6  ;;  %v11714_v12 = vld [vmem:[%s14798_s3 + $0x20] sm:$0xff] }
0x60f6   :  { %14064 = vtanh.f32 %v11375_v28  ;;  %v11376_v22 = vsub.f32 0.0, %v11375_v28  ;;  %v13610_v28 = vpack.c.bf16 %v11715_v13, %v11714_v12 }
0x60f8   :  { %v11377_v7 = vmul.f32 1.442695, %v11376_v22  ;;  %v11618_v22 = vld [vmem:[%s16584_s20 + $0x18] sm:$0xff] }
0x60fa   :  { %14066 = vpow2.f32 %v11377_v7 }
0x6100   :  { %v14065_v17 = vpop.eup %14064 }
0x6101   :  { %11388 = vrot.lane.b32.xlu1 %v14065_v17, %s14609_s13  ;;  %v11716_v17 = vld [vmem:[%s14798_s3 + $0x30] sm:$0xff] }
0x6104   :  { %v14067_v11 = vpop.eup %14066 }
0x6105   :  { %v11379_v25 = vadd.f32 1.0, %v14067_v11  ;;  %v12085_v11 = vld [vmem:[#allocation31] ss:$0 sm:$0xff] }
0x6107   :  { %14068 = vrcp.f32 %v11379_v25 }
0x6111   :  { %v14069_v53 = vpop.eup %14068 }
0x6112   :  { %v11386_v31 = vmul.f32 %v14069_v53, %v11384_v63  ;;  %v12089_v63 = vld [vmem:[%s14803_s17] ss:$0 sm:$0xff] }
0x6116   :  { %v11424_v5 = vpop.permute.xlu0 %11423 }
0x6117   :  { %v11426_v27 = vmul.f32 %v14061_v33, %v11424_v5  ;;  %v11717_v5 = vld [vmem:[%s14798_s3 + $0x38] sm:$0xff] }
0x6119   :  { %11432 = vrot.lane.b32.xlu0 %v11426_v27, %s14609_s13  ;;  %v13613_v27 = vpack.c.bf16 %v11717_v5, %v11716_v17 }
0x6173   :  { %v11389_v24 = vpop.permute.xlu1 %11388 }
0x6174   :  { %v11391_v41 = vmul.f32 %v14069_v53, %v11389_v24 }
0x6176   :  { %11393 = vrot.lane.b32.xlu1 %v11391_v41, %s14613_s14 }
0x618b   :  { %v11433_v46 = vpop.permute.xlu0 %11432 }
0x61e8   :  { %v11394_v32 = vpop.permute.xlu1 %11393 }
0x61e9   :  { %v11396_v39 = vadd.f32 %v11394_v32, %v11386_v31 }
0x61eb   :  { %14070 = vtanh.f32 %v11396_v39 }
0x61f5   :  { %v14071_v30 = vpop.eup %14070 }
0x61f6   :  { %11399 = vrot.lane.b32.xlu1 %v14071_v30, %s14609_s13 }
0x6268   :  { %v11400_v49 = vpop.permute.xlu1 %11399 }
0x6269   :  { %v11402_v14 = vmul.f32 %v14069_v53, %v11400_v49 }
0x626b   :  { %11428 = vrot.lane.b32.xlu1 %v11402_v14, %s14613_s14 }
0x62dd   :  { %v11429_v62 = vpop.permute.xlu1 %11428 }
0x62de   :  { %v11435_v0 = vsel %vm532_vm1, %v11429_v62, %v11433_v46 }
0x62df   :  { %v11452_v35 = vrot.slane %v11435_v0, 6 }
0x62e1   :  { %11799 = vrot.lane.b32.xlu0 %v11452_v35, %s14614_s22  ;;  %13198 = vmatmul.mubr.msk.f32.vlgmr.msra.gmra.mrb[132].mxu1 %vm3009_vm9, %v11452_v35 }
0x62e2   :  { %13227 = vmatprep.mubr.msk.f32.mxu1 %vm14600_vm2, %v14599_v18  ;;  %13599 = vmatpush3.bf16.msra.mxu1 %v13598_v40 }
0x62e3   :  { %13600 = vmatprep.subr.bf16.mxu1 %v14612_v1 }
0x6353   :  { %v11800_v6 = vpop.permute.xlu0 %11799 }
0x63b4   :  { %v11521_v33 = vpop.f32.mrb[132].mxu1 }
0x63b5   :  { %v11522_v58 = vadd.f32 %v12083_v52, %v11521_v33  ;;  %v13199_v45 = vpop.f32.mrb[133].mxu1 }
0x63b7   :  { %v11525_v48 = vmax.f32 %v11522_v58, 0.0 }
0x63b9   :  { %13217 = vmatmul.mubr.msk.f32.vlgmr.msra.gmra.mrb[106].mxu0 %vm3009_vm9, %v11525_v48 }
0x63ba   :  { %13605 = vmatpush3.bf16.msra.mxu0 %v13604_v9  ;;  %13246 = vmatprep.mubr.msk.f32.mxu0 %vm14600_vm2, %v14599_v18  ;;  %v11617_v18 = vld [vmem:[%s16584_s20 + $0x10] sm:$0xff] }
0x63bb   :  { %13606 = vmatprep.subr.bf16.mxu0 %v14612_v1  ;;  %v13601_v7 = vpack.c.bf16 %v11618_v22, %v11617_v18 }
0x63bd   :  { %13602 = vmatpush3.bf16.msra.mxu1 %v13601_v7 }
0x63be   :  { %13608 = vmatpush3.bf16.msra.mxu0 %v13607_v10 }
0x63bf   :  { %13609 = vmatprep.subr.bf16.mxu0 %v14612_v1 }
0x63c2   :  { %13611 = vmatpush3.bf16.msra.mxu0 %v13610_v28 }
0x63c3   :  { %13612 = vmatprep.subr.bf16.mxu0 %v14612_v1  ;;  %v12087_v1 = vld [vmem:[%s14793_s5] ss:$0 sm:$0xff] }
0x63c6   :  { %13614 = vmatpush3.bf16.msra.mxu0 %v13613_v27 }
0x63c9   :  { %13247 = vmatmul.mubr.msk.f32.vlgmr.msra.gmra.mrb[108].mxu0 %vm3009_vm9, %v11452_v35 }
0x648c   :  { %v11610_v25 = vpop.f32.mrb[106].mxu0 }
0x648d   :  { %v11611_v53 = vadd.f32 %v12085_v11, %v11610_v25  ;;  %v13218_v24 = vpop.f32.mrb[107].mxu0 }
0x648f   :  { %v11614_v41 = vmax.f32 %v11611_v53, 0.0 }
0x6491   :  { %13228 = vmatmul.mubr.msk.f32.vlgmr.msra.gmra.mrb[134].mxu1 %vm532_vm1, %v11614_v41  ;;  %vm11802_vm1 = vcmask 31744  }
0x649c   :  { %v11791_v31 = vpop.f32.mrb[108].mxu0 }
0x649d   :  { %v11792_v32 = vadd.f32 %v12089_v63, %v11791_v31  ;;  %v13248_v39 = vpop.f32.mrb[109].mxu0 }
0x649f   :  { %11796 = vrot.lane.b32.xlu1 %v11792_v32, %s14588_s24 }
0x6511   :  { %v11797_v49 = vpop.permute.xlu1 %11796 }
0x6564   :  { %v11695_v36 = vpop.f32.mrb[134].mxu1 }
0x6565   :  { %v11696_v21 = vadd.f32 %v12087_v1, %v11695_v36  ;;  %v13229_v20 = vpop.f32.mrb[135].mxu1 }
0x6567   :  { %v11701_v56 = vand.u32 2147483647, %v11696_v21  ;;  %v11700_v30 = vmax.f32 %v11696_v21, 0.0  ;;  %vm11699_vm2 = vcmp.gt.f32.partialorder %v11696_v21, 20.0 }
0x6569   :  { %v11702_v42 = vsub.f32 0.0, %v11701_v56 }
0x656b   :  { %v11703_v61 = vmul.f32 1.442695, %v11702_v42 }
0x656d   :  { %14072 = vpow2.f32 %v11703_v61 }
0x6577   :  { %v14073_v38 = vpop.eup %14072 }
0x6578   :  { %v11705_v19 = vadd.f32 1.0, %v14073_v38 }
0x657a   :  { %14074 = vlog2.f32 %v11705_v19 }
0x6584   :  { %v14075_v8 = vpop.eup %14074 }
0x6585   :  { %v11707_v54 = vmul.f32 0.6931472, %v14075_v8 }
0x6587   :  { %v11708_v43 = vadd.f32 %v11707_v54, %v11700_v30 }
0x6589   :  { %v11709_v2 = vsel %vm11699_vm2, %v11696_v21, %v11708_v43 }
0x658a   :  { %v11803_v14 = vsel %vm11802_vm1, %v11696_v21, %v11709_v2 }
0x658b   :  { %v11804_v51 = vsel %vm421_vm0, %v11803_v14, %v11797_v49 }
0x658c   :  { %v11805_v50 = vsel %vm1374_vm5, %v11804_v51, %v11800_v6 }
0x658d   :  { %11807 = vst.msk [vmem:[%s14808_s4] sm:$0x3] %vm11806_vm6, %v11805_v50 }
0x658e   :  { %11812 = vsyncpa [#allocation3], 1 }
0x658f   :  { %11813 = vsyncpa [#allocation5], 1 }
0x6590   :  { %11814 = vsyncpa [#allocation8], 1 }
0x6591   :  { %11815 = vsyncpa [#allocation11], 1 }
0x6592   :  { %11816 = vsyncpa [#allocation14], 1 }
0x6593   :  { %11817 = vsyncpa [#allocation17], 1 }
0x6594   :  { %11818 = vsyncpa [#allocation20], 1 }
0x6595   :  { %11819 = vsyncpa [#allocation23], 1 }
0x6596   :  { %11820 = vsyncpa [#allocation26], 1 }
0x6597   :  { %11821 = vsyncpa [#allocation29], 1 }
0x6598   :  { %11822 = vsyncpa [#allocation32], 1 }

</bundles_post_ra>
